<compile_context>
chip_gen: v7x
topology: tpu7x:2x2x1
jax: 0.10.0
libtpu: 0.0.40
codegen_flags: <defaults>
</compile_context>

<pallas_src>
import jax
import jax.numpy as jnp
from jax.experimental import pallas as pl
from jax.experimental.pallas import tpu as pltpu

_PAD_X0 = 8  # sublane-aligned column where the real image starts in the padded scratch


# ----------------- in-kernel building blocks (all on VMEM-resident values) -----

def _conv3x3_bias_relu(a, w_ref, b_ref, pad_ref, H, W):
    """3x3 'same' conv + bias + ReLU on one image.

    a:       (H*W, Cin) activation value (spatial-major rows, channels on lanes)
    w_ref:   (9, Cin, Cout) conv taps (HWIO flattened on the leading axis)
    b_ref:   (1, Cout)
    pad_ref: VMEM scratch (H+2, W+16, Cin) used as the zero-padded image
    """
    HW, Cin = a.shape
    Cout = w_ref.shape[-1]
    # in-kernel zero padding: memset the scratch, copy the image into its interior
    pad_ref[...] = jnp.zeros(pad_ref.shape, jnp.float32)
    pad_ref[1:H + 1, _PAD_X0:_PAD_X0 + W, :] = a.reshape(H, W, Cin)
    xp = pad_ref[...]                                      # (H+2, W+16, Cin)

    acc = jnp.zeros((HW, Cout), dtype=jnp.float32)
    for ky in range(3):
        for kx in range(3):
            patch = xp[ky:ky + H, _PAD_X0 - 1 + kx:_PAD_X0 - 1 + kx + W, :]
            acc = acc + jnp.dot(patch.reshape(HW, Cin), w_ref[3 * ky + kx],
                                preferred_element_type=jnp.float32)
    acc = acc + b_ref[...]                                 # (1, Cout) broadcasts
    return jnp.maximum(acc, 0.0)                           # fused ReLU


def _maxpool_2x2(a, H, W):
    """2x2 / stride-2 max pool of a (H*W, C) activation -> ((H//2)*(W//2), C)."""
    HW, _ = a.shape
    W2 = W // 2
    HWo = HW // 4
    dst = jax.lax.broadcasted_iota(jnp.int32, (HWo, HW), 0)   # destination flat index
    src = jax.lax.broadcasted_iota(jnp.int32, (HWo, HW), 1)   # source flat index
    yo = dst >> (W2.bit_length() - 1)                         # W2 is a power of two
    xo = dst & (W2 - 1)
    out = None
    for dy in (0, 1):
        for dx in (0, 1):
            sel = (src == (2 * yo + dy) * W + 2 * xo + dx).astype(jnp.float32)
            v = jnp.dot(sel, a, preferred_element_type=jnp.float32)
            out = v if out is None else jnp.maximum(out, v)
    return out


def _upsample_nearest_2x(a, H, W):
    """Nearest-neighbour x2 upsample of a (H*W, C) activation -> (4*H*W, C)."""
    HW, _ = a.shape
    Wo = 2 * W
    HWo = 4 * HW
    dst = jax.lax.broadcasted_iota(jnp.int32, (HWo, HW), 0)
    src = jax.lax.broadcasted_iota(jnp.int32, (HWo, HW), 1)
    yo = dst >> (Wo.bit_length() - 1)                         # Wo is a power of two
    xo = dst & (Wo - 1)
    sel = (src == (yo >> 1) * W + (xo >> 1)).astype(jnp.float32)
    return jnp.dot(sel, a, preferred_element_type=jnp.float32)


# ----------------- fused whole-network kernel ----------------------------------

def _make_fused_kernel(H, W):
    H2, W2 = H // 2, W // 2
    H4, W4 = H // 4, W // 4

    def kernel(x_ref, w1, b1, w2, b2, w3, b3, w4, b4, w5, b5, o_ref,
               pad1, pad2, pad3, pad4, pad5):
        a = x_ref[0]                                           # (H*W, C0)
        # encoder: Conv -> MaxPool -> ReLU (ReLU fused into conv; commutes with pool)
        a = _conv3x3_bias_relu(a, w1, b1, pad1, H, W)          # (H*W, 16)
        a = _maxpool_2x2(a, H, W)                              # (H2*W2, 16)
        a = _conv3x3_bias_relu(a, w2, b2, pad2, H2, W2)        # (H2*W2, 8)
        a = _maxpool_2x2(a, H2, W2)                            # (H4*W4, 8)
        # decoder: Upsample -> Conv -> ReLU, Upsample -> Conv -> ReLU, Conv -> ReLU
        a = _upsample_nearest_2x(a, H4, W4)                    # (H2*W2, 8)
        a = _conv3x3_bias_relu(a, w3, b3, pad3, H2, W2)        # (H2*W2, 8)
        a = _upsample_nearest_2x(a, H2, W2)                    # (H*W, 8)
        a = _conv3x3_bias_relu(a, w4, b4, pad4, H, W)          # (H*W, 16)
        a = _conv3x3_bias_relu(a, w5, b5, pad5, H, W)          # (H*W, C0)
        o_ref[...] = a.reshape(1, *a.shape).astype(o_ref.dtype)

    return kernel


@jax.jit
def conv_autoencoder_f2(params, x_nchw):
    N, C0, H, W = x_nchw.shape
    assert H % 4 == 0 and W % 4 == 0
    assert (H & (H - 1)) == 0 and (W & (W - 1)) == 0, "spatial dims must be powers of two"
    HW = H * W

    # NCHW -> (N, H*W, C): channels on the lane axis inside the kernel
    x_hwc = jnp.transpose(x_nchw, (0, 2, 3, 1)).reshape(N, HW, C0)

    layer_cfg = [                      # (name, Cin, Cout, h, w) in execution order
        ("enc1", C0, 16, H, W),
        ("enc2", 16, 8, H // 2, W // 2),
        ("dec1", 8, 8, H // 2, W // 2),
        ("dec2", 8, 16, H, W),
        ("dec3", 16, C0, H, W),
    ]

    flat_params = []
    in_specs = [pl.BlockSpec((1, HW, C0), lambda n: (n, 0, 0))]
    scratch_shapes = []
    for name, cin, cout, h, w in layer_cfg:
        w_hwio, b = params[name]                          # (3,3,Cin,Cout), (Cout,)
        flat_params += [w_hwio.reshape(9, cin, cout), b.reshape(1, cout)]
        in_specs += [
            pl.BlockSpec((9, cin, cout), lambda n: (0, 0, 0)),
            pl.BlockSpec((1, cout), lambda n: (0, 0)),
        ]
        # zero-padded image buffer for this layer (data starts at column _PAD_X0)
        scratch_shapes.append(pltpu.VMEM((h + 2, w + 16, cin), jnp.float32))

    out = pl.pallas_call(
        _make_fused_kernel(H, W),
        out_shape=jax.ShapeDtypeStruct((N, HW, C0), x_nchw.dtype),
        grid=(N,),
        in_specs=in_specs,
        out_specs=pl.BlockSpec((1, HW, C0), lambda n: (n, 0, 0)),
        scratch_shapes=scratch_shapes,
        compiler_params=pltpu.CompilerParams(
            dimension_semantics=("parallel",)),
    )(x_hwc, *flat_params)

    return jnp.transpose(out.reshape(N, H, W, C0), (0, 3, 1, 2))   # back to NCHW


# ----------------- parameters (deterministic, PyTorch-default-style uniform) ---

def _conv_params(key, cin, cout):
    kw, kb = jax.random.split(key)
    bound = float((cin * 9) ** -0.5)
    w = jax.random.uniform(kw, (3, 3, cin, cout), jnp.float32, -bound, bound)
    b = jax.random.uniform(kb, (cout,), jnp.float32, -bound, bound)
    return w, b


def init_params(key, c_in):
    keys = jax.random.split(key, 5)
    return {
        "enc1": _conv_params(keys[0], c_in, 16),
        "enc2": _conv_params(keys[1], 16, 8),
        "dec1": _conv_params(keys[2], 8, 8),
        "dec2": _conv_params(keys[3], 8, 16),
        "dec3": _conv_params(keys[4], 16, c_in),
    }


# ----------------- pure-JAX reference (matches the PyTorch module) -------------

def _reference_forward(params, x):
    def conv(h, name):
        w, b = params[name]
        y = jax.lax.conv_general_dilated(
            h, w, window_strides=(1, 1), padding=((1, 1), (1, 1)),
            dimension_numbers=("NCHW", "HWIO", "NCHW"),
            precision=jax.lax.Precision.HIGHEST)
        return y + b.reshape(1, -1, 1, 1)

    relu = lambda t: jnp.maximum(t, 0.0)

    def pool(t):
        n, c, h, w = t.shape
        return t.reshape(n, c, h // 2, 2, w // 2, 2).max(axis=(3, 5))

    def up(t):
        return jnp.repeat(jnp.repeat(t, 2, axis=2), 2, axis=3)

    h = relu(pool(conv(x, "enc1")))            # encoder: Conv -> MaxPool -> ReLU
    h = relu(pool(conv(h, "enc2")))
    h = relu(conv(up(h), "dec1"))              # decoder: Upsample -> Conv -> ReLU
    h = relu(conv(up(h), "dec2"))
    h = relu(conv(h, "dec3"))                  # Conv -> ReLU
    return h


if __name__ == "__main__":
    key = jax.random.PRNGKey(0)
    kx, kp = jax.random.split(key)

    dim = (4, 16, 16)                                    # (C, H, W) as in the module's `dim`
    x = jax.random.normal(kx, (2,) + dim, dtype=jnp.float32)   # NCHW input, batch=2
    params = init_params(kp, dim[0])

    out = jax.block_until_ready(conv_autoencoder_f2(params, x))
    assert out.shape == x.shape, out.shape
    assert bool(jnp.all(out >= 0.0))                     # final ReLU

    ref = jax.block_until_ready(_reference_forward(params, x))
    err = float(jnp.max(jnp.abs(out - ref)))
    assert err < 5e-2, f"mismatch vs reference: max abs err = {err}"
    print("KERNEL_OK")
</pallas_src>

<mosaic_0001>
module attributes {stable_mosaic.version = 11 : i64} {
  func.func @kernel(%arg0: i32, %arg1: memref<1x256x4xf32, #tpu.memory_space<vmem>>, %arg2: memref<9x4x16xf32, #tpu.memory_space<vmem>>, %arg3: memref<1x16xf32, #tpu.memory_space<vmem>>, %arg4: memref<9x16x8xf32, #tpu.memory_space<vmem>>, %arg5: memref<1x8xf32, #tpu.memory_space<vmem>>, %arg6: memref<9x8x8xf32, #tpu.memory_space<vmem>>, %arg7: memref<1x8xf32, #tpu.memory_space<vmem>>, %arg8: memref<9x8x16xf32, #tpu.memory_space<vmem>>, %arg9: memref<1x16xf32, #tpu.memory_space<vmem>>, %arg10: memref<9x16x4xf32, #tpu.memory_space<vmem>>, %arg11: memref<1x4xf32, #tpu.memory_space<vmem>>, %arg12: memref<1x256x4xf32, #tpu.memory_space<vmem>>, %arg13: memref<18x32x4xf32, #tpu.memory_space<vmem>>, %arg14: memref<10x24x16xf32, #tpu.memory_space<vmem>>, %arg15: memref<10x24x8xf32, #tpu.memory_space<vmem>>, %arg16: memref<18x32x8xf32, #tpu.memory_space<vmem>>, %arg17: memref<18x32x16xf32, #tpu.memory_space<vmem>>) attributes {dimension_semantics = [#tpu.dimension_semantics<parallel>], iteration_bounds = array<i64: 2>, scalar_prefetch = 0 : i64, scratch_operands = 5 : i64, tpu.core_type = #tpu.core_type<tc>, window_params = [{transform_indices = @transform_0, window_bounds = array<i64: 1, 256, 4>}, {pipeline_mode = #tpu.pipeline_mode<synchronous>, transform_indices = @transform_1, window_bounds = array<i64: 9, 4, 16>}, {pipeline_mode = #tpu.pipeline_mode<synchronous>, transform_indices = @transform_2, window_bounds = array<i64: 1, 16>}, {pipeline_mode = #tpu.pipeline_mode<synchronous>, transform_indices = @transform_3, window_bounds = array<i64: 9, 16, 8>}, {pipeline_mode = #tpu.pipeline_mode<synchronous>, transform_indices = @transform_4, window_bounds = array<i64: 1, 8>}, {pipeline_mode = #tpu.pipeline_mode<synchronous>, transform_indices = @transform_5, window_bounds = array<i64: 9, 8, 8>}, {pipeline_mode = #tpu.pipeline_mode<synchronous>, transform_indices = @transform_6, window_bounds = array<i64: 1, 8>}, {pipeline_mode = #tpu.pipeline_mode<synchronous>, transform_indices = @transform_7, window_bounds = array<i64: 9, 8, 16>}, {pipeline_mode = #tpu.pipeline_mode<synchronous>, transform_indices = @transform_8, window_bounds = array<i64: 1, 16>}, {pipeline_mode = #tpu.pipeline_mode<synchronous>, transform_indices = @transform_9, window_bounds = array<i64: 9, 16, 4>}, {pipeline_mode = #tpu.pipeline_mode<synchronous>, transform_indices = @transform_10, window_bounds = array<i64: 1, 4>}, {transform_indices = @transform_11, window_bounds = array<i64: 1, 256, 4>}]} {
    %c0 = arith.constant 0 : index
    %c0_0 = arith.constant 0 : index
    %c0_1 = arith.constant 0 : index
    %0 = vector.load %arg1[%c0, %c0_0, %c0_1] : memref<1x256x4xf32, #tpu.memory_space<vmem>>, vector<1x256x4xf32>
    %1 = vector.shape_cast %0 : vector<1x256x4xf32> to vector<256x4xf32>
    %cst = arith.constant 0.000000e+00 : f32
    %2 = vector.broadcast %cst : f32 to vector<18x32x4xf32>
    %c0_2 = arith.constant 0 : index
    %c0_3 = arith.constant 0 : index
    %c0_4 = arith.constant 0 : index
    %3 = vector.load %arg13[%c0_2, %c0_3, %c0_4] : memref<18x32x4xf32, #tpu.memory_space<vmem>>, vector<18x32x4xf32>
    tpu.vector_store %arg13[%c0_2, %c0_3, %c0_4], %2 {strides = array<i32>} : memref<18x32x4xf32, #tpu.memory_space<vmem>>, vector<18x32x4xf32>,
    %4 = vector.shape_cast %1 : vector<256x4xf32> to vector<16x16x4xf32>
    %c1 = arith.constant 1 : index
    %c8 = arith.constant 8 : index
    %c0_5 = arith.constant 0 : index
    %5 = vector.load %arg13[%c1, %c8, %c0_5] : memref<18x32x4xf32, #tpu.memory_space<vmem>>, vector<16x16x4xf32>
    tpu.vector_store %arg13[%c1, %c8, %c0_5], %4 {strides = array<i32>} : memref<18x32x4xf32, #tpu.memory_space<vmem>>, vector<16x16x4xf32>,
    %c0_6 = arith.constant 0 : index
    %c0_7 = arith.constant 0 : index
    %c0_8 = arith.constant 0 : index
    %6 = vector.load %arg13[%c0_6, %c0_7, %c0_8] : memref<18x32x4xf32, #tpu.memory_space<vmem>>, vector<18x32x4xf32>
    %cst_9 = arith.constant 0.000000e+00 : f32
    %7 = vector.broadcast %cst_9 : f32 to vector<256x16xf32>
    %8 = vector.extract_strided_slice %6 {offsets = [0, 7, 0], sizes = [16, 16, 4], strides = [1, 1, 1]} : vector<18x32x4xf32> to vector<16x16x4xf32>
    %9 = vector.shape_cast %8 : vector<16x16x4xf32> to vector<256x4xf32>
    %c0_10 = arith.constant 0 : index
    %c0_11 = arith.constant 0 : index
    %c0_12 = arith.constant 0 : index
    %10 = vector.load %arg2[%c0_10, %c0_11, %c0_12] : memref<9x4x16xf32, #tpu.memory_space<vmem>>, vector<1x4x16xf32>
    %11 = vector.shape_cast %10 : vector<1x4x16xf32> to vector<4x16xf32>
    %cst_13 = arith.constant dense<0.000000e+00> : vector<256x16xf32>
    %12 = tpu.matmul %9, %11, %cst_13 {dimension_numbers = #tpu.dot_dimension_numbers<[1], [0], [0], [1], [0, 0, 1, 1], [], []>} : vector<256x4xf32>, vector<4x16xf32>, vector<256x16xf32> -> vector<256x16xf32>
    %13 = arith.addf %7, %12 : vector<256x16xf32>
    %14 = vector.extract_strided_slice %6 {offsets = [0, 8, 0], sizes = [16, 16, 4], strides = [1, 1, 1]} : vector<18x32x4xf32> to vector<16x16x4xf32>
    %15 = vector.shape_cast %14 : vector<16x16x4xf32> to vector<256x4xf32>
    %c1_14 = arith.constant 1 : index
    %c0_15 = arith.constant 0 : index
    %c0_16 = arith.constant 0 : index
    %16 = vector.load %arg2[%c1_14, %c0_15, %c0_16] : memref<9x4x16xf32, #tpu.memory_space<vmem>>, vector<1x4x16xf32>
    %17 = vector.shape_cast %16 : vector<1x4x16xf32> to vector<4x16xf32>
    %cst_17 = arith.constant dense<0.000000e+00> : vector<256x16xf32>
    %18 = tpu.matmul %15, %17, %cst_17 {dimension_numbers = #tpu.dot_dimension_numbers<[1], [0], [0], [1], [0, 0, 1, 1], [], []>} : vector<256x4xf32>, vector<4x16xf32>, vector<256x16xf32> -> vector<256x16xf32>
    %19 = arith.addf %13, %18 : vector<256x16xf32>
    %20 = vector.extract_strided_slice %6 {offsets = [0, 9, 0], sizes = [16, 16, 4], strides = [1, 1, 1]} : vector<18x32x4xf32> to vector<16x16x4xf32>
    %21 = vector.shape_cast %20 : vector<16x16x4xf32> to vector<256x4xf32>
    %c2 = arith.constant 2 : index
    %c0_18 = arith.constant 0 : index
    %c0_19 = arith.constant 0 : index
    %22 = vector.load %arg2[%c2, %c0_18, %c0_19] : memref<9x4x16xf32, #tpu.memory_space<vmem>>, vector<1x4x16xf32>
    %23 = vector.shape_cast %22 : vector<1x4x16xf32> to vector<4x16xf32>
    %cst_20 = arith.constant dense<0.000000e+00> : vector<256x16xf32>
    %24 = tpu.matmul %21, %23, %cst_20 {dimension_numbers = #tpu.dot_dimension_numbers<[1], [0], [0], [1], [0, 0, 1, 1], [], []>} : vector<256x4xf32>, vector<4x16xf32>, vector<256x16xf32> -> vector<256x16xf32>
    %25 = arith.addf %19, %24 : vector<256x16xf32>
    %26 = vector.extract_strided_slice %6 {offsets = [1, 7, 0], sizes = [16, 16, 4], strides = [1, 1, 1]} : vector<18x32x4xf32> to vector<16x16x4xf32>
    %27 = vector.shape_cast %26 : vector<16x16x4xf32> to vector<256x4xf32>
    %c3 = arith.constant 3 : index
    %c0_21 = arith.constant 0 : index
    %c0_22 = arith.constant 0 : index
    %28 = vector.load %arg2[%c3, %c0_21, %c0_22] : memref<9x4x16xf32, #tpu.memory_space<vmem>>, vector<1x4x16xf32>
    %29 = vector.shape_cast %28 : vector<1x4x16xf32> to vector<4x16xf32>
    %cst_23 = arith.constant dense<0.000000e+00> : vector<256x16xf32>
    %30 = tpu.matmul %27, %29, %cst_23 {dimension_numbers = #tpu.dot_dimension_numbers<[1], [0], [0], [1], [0, 0, 1, 1], [], []>} : vector<256x4xf32>, vector<4x16xf32>, vector<256x16xf32> -> vector<256x16xf32>
    %31 = arith.addf %25, %30 : vector<256x16xf32>
    %32 = vector.extract_strided_slice %6 {offsets = [1, 8, 0], sizes = [16, 16, 4], strides = [1, 1, 1]} : vector<18x32x4xf32> to vector<16x16x4xf32>
    %33 = vector.shape_cast %32 : vector<16x16x4xf32> to vector<256x4xf32>
    %c4 = arith.constant 4 : index
    %c0_24 = arith.constant 0 : index
    %c0_25 = arith.constant 0 : index
    %34 = vector.load %arg2[%c4, %c0_24, %c0_25] : memref<9x4x16xf32, #tpu.memory_space<vmem>>, vector<1x4x16xf32>
    %35 = vector.shape_cast %34 : vector<1x4x16xf32> to vector<4x16xf32>
    %cst_26 = arith.constant dense<0.000000e+00> : vector<256x16xf32>
    %36 = tpu.matmul %33, %35, %cst_26 {dimension_numbers = #tpu.dot_dimension_numbers<[1], [0], [0], [1], [0, 0, 1, 1], [], []>} : vector<256x4xf32>, vector<4x16xf32>, vector<256x16xf32> -> vector<256x16xf32>
    %37 = arith.addf %31, %36 : vector<256x16xf32>
    %38 = vector.extract_strided_slice %6 {offsets = [1, 9, 0], sizes = [16, 16, 4], strides = [1, 1, 1]} : vector<18x32x4xf32> to vector<16x16x4xf32>
    %39 = vector.shape_cast %38 : vector<16x16x4xf32> to vector<256x4xf32>
    %c5 = arith.constant 5 : index
    %c0_27 = arith.constant 0 : index
    %c0_28 = arith.constant 0 : index
    %40 = vector.load %arg2[%c5, %c0_27, %c0_28] : memref<9x4x16xf32, #tpu.memory_space<vmem>>, vector<1x4x16xf32>
    %41 = vector.shape_cast %40 : vector<1x4x16xf32> to vector<4x16xf32>
    %cst_29 = arith.constant dense<0.000000e+00> : vector<256x16xf32>
    %42 = tpu.matmul %39, %41, %cst_29 {dimension_numbers = #tpu.dot_dimension_numbers<[1], [0], [0], [1], [0, 0, 1, 1], [], []>} : vector<256x4xf32>, vector<4x16xf32>, vector<256x16xf32> -> vector<256x16xf32>
    %43 = arith.addf %37, %42 : vector<256x16xf32>
    %44 = vector.extract_strided_slice %6 {offsets = [2, 7, 0], sizes = [16, 16, 4], strides = [1, 1, 1]} : vector<18x32x4xf32> to vector<16x16x4xf32>
    %45 = vector.shape_cast %44 : vector<16x16x4xf32> to vector<256x4xf32>
    %c6 = arith.constant 6 : index
    %c0_30 = arith.constant 0 : index
    %c0_31 = arith.constant 0 : index
    %46 = vector.load %arg2[%c6, %c0_30, %c0_31] : memref<9x4x16xf32, #tpu.memory_space<vmem>>, vector<1x4x16xf32>
    %47 = vector.shape_cast %46 : vector<1x4x16xf32> to vector<4x16xf32>
    %cst_32 = arith.constant dense<0.000000e+00> : vector<256x16xf32>
    %48 = tpu.matmul %45, %47, %cst_32 {dimension_numbers = #tpu.dot_dimension_numbers<[1], [0], [0], [1], [0, 0, 1, 1], [], []>} : vector<256x4xf32>, vector<4x16xf32>, vector<256x16xf32> -> vector<256x16xf32>
    %49 = arith.addf %43, %48 : vector<256x16xf32>
    %50 = vector.extract_strided_slice %6 {offsets = [2, 8, 0], sizes = [16, 16, 4], strides = [1, 1, 1]} : vector<18x32x4xf32> to vector<16x16x4xf32>
    %51 = vector.shape_cast %50 : vector<16x16x4xf32> to vector<256x4xf32>
    %c7 = arith.constant 7 : index
    %c0_33 = arith.constant 0 : index
    %c0_34 = arith.constant 0 : index
    %52 = vector.load %arg2[%c7, %c0_33, %c0_34] : memref<9x4x16xf32, #tpu.memory_space<vmem>>, vector<1x4x16xf32>
    %53 = vector.shape_cast %52 : vector<1x4x16xf32> to vector<4x16xf32>
    %cst_35 = arith.constant dense<0.000000e+00> : vector<256x16xf32>
    %54 = tpu.matmul %51, %53, %cst_35 {dimension_numbers = #tpu.dot_dimension_numbers<[1], [0], [0], [1], [0, 0, 1, 1], [], []>} : vector<256x4xf32>, vector<4x16xf32>, vector<256x16xf32> -> vector<256x16xf32>
    %55 = arith.addf %49, %54 : vector<256x16xf32>
    %56 = vector.extract_strided_slice %6 {offsets = [2, 9, 0], sizes = [16, 16, 4], strides = [1, 1, 1]} : vector<18x32x4xf32> to vector<16x16x4xf32>
    %57 = vector.shape_cast %56 : vector<16x16x4xf32> to vector<256x4xf32>
    %c8_36 = arith.constant 8 : index
    %c0_37 = arith.constant 0 : index
    %c0_38 = arith.constant 0 : index
    %58 = vector.load %arg2[%c8_36, %c0_37, %c0_38] : memref<9x4x16xf32, #tpu.memory_space<vmem>>, vector<1x4x16xf32>
    %59 = vector.shape_cast %58 : vector<1x4x16xf32> to vector<4x16xf32>
    %cst_39 = arith.constant dense<0.000000e+00> : vector<256x16xf32>
    %60 = tpu.matmul %57, %59, %cst_39 {dimension_numbers = #tpu.dot_dimension_numbers<[1], [0], [0], [1], [0, 0, 1, 1], [], []>} : vector<256x4xf32>, vector<4x16xf32>, vector<256x16xf32> -> vector<256x16xf32>
    %61 = arith.addf %55, %60 : vector<256x16xf32>
    %c0_40 = arith.constant 0 : index
    %c0_41 = arith.constant 0 : index
    %62 = vector.load %arg3[%c0_40, %c0_41] : memref<1x16xf32, #tpu.memory_space<vmem>>, vector<1x16xf32>
    %63 = vector.broadcast %62 : vector<1x16xf32> to vector<256x16xf32>
    %64 = arith.addf %61, %63 : vector<256x16xf32>
    %cst_42 = arith.constant 0.000000e+00 : f32
    %65 = vector.broadcast %cst_42 : f32 to vector<256x16xf32>
    %66 = arith.maximumf %64, %65 : vector<256x16xf32>
    %67 = tpu.iota {dimensions = array<i32: 0>} : vector<64x256xi32>
    %68 = tpu.iota {dimensions = array<i32: 1>} : vector<64x256xi32>
    %c3_i32 = arith.constant 3 : i32
    %69 = vector.broadcast %c3_i32 : i32 to vector<64x256xi32>
    %70 = arith.shrsi %67, %69 : vector<64x256xi32>
    %c7_i32 = arith.constant 7 : i32
    %71 = vector.broadcast %c7_i32 : i32 to vector<64x256xi32>
    %72 = arith.andi %67, %71 : vector<64x256xi32>
    %c2_i32 = arith.constant 2 : i32
    %73 = vector.broadcast %c2_i32 : i32 to vector<64x256xi32>
    %74 = arith.muli %73, %70 : vector<64x256xi32>
    %c0_i32 = arith.constant 0 : i32
    %75 = vector.broadcast %c0_i32 : i32 to vector<64x256xi32>
    %76 = arith.addi %74, %75 : vector<64x256xi32>
    %c16_i32 = arith.constant 16 : i32
    %77 = vector.broadcast %c16_i32 : i32 to vector<64x256xi32>
    %78 = arith.muli %76, %77 : vector<64x256xi32>
    %c2_i32_43 = arith.constant 2 : i32
    %79 = vector.broadcast %c2_i32_43 : i32 to vector<64x256xi32>
    %80 = arith.muli %79, %72 : vector<64x256xi32>
    %81 = arith.addi %78, %80 : vector<64x256xi32>
    %c0_i32_44 = arith.constant 0 : i32
    %82 = vector.broadcast %c0_i32_44 : i32 to vector<64x256xi32>
    %83 = arith.addi %81, %82 : vector<64x256xi32>
    %84 = arith.cmpi eq, %68, %83 : vector<64x256xi32>
    %85 = arith.extui %84 : vector<64x256xi1> to vector<64x256xi32>
    %86 = arith.sitofp %85 : vector<64x256xi32> to vector<64x256xf32>
    %cst_45 = arith.constant dense<0.000000e+00> : vector<64x16xf32>
    %87 = tpu.matmul %86, %66, %cst_45 {dimension_numbers = #tpu.dot_dimension_numbers<[1], [0], [0], [1], [0, 0, 1, 1], [], []>} : vector<64x256xf32>, vector<256x16xf32>, vector<64x16xf32> -> vector<64x16xf32>
    %c2_i32_46 = arith.constant 2 : i32
    %88 = vector.broadcast %c2_i32_46 : i32 to vector<64x256xi32>
    %89 = arith.muli %88, %70 : vector<64x256xi32>
    %c0_i32_47 = arith.constant 0 : i32
    %90 = vector.broadcast %c0_i32_47 : i32 to vector<64x256xi32>
    %91 = arith.addi %89, %90 : vector<64x256xi32>
    %c16_i32_48 = arith.constant 16 : i32
    %92 = vector.broadcast %c16_i32_48 : i32 to vector<64x256xi32>
    %93 = arith.muli %91, %92 : vector<64x256xi32>
    %c2_i32_49 = arith.constant 2 : i32
    %94 = vector.broadcast %c2_i32_49 : i32 to vector<64x256xi32>
    %95 = arith.muli %94, %72 : vector<64x256xi32>
    %96 = arith.addi %93, %95 : vector<64x256xi32>
    %c1_i32 = arith.constant 1 : i32
    %97 = vector.broadcast %c1_i32 : i32 to vector<64x256xi32>
    %98 = arith.addi %96, %97 : vector<64x256xi32>
    %99 = arith.cmpi eq, %68, %98 : vector<64x256xi32>
    %100 = arith.extui %99 : vector<64x256xi1> to vector<64x256xi32>
    %101 = arith.sitofp %100 : vector<64x256xi32> to vector<64x256xf32>
    %cst_50 = arith.constant dense<0.000000e+00> : vector<64x16xf32>
    %102 = tpu.matmul %101, %66, %cst_50 {dimension_numbers = #tpu.dot_dimension_numbers<[1], [0], [0], [1], [0, 0, 1, 1], [], []>} : vector<64x256xf32>, vector<256x16xf32>, vector<64x16xf32> -> vector<64x16xf32>
    %103 = arith.maximumf %87, %102 : vector<64x16xf32>
    %c2_i32_51 = arith.constant 2 : i32
    %104 = vector.broadcast %c2_i32_51 : i32 to vector<64x256xi32>
    %105 = arith.muli %104, %70 : vector<64x256xi32>
    %c1_i32_52 = arith.constant 1 : i32
    %106 = vector.broadcast %c1_i32_52 : i32 to vector<64x256xi32>
    %107 = arith.addi %105, %106 : vector<64x256xi32>
    %c16_i32_53 = arith.constant 16 : i32
    %108 = vector.broadcast %c16_i32_53 : i32 to vector<64x256xi32>
    %109 = arith.muli %107, %108 : vector<64x256xi32>
    %c2_i32_54 = arith.constant 2 : i32
    %110 = vector.broadcast %c2_i32_54 : i32 to vector<64x256xi32>
    %111 = arith.muli %110, %72 : vector<64x256xi32>
    %112 = arith.addi %109, %111 : vector<64x256xi32>
    %c0_i32_55 = arith.constant 0 : i32
    %113 = vector.broadcast %c0_i32_55 : i32 to vector<64x256xi32>
    %114 = arith.addi %112, %113 : vector<64x256xi32>
    %115 = arith.cmpi eq, %68, %114 : vector<64x256xi32>
    %116 = arith.extui %115 : vector<64x256xi1> to vector<64x256xi32>
    %117 = arith.sitofp %116 : vector<64x256xi32> to vector<64x256xf32>
    %cst_56 = arith.constant dense<0.000000e+00> : vector<64x16xf32>
    %118 = tpu.matmul %117, %66, %cst_56 {dimension_numbers = #tpu.dot_dimension_numbers<[1], [0], [0], [1], [0, 0, 1, 1], [], []>} : vector<64x256xf32>, vector<256x16xf32>, vector<64x16xf32> -> vector<64x16xf32>
    %119 = arith.maximumf %103, %118 : vector<64x16xf32>
    %c2_i32_57 = arith.constant 2 : i32
    %120 = vector.broadcast %c2_i32_57 : i32 to vector<64x256xi32>
    %121 = arith.muli %120, %70 : vector<64x256xi32>
    %c1_i32_58 = arith.constant 1 : i32
    %122 = vector.broadcast %c1_i32_58 : i32 to vector<64x256xi32>
    %123 = arith.addi %121, %122 : vector<64x256xi32>
    %c16_i32_59 = arith.constant 16 : i32
    %124 = vector.broadcast %c16_i32_59 : i32 to vector<64x256xi32>
    %125 = arith.muli %123, %124 : vector<64x256xi32>
    %c2_i32_60 = arith.constant 2 : i32
    %126 = vector.broadcast %c2_i32_60 : i32 to vector<64x256xi32>
    %127 = arith.muli %126, %72 : vector<64x256xi32>
    %128 = arith.addi %125, %127 : vector<64x256xi32>
    %c1_i32_61 = arith.constant 1 : i32
    %129 = vector.broadcast %c1_i32_61 : i32 to vector<64x256xi32>
    %130 = arith.addi %128, %129 : vector<64x256xi32>
    %131 = arith.cmpi eq, %68, %130 : vector<64x256xi32>
    %132 = arith.extui %131 : vector<64x256xi1> to vector<64x256xi32>
    %133 = arith.sitofp %132 : vector<64x256xi32> to vector<64x256xf32>
    %cst_62 = arith.constant dense<0.000000e+00> : vector<64x16xf32>
    %134 = tpu.matmul %133, %66, %cst_62 {dimension_numbers = #tpu.dot_dimension_numbers<[1], [0], [0], [1], [0, 0, 1, 1], [], []>} : vector<64x256xf32>, vector<256x16xf32>, vector<64x16xf32> -> vector<64x16xf32>
    %135 = arith.maximumf %119, %134 : vector<64x16xf32>
    %cst_63 = arith.constant 0.000000e+00 : f32
    %136 = vector.broadcast %cst_63 : f32 to vector<10x24x16xf32>
    %c0_64 = arith.constant 0 : index
    %c0_65 = arith.constant 0 : index
    %c0_66 = arith.constant 0 : index
    %137 = vector.load %arg14[%c0_64, %c0_65, %c0_66] : memref<10x24x16xf32, #tpu.memory_space<vmem>>, vector<10x24x16xf32>
    tpu.vector_store %arg14[%c0_64, %c0_65, %c0_66], %136 {strides = array<i32>} : memref<10x24x16xf32, #tpu.memory_space<vmem>>, vector<10x24x16xf32>,
    %138 = vector.shape_cast %135 : vector<64x16xf32> to vector<8x8x16xf32>
    %c1_67 = arith.constant 1 : index
    %c8_68 = arith.constant 8 : index
    %c0_69 = arith.constant 0 : index
    %139 = vector.load %arg14[%c1_67, %c8_68, %c0_69] : memref<10x24x16xf32, #tpu.memory_space<vmem>>, vector<8x8x16xf32>
    tpu.vector_store %arg14[%c1_67, %c8_68, %c0_69], %138 {strides = array<i32>} : memref<10x24x16xf32, #tpu.memory_space<vmem>>, vector<8x8x16xf32>,
    %c0_70 = arith.constant 0 : index
    %c0_71 = arith.constant 0 : index
    %c0_72 = arith.constant 0 : index
    %140 = vector.load %arg14[%c0_70, %c0_71, %c0_72] : memref<10x24x16xf32, #tpu.memory_space<vmem>>, vector<10x24x16xf32>
    %cst_73 = arith.constant 0.000000e+00 : f32
    %141 = vector.broadcast %cst_73 : f32 to vector<64x8xf32>
    %142 = vector.extract_strided_slice %140 {offsets = [0, 7, 0], sizes = [8, 8, 16], strides = [1, 1, 1]} : vector<10x24x16xf32> to vector<8x8x16xf32>
    %143 = vector.shape_cast %142 : vector<8x8x16xf32> to vector<64x16xf32>
    %c0_74 = arith.constant 0 : index
    %c0_75 = arith.constant 0 : index
    %c0_76 = arith.constant 0 : index
    %144 = vector.load %arg4[%c0_74, %c0_75, %c0_76] : memref<9x16x8xf32, #tpu.memory_space<vmem>>, vector<1x16x8xf32>
    %145 = vector.shape_cast %144 : vector<1x16x8xf32> to vector<16x8xf32>
    %cst_77 = arith.constant dense<0.000000e+00> : vector<64x8xf32>
    %146 = tpu.matmul %143, %145, %cst_77 {dimension_numbers = #tpu.dot_dimension_numbers<[1], [0], [0], [1], [0, 0, 1, 1], [], []>} : vector<64x16xf32>, vector<16x8xf32>, vector<64x8xf32> -> vector<64x8xf32>
    %147 = arith.addf %141, %146 : vector<64x8xf32>
    %148 = vector.extract_strided_slice %140 {offsets = [0, 8, 0], sizes = [8, 8, 16], strides = [1, 1, 1]} : vector<10x24x16xf32> to vector<8x8x16xf32>
    %149 = vector.shape_cast %148 : vector<8x8x16xf32> to vector<64x16xf32>
    %c1_78 = arith.constant 1 : index
    %c0_79 = arith.constant 0 : index
    %c0_80 = arith.constant 0 : index
    %150 = vector.load %arg4[%c1_78, %c0_79, %c0_80] : memref<9x16x8xf32, #tpu.memory_space<vmem>>, vector<1x16x8xf32>
    %151 = vector.shape_cast %150 : vector<1x16x8xf32> to vector<16x8xf32>
    %cst_81 = arith.constant dense<0.000000e+00> : vector<64x8xf32>
    %152 = tpu.matmul %149, %151, %cst_81 {dimension_numbers = #tpu.dot_dimension_numbers<[1], [0], [0], [1], [0, 0, 1, 1], [], []>} : vector<64x16xf32>, vector<16x8xf32>, vector<64x8xf32> -> vector<64x8xf32>
    %153 = arith.addf %147, %152 : vector<64x8xf32>
    %154 = vector.extract_strided_slice %140 {offsets = [0, 9, 0], sizes = [8, 8, 16], strides = [1, 1, 1]} : vector<10x24x16xf32> to vector<8x8x16xf32>
    %155 = vector.shape_cast %154 : vector<8x8x16xf32> to vector<64x16xf32>
    %c2_82 = arith.constant 2 : index
    %c0_83 = arith.constant 0 : index
    %c0_84 = arith.constant 0 : index
    %156 = vector.load %arg4[%c2_82, %c0_83, %c0_84] : memref<9x16x8xf32, #tpu.memory_space<vmem>>, vector<1x16x8xf32>
    %157 = vector.shape_cast %156 : vector<1x16x8xf32> to vector<16x8xf32>
    %cst_85 = arith.constant dense<0.000000e+00> : vector<64x8xf32>
    %158 = tpu.matmul %155, %157, %cst_85 {dimension_numbers = #tpu.dot_dimension_numbers<[1], [0], [0], [1], [0, 0, 1, 1], [], []>} : vector<64x16xf32>, vector<16x8xf32>, vector<64x8xf32> -> vector<64x8xf32>
    %159 = arith.addf %153, %158 : vector<64x8xf32>
    %160 = vector.extract_strided_slice %140 {offsets = [1, 7, 0], sizes = [8, 8, 16], strides = [1, 1, 1]} : vector<10x24x16xf32> to vector<8x8x16xf32>
    %161 = vector.shape_cast %160 : vector<8x8x16xf32> to vector<64x16xf32>
    %c3_86 = arith.constant 3 : index
    %c0_87 = arith.constant 0 : index
    %c0_88 = arith.constant 0 : index
    %162 = vector.load %arg4[%c3_86, %c0_87, %c0_88] : memref<9x16x8xf32, #tpu.memory_space<vmem>>, vector<1x16x8xf32>
    %163 = vector.shape_cast %162 : vector<1x16x8xf32> to vector<16x8xf32>
    %cst_89 = arith.constant dense<0.000000e+00> : vector<64x8xf32>
    %164 = tpu.matmul %161, %163, %cst_89 {dimension_numbers = #tpu.dot_dimension_numbers<[1], [0], [0], [1], [0, 0, 1, 1], [], []>} : vector<64x16xf32>, vector<16x8xf32>, vector<64x8xf32> -> vector<64x8xf32>
    %165 = arith.addf %159, %164 : vector<64x8xf32>
    %166 = vector.extract_strided_slice %140 {offsets = [1, 8, 0], sizes = [8, 8, 16], strides = [1, 1, 1]} : vector<10x24x16xf32> to vector<8x8x16xf32>
    %167 = vector.shape_cast %166 : vector<8x8x16xf32> to vector<64x16xf32>
    %c4_90 = arith.constant 4 : index
    %c0_91 = arith.constant 0 : index
    %c0_92 = arith.constant 0 : index
    %168 = vector.load %arg4[%c4_90, %c0_91, %c0_92] : memref<9x16x8xf32, #tpu.memory_space<vmem>>, vector<1x16x8xf32>
    %169 = vector.shape_cast %168 : vector<1x16x8xf32> to vector<16x8xf32>
    %cst_93 = arith.constant dense<0.000000e+00> : vector<64x8xf32>
    %170 = tpu.matmul %167, %169, %cst_93 {dimension_numbers = #tpu.dot_dimension_numbers<[1], [0], [0], [1], [0, 0, 1, 1], [], []>} : vector<64x16xf32>, vector<16x8xf32>, vector<64x8xf32> -> vector<64x8xf32>
    %171 = arith.addf %165, %170 : vector<64x8xf32>
    %172 = vector.extract_strided_slice %140 {offsets = [1, 9, 0], sizes = [8, 8, 16], strides = [1, 1, 1]} : vector<10x24x16xf32> to vector<8x8x16xf32>
    %173 = vector.shape_cast %172 : vector<8x8x16xf32> to vector<64x16xf32>
    %c5_94 = arith.constant 5 : index
    %c0_95 = arith.constant 0 : index
    %c0_96 = arith.constant 0 : index
    %174 = vector.load %arg4[%c5_94, %c0_95, %c0_96] : memref<9x16x8xf32, #tpu.memory_space<vmem>>, vector<1x16x8xf32>
    %175 = vector.shape_cast %174 : vector<1x16x8xf32> to vector<16x8xf32>
    %cst_97 = arith.constant dense<0.000000e+00> : vector<64x8xf32>
    %176 = tpu.matmul %173, %175, %cst_97 {dimension_numbers = #tpu.dot_dimension_numbers<[1], [0], [0], [1], [0, 0, 1, 1], [], []>} : vector<64x16xf32>, vector<16x8xf32>, vector<64x8xf32> -> vector<64x8xf32>
    %177 = arith.addf %171, %176 : vector<64x8xf32>
    %178 = vector.extract_strided_slice %140 {offsets = [2, 7, 0], sizes = [8, 8, 16], strides = [1, 1, 1]} : vector<10x24x16xf32> to vector<8x8x16xf32>
    %179 = vector.shape_cast %178 : vector<8x8x16xf32> to vector<64x16xf32>
    %c6_98 = arith.constant 6 : index
    %c0_99 = arith.constant 0 : index
    %c0_100 = arith.constant 0 : index
    %180 = vector.load %arg4[%c6_98, %c0_99, %c0_100] : memref<9x16x8xf32, #tpu.memory_space<vmem>>, vector<1x16x8xf32>
    %181 = vector.shape_cast %180 : vector<1x16x8xf32> to vector<16x8xf32>
    %cst_101 = arith.constant dense<0.000000e+00> : vector<64x8xf32>
    %182 = tpu.matmul %179, %181, %cst_101 {dimension_numbers = #tpu.dot_dimension_numbers<[1], [0], [0], [1], [0, 0, 1, 1], [], []>} : vector<64x16xf32>, vector<16x8xf32>, vector<64x8xf32> -> vector<64x8xf32>
    %183 = arith.addf %177, %182 : vector<64x8xf32>
    %184 = vector.extract_strided_slice %140 {offsets = [2, 8, 0], sizes = [8, 8, 16], strides = [1, 1, 1]} : vector<10x24x16xf32> to vector<8x8x16xf32>
    %185 = vector.shape_cast %184 : vector<8x8x16xf32> to vector<64x16xf32>
    %c7_102 = arith.constant 7 : index
    %c0_103 = arith.constant 0 : index
    %c0_104 = arith.constant 0 : index
    %186 = vector.load %arg4[%c7_102, %c0_103, %c0_104] : memref<9x16x8xf32, #tpu.memory_space<vmem>>, vector<1x16x8xf32>
    %187 = vector.shape_cast %186 : vector<1x16x8xf32> to vector<16x8xf32>
    %cst_105 = arith.constant dense<0.000000e+00> : vector<64x8xf32>
    %188 = tpu.matmul %185, %187, %cst_105 {dimension_numbers = #tpu.dot_dimension_numbers<[1], [0], [0], [1], [0, 0, 1, 1], [], []>} : vector<64x16xf32>, vector<16x8xf32>, vector<64x8xf32> -> vector<64x8xf32>
    %189 = arith.addf %183, %188 : vector<64x8xf32>
    %190 = vector.extract_strided_slice %140 {offsets = [2, 9, 0], sizes = [8, 8, 16], strides = [1, 1, 1]} : vector<10x24x16xf32> to vector<8x8x16xf32>
    %191 = vector.shape_cast %190 : vector<8x8x16xf32> to vector<64x16xf32>
    %c8_106 = arith.constant 8 : index
    %c0_107 = arith.constant 0 : index
    %c0_108 = arith.constant 0 : index
    %192 = vector.load %arg4[%c8_106, %c0_107, %c0_108] : memref<9x16x8xf32, #tpu.memory_space<vmem>>, vector<1x16x8xf32>
    %193 = vector.shape_cast %192 : vector<1x16x8xf32> to vector<16x8xf32>
    %cst_109 = arith.constant dense<0.000000e+00> : vector<64x8xf32>
    %194 = tpu.matmul %191, %193, %cst_109 {dimension_numbers = #tpu.dot_dimension_numbers<[1], [0], [0], [1], [0, 0, 1, 1], [], []>} : vector<64x16xf32>, vector<16x8xf32>, vector<64x8xf32> -> vector<64x8xf32>
    %195 = arith.addf %189, %194 : vector<64x8xf32>
    %c0_110 = arith.constant 0 : index
    %c0_111 = arith.constant 0 : index
    %196 = vector.load %arg5[%c0_110, %c0_111] : memref<1x8xf32, #tpu.memory_space<vmem>>, vector<1x8xf32>
    %197 = vector.broadcast %196 : vector<1x8xf32> to vector<64x8xf32>
    %198 = arith.addf %195, %197 : vector<64x8xf32>
    %cst_112 = arith.constant 0.000000e+00 : f32
    %199 = vector.broadcast %cst_112 : f32 to vector<64x8xf32>
    %200 = arith.maximumf %198, %199 : vector<64x8xf32>
    %201 = tpu.iota {dimensions = array<i32: 0>} : vector<16x64xi32>
    %202 = tpu.iota {dimensions = array<i32: 1>} : vector<16x64xi32>
    %c2_i32_113 = arith.constant 2 : i32
    %203 = vector.broadcast %c2_i32_113 : i32 to vector<16x64xi32>
    %204 = arith.shrsi %201, %203 : vector<16x64xi32>
    %c3_i32_114 = arith.constant 3 : i32
    %205 = vector.broadcast %c3_i32_114 : i32 to vector<16x64xi32>
    %206 = arith.andi %201, %205 : vector<16x64xi32>
    %c2_i32_115 = arith.constant 2 : i32
    %207 = vector.broadcast %c2_i32_115 : i32 to vector<16x64xi32>
    %208 = arith.muli %207, %204 : vector<16x64xi32>
    %c0_i32_116 = arith.constant 0 : i32
    %209 = vector.broadcast %c0_i32_116 : i32 to vector<16x64xi32>
    %210 = arith.addi %208, %209 : vector<16x64xi32>
    %c8_i32 = arith.constant 8 : i32
    %211 = vector.broadcast %c8_i32 : i32 to vector<16x64xi32>
    %212 = arith.muli %210, %211 : vector<16x64xi32>
    %c2_i32_117 = arith.constant 2 : i32
    %213 = vector.broadcast %c2_i32_117 : i32 to vector<16x64xi32>
    %214 = arith.muli %213, %206 : vector<16x64xi32>
    %215 = arith.addi %212, %214 : vector<16x64xi32>
    %c0_i32_118 = arith.constant 0 : i32
    %216 = vector.broadcast %c0_i32_118 : i32 to vector<16x64xi32>
    %217 = arith.addi %215, %216 : vector<16x64xi32>
    %218 = arith.cmpi eq, %202, %217 : vector<16x64xi32>
    %219 = arith.extui %218 : vector<16x64xi1> to vector<16x64xi32>
    %220 = arith.sitofp %219 : vector<16x64xi32> to vector<16x64xf32>
    %cst_119 = arith.constant dense<0.000000e+00> : vector<16x8xf32>
    %221 = tpu.matmul %220, %200, %cst_119 {dimension_numbers = #tpu.dot_dimension_numbers<[1], [0], [0], [1], [0, 0, 1, 1], [], []>} : vector<16x64xf32>, vector<64x8xf32>, vector<16x8xf32> -> vector<16x8xf32>
    %c2_i32_120 = arith.constant 2 : i32
    %222 = vector.broadcast %c2_i32_120 : i32 to vector<16x64xi32>
    %223 = arith.muli %222, %204 : vector<16x64xi32>
    %c0_i32_121 = arith.constant 0 : i32
    %224 = vector.broadcast %c0_i32_121 : i32 to vector<16x64xi32>
    %225 = arith.addi %223, %224 : vector<16x64xi32>
    %c8_i32_122 = arith.constant 8 : i32
    %226 = vector.broadcast %c8_i32_122 : i32 to vector<16x64xi32>
    %227 = arith.muli %225, %226 : vector<16x64xi32>
    %c2_i32_123 = arith.constant 2 : i32
    %228 = vector.broadcast %c2_i32_123 : i32 to vector<16x64xi32>
    %229 = arith.muli %228, %206 : vector<16x64xi32>
    %230 = arith.addi %227, %229 : vector<16x64xi32>
    %c1_i32_124 = arith.constant 1 : i32
    %231 = vector.broadcast %c1_i32_124 : i32 to vector<16x64xi32>
    %232 = arith.addi %230, %231 : vector<16x64xi32>
    %233 = arith.cmpi eq, %202, %232 : vector<16x64xi32>
    %234 = arith.extui %233 : vector<16x64xi1> to vector<16x64xi32>
    %235 = arith.sitofp %234 : vector<16x64xi32> to vector<16x64xf32>
    %cst_125 = arith.constant dense<0.000000e+00> : vector<16x8xf32>
    %236 = tpu.matmul %235, %200, %cst_125 {dimension_numbers = #tpu.dot_dimension_numbers<[1], [0], [0], [1], [0, 0, 1, 1], [], []>} : vector<16x64xf32>, vector<64x8xf32>, vector<16x8xf32> -> vector<16x8xf32>
    %237 = arith.maximumf %221, %236 : vector<16x8xf32>
    %c2_i32_126 = arith.constant 2 : i32
    %238 = vector.broadcast %c2_i32_126 : i32 to vector<16x64xi32>
    %239 = arith.muli %238, %204 : vector<16x64xi32>
    %c1_i32_127 = arith.constant 1 : i32
    %240 = vector.broadcast %c1_i32_127 : i32 to vector<16x64xi32>
    %241 = arith.addi %239, %240 : vector<16x64xi32>
    %c8_i32_128 = arith.constant 8 : i32
    %242 = vector.broadcast %c8_i32_128 : i32 to vector<16x64xi32>
    %243 = arith.muli %241, %242 : vector<16x64xi32>
    %c2_i32_129 = arith.constant 2 : i32
    %244 = vector.broadcast %c2_i32_129 : i32 to vector<16x64xi32>
    %245 = arith.muli %244, %206 : vector<16x64xi32>
    %246 = arith.addi %243, %245 : vector<16x64xi32>
    %c0_i32_130 = arith.constant 0 : i32
    %247 = vector.broadcast %c0_i32_130 : i32 to vector<16x64xi32>
    %248 = arith.addi %246, %247 : vector<16x64xi32>
    %249 = arith.cmpi eq, %202, %248 : vector<16x64xi32>
    %250 = arith.extui %249 : vector<16x64xi1> to vector<16x64xi32>
    %251 = arith.sitofp %250 : vector<16x64xi32> to vector<16x64xf32>
    %cst_131 = arith.constant dense<0.000000e+00> : vector<16x8xf32>
    %252 = tpu.matmul %251, %200, %cst_131 {dimension_numbers = #tpu.dot_dimension_numbers<[1], [0], [0], [1], [0, 0, 1, 1], [], []>} : vector<16x64xf32>, vector<64x8xf32>, vector<16x8xf32> -> vector<16x8xf32>
    %253 = arith.maximumf %237, %252 : vector<16x8xf32>
    %c2_i32_132 = arith.constant 2 : i32
    %254 = vector.broadcast %c2_i32_132 : i32 to vector<16x64xi32>
    %255 = arith.muli %254, %204 : vector<16x64xi32>
    %c1_i32_133 = arith.constant 1 : i32
    %256 = vector.broadcast %c1_i32_133 : i32 to vector<16x64xi32>
    %257 = arith.addi %255, %256 : vector<16x64xi32>
    %c8_i32_134 = arith.constant 8 : i32
    %258 = vector.broadcast %c8_i32_134 : i32 to vector<16x64xi32>
    %259 = arith.muli %257, %258 : vector<16x64xi32>
    %c2_i32_135 = arith.constant 2 : i32
    %260 = vector.broadcast %c2_i32_135 : i32 to vector<16x64xi32>
    %261 = arith.muli %260, %206 : vector<16x64xi32>
    %262 = arith.addi %259, %261 : vector<16x64xi32>
    %c1_i32_136 = arith.constant 1 : i32
    %263 = vector.broadcast %c1_i32_136 : i32 to vector<16x64xi32>
    %264 = arith.addi %262, %263 : vector<16x64xi32>
    %265 = arith.cmpi eq, %202, %264 : vector<16x64xi32>
    %266 = arith.extui %265 : vector<16x64xi1> to vector<16x64xi32>
    %267 = arith.sitofp %266 : vector<16x64xi32> to vector<16x64xf32>
    %cst_137 = arith.constant dense<0.000000e+00> : vector<16x8xf32>
    %268 = tpu.matmul %267, %200, %cst_137 {dimension_numbers = #tpu.dot_dimension_numbers<[1], [0], [0], [1], [0, 0, 1, 1], [], []>} : vector<16x64xf32>, vector<64x8xf32>, vector<16x8xf32> -> vector<16x8xf32>
    %269 = arith.maximumf %253, %268 : vector<16x8xf32>
    %270 = tpu.iota {dimensions = array<i32: 0>} : vector<64x16xi32>
    %271 = tpu.iota {dimensions = array<i32: 1>} : vector<64x16xi32>
    %c3_i32_138 = arith.constant 3 : i32
    %272 = vector.broadcast %c3_i32_138 : i32 to vector<64x16xi32>
    %273 = arith.shrsi %270, %272 : vector<64x16xi32>
    %c7_i32_139 = arith.constant 7 : i32
    %274 = vector.broadcast %c7_i32_139 : i32 to vector<64x16xi32>
    %275 = arith.andi %270, %274 : vector<64x16xi32>
    %c1_i32_140 = arith.constant 1 : i32
    %276 = vector.broadcast %c1_i32_140 : i32 to vector<64x16xi32>
    %277 = arith.shrsi %273, %276 : vector<64x16xi32>
    %c4_i32 = arith.constant 4 : i32
    %278 = vector.broadcast %c4_i32 : i32 to vector<64x16xi32>
    %279 = arith.muli %277, %278 : vector<64x16xi32>
    %c1_i32_141 = arith.constant 1 : i32
    %280 = vector.broadcast %c1_i32_141 : i32 to vector<64x16xi32>
    %281 = arith.shrsi %275, %280 : vector<64x16xi32>
    %282 = arith.addi %279, %281 : vector<64x16xi32>
    %283 = arith.cmpi eq, %271, %282 : vector<64x16xi32>
    %284 = arith.extui %283 : vector<64x16xi1> to vector<64x16xi32>
    %285 = arith.sitofp %284 : vector<64x16xi32> to vector<64x16xf32>
    %cst_142 = arith.constant dense<0.000000e+00> : vector<64x8xf32>
    %286 = tpu.matmul %285, %269, %cst_142 {dimension_numbers = #tpu.dot_dimension_numbers<[1], [0], [0], [1], [0, 0, 1, 1], [], []>} : vector<64x16xf32>, vector<16x8xf32>, vector<64x8xf32> -> vector<64x8xf32>
    %cst_143 = arith.constant 0.000000e+00 : f32
    %287 = vector.broadcast %cst_143 : f32 to vector<10x24x8xf32>
    %c0_144 = arith.constant 0 : index
    %c0_145 = arith.constant 0 : index
    %c0_146 = arith.constant 0 : index
    %288 = vector.load %arg15[%c0_144, %c0_145, %c0_146] : memref<10x24x8xf32, #tpu.memory_space<vmem>>, vector<10x24x8xf32>
    tpu.vector_store %arg15[%c0_144, %c0_145, %c0_146], %287 {strides = array<i32>} : memref<10x24x8xf32, #tpu.memory_space<vmem>>, vector<10x24x8xf32>,
    %289 = vector.shape_cast %286 : vector<64x8xf32> to vector<8x8x8xf32>
    %c1_147 = arith.constant 1 : index
    %c8_148 = arith.constant 8 : index
    %c0_149 = arith.constant 0 : index
    %290 = vector.load %arg15[%c1_147, %c8_148, %c0_149] : memref<10x24x8xf32, #tpu.memory_space<vmem>>, vector<8x8x8xf32>
    tpu.vector_store %arg15[%c1_147, %c8_148, %c0_149], %289 {strides = array<i32>} : memref<10x24x8xf32, #tpu.memory_space<vmem>>, vector<8x8x8xf32>,
    %c0_150 = arith.constant 0 : index
    %c0_151 = arith.constant 0 : index
    %c0_152 = arith.constant 0 : index
    %291 = vector.load %arg15[%c0_150, %c0_151, %c0_152] : memref<10x24x8xf32, #tpu.memory_space<vmem>>, vector<10x24x8xf32>
    %cst_153 = arith.constant 0.000000e+00 : f32
    %292 = vector.broadcast %cst_153 : f32 to vector<64x8xf32>
    %293 = vector.extract_strided_slice %291 {offsets = [0, 7, 0], sizes = [8, 8, 8], strides = [1, 1, 1]} : vector<10x24x8xf32> to vector<8x8x8xf32>
    %294 = vector.shape_cast %293 : vector<8x8x8xf32> to vector<64x8xf32>
    %c0_154 = arith.constant 0 : index
    %c0_155 = arith.constant 0 : index
    %c0_156 = arith.constant 0 : index
    %295 = vector.load %arg6[%c0_154, %c0_155, %c0_156] : memref<9x8x8xf32, #tpu.memory_space<vmem>>, vector<1x8x8xf32>
    %296 = vector.shape_cast %295 : vector<1x8x8xf32> to vector<8x8xf32>
    %cst_157 = arith.constant dense<0.000000e+00> : vector<64x8xf32>
    %297 = tpu.matmul %294, %296, %cst_157 {dimension_numbers = #tpu.dot_dimension_numbers<[1], [0], [0], [1], [0, 0, 1, 1], [], []>} : vector<64x8xf32>, vector<8x8xf32>, vector<64x8xf32> -> vector<64x8xf32>
    %298 = arith.addf %292, %297 : vector<64x8xf32>
    %299 = vector.extract_strided_slice %291 {offsets = [0, 8, 0], sizes = [8, 8, 8], strides = [1, 1, 1]} : vector<10x24x8xf32> to vector<8x8x8xf32>
    %300 = vector.shape_cast %299 : vector<8x8x8xf32> to vector<64x8xf32>
    %c1_158 = arith.constant 1 : index
    %c0_159 = arith.constant 0 : index
    %c0_160 = arith.constant 0 : index
    %301 = vector.load %arg6[%c1_158, %c0_159, %c0_160] : memref<9x8x8xf32, #tpu.memory_space<vmem>>, vector<1x8x8xf32>
    %302 = vector.shape_cast %301 : vector<1x8x8xf32> to vector<8x8xf32>
    %cst_161 = arith.constant dense<0.000000e+00> : vector<64x8xf32>
    %303 = tpu.matmul %300, %302, %cst_161 {dimension_numbers = #tpu.dot_dimension_numbers<[1], [0], [0], [1], [0, 0, 1, 1], [], []>} : vector<64x8xf32>, vector<8x8xf32>, vector<64x8xf32> -> vector<64x8xf32>
    %304 = arith.addf %298, %303 : vector<64x8xf32>
    %305 = vector.extract_strided_slice %291 {offsets = [0, 9, 0], sizes = [8, 8, 8], strides = [1, 1, 1]} : vector<10x24x8xf32> to vector<8x8x8xf32>
    %306 = vector.shape_cast %305 : vector<8x8x8xf32> to vector<64x8xf32>
    %c2_162 = arith.constant 2 : index
    %c0_163 = arith.constant 0 : index
    %c0_164 = arith.constant 0 : index
    %307 = vector.load %arg6[%c2_162, %c0_163, %c0_164] : memref<9x8x8xf32, #tpu.memory_space<vmem>>, vector<1x8x8xf32>
    %308 = vector.shape_cast %307 : vector<1x8x8xf32> to vector<8x8xf32>
    %cst_165 = arith.constant dense<0.000000e+00> : vector<64x8xf32>
    %309 = tpu.matmul %306, %308, %cst_165 {dimension_numbers = #tpu.dot_dimension_numbers<[1], [0], [0], [1], [0, 0, 1, 1], [], []>} : vector<64x8xf32>, vector<8x8xf32>, vector<64x8xf32> -> vector<64x8xf32>
    %310 = arith.addf %304, %309 : vector<64x8xf32>
    %311 = vector.extract_strided_slice %291 {offsets = [1, 7, 0], sizes = [8, 8, 8], strides = [1, 1, 1]} : vector<10x24x8xf32> to vector<8x8x8xf32>
    %312 = vector.shape_cast %311 : vector<8x8x8xf32> to vector<64x8xf32>
    %c3_166 = arith.constant 3 : index
    %c0_167 = arith.constant 0 : index
    %c0_168 = arith.constant 0 : index
    %313 = vector.load %arg6[%c3_166, %c0_167, %c0_168] : memref<9x8x8xf32, #tpu.memory_space<vmem>>, vector<1x8x8xf32>
    %314 = vector.shape_cast %313 : vector<1x8x8xf32> to vector<8x8xf32>
    %cst_169 = arith.constant dense<0.000000e+00> : vector<64x8xf32>
    %315 = tpu.matmul %312, %314, %cst_169 {dimension_numbers = #tpu.dot_dimension_numbers<[1], [0], [0], [1], [0, 0, 1, 1], [], []>} : vector<64x8xf32>, vector<8x8xf32>, vector<64x8xf32> -> vector<64x8xf32>
    %316 = arith.addf %310, %315 : vector<64x8xf32>
    %317 = vector.extract_strided_slice %291 {offsets = [1, 8, 0], sizes = [8, 8, 8], strides = [1, 1, 1]} : vector<10x24x8xf32> to vector<8x8x8xf32>
    %318 = vector.shape_cast %317 : vector<8x8x8xf32> to vector<64x8xf32>
    %c4_170 = arith.constant 4 : index
    %c0_171 = arith.constant 0 : index
    %c0_172 = arith.constant 0 : index
    %319 = vector.load %arg6[%c4_170, %c0_171, %c0_172] : memref<9x8x8xf32, #tpu.memory_space<vmem>>, vector<1x8x8xf32>
    %320 = vector.shape_cast %319 : vector<1x8x8xf32> to vector<8x8xf32>
    %cst_173 = arith.constant dense<0.000000e+00> : vector<64x8xf32>
    %321 = tpu.matmul %318, %320, %cst_173 {dimension_numbers = #tpu.dot_dimension_numbers<[1], [0], [0], [1], [0, 0, 1, 1], [], []>} : vector<64x8xf32>, vector<8x8xf32>, vector<64x8xf32> -> vector<64x8xf32>
    %322 = arith.addf %316, %321 : vector<64x8xf32>
    %323 = vector.extract_strided_slice %291 {offsets = [1, 9, 0], sizes = [8, 8, 8], strides = [1, 1, 1]} : vector<10x24x8xf32> to vector<8x8x8xf32>
    %324 = vector.shape_cast %323 : vector<8x8x8xf32> to vector<64x8xf32>
    %c5_174 = arith.constant 5 : index
    %c0_175 = arith.constant 0 : index
    %c0_176 = arith.constant 0 : index
    %325 = vector.load %arg6[%c5_174, %c0_175, %c0_176] : memref<9x8x8xf32, #tpu.memory_space<vmem>>, vector<1x8x8xf32>
    %326 = vector.shape_cast %325 : vector<1x8x8xf32> to vector<8x8xf32>
    %cst_177 = arith.constant dense<0.000000e+00> : vector<64x8xf32>
    %327 = tpu.matmul %324, %326, %cst_177 {dimension_numbers = #tpu.dot_dimension_numbers<[1], [0], [0], [1], [0, 0, 1, 1], [], []>} : vector<64x8xf32>, vector<8x8xf32>, vector<64x8xf32> -> vector<64x8xf32>
    %328 = arith.addf %322, %327 : vector<64x8xf32>
    %329 = vector.extract_strided_slice %291 {offsets = [2, 7, 0], sizes = [8, 8, 8], strides = [1, 1, 1]} : vector<10x24x8xf32> to vector<8x8x8xf32>
    %330 = vector.shape_cast %329 : vector<8x8x8xf32> to vector<64x8xf32>
    %c6_178 = arith.constant 6 : index
    %c0_179 = arith.constant 0 : index
    %c0_180 = arith.constant 0 : index
    %331 = vector.load %arg6[%c6_178, %c0_179, %c0_180] : memref<9x8x8xf32, #tpu.memory_space<vmem>>, vector<1x8x8xf32>
    %332 = vector.shape_cast %331 : vector<1x8x8xf32> to vector<8x8xf32>
    %cst_181 = arith.constant dense<0.000000e+00> : vector<64x8xf32>
    %333 = tpu.matmul %330, %332, %cst_181 {dimension_numbers = #tpu.dot_dimension_numbers<[1], [0], [0], [1], [0, 0, 1, 1], [], []>} : vector<64x8xf32>, vector<8x8xf32>, vector<64x8xf32> -> vector<64x8xf32>
    %334 = arith.addf %328, %333 : vector<64x8xf32>
    %335 = vector.extract_strided_slice %291 {offsets = [2, 8, 0], sizes = [8, 8, 8], strides = [1, 1, 1]} : vector<10x24x8xf32> to vector<8x8x8xf32>
    %336 = vector.shape_cast %335 : vector<8x8x8xf32> to vector<64x8xf32>
    %c7_182 = arith.constant 7 : index
    %c0_183 = arith.constant 0 : index
    %c0_184 = arith.constant 0 : index
    %337 = vector.load %arg6[%c7_182, %c0_183, %c0_184] : memref<9x8x8xf32, #tpu.memory_space<vmem>>, vector<1x8x8xf32>
    %338 = vector.shape_cast %337 : vector<1x8x8xf32> to vector<8x8xf32>
    %cst_185 = arith.constant dense<0.000000e+00> : vector<64x8xf32>
    %339 = tpu.matmul %336, %338, %cst_185 {dimension_numbers = #tpu.dot_dimension_numbers<[1], [0], [0], [1], [0, 0, 1, 1], [], []>} : vector<64x8xf32>, vector<8x8xf32>, vector<64x8xf32> -> vector<64x8xf32>
    %340 = arith.addf %334, %339 : vector<64x8xf32>
    %341 = vector.extract_strided_slice %291 {offsets = [2, 9, 0], sizes = [8, 8, 8], strides = [1, 1, 1]} : vector<10x24x8xf32> to vector<8x8x8xf32>
    %342 = vector.shape_cast %341 : vector<8x8x8xf32> to vector<64x8xf32>
    %c8_186 = arith.constant 8 : index
    %c0_187 = arith.constant 0 : index
    %c0_188 = arith.constant 0 : index
    %343 = vector.load %arg6[%c8_186, %c0_187, %c0_188] : memref<9x8x8xf32, #tpu.memory_space<vmem>>, vector<1x8x8xf32>
    %344 = vector.shape_cast %343 : vector<1x8x8xf32> to vector<8x8xf32>
    %cst_189 = arith.constant dense<0.000000e+00> : vector<64x8xf32>
    %345 = tpu.matmul %342, %344, %cst_189 {dimension_numbers = #tpu.dot_dimension_numbers<[1], [0], [0], [1], [0, 0, 1, 1], [], []>} : vector<64x8xf32>, vector<8x8xf32>, vector<64x8xf32> -> vector<64x8xf32>
    %346 = arith.addf %340, %345 : vector<64x8xf32>
    %c0_190 = arith.constant 0 : index
    %c0_191 = arith.constant 0 : index
    %347 = vector.load %arg7[%c0_190, %c0_191] : memref<1x8xf32, #tpu.memory_space<vmem>>, vector<1x8xf32>
    %348 = vector.broadcast %347 : vector<1x8xf32> to vector<64x8xf32>
    %349 = arith.addf %346, %348 : vector<64x8xf32>
    %cst_192 = arith.constant 0.000000e+00 : f32
    %350 = vector.broadcast %cst_192 : f32 to vector<64x8xf32>
    %351 = arith.maximumf %349, %350 : vector<64x8xf32>
    %352 = tpu.iota {dimensions = array<i32: 0>} : vector<256x64xi32>
    %353 = tpu.iota {dimensions = array<i32: 1>} : vector<256x64xi32>
    %c4_i32_193 = arith.constant 4 : i32
    %354 = vector.broadcast %c4_i32_193 : i32 to vector<256x64xi32>
    %355 = arith.shrsi %352, %354 : vector<256x64xi32>
    %c15_i32 = arith.constant 15 : i32
    %356 = vector.broadcast %c15_i32 : i32 to vector<256x64xi32>
    %357 = arith.andi %352, %356 : vector<256x64xi32>
    %c1_i32_194 = arith.constant 1 : i32
    %358 = vector.broadcast %c1_i32_194 : i32 to vector<256x64xi32>
    %359 = arith.shrsi %355, %358 : vector<256x64xi32>
    %c8_i32_195 = arith.constant 8 : i32
    %360 = vector.broadcast %c8_i32_195 : i32 to vector<256x64xi32>
    %361 = arith.muli %359, %360 : vector<256x64xi32>
    %c1_i32_196 = arith.constant 1 : i32
    %362 = vector.broadcast %c1_i32_196 : i32 to vector<256x64xi32>
    %363 = arith.shrsi %357, %362 : vector<256x64xi32>
    %364 = arith.addi %361, %363 : vector<256x64xi32>
    %365 = arith.cmpi eq, %353, %364 : vector<256x64xi32>
    %366 = arith.extui %365 : vector<256x64xi1> to vector<256x64xi32>
    %367 = arith.sitofp %366 : vector<256x64xi32> to vector<256x64xf32>
    %cst_197 = arith.constant dense<0.000000e+00> : vector<256x8xf32>
    %368 = tpu.matmul %367, %351, %cst_197 {dimension_numbers = #tpu.dot_dimension_numbers<[1], [0], [0], [1], [0, 0, 1, 1], [], []>} : vector<256x64xf32>, vector<64x8xf32>, vector<256x8xf32> -> vector<256x8xf32>
    %cst_198 = arith.constant 0.000000e+00 : f32
    %369 = vector.broadcast %cst_198 : f32 to vector<18x32x8xf32>
    %c0_199 = arith.constant 0 : index
    %c0_200 = arith.constant 0 : index
    %c0_201 = arith.constant 0 : index
    %370 = vector.load %arg16[%c0_199, %c0_200, %c0_201] : memref<18x32x8xf32, #tpu.memory_space<vmem>>, vector<18x32x8xf32>
    tpu.vector_store %arg16[%c0_199, %c0_200, %c0_201], %369 {strides = array<i32>} : memref<18x32x8xf32, #tpu.memory_space<vmem>>, vector<18x32x8xf32>,
    %371 = vector.shape_cast %368 : vector<256x8xf32> to vector<16x16x8xf32>
    %c1_202 = arith.constant 1 : index
    %c8_203 = arith.constant 8 : index
    %c0_204 = arith.constant 0 : index
    %372 = vector.load %arg16[%c1_202, %c8_203, %c0_204] : memref<18x32x8xf32, #tpu.memory_space<vmem>>, vector<16x16x8xf32>
    tpu.vector_store %arg16[%c1_202, %c8_203, %c0_204], %371 {strides = array<i32>} : memref<18x32x8xf32, #tpu.memory_space<vmem>>, vector<16x16x8xf32>,
    %c0_205 = arith.constant 0 : index
    %c0_206 = arith.constant 0 : index
    %c0_207 = arith.constant 0 : index
    %373 = vector.load %arg16[%c0_205, %c0_206, %c0_207] : memref<18x32x8xf32, #tpu.memory_space<vmem>>, vector<18x32x8xf32>
    %cst_208 = arith.constant 0.000000e+00 : f32
    %374 = vector.broadcast %cst_208 : f32 to vector<256x16xf32>
    %375 = vector.extract_strided_slice %373 {offsets = [0, 7, 0], sizes = [16, 16, 8], strides = [1, 1, 1]} : vector<18x32x8xf32> to vector<16x16x8xf32>
    %376 = vector.shape_cast %375 : vector<16x16x8xf32> to vector<256x8xf32>
    %c0_209 = arith.constant 0 : index
    %c0_210 = arith.constant 0 : index
    %c0_211 = arith.constant 0 : index
    %377 = vector.load %arg8[%c0_209, %c0_210, %c0_211] : memref<9x8x16xf32, #tpu.memory_space<vmem>>, vector<1x8x16xf32>
    %378 = vector.shape_cast %377 : vector<1x8x16xf32> to vector<8x16xf32>
    %cst_212 = arith.constant dense<0.000000e+00> : vector<256x16xf32>
    %379 = tpu.matmul %376, %378, %cst_212 {dimension_numbers = #tpu.dot_dimension_numbers<[1], [0], [0], [1], [0, 0, 1, 1], [], []>} : vector<256x8xf32>, vector<8x16xf32>, vector<256x16xf32> -> vector<256x16xf32>
    %380 = arith.addf %374, %379 : vector<256x16xf32>
    %381 = vector.extract_strided_slice %373 {offsets = [0, 8, 0], sizes = [16, 16, 8], strides = [1, 1, 1]} : vector<18x32x8xf32> to vector<16x16x8xf32>
    %382 = vector.shape_cast %381 : vector<16x16x8xf32> to vector<256x8xf32>
    %c1_213 = arith.constant 1 : index
    %c0_214 = arith.constant 0 : index
    %c0_215 = arith.constant 0 : index
    %383 = vector.load %arg8[%c1_213, %c0_214, %c0_215] : memref<9x8x16xf32, #tpu.memory_space<vmem>>, vector<1x8x16xf32>
    %384 = vector.shape_cast %383 : vector<1x8x16xf32> to vector<8x16xf32>
    %cst_216 = arith.constant dense<0.000000e+00> : vector<256x16xf32>
    %385 = tpu.matmul %382, %384, %cst_216 {dimension_numbers = #tpu.dot_dimension_numbers<[1], [0], [0], [1], [0, 0, 1, 1], [], []>} : vector<256x8xf32>, vector<8x16xf32>, vector<256x16xf32> -> vector<256x16xf32>
    %386 = arith.addf %380, %385 : vector<256x16xf32>
    %387 = vector.extract_strided_slice %373 {offsets = [0, 9, 0], sizes = [16, 16, 8], strides = [1, 1, 1]} : vector<18x32x8xf32> to vector<16x16x8xf32>
    %388 = vector.shape_cast %387 : vector<16x16x8xf32> to vector<256x8xf32>
    %c2_217 = arith.constant 2 : index
    %c0_218 = arith.constant 0 : index
    %c0_219 = arith.constant 0 : index
    %389 = vector.load %arg8[%c2_217, %c0_218, %c0_219] : memref<9x8x16xf32, #tpu.memory_space<vmem>>, vector<1x8x16xf32>
    %390 = vector.shape_cast %389 : vector<1x8x16xf32> to vector<8x16xf32>
    %cst_220 = arith.constant dense<0.000000e+00> : vector<256x16xf32>
    %391 = tpu.matmul %388, %390, %cst_220 {dimension_numbers = #tpu.dot_dimension_numbers<[1], [0], [0], [1], [0, 0, 1, 1], [], []>} : vector<256x8xf32>, vector<8x16xf32>, vector<256x16xf32> -> vector<256x16xf32>
    %392 = arith.addf %386, %391 : vector<256x16xf32>
    %393 = vector.extract_strided_slice %373 {offsets = [1, 7, 0], sizes = [16, 16, 8], strides = [1, 1, 1]} : vector<18x32x8xf32> to vector<16x16x8xf32>
    %394 = vector.shape_cast %393 : vector<16x16x8xf32> to vector<256x8xf32>
    %c3_221 = arith.constant 3 : index
    %c0_222 = arith.constant 0 : index
    %c0_223 = arith.constant 0 : index
    %395 = vector.load %arg8[%c3_221, %c0_222, %c0_223] : memref<9x8x16xf32, #tpu.memory_space<vmem>>, vector<1x8x16xf32>
    %396 = vector.shape_cast %395 : vector<1x8x16xf32> to vector<8x16xf32>
    %cst_224 = arith.constant dense<0.000000e+00> : vector<256x16xf32>
    %397 = tpu.matmul %394, %396, %cst_224 {dimension_numbers = #tpu.dot_dimension_numbers<[1], [0], [0], [1], [0, 0, 1, 1], [], []>} : vector<256x8xf32>, vector<8x16xf32>, vector<256x16xf32> -> vector<256x16xf32>
    %398 = arith.addf %392, %397 : vector<256x16xf32>
    %399 = vector.extract_strided_slice %373 {offsets = [1, 8, 0], sizes = [16, 16, 8], strides = [1, 1, 1]} : vector<18x32x8xf32> to vector<16x16x8xf32>
    %400 = vector.shape_cast %399 : vector<16x16x8xf32> to vector<256x8xf32>
    %c4_225 = arith.constant 4 : index
    %c0_226 = arith.constant 0 : index
    %c0_227 = arith.constant 0 : index
    %401 = vector.load %arg8[%c4_225, %c0_226, %c0_227] : memref<9x8x16xf32, #tpu.memory_space<vmem>>, vector<1x8x16xf32>
    %402 = vector.shape_cast %401 : vector<1x8x16xf32> to vector<8x16xf32>
    %cst_228 = arith.constant dense<0.000000e+00> : vector<256x16xf32>
    %403 = tpu.matmul %400, %402, %cst_228 {dimension_numbers = #tpu.dot_dimension_numbers<[1], [0], [0], [1], [0, 0, 1, 1], [], []>} : vector<256x8xf32>, vector<8x16xf32>, vector<256x16xf32> -> vector<256x16xf32>
    %404 = arith.addf %398, %403 : vector<256x16xf32>
    %405 = vector.extract_strided_slice %373 {offsets = [1, 9, 0], sizes = [16, 16, 8], strides = [1, 1, 1]} : vector<18x32x8xf32> to vector<16x16x8xf32>
    %406 = vector.shape_cast %405 : vector<16x16x8xf32> to vector<256x8xf32>
    %c5_229 = arith.constant 5 : index
    %c0_230 = arith.constant 0 : index
    %c0_231 = arith.constant 0 : index
    %407 = vector.load %arg8[%c5_229, %c0_230, %c0_231] : memref<9x8x16xf32, #tpu.memory_space<vmem>>, vector<1x8x16xf32>
    %408 = vector.shape_cast %407 : vector<1x8x16xf32> to vector<8x16xf32>
    %cst_232 = arith.constant dense<0.000000e+00> : vector<256x16xf32>
    %409 = tpu.matmul %406, %408, %cst_232 {dimension_numbers = #tpu.dot_dimension_numbers<[1], [0], [0], [1], [0, 0, 1, 1], [], []>} : vector<256x8xf32>, vector<8x16xf32>, vector<256x16xf32> -> vector<256x16xf32>
    %410 = arith.addf %404, %409 : vector<256x16xf32>
    %411 = vector.extract_strided_slice %373 {offsets = [2, 7, 0], sizes = [16, 16, 8], strides = [1, 1, 1]} : vector<18x32x8xf32> to vector<16x16x8xf32>
    %412 = vector.shape_cast %411 : vector<16x16x8xf32> to vector<256x8xf32>
    %c6_233 = arith.constant 6 : index
    %c0_234 = arith.constant 0 : index
    %c0_235 = arith.constant 0 : index
    %413 = vector.load %arg8[%c6_233, %c0_234, %c0_235] : memref<9x8x16xf32, #tpu.memory_space<vmem>>, vector<1x8x16xf32>
    %414 = vector.shape_cast %413 : vector<1x8x16xf32> to vector<8x16xf32>
    %cst_236 = arith.constant dense<0.000000e+00> : vector<256x16xf32>
    %415 = tpu.matmul %412, %414, %cst_236 {dimension_numbers = #tpu.dot_dimension_numbers<[1], [0], [0], [1], [0, 0, 1, 1], [], []>} : vector<256x8xf32>, vector<8x16xf32>, vector<256x16xf32> -> vector<256x16xf32>
    %416 = arith.addf %410, %415 : vector<256x16xf32>
    %417 = vector.extract_strided_slice %373 {offsets = [2, 8, 0], sizes = [16, 16, 8], strides = [1, 1, 1]} : vector<18x32x8xf32> to vector<16x16x8xf32>
    %418 = vector.shape_cast %417 : vector<16x16x8xf32> to vector<256x8xf32>
    %c7_237 = arith.constant 7 : index
    %c0_238 = arith.constant 0 : index
    %c0_239 = arith.constant 0 : index
    %419 = vector.load %arg8[%c7_237, %c0_238, %c0_239] : memref<9x8x16xf32, #tpu.memory_space<vmem>>, vector<1x8x16xf32>
    %420 = vector.shape_cast %419 : vector<1x8x16xf32> to vector<8x16xf32>
    %cst_240 = arith.constant dense<0.000000e+00> : vector<256x16xf32>
    %421 = tpu.matmul %418, %420, %cst_240 {dimension_numbers = #tpu.dot_dimension_numbers<[1], [0], [0], [1], [0, 0, 1, 1], [], []>} : vector<256x8xf32>, vector<8x16xf32>, vector<256x16xf32> -> vector<256x16xf32>
    %422 = arith.addf %416, %421 : vector<256x16xf32>
    %423 = vector.extract_strided_slice %373 {offsets = [2, 9, 0], sizes = [16, 16, 8], strides = [1, 1, 1]} : vector<18x32x8xf32> to vector<16x16x8xf32>
    %424 = vector.shape_cast %423 : vector<16x16x8xf32> to vector<256x8xf32>
    %c8_241 = arith.constant 8 : index
    %c0_242 = arith.constant 0 : index
    %c0_243 = arith.constant 0 : index
    %425 = vector.load %arg8[%c8_241, %c0_242, %c0_243] : memref<9x8x16xf32, #tpu.memory_space<vmem>>, vector<1x8x16xf32>
    %426 = vector.shape_cast %425 : vector<1x8x16xf32> to vector<8x16xf32>
    %cst_244 = arith.constant dense<0.000000e+00> : vector<256x16xf32>
    %427 = tpu.matmul %424, %426, %cst_244 {dimension_numbers = #tpu.dot_dimension_numbers<[1], [0], [0], [1], [0, 0, 1, 1], [], []>} : vector<256x8xf32>, vector<8x16xf32>, vector<256x16xf32> -> vector<256x16xf32>
    %428 = arith.addf %422, %427 : vector<256x16xf32>
    %c0_245 = arith.constant 0 : index
    %c0_246 = arith.constant 0 : index
    %429 = vector.load %arg9[%c0_245, %c0_246] : memref<1x16xf32, #tpu.memory_space<vmem>>, vector<1x16xf32>
    %430 = vector.broadcast %429 : vector<1x16xf32> to vector<256x16xf32>
    %431 = arith.addf %428, %430 : vector<256x16xf32>
    %cst_247 = arith.constant 0.000000e+00 : f32
    %432 = vector.broadcast %cst_247 : f32 to vector<256x16xf32>
    %433 = arith.maximumf %431, %432 : vector<256x16xf32>
    %cst_248 = arith.constant 0.000000e+00 : f32
    %434 = vector.broadcast %cst_248 : f32 to vector<18x32x16xf32>
    %c0_249 = arith.constant 0 : index
    %c0_250 = arith.constant 0 : index
    %c0_251 = arith.constant 0 : index
    %435 = vector.load %arg17[%c0_249, %c0_250, %c0_251] : memref<18x32x16xf32, #tpu.memory_space<vmem>>, vector<18x32x16xf32>
    tpu.vector_store %arg17[%c0_249, %c0_250, %c0_251], %434 {strides = array<i32>} : memref<18x32x16xf32, #tpu.memory_space<vmem>>, vector<18x32x16xf32>,
    %436 = vector.shape_cast %433 : vector<256x16xf32> to vector<16x16x16xf32>
    %c1_252 = arith.constant 1 : index
    %c8_253 = arith.constant 8 : index
    %c0_254 = arith.constant 0 : index
    %437 = vector.load %arg17[%c1_252, %c8_253, %c0_254] : memref<18x32x16xf32, #tpu.memory_space<vmem>>, vector<16x16x16xf32>
    tpu.vector_store %arg17[%c1_252, %c8_253, %c0_254], %436 {strides = array<i32>} : memref<18x32x16xf32, #tpu.memory_space<vmem>>, vector<16x16x16xf32>,
    %c0_255 = arith.constant 0 : index
    %c0_256 = arith.constant 0 : index
    %c0_257 = arith.constant 0 : index
    %438 = vector.load %arg17[%c0_255, %c0_256, %c0_257] : memref<18x32x16xf32, #tpu.memory_space<vmem>>, vector<18x32x16xf32>
    %cst_258 = arith.constant 0.000000e+00 : f32
    %439 = vector.broadcast %cst_258 : f32 to vector<256x4xf32>
    %440 = vector.extract_strided_slice %438 {offsets = [0, 7, 0], sizes = [16, 16, 16], strides = [1, 1, 1]} : vector<18x32x16xf32> to vector<16x16x16xf32>
    %441 = vector.shape_cast %440 : vector<16x16x16xf32> to vector<256x16xf32>
    %c0_259 = arith.constant 0 : index
    %c0_260 = arith.constant 0 : index
    %c0_261 = arith.constant 0 : index
    %442 = vector.load %arg10[%c0_259, %c0_260, %c0_261] : memref<9x16x4xf32, #tpu.memory_space<vmem>>, vector<1x16x4xf32>
    %443 = vector.shape_cast %442 : vector<1x16x4xf32> to vector<16x4xf32>
    %cst_262 = arith.constant dense<0.000000e+00> : vector<256x4xf32>
    %444 = tpu.matmul %441, %443, %cst_262 {dimension_numbers = #tpu.dot_dimension_numbers<[1], [0], [0], [1], [0, 0, 1, 1], [], []>} : vector<256x16xf32>, vector<16x4xf32>, vector<256x4xf32> -> vector<256x4xf32>
    %445 = arith.addf %439, %444 : vector<256x4xf32>
    %446 = vector.extract_strided_slice %438 {offsets = [0, 8, 0], sizes = [16, 16, 16], strides = [1, 1, 1]} : vector<18x32x16xf32> to vector<16x16x16xf32>
    %447 = vector.shape_cast %446 : vector<16x16x16xf32> to vector<256x16xf32>
    %c1_263 = arith.constant 1 : index
    %c0_264 = arith.constant 0 : index
    %c0_265 = arith.constant 0 : index
    %448 = vector.load %arg10[%c1_263, %c0_264, %c0_265] : memref<9x16x4xf32, #tpu.memory_space<vmem>>, vector<1x16x4xf32>
    %449 = vector.shape_cast %448 : vector<1x16x4xf32> to vector<16x4xf32>
    %cst_266 = arith.constant dense<0.000000e+00> : vector<256x4xf32>
    %450 = tpu.matmul %447, %449, %cst_266 {dimension_numbers = #tpu.dot_dimension_numbers<[1], [0], [0], [1], [0, 0, 1, 1], [], []>} : vector<256x16xf32>, vector<16x4xf32>, vector<256x4xf32> -> vector<256x4xf32>
    %451 = arith.addf %445, %450 : vector<256x4xf32>
    %452 = vector.extract_strided_slice %438 {offsets = [0, 9, 0], sizes = [16, 16, 16], strides = [1, 1, 1]} : vector<18x32x16xf32> to vector<16x16x16xf32>
    %453 = vector.shape_cast %452 : vector<16x16x16xf32> to vector<256x16xf32>
    %c2_267 = arith.constant 2 : index
    %c0_268 = arith.constant 0 : index
    %c0_269 = arith.constant 0 : index
    %454 = vector.load %arg10[%c2_267, %c0_268, %c0_269] : memref<9x16x4xf32, #tpu.memory_space<vmem>>, vector<1x16x4xf32>
    %455 = vector.shape_cast %454 : vector<1x16x4xf32> to vector<16x4xf32>
    %cst_270 = arith.constant dense<0.000000e+00> : vector<256x4xf32>
    %456 = tpu.matmul %453, %455, %cst_270 {dimension_numbers = #tpu.dot_dimension_numbers<[1], [0], [0], [1], [0, 0, 1, 1], [], []>} : vector<256x16xf32>, vector<16x4xf32>, vector<256x4xf32> -> vector<256x4xf32>
    %457 = arith.addf %451, %456 : vector<256x4xf32>
    %458 = vector.extract_strided_slice %438 {offsets = [1, 7, 0], sizes = [16, 16, 16], strides = [1, 1, 1]} : vector<18x32x16xf32> to vector<16x16x16xf32>
    %459 = vector.shape_cast %458 : vector<16x16x16xf32> to vector<256x16xf32>
    %c3_271 = arith.constant 3 : index
    %c0_272 = arith.constant 0 : index
    %c0_273 = arith.constant 0 : index
    %460 = vector.load %arg10[%c3_271, %c0_272, %c0_273] : memref<9x16x4xf32, #tpu.memory_space<vmem>>, vector<1x16x4xf32>
    %461 = vector.shape_cast %460 : vector<1x16x4xf32> to vector<16x4xf32>
    %cst_274 = arith.constant dense<0.000000e+00> : vector<256x4xf32>
    %462 = tpu.matmul %459, %461, %cst_274 {dimension_numbers = #tpu.dot_dimension_numbers<[1], [0], [0], [1], [0, 0, 1, 1], [], []>} : vector<256x16xf32>, vector<16x4xf32>, vector<256x4xf32> -> vector<256x4xf32>
    %463 = arith.addf %457, %462 : vector<256x4xf32>
    %464 = vector.extract_strided_slice %438 {offsets = [1, 8, 0], sizes = [16, 16, 16], strides = [1, 1, 1]} : vector<18x32x16xf32> to vector<16x16x16xf32>
    %465 = vector.shape_cast %464 : vector<16x16x16xf32> to vector<256x16xf32>
    %c4_275 = arith.constant 4 : index
    %c0_276 = arith.constant 0 : index
    %c0_277 = arith.constant 0 : index
    %466 = vector.load %arg10[%c4_275, %c0_276, %c0_277] : memref<9x16x4xf32, #tpu.memory_space<vmem>>, vector<1x16x4xf32>
    %467 = vector.shape_cast %466 : vector<1x16x4xf32> to vector<16x4xf32>
    %cst_278 = arith.constant dense<0.000000e+00> : vector<256x4xf32>
    %468 = tpu.matmul %465, %467, %cst_278 {dimension_numbers = #tpu.dot_dimension_numbers<[1], [0], [0], [1], [0, 0, 1, 1], [], []>} : vector<256x16xf32>, vector<16x4xf32>, vector<256x4xf32> -> vector<256x4xf32>
    %469 = arith.addf %463, %468 : vector<256x4xf32>
    %470 = vector.extract_strided_slice %438 {offsets = [1, 9, 0], sizes = [16, 16, 16], strides = [1, 1, 1]} : vector<18x32x16xf32> to vector<16x16x16xf32>
    %471 = vector.shape_cast %470 : vector<16x16x16xf32> to vector<256x16xf32>
    %c5_279 = arith.constant 5 : index
    %c0_280 = arith.constant 0 : index
    %c0_281 = arith.constant 0 : index
    %472 = vector.load %arg10[%c5_279, %c0_280, %c0_281] : memref<9x16x4xf32, #tpu.memory_space<vmem>>, vector<1x16x4xf32>
    %473 = vector.shape_cast %472 : vector<1x16x4xf32> to vector<16x4xf32>
    %cst_282 = arith.constant dense<0.000000e+00> : vector<256x4xf32>
    %474 = tpu.matmul %471, %473, %cst_282 {dimension_numbers = #tpu.dot_dimension_numbers<[1], [0], [0], [1], [0, 0, 1, 1], [], []>} : vector<256x16xf32>, vector<16x4xf32>, vector<256x4xf32> -> vector<256x4xf32>
    %475 = arith.addf %469, %474 : vector<256x4xf32>
    %476 = vector.extract_strided_slice %438 {offsets = [2, 7, 0], sizes = [16, 16, 16], strides = [1, 1, 1]} : vector<18x32x16xf32> to vector<16x16x16xf32>
    %477 = vector.shape_cast %476 : vector<16x16x16xf32> to vector<256x16xf32>
    %c6_283 = arith.constant 6 : index
    %c0_284 = arith.constant 0 : index
    %c0_285 = arith.constant 0 : index
    %478 = vector.load %arg10[%c6_283, %c0_284, %c0_285] : memref<9x16x4xf32, #tpu.memory_space<vmem>>, vector<1x16x4xf32>
    %479 = vector.shape_cast %478 : vector<1x16x4xf32> to vector<16x4xf32>
    %cst_286 = arith.constant dense<0.000000e+00> : vector<256x4xf32>
    %480 = tpu.matmul %477, %479, %cst_286 {dimension_numbers = #tpu.dot_dimension_numbers<[1], [0], [0], [1], [0, 0, 1, 1], [], []>} : vector<256x16xf32>, vector<16x4xf32>, vector<256x4xf32> -> vector<256x4xf32>
    %481 = arith.addf %475, %480 : vector<256x4xf32>
    %482 = vector.extract_strided_slice %438 {offsets = [2, 8, 0], sizes = [16, 16, 16], strides = [1, 1, 1]} : vector<18x32x16xf32> to vector<16x16x16xf32>
    %483 = vector.shape_cast %482 : vector<16x16x16xf32> to vector<256x16xf32>
    %c7_287 = arith.constant 7 : index
    %c0_288 = arith.constant 0 : index
    %c0_289 = arith.constant 0 : index
    %484 = vector.load %arg10[%c7_287, %c0_288, %c0_289] : memref<9x16x4xf32, #tpu.memory_space<vmem>>, vector<1x16x4xf32>
    %485 = vector.shape_cast %484 : vector<1x16x4xf32> to vector<16x4xf32>
    %cst_290 = arith.constant dense<0.000000e+00> : vector<256x4xf32>
    %486 = tpu.matmul %483, %485, %cst_290 {dimension_numbers = #tpu.dot_dimension_numbers<[1], [0], [0], [1], [0, 0, 1, 1], [], []>} : vector<256x16xf32>, vector<16x4xf32>, vector<256x4xf32> -> vector<256x4xf32>
    %487 = arith.addf %481, %486 : vector<256x4xf32>
    %488 = vector.extract_strided_slice %438 {offsets = [2, 9, 0], sizes = [16, 16, 16], strides = [1, 1, 1]} : vector<18x32x16xf32> to vector<16x16x16xf32>
    %489 = vector.shape_cast %488 : vector<16x16x16xf32> to vector<256x16xf32>
    %c8_291 = arith.constant 8 : index
    %c0_292 = arith.constant 0 : index
    %c0_293 = arith.constant 0 : index
    %490 = vector.load %arg10[%c8_291, %c0_292, %c0_293] : memref<9x16x4xf32, #tpu.memory_space<vmem>>, vector<1x16x4xf32>
    %491 = vector.shape_cast %490 : vector<1x16x4xf32> to vector<16x4xf32>
    %cst_294 = arith.constant dense<0.000000e+00> : vector<256x4xf32>
    %492 = tpu.matmul %489, %491, %cst_294 {dimension_numbers = #tpu.dot_dimension_numbers<[1], [0], [0], [1], [0, 0, 1, 1], [], []>} : vector<256x16xf32>, vector<16x4xf32>, vector<256x4xf32> -> vector<256x4xf32>
    %493 = arith.addf %487, %492 : vector<256x4xf32>
    %c0_295 = arith.constant 0 : index
    %c0_296 = arith.constant 0 : index
    %494 = vector.load %arg11[%c0_295, %c0_296] : memref<1x4xf32, #tpu.memory_space<vmem>>, vector<1x4xf32>
    %495 = vector.broadcast %494 : vector<1x4xf32> to vector<256x4xf32>
    %496 = arith.addf %493, %495 : vector<256x4xf32>
    %cst_297 = arith.constant 0.000000e+00 : f32
    %497 = vector.broadcast %cst_297 : f32 to vector<256x4xf32>
    %498 = arith.maximumf %496, %497 : vector<256x4xf32>
    %499 = vector.shape_cast %498 : vector<256x4xf32> to vector<1x256x4xf32>
    %c0_298 = arith.constant 0 : index
    %c0_299 = arith.constant 0 : index
    %c0_300 = arith.constant 0 : index
    %500 = vector.load %arg12[%c0_298, %c0_299, %c0_300] : memref<1x256x4xf32, #tpu.memory_space<vmem>>, vector<1x256x4xf32>
    tpu.vector_store %arg12[%c0_298, %c0_299, %c0_300], %499 {strides = array<i32>} : memref<1x256x4xf32, #tpu.memory_space<vmem>>, vector<1x256x4xf32>,
    return
  }
  func.func @transform_0(%arg0: i32) -> (i32, i32, i32) {
    %c0_i32 = arith.constant 0 : i32
    %c0_i32_0 = arith.constant 0 : i32
    %c0_i32_1 = arith.constant 0 : i32
    return %arg0, %c0_i32, %c0_i32_0 : i32, i32, i32
  }
  func.func @transform_1(%arg0: i32) -> (i32, i32, i32) {
    %c0_i32 = arith.constant 0 : i32
    %c0_i32_0 = arith.constant 0 : i32
    %c0_i32_1 = arith.constant 0 : i32
    %c0_i32_2 = arith.constant 0 : i32
    return %c0_i32, %c0_i32_0, %c0_i32_1 : i32, i32, i32
  }
  func.func @transform_2(%arg0: i32) -> (i32, i32) {
    %c0_i32 = arith.constant 0 : i32
    %c0_i32_0 = arith.constant 0 : i32
    %c0_i32_1 = arith.constant 0 : i32
    return %c0_i32, %c0_i32_0 : i32, i32
  }
  func.func @transform_3(%arg0: i32) -> (i32, i32, i32) {
    %c0_i32 = arith.constant 0 : i32
    %c0_i32_0 = arith.constant 0 : i32
    %c0_i32_1 = arith.constant 0 : i32
    %c0_i32_2 = arith.constant 0 : i32
    return %c0_i32, %c0_i32_0, %c0_i32_1 : i32, i32, i32
  }
  func.func @transform_4(%arg0: i32) -> (i32, i32) {
    %c0_i32 = arith.constant 0 : i32
    %c0_i32_0 = arith.constant 0 : i32
    %c0_i32_1 = arith.constant 0 : i32
    return %c0_i32, %c0_i32_0 : i32, i32
  }
  func.func @transform_5(%arg0: i32) -> (i32, i32, i32) {
    %c0_i32 = arith.constant 0 : i32
    %c0_i32_0 = arith.constant 0 : i32
    %c0_i32_1 = arith.constant 0 : i32
    %c0_i32_2 = arith.constant 0 : i32
    return %c0_i32, %c0_i32_0, %c0_i32_1 : i32, i32, i32
  }
  func.func @transform_6(%arg0: i32) -> (i32, i32) {
    %c0_i32 = arith.constant 0 : i32
    %c0_i32_0 = arith.constant 0 : i32
    %c0_i32_1 = arith.constant 0 : i32
    return %c0_i32, %c0_i32_0 : i32, i32
  }
  func.func @transform_7(%arg0: i32) -> (i32, i32, i32) {
    %c0_i32 = arith.constant 0 : i32
    %c0_i32_0 = arith.constant 0 : i32
    %c0_i32_1 = arith.constant 0 : i32
    %c0_i32_2 = arith.constant 0 : i32
    return %c0_i32, %c0_i32_0, %c0_i32_1 : i32, i32, i32
  }
  func.func @transform_8(%arg0: i32) -> (i32, i32) {
    %c0_i32 = arith.constant 0 : i32
    %c0_i32_0 = arith.constant 0 : i32
    %c0_i32_1 = arith.constant 0 : i32
    return %c0_i32, %c0_i32_0 : i32, i32
  }
  func.func @transform_9(%arg0: i32) -> (i32, i32, i32) {
    %c0_i32 = arith.constant 0 : i32
    %c0_i32_0 = arith.constant 0 : i32
    %c0_i32_1 = arith.constant 0 : i32
    %c0_i32_2 = arith.constant 0 : i32
    return %c0_i32, %c0_i32_0, %c0_i32_1 : i32, i32, i32
  }
  func.func @transform_10(%arg0: i32) -> (i32, i32) {
    %c0_i32 = arith.constant 0 : i32
    %c0_i32_0 = arith.constant 0 : i32
    %c0_i32_1 = arith.constant 0 : i32
    return %c0_i32, %c0_i32_0 : i32, i32
  }
  func.func @transform_11(%arg0: i32) -> (i32, i32, i32) {
    %c0_i32 = arith.constant 0 : i32
    %c0_i32_0 = arith.constant 0 : i32
    %c0_i32_1 = arith.constant 0 : i32
    return %arg0, %c0_i32, %c0_i32_0 : i32, i32, i32
  }
}

</mosaic_0001>

<bundles_post_ra>
// kernel: conv_autoencoder_f2.1
= control target key start
LH: loop header
LB: loop body
LE: loop exit
PB: predicated region body
PF: predicated region fallthrough
CT: control target
= control target key end

     0   :  { %s19732_s17 = smov 0   ;;  %s24734_s0 = inlined_call_operand.vmem [shape: f32[2,256,4], index: 0, kind: input, shape index: {}]   ;;  %s24735_s1 = inlined_call_operand.vmem [shape: f32[9,4,16], index: 1, kind: input, shape index: {}]   ;;  %s24736_s2 = inlined_call_operand.vmem [shape: f32[1,16], index: 2, kind: input, shape index: {}]   ;;  %s24737_s3 = inlined_call_operand.vmem [shape: f32[9,16,8], index: 3, kind: input, shape index: {}]   ;;  %s24738_s4 = inlined_call_operand.vmem [shape: f32[1,8], index: 4, kind: input, shape index: {}]   ;;  %s24739_s5 = inlined_call_operand.vmem [shape: f32[9,8,8], index: 5, kind: input, shape index: {}]   ;;  %s24740_s6 = inlined_call_operand.vmem [shape: f32[1,8], index: 6, kind: input, shape index: {}]   ;;  %s24741_s7 = inlined_call_operand.vmem [shape: f32[9,8,16], index: 7, kind: input, shape index: {}]   ;;  %s24742_s8 = inlined_call_operand.vmem [shape: f32[1,16], index: 8, kind: input, shape index: {}]   ;;  %s24743_s9 = inlined_call_operand.vmem [shape: f32[9,16,4], index: 9, kind: input, shape index: {}]   ;;  %s24744_s10 = inlined_call_operand.vmem [shape: f32[1,4], index: 10, kind: input, shape index: {}]   ;;  %s24745_s11 = inlined_call_operand.vmem [shape: f32[2,256,4], index: 11, kind: output, shape index: {}]  }
   0x1 LB: > { %s13954_s18 = sadd.s32 4294967295, %s19668_s17   ;;  %p13958_p0 = scmp.ge.s32.totalorder %s19668_s17, 1  ;;  %s19668_s17 = sphi %s19732_s17, %s21_s17  }
   0x2   : > { %p337_p1 = scmp.lt.s32.totalorder %s19668_s17, 3 }
   0x4   : > { %p338_p2 = pnand %p13958_p0, %p337_p1 }
   0x6   : > { %341 = sbr.rel (%p338_p2) target bundleno = 4141 (0x102d), region = 64 }
   0xd   : > { %v19743_v0 = vld [vmem:[%s24735_s1 + $0x4] sm:$0xf]  ;;  %vm793_vm0 = vcmask 1043456   ;;  %vm419_vm1 = vcmask 31744   ;;  %p19747_p3 = scmp.lt.s32.totalorder %s13954_s18, 1  ;;  %v24746_v1 = vmov 0.0  }
   0xe   : > { %16654 = vmatprep.subr.msk.mxu0 %vm793_vm0, %v19743_v0  ;;  %421 = vst.msk [vmem:[#allocation2 + $0x8] sm:$0xff] %vm419_vm1, %v24746_v1  ;;  %420 = vst.msk [vmem:[#allocation2] sm:$0xff] %vm419_vm1, %v24746_v1  ;;  %v726_v2 = vld [vmem:[%s24735_s1] sm:$0xf]  ;;  %vm1330_vm2 = vcmask 1046528   ;;  %vm645_vm3 = vcmask 1040384  }
   0xf   : > { %422 = vst.msk [vmem:[#allocation2 + $0x10] sm:$0xff] %vm419_vm1, %v24746_v1  ;;  %423 = vst.msk [vmem:[#allocation2 + $0x18] sm:$0xff] %vm419_vm1, %v24746_v1  ;;  %16655 = vmatpush3.msk.msra.mxu0 %vm793_vm0, %v19743_v0  ;;  %s25260_s18 = smov (!%p19747_p3, %s13954_s18), 1  ;;  %v19944_v16 = vld [vmem:[%s24735_s1 + $0x8] sm:$0xf] }
  0x10   : > { %424 = vst.msk [vmem:[#allocation2 + $0x20] sm:$0xff] %vm419_vm1, %v24746_v1  ;;  %425 = vst.msk [vmem:[#allocation2 + $0x28] sm:$0xff] %vm419_vm1, %v24746_v1  ;;  %16704 = vmatprep.subr.msk.mxu0 %vm793_vm0, %v726_v2  ;;  %s15267_s24 = sshll.u32 %s25260_s18, 8 }
  0x11   : > { %426 = vst.msk [vmem:[#allocation2 + $0x30] sm:$0xff] %vm419_vm1, %v24746_v1  ;;  %427 = vst.msk [vmem:[#allocation2 + $0x38] sm:$0xff] %vm419_vm1, %v24746_v1  ;;  %s19915_s27 = scalar_lea.vmem %s24734_s0, %s15267_s24  ;;  %s24634_s15 = scalar_lea.vmem %s24745_s11, %s15267_s24 }
  0x12   : > { %428 = vst.msk [vmem:[#allocation2 + $0x40] sm:$0xff] %vm419_vm1, %v24746_v1  ;;  %429 = vst.msk [vmem:[#allocation2 + $0x48] sm:$0xff] %vm419_vm1, %v24746_v1  ;;  %v387_v3 = vld [vmem:[%s19915_s27] sm:$0xff]  ;;  %v388_v4 = vld [vmem:[%s19915_s27 + $0x8] sm:$0xff] }
  0x13   : > { %430 = vst.msk [vmem:[#allocation2 + $0x50] sm:$0xff] %vm419_vm1, %v24746_v1  ;;  %431 = vst.msk [vmem:[#allocation2 + $0x58] sm:$0xff] %vm419_vm1, %v24746_v1  ;;  %v389_v5 = vld [vmem:[%s19915_s27 + $0x10] sm:$0xff]  ;;  %v390_v6 = vld [vmem:[%s19915_s27 + $0x18] sm:$0xff] }
  0x14   : > { %432 = vst.msk [vmem:[#allocation2 + $0x60] sm:$0xff] %vm419_vm1, %v24746_v1  ;;  %433 = vst.msk [vmem:[#allocation2 + $0x68] sm:$0xff] %vm419_vm1, %v24746_v1  ;;  %v391_v7 = vld [vmem:[%s19915_s27 + $0x20] sm:$0xff]  ;;  %v392_v8 = vld [vmem:[%s19915_s27 + $0x28] sm:$0xff] }
  0x15   : > { %434 = vst.msk [vmem:[#allocation2 + $0x70] sm:$0xff] %vm419_vm1, %v24746_v1  ;;  %435 = vst.msk [vmem:[#allocation2 + $0x78] sm:$0xff] %vm419_vm1, %v24746_v1  ;;  %v19926_v9 = vld [vmem:[#allocation2 + $0x8] sm:$0xff]  ;;  %v393_v11 = vld [vmem:[%s19915_s27 + $0x30] sm:$0xff] }
  0x16   : > { %436 = vst.msk [vmem:[#allocation2 + $0x80] sm:$0xff] %vm419_vm1, %v24746_v1  ;;  %437 = vst.msk [vmem:[#allocation2 + $0x88] sm:$0xff] %vm419_vm1, %v24746_v1  ;;  %v19928_v10 = vld [vmem:[#allocation2 + $0x10] sm:$0xff]  ;;  %16656 = vmatprep.mubr.msk.f32.mxu0 %vm419_vm1, %v19926_v9  ;;  %v1331_v12 = vrot.slane %v19926_v9, 1  ;;  %v394_v14 = vld [vmem:[%s19915_s27 + $0x38] sm:$0xff] }
  0x17   : > { %438 = vst.msk [vmem:[#allocation2 + $0x90] sm:$0xff] %vm419_vm1, %v24746_v1  ;;  %439 = vst.msk [vmem:[#allocation2 + $0x98] sm:$0xff] %vm419_vm1, %v24746_v1  ;;  %v24748_v13 = vrot.slane %v19928_v10, 1  ;;  %v395_v15 = vld [vmem:[%s19915_s27 + $0x40] sm:$0xff]  ;;  %16657 = vmatmul.mubr.msk.f32.vlgmr.msra.gmra.mrb[0].mxu0 %vm419_vm1, %v19928_v10  ;;  %v396_v17 = vld [vmem:[%s19915_s27 + $0x48] sm:$0xff] }
  0x18   : > { %440 = vst.msk [vmem:[#allocation2 + $0xa0] sm:$0xff] %vm419_vm1, %v24746_v1  ;;  %441 = vst.msk [vmem:[#allocation2 + $0xa8] sm:$0xff] %vm419_vm1, %v24746_v1  ;;  %v397_v18 = vld [vmem:[%s19915_s27 + $0x50] sm:$0xff]  ;;  %v398_v19 = vld [vmem:[%s19915_s27 + $0x58] sm:$0xff]  ;;  %16705 = vmatpush3.msk.msra.mxu0 %vm793_vm0, %v726_v2 }
  0x19   : > { %442 = vst.msk [vmem:[#allocation2 + $0xb0] sm:$0xff] %vm419_vm1, %v24746_v1  ;;  %443 = vst.msk [vmem:[#allocation2 + $0xb8] sm:$0xff] %vm419_vm1, %v24746_v1  ;;  %v399_v20 = vld [vmem:[%s19915_s27 + $0x60] sm:$0xff]  ;;  %v400_v21 = vld [vmem:[%s19915_s27 + $0x68] sm:$0xff]  ;;  %v19963_v23 = vsel %vm1330_vm2, %v1331_v12, %v24748_v13  ;;  %16754 = vmatprep.subr.msk.mxu0 %vm793_vm0, %v19944_v16 }
  0x1a   : > { %444 = vst.msk [vmem:[#allocation2 + $0xc0] sm:$0xff] %vm419_vm1, %v24746_v1  ;;  %445 = vst.msk [vmem:[#allocation2 + $0xc8] sm:$0xff] %vm419_vm1, %v24746_v1  ;;  %v401_v22 = vld [vmem:[%s19915_s27 + $0x70] sm:$0xff]  ;;  %v402_v24 = vld [vmem:[%s19915_s27 + $0x78] sm:$0xff] }
  0x1b   : > { %446 = vst.msk [vmem:[#allocation2 + $0xd0] sm:$0xff] %vm419_vm1, %v24746_v1  ;;  %447 = vst.msk [vmem:[#allocation2 + $0xd8] sm:$0xff] %vm419_vm1, %v24746_v1  ;;  %v403_v25 = vld [vmem:[%s19915_s27 + $0x80] sm:$0xff]  ;;  %v404_v26 = vld [vmem:[%s19915_s27 + $0x88] sm:$0xff] }
  0x1c   : > { %448 = vst.msk [vmem:[#allocation2 + $0xe0] sm:$0xff] %vm419_vm1, %v24746_v1  ;;  %449 = vst.msk [vmem:[#allocation2 + $0xe8] sm:$0xff] %vm419_vm1, %v24746_v1  ;;  %v405_v27 = vld [vmem:[%s19915_s27 + $0x90] sm:$0xff]  ;;  %v406_v28 = vld [vmem:[%s19915_s27 + $0x98] sm:$0xff] }
  0x1d   : > { %450 = vst.msk [vmem:[#allocation2 + $0xf0] sm:$0xff] %vm419_vm1, %v24746_v1  ;;  %451 = vst.msk [vmem:[#allocation2 + $0xf8] sm:$0xff] %vm419_vm1, %v24746_v1  ;;  %v407_v29 = vld [vmem:[%s19915_s27 + $0xa0] sm:$0xff]  ;;  %v408_v33 = vld [vmem:[%s19915_s27 + $0xa8] sm:$0xff] }
  0x1e   : > { %452 = vst.msk [vmem:[#allocation2 + $0x100] sm:$0xff] %vm419_vm1, %v24746_v1  ;;  %453 = vst.msk [vmem:[#allocation2 + $0x108] sm:$0xff] %vm419_vm1, %v24746_v1  ;;  %v409_v35 = vld [vmem:[%s19915_s27 + $0xb0] sm:$0xff]  ;;  %v410_v39 = vld [vmem:[%s19915_s27 + $0xb8] sm:$0xff] }
  0x1f   : > { %454 = vst.msk [vmem:[#allocation2 + $0x110] sm:$0xff] %vm419_vm1, %v24746_v1  ;;  %455 = vst.msk [vmem:[#allocation2 + $0x118] sm:$0xff] %vm419_vm1, %v24746_v1  ;;  %v411_v40 = vld [vmem:[%s19915_s27 + $0xc0] sm:$0xff]  ;;  %v412_v41 = vld [vmem:[%s19915_s27 + $0xc8] sm:$0xff] }
  0x20   : > { %456 = vst.msk [vmem:[#allocation2 + $0x120] sm:$0xff] %vm419_vm1, %v24746_v1  ;;  %457 = vst.msk [vmem:[#allocation2 + $0x128] sm:$0xff] %vm419_vm1, %v24746_v1  ;;  %v413_v42 = vld [vmem:[%s19915_s27 + $0xd0] sm:$0xff]  ;;  %v414_v43 = vld [vmem:[%s19915_s27 + $0xd8] sm:$0xff] }
  0x21   : > { %458 = vst.msk [vmem:[#allocation2 + $0x130] sm:$0xff] %vm419_vm1, %v24746_v1  ;;  %459 = vst.msk [vmem:[#allocation2 + $0x138] sm:$0xff] %vm419_vm1, %v24746_v1  ;;  %v415_v44 = vld [vmem:[%s19915_s27 + $0xe0] sm:$0xff]  ;;  %v416_v45 = vld [vmem:[%s19915_s27 + $0xe8] sm:$0xff] }
  0x22   : > { %460 = vst.msk [vmem:[#allocation2 + $0x140] sm:$0xff] %vm419_vm1, %v24746_v1  ;;  %461 = vst.msk [vmem:[#allocation2 + $0x148] sm:$0xff] %vm419_vm1, %v24746_v1 }
  0x23   : > { %462 = vst.msk [vmem:[#allocation2 + $0x150] sm:$0xff] %vm419_vm1, %v24746_v1  ;;  %463 = vst.msk [vmem:[#allocation2 + $0x158] sm:$0xff] %vm419_vm1, %v24746_v1 }
  0x24   : > { %464 = vst.msk [vmem:[#allocation2 + $0x160] sm:$0xff] %vm419_vm1, %v24746_v1  ;;  %465 = vst.msk [vmem:[#allocation2 + $0x168] sm:$0xff] %vm419_vm1, %v24746_v1 }
  0x25   : > { %466 = vst.msk [vmem:[#allocation2 + $0x170] sm:$0xff] %vm419_vm1, %v24746_v1  ;;  %467 = vst.msk [vmem:[#allocation2 + $0x178] sm:$0xff] %vm419_vm1, %v24746_v1 }
  0x26   : > { %468 = vst.msk [vmem:[#allocation2 + $0x180] sm:$0xff] %vm419_vm1, %v24746_v1  ;;  %469 = vst.msk [vmem:[#allocation2 + $0x188] sm:$0xff] %vm419_vm1, %v24746_v1 }
  0x27   : > { %470 = vst.msk [vmem:[#allocation2 + $0x190] sm:$0xff] %vm419_vm1, %v24746_v1  ;;  %471 = vst.msk [vmem:[#allocation2 + $0x198] sm:$0xff] %vm419_vm1, %v24746_v1 }
  0x28   : > { %472 = vst.msk [vmem:[#allocation2 + $0x1a0] sm:$0xff] %vm419_vm1, %v24746_v1  ;;  %473 = vst.msk [vmem:[#allocation2 + $0x1a8] sm:$0xff] %vm419_vm1, %v24746_v1 }
  0x29   : > { %474 = vst.msk [vmem:[#allocation2 + $0x1b0] sm:$0xff] %vm419_vm1, %v24746_v1  ;;  %475 = vst.msk [vmem:[#allocation2 + $0x1b8] sm:$0xff] %vm419_vm1, %v24746_v1 }
  0x2a   : > { %476 = vst.msk [vmem:[#allocation2 + $0x1c0] sm:$0xff] %vm419_vm1, %v24746_v1  ;;  %477 = vst.msk [vmem:[#allocation2 + $0x1c8] sm:$0xff] %vm419_vm1, %v24746_v1 }
  0x2b   : > { %478 = vst.msk [vmem:[#allocation2 + $0x1d0] sm:$0xff] %vm419_vm1, %v24746_v1  ;;  %479 = vst.msk [vmem:[#allocation2 + $0x1d8] sm:$0xff] %vm419_vm1, %v24746_v1 }
  0x2c   : > { %480 = vst.msk [vmem:[#allocation2 + $0x1e0] sm:$0xff] %vm419_vm1, %v24746_v1  ;;  %481 = vst.msk [vmem:[#allocation2 + $0x1e8] sm:$0xff] %vm419_vm1, %v24746_v1 }
  0x2d   : > { %482 = vst.msk [vmem:[#allocation2 + $0x1f0] sm:$0xff] %vm419_vm1, %v24746_v1  ;;  %483 = vst.msk [vmem:[#allocation2 + $0x1f8] sm:$0xff] %vm419_vm1, %v24746_v1 }
  0x2e   : > { %484 = vst.msk [vmem:[#allocation2 + $0x200] sm:$0xff] %vm419_vm1, %v24746_v1  ;;  %485 = vst.msk [vmem:[#allocation2 + $0x208] sm:$0xff] %vm419_vm1, %v24746_v1 }
  0x2f   : > { %486 = vst.msk [vmem:[#allocation2 + $0x210] sm:$0xff] %vm419_vm1, %v24746_v1  ;;  %487 = vst.msk [vmem:[#allocation2 + $0x218] sm:$0xff] %vm419_vm1, %v24746_v1 }
  0x30   : > { %488 = vst.msk [vmem:[#allocation2 + $0x220] sm:$0xff] %vm419_vm1, %v24746_v1  ;;  %489 = vst.msk [vmem:[#allocation2 + $0x228] sm:$0xff] %vm419_vm1, %v24746_v1 }
  0x31   : > { %490 = vst.msk [vmem:[#allocation2 + $0x230] sm:$0xff] %vm419_vm1, %v24746_v1  ;;  %491 = vst.msk [vmem:[#allocation2 + $0x238] sm:$0xff] %vm419_vm1, %v24746_v1  ;;  %v577_v1 = vld [vmem:[#allocation2 + $0x1a0] sm:$0xff] }
  0x32   : > { %493 = vst.msk [vmem:[#allocation2 + $0x28] sm:$0xff] %vm419_vm1, %v387_v3  ;;  %494 = vst.msk [vmem:[#allocation2 + $0x30] sm:$0xff] %vm419_vm1, %v388_v4  ;;  %v525_v3 = vld [vmem:[#allocation2] sm:$0xff] }
  0x33   : > { %495 = vst.msk [vmem:[#allocation2 + $0x48] sm:$0xff] %vm419_vm1, %v389_v5  ;;  %496 = vst.msk [vmem:[#allocation2 + $0x50] sm:$0xff] %vm419_vm1, %v390_v6  ;;  %v647_v5 = vrot.slane %v19926_v9, 7 }
  0x34   : > { %497 = vst.msk [vmem:[#allocation2 + $0x68] sm:$0xff] %vm419_vm1, %v391_v7  ;;  %498 = vst.msk [vmem:[#allocation2 + $0x70] sm:$0xff] %vm419_vm1, %v392_v8  ;;  %v646_v7 = vrot.slane %v525_v3, 7  ;;  %v529_v8 = vld [vmem:[#allocation2 + $0x20] sm:$0xff] }
  0x35   : > { %499 = vst.msk [vmem:[#allocation2 + $0x88] sm:$0xff] %vm419_vm1, %v393_v11  ;;  %500 = vst.msk [vmem:[#allocation2 + $0x90] sm:$0xff] %vm419_vm1, %v394_v14  ;;  %v649_v11 = vrot.slane %v19928_v10, 7  ;;  %v651_v9 = vrot.slane %v529_v8, 7  ;;  %v549_v8 = vld [vmem:[#allocation2 + $0xc0] sm:$0xff] }
  0x36   : > { %501 = vst.msk [vmem:[#allocation2 + $0xa8] sm:$0xff] %vm419_vm1, %v395_v15  ;;  %502 = vst.msk [vmem:[#allocation2 + $0xb0] sm:$0xff] %vm419_vm1, %v396_v17  ;;  %v648_v15 = vsel %vm645_vm3, %v646_v7, %v647_v5  ;;  %v533_v17 = vld [vmem:[#allocation2 + $0x40] sm:$0xff] }
  0x37   : > { %503 = vst.msk [vmem:[#allocation2 + $0xc8] sm:$0xff] %vm419_vm1, %v397_v18  ;;  %504 = vst.msk [vmem:[#allocation2 + $0xd0] sm:$0xff] %vm419_vm1, %v398_v19  ;;  %v650_v19 = vsel %vm645_vm3, %v647_v5, %v649_v11 }
  0x38   : > { %505 = vst.msk [vmem:[#allocation2 + $0xe8] sm:$0xff] %vm419_vm1, %v399_v20  ;;  %506 = vst.msk [vmem:[#allocation2 + $0xf0] sm:$0xff] %vm419_vm1, %v400_v21  ;;  %v656_v21 = vrot.slane %v533_v17, 7 }
  0x39   : > { %507 = vst.msk [vmem:[#allocation2 + $0x108] sm:$0xff] %vm419_vm1, %v401_v22  ;;  %508 = vst.msk [vmem:[#allocation2 + $0x110] sm:$0xff] %vm419_vm1, %v402_v24  ;;  %v19979_v30 = vld [vmem:[#allocation2 + $0x28] sm:$0xff]  ;;  %v19981_v31 = vld [vmem:[#allocation2 + $0x30] sm:$0xff] }
  0x3a   : > { %509 = vst.msk [vmem:[#allocation2 + $0x128] sm:$0xff] %vm419_vm1, %v403_v25  ;;  %510 = vst.msk [vmem:[#allocation2 + $0x130] sm:$0xff] %vm419_vm1, %v404_v26  ;;  %v19983_v32 = vld [vmem:[#allocation2 + $0x48] sm:$0xff]  ;;  %16659 = vmatprep.mubr.msk.f32.mxu0 %vm419_vm1, %v19979_v30  ;;  %v19995_v34 = vld [vmem:[#allocation2 + $0x50] sm:$0xff]  ;;  %v652_v14 = vrot.slane %v19979_v30, 7  ;;  %v654_v18 = vrot.slane %v19981_v31, 7 }
  0x3b   : > { %24965 = vst [vmem:[#allocation7_spill] sm:$0xff] %v19979_v30  ;;  %24966 = vst [vmem:[#allocation8_spill] sm:$0xff] %v19981_v31  ;;  %16660 = vmatmul.mubr.msk.f32.gmra.mrb[2].mxu0 %vm419_vm1, %v19981_v31  ;;  %v19999_v36 = vld [vmem:[#allocation2 + $0x68] sm:$0xff]  ;;  %v20006_v37 = vld [vmem:[#allocation2 + $0x70] sm:$0xff]  ;;  %v657_v22 = vrot.slane %v19983_v32, 7 }
  0x3c   : > { %511 = vst.msk [vmem:[#allocation2 + $0x148] sm:$0xff] %vm419_vm1, %v405_v27  ;;  %512 = vst.msk [vmem:[#allocation2 + $0x150] sm:$0xff] %vm419_vm1, %v406_v28  ;;  %16662 = vmatprep.mubr.msk.f32.mxu0 %vm419_vm1, %v19983_v32  ;;  %v20008_v38 = vld [vmem:[#allocation2 + $0x88] sm:$0xff]  ;;  %v20027_v46 = vld [vmem:[#allocation2 + $0x90] sm:$0xff]  ;;  %v20128_v20 = vsel %vm645_vm3, %v651_v9, %v652_v14  ;;  %v20142_v26 = vsel %vm645_vm3, %v652_v14, %v654_v18  ;;  %v659_v27 = vrot.slane %v19995_v34, 7  ;;  %v676_v9 = vrot.slane %v549_v8, 7 }
  0x3d   : > { %513 = vst.msk [vmem:[#allocation2 + $0x168] sm:$0xff] %vm419_vm1, %v407_v29  ;;  %514 = vst.msk [vmem:[#allocation2 + $0x170] sm:$0xff] %vm419_vm1, %v408_v33  ;;  %v20030_v47 = vld [vmem:[#allocation2 + $0xa8] sm:$0xff]  ;;  %v20036_v48 = vld [vmem:[#allocation2 + $0xb0] sm:$0xff]  ;;  %v20146_v28 = vsel %vm645_vm3, %v656_v21, %v657_v22  ;;  %v662_v33 = vrot.slane %v19999_v36, 7 }
  0x3e   : > { %515 = vst.msk [vmem:[#allocation2 + $0x188] sm:$0xff] %vm419_vm1, %v409_v35  ;;  %516 = vst.msk [vmem:[#allocation2 + $0x190] sm:$0xff] %vm419_vm1, %v410_v39  ;;  %v20038_v49 = vld [vmem:[#allocation2 + $0xc8] sm:$0xff]  ;;  %v20044_v50 = vld [vmem:[#allocation2 + $0xd0] sm:$0xff]  ;;  %v664_v39 = vrot.slane %v20006_v37, 7  ;;  %v672_v7 = vrot.slane %v20030_v47, 7 }
  0x3f   : > { %16663 = vmatmul.mubr.msk.f32.gmra.mrb[4].mxu0 %vm419_vm1, %v19995_v34  ;;  %517 = vst.msk [vmem:[#allocation2 + $0x1a8] sm:$0xff] %vm419_vm1, %v411_v40  ;;  %518 = vst.msk [vmem:[#allocation2 + $0x1b0] sm:$0xff] %vm419_vm1, %v412_v41  ;;  %v20046_v51 = vld [vmem:[#allocation2 + $0xe8] sm:$0xff]  ;;  %v20052_v52 = vld [vmem:[#allocation2 + $0xf0] sm:$0xff]  ;;  %v674_v14 = vrot.slane %v20036_v48, 7  ;;  %v677_v17 = vrot.slane %v20038_v49, 7 }
  0x40   : > { %16665 = vmatprep.mubr.msk.f32.mxu0 %vm419_vm1, %v19999_v36  ;;  %519 = vst.msk [vmem:[#allocation2 + $0x1c8] sm:$0xff] %vm419_vm1, %v413_v42  ;;  %520 = vst.msk [vmem:[#allocation2 + $0x1d0] sm:$0xff] %vm419_vm1, %v414_v43  ;;  %v20054_v53 = vld [vmem:[#allocation2 + $0x108] sm:$0xff]  ;;  %v20060_v54 = vld [vmem:[#allocation2 + $0x110] sm:$0xff]  ;;  %v667_v42 = vrot.slane %v20008_v38, 7  ;;  %v679_v21 = vrot.slane %v20044_v50, 7 }
  0x41   : > { %521 = vst.msk [vmem:[#allocation2 + $0x1e8] sm:$0xff] %vm419_vm1, %v415_v44  ;;  %522 = vst.msk [vmem:[#allocation2 + $0x1f0] sm:$0xff] %vm419_vm1, %v416_v45  ;;  %v20062_v55 = vld [vmem:[#allocation2 + $0x128] sm:$0xff]  ;;  %v20068_v56 = vld [vmem:[#allocation2 + $0x130] sm:$0xff]  ;;  %v20168_v44 = vsel %vm645_vm3, %v662_v33, %v664_v39  ;;  %v669_v45 = vrot.slane %v20027_v46, 7 }
  0x42   : > { %v537_v24 = vld [vmem:[#allocation2 + $0x60] sm:$0xff]  ;;  %v20134_v25 = vld [vmem:[%s24735_s1 + $0xc] sm:$0xf] }
  0x43   : > { %16666 = vmatmul.mubr.msk.f32.gmra.mrb[6].mxu0 %vm419_vm1, %v20006_v37  ;;  %v20070_v57 = vld [vmem:[#allocation2 + $0x148] sm:$0xff]  ;;  %v20076_v58 = vld [vmem:[#allocation2 + $0x150] sm:$0xff]  ;;  %v661_v29 = vrot.slane %v537_v24, 7  ;;  %v541_v35 = vld [vmem:[#allocation2 + $0x80] sm:$0xff]  ;;  %v20180_v11 = vsel %vm645_vm3, %v667_v42, %v669_v45 }
  0x44   : > { %16668 = vmatprep.mubr.msk.f32.mxu0 %vm419_vm1, %v20008_v38  ;;  %v20078_v59 = vld [vmem:[#allocation2 + $0x168] sm:$0xff]  ;;  %v20084_v60 = vld [vmem:[#allocation2 + $0x170] sm:$0xff]  ;;  %v666_v41 = vrot.slane %v541_v35, 7  ;;  %v545_v43 = vld [vmem:[#allocation2 + $0xa0] sm:$0xff]  ;;  %v684_v35 = vrot.slane %v20052_v52, 7 }
  0x45   : > { %v20086_v61 = vld [vmem:[#allocation2 + $0x188] sm:$0xff]  ;;  %v20092_v62 = vld [vmem:[#allocation2 + $0x190] sm:$0xff]  ;;  %v20160_v40 = vsel %vm645_vm3, %v661_v29, %v662_v33  ;;  %v671_v5 = vrot.slane %v545_v43, 7  ;;  %v553_v18 = vld [vmem:[#allocation2 + $0xe0] sm:$0xff]  ;;  %v20204_v33 = vsel %vm645_vm3, %v677_v17, %v679_v21 }
  0x46   : > { %v20094_v63 = vld [vmem:[#allocation2 + $0x1a8] sm:$0xff]  ;;  %v20100_v0 = vld [vmem:[#allocation2 + $0x1b0] sm:$0xff]  ;;  %v20172_v3 = vsel %vm645_vm3, %v666_v41, %v667_v42  ;;  %v681_v24 = vrot.slane %v553_v18, 7  ;;  %v557_v29 = vld [vmem:[#allocation2 + $0x100] sm:$0xff]  ;;  %v687_v42 = vrot.slane %v20054_v53, 7  ;;  %v694_v18 = vrot.slane %v20068_v56, 7 }
  0x47   : > { %16669 = vmatmul.mubr.msk.f32.gmra.mrb[8].mxu0 %vm419_vm1, %v20027_v46  ;;  %v20102_v2 = vld [vmem:[#allocation2 + $0x1c8] sm:$0xff]  ;;  %v20108_v4 = vld [vmem:[#allocation2 + $0x1d0] sm:$0xff]  ;;  %v686_v41 = vrot.slane %v557_v29, 7  ;;  %v561_v43 = vld [vmem:[#allocation2 + $0x120] sm:$0xff] }
  0x48   : > { %16671 = vmatprep.mubr.msk.f32.mxu0 %vm419_vm1, %v20030_v47  ;;  %v20111_v6 = vld [vmem:[#allocation2 + $0x1e8] sm:$0xff]  ;;  %v20118_v12 = vld [vmem:[#allocation2 + $0x1f0] sm:$0xff]  ;;  %v691_v8 = vrot.slane %v561_v43, 7  ;;  %v569_v29 = vld [vmem:[#allocation2 + $0x160] sm:$0xff] }
  0x49   : > { %24967 = vst [vmem:[#allocation9_spill] sm:$0xff] %v20111_v6  ;;  %24968 = vst [vmem:[#allocation10_spill] sm:$0xff] %v20118_v12  ;;  %v701_v43 = vrot.slane %v569_v29, 7  ;;  %v707_v29 = vrot.slane %v20086_v61, 7 }
  0x4b   : > { %16672 = vmatmul.mubr.msk.f32.gmra.mrb[10].mxu0 %vm419_vm1, %v20036_v48 }
  0x4c   : > { %16674 = vmatprep.mubr.msk.f32.mxu0 %vm419_vm1, %v20038_v49 }
  0x4f   : > { %16675 = vmatmul.mubr.msk.f32.gmra.mrb[12].mxu0 %vm419_vm1, %v20044_v50 }
  0x50   : > { %16677 = vmatprep.mubr.msk.f32.mxu0 %vm419_vm1, %v20046_v51 }
  0x53   : > { %16678 = vmatmul.mubr.msk.f32.gmra.mrb[14].mxu0 %vm419_vm1, %v20052_v52 }
  0x54   : > { %16680 = vmatprep.mubr.msk.f32.mxu0 %vm419_vm1, %v20054_v53 }
  0x57   : > { %16681 = vmatmul.mubr.msk.f32.gmra.mrb[16].mxu0 %vm419_vm1, %v20060_v54 }
  0x58   : > { %16683 = vmatprep.mubr.msk.f32.mxu0 %vm419_vm1, %v20062_v55 }
  0x5b   : > { %16684 = vmatmul.mubr.msk.f32.gmra.mrb[18].mxu0 %vm419_vm1, %v20068_v56 }
  0x5c   : > { %16686 = vmatprep.mubr.msk.f32.mxu0 %vm419_vm1, %v20070_v57 }
  0x5f   : > { %16687 = vmatmul.mubr.msk.f32.gmra.mrb[20].mxu0 %vm419_vm1, %v20076_v58 }
  0x60   : > { %16689 = vmatprep.mubr.msk.f32.mxu0 %vm419_vm1, %v20078_v59 }
  0x63   : > { %16690 = vmatmul.mubr.msk.f32.gmra.mrb[22].mxu0 %vm419_vm1, %v20084_v60 }
  0x64   : > { %16692 = vmatprep.mubr.msk.f32.mxu0 %vm419_vm1, %v20086_v61 }
  0x67   : > { %16693 = vmatmul.mubr.msk.f32.gmra.mrb[24].mxu0 %vm419_vm1, %v20092_v62 }
  0x68   : > { %16695 = vmatprep.mubr.msk.f32.mxu0 %vm419_vm1, %v20094_v63 }
  0x6b   : > { %16696 = vmatmul.mubr.msk.f32.gmra.mrb[26].mxu0 %vm419_vm1, %v20100_v0 }
  0x6c   : > { %16698 = vmatprep.mubr.msk.f32.mxu0 %vm419_vm1, %v20102_v2 }
  0x6f   : > { %16699 = vmatmul.mubr.msk.f32.gmra.mrb[28].mxu0 %vm419_vm1, %v20108_v4 }
  0x70   : > { %16701 = vmatprep.mubr.msk.f32.mxu0 %vm419_vm1, %v20111_v6 }
  0x73   : > { %16702 = vmatmul.mubr.msk.f32.gmra.mrb[30].mxu0 %vm419_vm1, %v20118_v12 }
  0x74   : > { %16706 = vmatprep.mubr.msk.f32.mxu0 %vm419_vm1, %v648_v15  ;;  %v20184_v15 = vsel %vm645_vm3, %v671_v5, %v672_v7  ;;  %v689_v5 = vrot.slane %v20060_v54, 7 }
  0x77   : > { %16707 = vmatmul.mubr.msk.f32.vlgmr.msra.gmra.mrb[0].mxu0 %vm419_vm1, %v650_v19  ;;  %v20192_v19 = vsel %vm645_vm3, %v672_v7, %v674_v14  ;;  %v20220_v7 = vsel %vm645_vm3, %v686_v41, %v687_v42  ;;  %v692_v14 = vrot.slane %v20062_v55, 7  ;;  %v699_v41 = vrot.slane %v20076_v58, 7 }
  0x78   : > { %16755 = vmatpush3.msk.msra.mxu0 %vm793_vm0, %v19944_v16  ;;  %16709 = vmatprep.mubr.msk.f32.mxu0 %vm419_vm1, %v20128_v20  ;;  %v20156_v16 = vsel %vm645_vm3, %v657_v22, %v659_v27  ;;  %v20196_v22 = vsel %vm645_vm3, %v676_v9, %v677_v17  ;;  %v682_v27 = vrot.slane %v20046_v51, 7  ;;  %v565_v9 = vld [vmem:[#allocation2 + $0x140] sm:$0xff]  ;;  %v20228_v17 = vsel %vm645_vm3, %v687_v42, %v689_v5 }
  0x79   : > { %16804 = vmatprep.subr.msk.mxu0 %vm793_vm0, %v20134_v25  ;;  %v20232_v21 = vsel %vm645_vm3, %v691_v8, %v692_v14  ;;  %v702_v5 = vrot.slane %v20078_v59, 7  ;;  %v573_v8 = vld [vmem:[#allocation2 + $0x180] sm:$0xff] }
  0x7a   : > { %v20208_v39 = vsel %vm645_vm3, %v681_v24, %v682_v27  ;;  %v20216_v45 = vsel %vm645_vm3, %v682_v27, %v684_v35  ;;  %v696_v24 = vrot.slane %v565_v9, 7  ;;  %v697_v27 = vrot.slane %v20070_v57, 7 }
  0x7b   : > { %16710 = vmatmul.mubr.msk.f32.gmra.mrb[2].mxu0 %vm419_vm1, %v20142_v26  ;;  %v20240_v35 = vsel %vm645_vm3, %v692_v14, %v694_v18  ;;  %v704_v14 = vrot.slane %v20084_v60, 7  ;;  %v20256_v18 = vsel %vm645_vm3, %v701_v43, %v702_v5  ;;  %v711_v43 = vrot.slane %v577_v1, 7 }
  0x7c   : > { %16712 = vmatprep.mubr.msk.f32.mxu0 %vm419_vm1, %v20146_v28  ;;  %24969 = vst [vmem:[#allocation11_spill] sm:$0xff] %v20240_v35  ;;  %v20244_v42 = vsel %vm645_vm3, %v696_v24, %v697_v27  ;;  %v20252_v9 = vsel %vm645_vm3, %v697_v27, %v699_v41  ;;  %24972 = vst [vmem:[#allocation14_spill] sm:$0xff] %v20256_v18  ;;  %v706_v24 = vrot.slane %v573_v8, 7  ;;  %v709_v27 = vrot.slane %v20092_v62, 7 }
  0x7d   : > { %24970 = vst [vmem:[#allocation12_spill] sm:$0xff] %v20244_v42  ;;  %24971 = vst [vmem:[#allocation13_spill] sm:$0xff] %v20252_v9  ;;  %v20264_v13 = vsel %vm645_vm3, %v702_v5, %v704_v14  ;;  %v712_v8 = vrot.slane %v20094_v63, 7  ;;  %v714_v5 = vrot.slane %v20100_v0, 7  ;;  %v717_v1 = vrot.slane %v20102_v2, 7 }
  0x7e   : > { %24973 = vst [vmem:[#allocation15_spill] sm:$0xff] %v20264_v13  ;;  %v20268_v41 = vsel %vm645_vm3, %v706_v24, %v707_v29 }
  0x7f   : > { %16713 = vmatmul.mubr.msk.f32.gmra.mrb[4].mxu0 %vm419_vm1, %v20156_v16  ;;  %24974 = vst [vmem:[#allocation16_spill] sm:$0xff] %v20268_v41  ;;  %v20280_v14 = vsel %vm645_vm3, %v711_v43, %v712_v8 }
  0x80   : > { %16715 = vmatprep.mubr.msk.f32.mxu0 %vm419_vm1, %v20160_v40  ;;  %24976 = vst [vmem:[#allocation18_spill] sm:$0xff] %v20280_v14 }
  0x83   : > { %16716 = vmatmul.mubr.msk.f32.gmra.mrb[6].mxu0 %vm419_vm1, %v20168_v44 }
  0x84   : > { %16718 = vmatprep.mubr.msk.f32.mxu0 %vm419_vm1, %v20172_v3 }
  0x87   : > { %16719 = vmatmul.mubr.msk.f32.gmra.mrb[8].mxu0 %vm419_vm1, %v20180_v11 }
  0x88   : > { %16721 = vmatprep.mubr.msk.f32.mxu0 %vm419_vm1, %v20184_v15 }
  0x8b   : > { %16722 = vmatmul.mubr.msk.f32.gmra.mrb[10].mxu0 %vm419_vm1, %v20192_v19 }
  0x8c   : > { %16724 = vmatprep.mubr.msk.f32.mxu0 %vm419_vm1, %v20196_v22 }
  0x8f   : > { %16725 = vmatmul.mubr.msk.f32.gmra.mrb[12].mxu0 %vm419_vm1, %v20204_v33 }
  0x90   : > { %16727 = vmatprep.mubr.msk.f32.mxu0 %vm419_vm1, %v20208_v39 }
  0x93   : > { %16728 = vmatmul.mubr.msk.f32.gmra.mrb[14].mxu0 %vm419_vm1, %v20216_v45 }
  0x94   : > { %16730 = vmatprep.mubr.msk.f32.mxu0 %vm419_vm1, %v20220_v7 }
  0x97   : > { %16731 = vmatmul.mubr.msk.f32.gmra.mrb[16].mxu0 %vm419_vm1, %v20228_v17 }
  0x98   : > { %16733 = vmatprep.mubr.msk.f32.mxu0 %vm419_vm1, %v20232_v21 }
  0x9b   : > { %16734 = vmatmul.mubr.msk.f32.gmra.mrb[18].mxu0 %vm419_vm1, %v20240_v35  ;;  %v417_v35 = vld [vmem:[%s19915_s27 + $0xf0] sm:$0xff] }
  0x9c   : > { %16736 = vmatprep.mubr.msk.f32.mxu0 %vm419_vm1, %v20244_v42  ;;  %v581_v42 = vld [vmem:[#allocation2 + $0x1c0] sm:$0xff]  ;;  %523 = vst.msk [vmem:[#allocation2 + $0x208] sm:$0xff] %vm419_vm1, %v417_v35 }
  0x9d   : > { %v716_v24 = vrot.slane %v581_v42, 7 }
  0x9f   : > { %16737 = vmatmul.mubr.msk.f32.gmra.mrb[20].mxu0 %vm419_vm1, %v20252_v9  ;;  %v585_v9 = vld [vmem:[#allocation2 + $0x1e0] sm:$0xff]  ;;  %v20296_v42 = vsel %vm645_vm3, %v716_v24, %v717_v1 }
  0xa0   : > { %16739 = vmatprep.mubr.msk.f32.mxu0 %vm419_vm1, %v20256_v18  ;;  %v20276_v18 = vsel %vm645_vm3, %v707_v29, %v709_v27  ;;  %v20291_v29 = vsel %vm645_vm3, %v712_v8, %v714_v5  ;;  %v719_v27 = vrot.slane %v20108_v4, 7  ;;  %24977 = vst [vmem:[#allocation19_spill] sm:$0xff] %v20296_v42  ;;  %v721_v43 = vrot.slane %v585_v9, 7 }
  0xa1   : > { %24975 = vst [vmem:[#allocation17_spill] sm:$0xff] %v20276_v18  ;;  %v724_v8 = vrot.slane %v20118_v12, 7 }
  0xa2   : > { %v20304_v35 = vsel %vm645_vm3, %v717_v1, %v719_v27  ;;  %v1337_v1 = vrot.slane %v19981_v31, 1  ;;  %v532_v27 = vld [vmem:[#allocation2 + $0x38] sm:$0xff] }
  0xa3   : > { %16740 = vmatmul.mubr.msk.f32.gmra.mrb[22].mxu0 %vm419_vm1, %v20264_v13  ;;  %v418_v13 = vld [vmem:[%s19915_s27 + $0xf8] sm:$0xff]  ;;  %24978 = vst [vmem:[#allocation20_spill] sm:$0xff] %v20304_v35 }
  0xa4   : > { %16742 = vmatprep.mubr.msk.f32.mxu0 %vm419_vm1, %v20268_v41  ;;  %524 = vst.msk [vmem:[#allocation2 + $0x210] sm:$0xff] %vm419_vm1, %v418_v13  ;;  %v722_v41 = vrot.slane %v20111_v6, 7  ;;  %v528_v13 = vld [vmem:[#allocation2 + $0x18] sm:$0xff] }
  0xa5   : > { %v1334_v24 = vrot.slane %v528_v13, 1  ;;  %v1342_v13 = vrot.slane %v19995_v34, 1  ;;  %v536_v31 = vld [vmem:[#allocation2 + $0x58] sm:$0xff] }
  0xa6   : > { %v20308_v5 = vsel %vm645_vm3, %v721_v43, %v722_v41  ;;  %v20315_v9 = vsel %vm645_vm3, %v722_v41, %v724_v8  ;;  %v24980_v43 = vrot.slane %v19928_v10, 1  ;;  %v1341_v8 = vrot.slane %v19983_v32, 1 }
  0xa7   : > { %16743 = vmatmul.mubr.msk.f32.gmra.mrb[24].mxu0 %vm419_vm1, %v20276_v18  ;;  %24979 = vst [vmem:[#allocation21_spill] sm:$0xff] %v20308_v5 }
  0xa8   : > { %16745 = vmatprep.mubr.msk.f32.mxu0 %vm419_vm1, %v20280_v14 }
  0xab   : > { %16746 = vmatmul.mubr.msk.f32.gmra.mrb[26].mxu0 %vm419_vm1, %v20291_v29 }
  0xac   : > { %16748 = vmatprep.mubr.msk.f32.mxu0 %vm419_vm1, %v20296_v42  ;;  %v1336_v42 = vrot.slane %v19979_v30, 1  ;;  %v20334_v30 = vld [vmem:[%s24735_s1 + $0x10] sm:$0xf] }
  0xae   : > { %v20327_v41 = vsel %vm1330_vm2, %v1336_v42, %v1337_v1  ;;  %v20345_v42 = vsel %vm1330_vm2, %v1341_v8, %v1342_v13  ;;  %v544_v8 = vld [vmem:[#allocation2 + $0x98] sm:$0xff] }
  0xaf   : > { %16749 = vmatmul.mubr.msk.f32.gmra.mrb[28].mxu0 %vm419_vm1, %v20304_v35  ;;  %v1335_v35 = vsel %vm1330_vm2, %v24980_v43, %v1334_v24  ;;  %24982 = vst [vmem:[#allocation23_spill] sm:$0xff] %v20345_v42  ;;  %v1346_v24 = vrot.slane %v19999_v36, 1  ;;  %v540_v43 = vld [vmem:[#allocation2 + $0x78] sm:$0xff] }
  0xb0   : > { %16751 = vmatprep.mubr.msk.f32.mxu0 %vm419_vm1, %v20308_v5  ;;  %v1339_v5 = vrot.slane %v532_v27, 1  ;;  %v1347_v27 = vrot.slane %v20006_v37, 1 }
  0xb2   : > { %v20342_v10 = vsel %vm1330_vm2, %v1337_v1, %v1339_v5  ;;  %v1351_v5 = vrot.slane %v20008_v38, 1  ;;  %v1352_v1 = vrot.slane %v20027_v46, 1 }
  0xb3   : > { %16752 = vmatmul.mubr.msk.f32.gmra.mrb[30].mxu0 %vm419_vm1, %v20315_v9  ;;  %24981 = vst [vmem:[#allocation22_spill] sm:$0xff] %v20342_v10 }
  0xb4   : > { %16756 = vmatprep.mubr.msk.f32.mxu0 %vm419_vm1, %v19963_v23  ;;  %v1344_v23 = vrot.slane %v536_v31, 1  ;;  %v1349_v31 = vrot.slane %v540_v43, 1  ;;  %v1357_v43 = vrot.slane %v20036_v48, 1 }
  0xb7   : > { %16757 = vmatmul.mubr.msk.f32.vlgmr.msra.gmra.mrb[0].mxu0 %vm419_vm1, %v1335_v35  ;;  %v20359_v35 = vsel %vm1330_vm2, %v1346_v24, %v1347_v27  ;;  %v1356_v24 = vrot.slane %v20030_v47, 1 }
  0xb8   : > { %16805 = vmatpush3.msk.msra.mxu0 %vm793_vm0, %v20134_v25  ;;  %16759 = vmatprep.mubr.msk.f32.mxu0 %vm419_vm1, %v20327_v41  ;;  %v20356_v25 = vsel %vm1330_vm2, %v1342_v13, %v1344_v23  ;;  %24984 = vst [vmem:[#allocation25_spill] sm:$0xff] %v20359_v35  ;;  %v1354_v13 = vrot.slane %v544_v8, 1  ;;  %v20371_v23 = vsel %vm1330_vm2, %v1351_v5, %v1352_v1  ;;  %v1361_v5 = vrot.slane %v20038_v49, 1 }
  0xb9   : > { %16854 = vmatprep.subr.msk.mxu0 %vm793_vm0, %v20334_v30  ;;  %24983 = vst [vmem:[#allocation24_spill] sm:$0xff] %v20356_v25  ;;  %24986 = vst [vmem:[#allocation27_spill] sm:$0xff] %v20371_v23  ;;  %v1362_v8 = vrot.slane %v20044_v50, 1 }
  0xbb   : > { %16760 = vmatmul.mubr.msk.f32.gmra.mrb[2].mxu0 %vm419_vm1, %v20342_v10  ;;  %v548_v10 = vld [vmem:[#allocation2 + $0xb8] sm:$0xff] }
  0xbc   : > { %16762 = vmatprep.mubr.msk.f32.mxu0 %vm419_vm1, %v20345_v42  ;;  %v20368_v42 = vsel %vm1330_vm2, %v1347_v27, %v1349_v31  ;;  %v1359_v27 = vrot.slane %v548_v10, 1  ;;  %v20383_v31 = vsel %vm1330_vm2, %v1356_v24, %v1357_v43  ;;  %v20395_v10 = vsel %vm1330_vm2, %v1361_v5, %v1362_v8 }
  0xbd   : > { %24985 = vst [vmem:[#allocation26_spill] sm:$0xff] %v20368_v42  ;;  %24988 = vst [vmem:[#allocation29_spill] sm:$0xff] %v20383_v31  ;;  %v1367_v24 = vrot.slane %v20052_v52, 1  ;;  %v1372_v5 = vrot.slane %v20060_v54, 1 }
  0xbe   : > { %24990 = vst [vmem:[#allocation31_spill] sm:$0xff] %v20395_v10 }
  0xbf   : > { %16763 = vmatmul.mubr.msk.f32.gmra.mrb[4].mxu0 %vm419_vm1, %v20356_v25  ;;  %v552_v25 = vld [vmem:[#allocation2 + $0xd8] sm:$0xff] }
  0xc0   : > { %16765 = vmatprep.mubr.msk.f32.mxu0 %vm419_vm1, %v20359_v35  ;;  %v20380_v35 = vsel %vm1330_vm2, %v1352_v1, %v1354_v13  ;;  %v1364_v1 = vrot.slane %v552_v25, 1  ;;  %v1366_v13 = vrot.slane %v20046_v51, 1 }
  0xc1   : > { %24987 = vst [vmem:[#allocation28_spill] sm:$0xff] %v20380_v35 }
  0xc2   : > { %v20407_v25 = vsel %vm1330_vm2, %v1366_v13, %v1367_v24  ;;  %v1377_v13 = vrot.slane %v20068_v56, 1 }
  0xc3   : > { %16766 = vmatmul.mubr.msk.f32.gmra.mrb[6].mxu0 %vm419_vm1, %v20368_v42  ;;  %v556_v42 = vld [vmem:[#allocation2 + $0xf8] sm:$0xff]  ;;  %24992 = vst [vmem:[#allocation33_spill] sm:$0xff] %v20407_v25 }
  0xc4   : > { %16768 = vmatprep.mubr.msk.f32.mxu0 %vm419_vm1, %v20371_v23  ;;  %v20392_v23 = vsel %vm1330_vm2, %v1357_v43, %v1359_v27  ;;  %v1369_v43 = vrot.slane %v556_v42, 1  ;;  %v1371_v27 = vrot.slane %v20054_v53, 1 }
  0xc5   : > { %24989 = vst [vmem:[#allocation30_spill] sm:$0xff] %v20392_v23 }
  0xc6   : > { %v20419_v42 = vsel %vm1330_vm2, %v1371_v27, %v1372_v5  ;;  %v1382_v27 = vrot.slane %v20076_v58, 1 }
  0xc7   : > { %16769 = vmatmul.mubr.msk.f32.gmra.mrb[8].mxu0 %vm419_vm1, %v20380_v35  ;;  %v560_v35 = vld [vmem:[#allocation2 + $0x118] sm:$0xff]  ;;  %24994 = vst [vmem:[#allocation35_spill] sm:$0xff] %v20419_v42 }
  0xc8   : > { %16771 = vmatprep.mubr.msk.f32.mxu0 %vm419_vm1, %v20383_v31  ;;  %v20404_v31 = vsel %vm1330_vm2, %v1362_v8, %v1364_v1  ;;  %v1374_v8 = vrot.slane %v560_v35, 1  ;;  %v1376_v1 = vrot.slane %v20062_v55, 1 }
  0xc9   : > { %24991 = vst [vmem:[#allocation32_spill] sm:$0xff] %v20404_v31 }
  0xca   : > { %v20431_v35 = vsel %vm1330_vm2, %v1376_v1, %v1377_v13  ;;  %v1387_v1 = vrot.slane %v20084_v60, 1 }
  0xcb   : > { %16772 = vmatmul.mubr.msk.f32.gmra.mrb[10].mxu0 %vm419_vm1, %v20392_v23  ;;  %v564_v23 = vld [vmem:[#allocation2 + $0x138] sm:$0xff]  ;;  %24996 = vst [vmem:[#allocation37_spill] sm:$0xff] %v20431_v35 }
  0xcc   : > { %16774 = vmatprep.mubr.msk.f32.mxu0 %vm419_vm1, %v20395_v10  ;;  %v20416_v10 = vsel %vm1330_vm2, %v1367_v24, %v1369_v43  ;;  %v1379_v24 = vrot.slane %v564_v23, 1  ;;  %v1381_v43 = vrot.slane %v20070_v57, 1 }
  0xcd   : > { %24993 = vst [vmem:[#allocation34_spill] sm:$0xff] %v20416_v10 }
  0xce   : > { %v20443_v23 = vsel %vm1330_vm2, %v1381_v43, %v1382_v27  ;;  %v1392_v43 = vrot.slane %v20092_v62, 1 }
  0xcf   : > { %16775 = vmatmul.mubr.msk.f32.gmra.mrb[12].mxu0 %vm419_vm1, %v20404_v31  ;;  %v568_v31 = vld [vmem:[#allocation2 + $0x158] sm:$0xff]  ;;  %24998 = vst [vmem:[#allocation39_spill] sm:$0xff] %v20443_v23 }
  0xd0   : > { %16777 = vmatprep.mubr.msk.f32.mxu0 %vm419_vm1, %v20407_v25  ;;  %v20428_v25 = vsel %vm1330_vm2, %v1372_v5, %v1374_v8  ;;  %v1384_v5 = vrot.slane %v568_v31, 1  ;;  %v1386_v8 = vrot.slane %v20078_v59, 1 }
  0xd1   : > { %24995 = vst [vmem:[#allocation36_spill] sm:$0xff] %v20428_v25 }
  0xd2   : > { %v20455_v31 = vsel %vm1330_vm2, %v1386_v8, %v1387_v1  ;;  %v1397_v8 = vrot.slane %v20100_v0, 1 }
  0xd3   : > { %16778 = vmatmul.mubr.msk.f32.gmra.mrb[14].mxu0 %vm419_vm1, %v20416_v10  ;;  %v572_v10 = vld [vmem:[#allocation2 + $0x178] sm:$0xff]  ;;  %25000 = vst [vmem:[#allocation41_spill] sm:$0xff] %v20455_v31 }
  0xd4   : > { %16780 = vmatprep.mubr.msk.f32.mxu0 %vm419_vm1, %v20419_v42  ;;  %v20440_v42 = vsel %vm1330_vm2, %v1377_v13, %v1379_v24  ;;  %v1389_v13 = vrot.slane %v572_v10, 1  ;;  %v1391_v24 = vrot.slane %v20086_v61, 1 }
  0xd5   : > { %24997 = vst [vmem:[#allocation38_spill] sm:$0xff] %v20440_v42 }
  0xd6   : > { %v20467_v10 = vsel %vm1330_vm2, %v1391_v24, %v1392_v43  ;;  %v1402_v24 = vrot.slane %v20108_v4, 1 }
  0xd7   : > { %16781 = vmatmul.mubr.msk.f32.gmra.mrb[16].mxu0 %vm419_vm1, %v20428_v25  ;;  %v576_v25 = vld [vmem:[#allocation2 + $0x198] sm:$0xff]  ;;  %25002 = vst [vmem:[#allocation43_spill] sm:$0xff] %v20467_v10 }
  0xd8   : > { %16783 = vmatprep.mubr.msk.f32.mxu0 %vm419_vm1, %v20431_v35  ;;  %v20452_v35 = vsel %vm1330_vm2, %v1382_v27, %v1384_v5  ;;  %v1394_v27 = vrot.slane %v576_v25, 1  ;;  %v1396_v5 = vrot.slane %v20094_v63, 1 }
  0xd9   : > { %24999 = vst [vmem:[#allocation40_spill] sm:$0xff] %v20452_v35 }
  0xda   : > { %v20479_v25 = vsel %vm1330_vm2, %v1396_v5, %v1397_v8  ;;  %v1407_v5 = vrot.slane %v20118_v12, 1 }
  0xdb   : > { %16784 = vmatmul.mubr.msk.f32.gmra.mrb[18].mxu0 %vm419_vm1, %v20440_v42  ;;  %v580_v42 = vld [vmem:[#allocation2 + $0x1b8] sm:$0xff]  ;;  %25004 = vst [vmem:[#allocation45_spill] sm:$0xff] %v20479_v25 }
  0xdc   : > { %16786 = vmatprep.mubr.msk.f32.mxu0 %vm419_vm1, %v20443_v23  ;;  %v20464_v23 = vsel %vm1330_vm2, %v1387_v1, %v1389_v13  ;;  %v1399_v1 = vrot.slane %v580_v42, 1  ;;  %v1401_v13 = vrot.slane %v20102_v2, 1 }
  0xdd   : > { %25001 = vst [vmem:[#allocation42_spill] sm:$0xff] %v20464_v23 }
  0xde   : > { %v20491_v42 = vsel %vm1330_vm2, %v1401_v13, %v1402_v24  ;;  %v25009_v13 = vld [vmem:[#allocation14_spill] sm:$0xff] }
  0xdf   : > { %16787 = vmatmul.mubr.msk.f32.gmra.mrb[20].mxu0 %vm419_vm1, %v20452_v35  ;;  %v584_v35 = vld [vmem:[#allocation2 + $0x1d8] sm:$0xff]  ;;  %25005 = vst [vmem:[#allocation46_spill] sm:$0xff] %v20491_v42 }
  0xe0   : > { %16789 = vmatprep.mubr.msk.f32.mxu0 %vm419_vm1, %v20455_v31  ;;  %v20476_v31 = vsel %vm1330_vm2, %v1392_v43, %v1394_v27  ;;  %v1404_v43 = vrot.slane %v584_v35, 1  ;;  %v1406_v27 = vrot.slane %v20111_v6, 1 }
  0xe1   : > { %25003 = vst [vmem:[#allocation44_spill] sm:$0xff] %v20476_v31 }
  0xe2   : > { %v20503_v35 = vsel %vm1330_vm2, %v1406_v27, %v1407_v5  ;;  %v589_v27 = vld [vmem:[#allocation2 + $0x200] sm:$0xff] }
  0xe3   : > { %16790 = vmatmul.mubr.msk.f32.gmra.mrb[22].mxu0 %vm419_vm1, %v20464_v23  ;;  %v588_v23 = vld [vmem:[#allocation2 + $0x1f8] sm:$0xff] }
  0xe4   : > { %16792 = vmatprep.mubr.msk.f32.mxu0 %vm419_vm1, %v20467_v10  ;;  %v20488_v10 = vsel %vm1330_vm2, %v1397_v8, %v1399_v1  ;;  %v1409_v8 = vrot.slane %v588_v23, 1  ;;  %v14132_v23 = vld [vmem:[%s24735_s1 + $0x14] sm:$0xf] }
  0xe6   : > { %v20510_v1 = vsel %vm1330_vm2, %v1407_v5, %v1409_v8  ;;  %v20570_v5 = vld [vmem:[#allocation2 + $0x208] sm:$0xff]  ;;  %v25012_v8 = vld [vmem:[#allocation19_spill] sm:$0xff] }
  0xe7   : > { %16793 = vmatmul.mubr.msk.f32.gmra.mrb[24].mxu0 %vm419_vm1, %v20476_v31 }
  0xe8   : > { %16795 = vmatprep.mubr.msk.f32.mxu0 %vm419_vm1, %v20479_v25  ;;  %v20500_v25 = vsel %vm1330_vm2, %v1402_v24, %v1404_v43  ;;  %v25010_v24 = vld [vmem:[#allocation15_spill] sm:$0xff]  ;;  %v25011_v43 = vld [vmem:[#allocation16_spill] sm:$0xff] }
  0xeb   : > { %16796 = vmatmul.mubr.msk.f32.gmra.mrb[26].mxu0 %vm419_vm1, %v20488_v10 }
  0xec   : > { %16798 = vmatprep.mubr.msk.f32.mxu0 %vm419_vm1, %v20491_v42 }
  0xef   : > { %16799 = vmatmul.mubr.msk.f32.gmra.mrb[28].mxu0 %vm419_vm1, %v20500_v25 }
  0xf0   : > { %16801 = vmatprep.mubr.msk.f32.mxu0 %vm419_vm1, %v20503_v35 }
  0xf3   : > { %16802 = vmatmul.mubr.msk.f32.gmra.mrb[30].mxu0 %vm419_vm1, %v20510_v1 }
  0xf4   : > { %16806 = vmatprep.mubr.msk.f32.mxu0 %vm419_vm1, %v20128_v20  ;;  %v25007_v20 = vld [vmem:[#allocation12_spill] sm:$0xff] }
  0xf7   : > { %16807 = vmatmul.mubr.msk.f32.vlgmr.msra.gmra.mrb[0].mxu0 %vm419_vm1, %v20142_v26  ;;  %v25008_v26 = vld [vmem:[#allocation13_spill] sm:$0xff] }
  0xf8   : > { %16855 = vmatpush3.msk.msra.mxu0 %vm793_vm0, %v20334_v30  ;;  %16809 = vmatprep.mubr.msk.f32.mxu0 %vm419_vm1, %v20146_v28  ;;  %v25006_v30 = vld [vmem:[#allocation11_spill] sm:$0xff] }
  0xf9   : > { %16904 = vmatprep.subr.msk.mxu0 %vm793_vm0, %v14132_v23 }
  0xfb   : > { %16810 = vmatmul.mubr.msk.f32.gmra.mrb[2].mxu0 %vm419_vm1, %v20156_v16 }
  0xfc   : > { %16812 = vmatprep.mubr.msk.f32.mxu0 %vm419_vm1, %v20160_v40 }
  0xff   : > { %16813 = vmatmul.mubr.msk.f32.gmra.mrb[4].mxu0 %vm419_vm1, %v20168_v44 }
 0x100   : > { %16815 = vmatprep.mubr.msk.f32.mxu0 %vm419_vm1, %v20172_v3 }
 0x103   : > { %16816 = vmatmul.mubr.msk.f32.gmra.mrb[6].mxu0 %vm419_vm1, %v20180_v11 }
 0x104   : > { %16818 = vmatprep.mubr.msk.f32.mxu0 %vm419_vm1, %v20184_v15 }
 0x107   : > { %16819 = vmatmul.mubr.msk.f32.gmra.mrb[8].mxu0 %vm419_vm1, %v20192_v19 }
 0x108   : > { %16821 = vmatprep.mubr.msk.f32.mxu0 %vm419_vm1, %v20196_v22 }
 0x10b   : > { %16822 = vmatmul.mubr.msk.f32.gmra.mrb[10].mxu0 %vm419_vm1, %v20204_v33 }
 0x10c   : > { %16824 = vmatprep.mubr.msk.f32.mxu0 %vm419_vm1, %v20208_v39 }
 0x10f   : > { %16825 = vmatmul.mubr.msk.f32.gmra.mrb[12].mxu0 %vm419_vm1, %v20216_v45 }
 0x110   : > { %16827 = vmatprep.mubr.msk.f32.mxu0 %vm419_vm1, %v20220_v7 }
 0x113   : > { %16828 = vmatmul.mubr.msk.f32.gmra.mrb[14].mxu0 %vm419_vm1, %v20228_v17 }
 0x114   : > { %16830 = vmatprep.mubr.msk.f32.mxu0 %vm419_vm1, %v20232_v21 }
 0x117   : > { %16831 = vmatmul.mubr.msk.f32.gmra.mrb[16].mxu0 %vm419_vm1, %v25006_v30 }
 0x118   : > { %16833 = vmatprep.mubr.msk.f32.mxu0 %vm419_vm1, %v25007_v20 }
 0x11b   : > { %16834 = vmatmul.mubr.msk.f32.gmra.mrb[18].mxu0 %vm419_vm1, %v25008_v26  ;;  %v20577_v26 = vld [vmem:[#allocation2 + $0x210] sm:$0xff] }
 0x11c   : > { %16836 = vmatprep.mubr.msk.f32.mxu0 %vm419_vm1, %v25009_v13  ;;  %v1740_v13 = vrot.slane %v589_v27, 7 }
 0x11f   : > { %16837 = vmatmul.mubr.msk.f32.gmra.mrb[20].mxu0 %vm419_vm1, %v25010_v24  ;;  %v1741_v24 = vrot.slane %v20570_v5, 7 }
 0x120   : > { %16839 = vmatprep.mubr.msk.f32.mxu0 %vm419_vm1, %v25011_v43  ;;  %v25013_v43 = vld [vmem:[#allocation20_spill] sm:$0xff] }
 0x121   : > { %v20585_v20 = vsel %vm645_vm3, %v1740_v13, %v1741_v24  ;;  %v14166_v13 = vld [vmem:[%s24735_s1 + $0x18] sm:$0xf] }
 0x123   : > { %16840 = vmatmul.mubr.msk.f32.gmra.mrb[22].mxu0 %vm419_vm1, %v20276_v18  ;;  %v25014_v18 = vld [vmem:[#allocation21_spill] sm:$0xff] }
 0x124   : > { %16842 = vmatprep.mubr.msk.f32.mxu0 %vm419_vm1, %v20280_v14  ;;  %v1743_v14 = vrot.slane %v20577_v26, 7 }
 0x126   : > { %v20592_v27 = vsel %vm645_vm3, %v1741_v24, %v1743_v14  ;;  %v25017_v14 = vld [vmem:[#allocation22_spill] sm:$0xff]  ;;  %v25019_v24 = vld [vmem:[#allocation24_spill] sm:$0xff] }
 0x127   : > { %16843 = vmatmul.mubr.msk.f32.gmra.mrb[24].mxu0 %vm419_vm1, %v20291_v29 }
 0x128   : > { %16845 = vmatprep.mubr.msk.f32.mxu0 %vm419_vm1, %v25012_v8 }
 0x12b   : > { %16846 = vmatmul.mubr.msk.f32.gmra.mrb[26].mxu0 %vm419_vm1, %v25013_v43  ;;  %v25015_v43 = vld [vmem:[#allocation7_spill] sm:$0xff] }
 0x12c   : > { %16848 = vmatprep.mubr.msk.f32.mxu0 %vm419_vm1, %v25014_v18  ;;  %v25016_v18 = vld [vmem:[#allocation8_spill] sm:$0xff] }
 0x12f   : > { %16849 = vmatmul.mubr.msk.f32.gmra.mrb[28].mxu0 %vm419_vm1, %v20315_v9 }
 0x130   : > { %16851 = vmatprep.mubr.msk.f32.mxu0 %vm419_vm1, %v20585_v20 }
 0x133   : > { %16852 = vmatmul.mubr.msk.f32.gmra.mrb[30].mxu0 %vm419_vm1, %v20592_v27 }
 0x134   : > { %16856 = vmatprep.mubr.msk.f32.mxu0 %vm419_vm1, %v25015_v43  ;;  %v25020_v43 = vld [vmem:[#allocation25_spill] sm:$0xff] }
 0x137   : > { %16857 = vmatmul.mubr.msk.f32.vlgmr.msra.gmra.mrb[0].mxu0 %vm419_vm1, %v25016_v18  ;;  %v14200_v18 = vld [vmem:[%s24735_s1 + $0x1c] sm:$0xf] }
 0x138   : > { %16905 = vmatpush3.msk.msra.mxu0 %vm793_vm0, %v14132_v23  ;;  %16859 = vmatprep.mubr.msk.f32.mxu0 %vm419_vm1, %v19983_v32  ;;  %v25018_v23 = vld [vmem:[#allocation23_spill] sm:$0xff] }
 0x139   : > { %16954 = vmatprep.subr.msk.mxu0 %vm793_vm0, %v14166_v13 }
 0x13b   : > { %16860 = vmatmul.mubr.msk.f32.gmra.mrb[2].mxu0 %vm419_vm1, %v19995_v34 }
 0x13c   : > { %16862 = vmatprep.mubr.msk.f32.mxu0 %vm419_vm1, %v19999_v36 }
 0x13f   : > { %16863 = vmatmul.mubr.msk.f32.gmra.mrb[4].mxu0 %vm419_vm1, %v20006_v37 }
 0x140   : > { %16865 = vmatprep.mubr.msk.f32.mxu0 %vm419_vm1, %v20008_v38 }
 0x143   : > { %16866 = vmatmul.mubr.msk.f32.gmra.mrb[6].mxu0 %vm419_vm1, %v20027_v46 }
 0x144   : > { %16868 = vmatprep.mubr.msk.f32.mxu0 %vm419_vm1, %v20030_v47 }
 0x147   : > { %16869 = vmatmul.mubr.msk.f32.gmra.mrb[8].mxu0 %vm419_vm1, %v20036_v48 }
 0x148   : > { %16871 = vmatprep.mubr.msk.f32.mxu0 %vm419_vm1, %v20038_v49 }
 0x14b   : > { %16872 = vmatmul.mubr.msk.f32.gmra.mrb[10].mxu0 %vm419_vm1, %v20044_v50 }
 0x14c   : > { %16874 = vmatprep.mubr.msk.f32.mxu0 %vm419_vm1, %v20046_v51 }
 0x14f   : > { %16875 = vmatmul.mubr.msk.f32.gmra.mrb[12].mxu0 %vm419_vm1, %v20052_v52 }
 0x150   : > { %16877 = vmatprep.mubr.msk.f32.mxu0 %vm419_vm1, %v20054_v53 }
 0x153   : > { %16878 = vmatmul.mubr.msk.f32.gmra.mrb[14].mxu0 %vm419_vm1, %v20060_v54 }
 0x154   : > { %16880 = vmatprep.mubr.msk.f32.mxu0 %vm419_vm1, %v20062_v55 }
 0x157   : > { %16881 = vmatmul.mubr.msk.f32.gmra.mrb[16].mxu0 %vm419_vm1, %v20068_v56 }
 0x158   : > { %16883 = vmatprep.mubr.msk.f32.mxu0 %vm419_vm1, %v20070_v57 }
 0x15b   : > { %16884 = vmatmul.mubr.msk.f32.gmra.mrb[18].mxu0 %vm419_vm1, %v20076_v58 }
 0x15c   : > { %16886 = vmatprep.mubr.msk.f32.mxu0 %vm419_vm1, %v20078_v59 }
 0x15f   : > { %16887 = vmatmul.mubr.msk.f32.gmra.mrb[20].mxu0 %vm419_vm1, %v20084_v60 }
 0x160   : > { %16889 = vmatprep.mubr.msk.f32.mxu0 %vm419_vm1, %v20086_v61 }
 0x163   : > { %16890 = vmatmul.mubr.msk.f32.gmra.mrb[22].mxu0 %vm419_vm1, %v20092_v62 }
 0x164   : > { %16892 = vmatprep.mubr.msk.f32.mxu0 %vm419_vm1, %v20094_v63 }
 0x167   : > { %16893 = vmatmul.mubr.msk.f32.gmra.mrb[24].mxu0 %vm419_vm1, %v20100_v0 }
 0x168   : > { %16895 = vmatprep.mubr.msk.f32.mxu0 %vm419_vm1, %v20102_v2 }
 0x16b   : > { %16896 = vmatmul.mubr.msk.f32.gmra.mrb[26].mxu0 %vm419_vm1, %v20108_v4 }
 0x16c   : > { %16898 = vmatprep.mubr.msk.f32.mxu0 %vm419_vm1, %v20111_v6  ;;  %v25026_v6 = vld [vmem:[#allocation31_spill] sm:$0xff] }
 0x16f   : > { %16899 = vmatmul.mubr.msk.f32.gmra.mrb[28].mxu0 %vm419_vm1, %v20118_v12  ;;  %v25022_v12 = vld [vmem:[#allocation27_spill] sm:$0xff] }
 0x170   : > { %16901 = vmatprep.mubr.msk.f32.mxu0 %vm419_vm1, %v20570_v5 }
 0x173   : > { %16902 = vmatmul.mubr.msk.f32.gmra.mrb[30].mxu0 %vm419_vm1, %v20577_v26 }
 0x174   : > { %16906 = vmatprep.mubr.msk.f32.mxu0 %vm419_vm1, %v20327_v41  ;;  %v25021_v41 = vld [vmem:[#allocation26_spill] sm:$0xff] }
 0x177   : > { %16907 = vmatmul.mubr.msk.f32.vlgmr.msra.gmra.mrb[0].mxu0 %vm419_vm1, %v25017_v14  ;;  %v25023_v14 = vld [vmem:[#allocation28_spill] sm:$0xff] }
 0x178   : > { %16955 = vmatpush3.msk.msra.mxu0 %vm793_vm0, %v14166_v13  ;;  %16909 = vmatprep.mubr.msk.f32.mxu0 %vm419_vm1, %v25018_v23  ;;  %v25024_v13 = vld [vmem:[#allocation29_spill] sm:$0xff]  ;;  %v25025_v23 = vld [vmem:[#allocation30_spill] sm:$0xff] }
 0x179   : > { %17004 = vmatprep.subr.msk.mxu0 %vm793_vm0, %v14200_v18 }
 0x17b   : > { %16910 = vmatmul.mubr.msk.f32.gmra.mrb[2].mxu0 %vm419_vm1, %v25019_v24  ;;  %v25027_v24 = vld [vmem:[#allocation32_spill] sm:$0xff] }
 0x17c   : > { %16912 = vmatprep.mubr.msk.f32.mxu0 %vm419_vm1, %v25020_v43  ;;  %v25028_v43 = vld [vmem:[#allocation33_spill] sm:$0xff] }
 0x17f   : > { %16913 = vmatmul.mubr.msk.f32.gmra.mrb[4].mxu0 %vm419_vm1, %v25021_v41  ;;  %v25029_v41 = vld [vmem:[#allocation34_spill] sm:$0xff] }
 0x180   : > { %16915 = vmatprep.mubr.msk.f32.mxu0 %vm419_vm1, %v25022_v12  ;;  %v25030_v12 = vld [vmem:[#allocation35_spill] sm:$0xff] }
 0x183   : > { %16916 = vmatmul.mubr.msk.f32.gmra.mrb[6].mxu0 %vm419_vm1, %v25023_v14  ;;  %v25031_v14 = vld [vmem:[#allocation36_spill] sm:$0xff] }
 0x184   : > { %16918 = vmatprep.mubr.msk.f32.mxu0 %vm419_vm1, %v25024_v13  ;;  %v25032_v13 = vld [vmem:[#allocation37_spill] sm:$0xff] }
 0x187   : > { %16919 = vmatmul.mubr.msk.f32.gmra.mrb[8].mxu0 %vm419_vm1, %v25025_v23  ;;  %v25033_v23 = vld [vmem:[#allocation38_spill] sm:$0xff] }
 0x188   : > { %16921 = vmatprep.mubr.msk.f32.mxu0 %vm419_vm1, %v25026_v6  ;;  %v25034_v6 = vld [vmem:[#allocation39_spill] sm:$0xff] }
 0x18b   : > { %16922 = vmatmul.mubr.msk.f32.gmra.mrb[10].mxu0 %vm419_vm1, %v25027_v24  ;;  %v25035_v24 = vld [vmem:[#allocation40_spill] sm:$0xff] }
 0x18c   : > { %16924 = vmatprep.mubr.msk.f32.mxu0 %vm419_vm1, %v25028_v43  ;;  %v25036_v43 = vld [vmem:[#allocation41_spill] sm:$0xff] }
 0x18f   : > { %16925 = vmatmul.mubr.msk.f32.gmra.mrb[12].mxu0 %vm419_vm1, %v25029_v41  ;;  %v25037_v41 = vld [vmem:[#allocation42_spill] sm:$0xff] }
 0x190   : > { %16927 = vmatprep.mubr.msk.f32.mxu0 %vm419_vm1, %v25030_v12  ;;  %v25038_v12 = vld [vmem:[#allocation43_spill] sm:$0xff] }
 0x193   : > { %16928 = vmatmul.mubr.msk.f32.gmra.mrb[14].mxu0 %vm419_vm1, %v25031_v14 }
 0x194   : > { %16930 = vmatprep.mubr.msk.f32.mxu0 %vm419_vm1, %v25032_v13  ;;  %v25039_v13 = vld [vmem:[#allocation45_spill] sm:$0xff] }
 0x197   : > { %16931 = vmatmul.mubr.msk.f32.gmra.mrb[16].mxu0 %vm419_vm1, %v25033_v23 }
 0x198   : > { %16933 = vmatprep.mubr.msk.f32.mxu0 %vm419_vm1, %v25034_v6 }
 0x19b   : > { %16934 = vmatmul.mubr.msk.f32.gmra.mrb[18].mxu0 %vm419_vm1, %v25035_v24  ;;  %v2279_v24 = vrot.slane %v20577_v26, 1 }
 0x19c   : > { %16936 = vmatprep.mubr.msk.f32.mxu0 %vm419_vm1, %v25036_v43  ;;  %v2278_v43 = vrot.slane %v20570_v5, 1 }
 0x19f   : > { %16937 = vmatmul.mubr.msk.f32.gmra.mrb[20].mxu0 %vm419_vm1, %v25037_v41  ;;  %v592_v41 = vld [vmem:[#allocation2 + $0x218] sm:$0xff] }
 0x1a0   : > { %16939 = vmatprep.mubr.msk.f32.mxu0 %vm419_vm1, %v25038_v12 }
 0x1a3   : > { %16940 = vmatmul.mubr.msk.f32.gmra.mrb[22].mxu0 %vm419_vm1, %v20476_v31  ;;  %v2281_v31 = vrot.slane %v592_v41, 1 }
 0x1a4   : > { %16942 = vmatprep.mubr.msk.f32.mxu0 %vm419_vm1, %v25039_v13  ;;  %v20731_v13 = vsel %vm1330_vm2, %v2278_v43, %v2279_v24  ;;  %v14234_v43 = vld [vmem:[%s24735_s1 + $0x20] sm:$0xf] }
 0x1a7   : > { %16943 = vmatmul.mubr.msk.f32.gmra.mrb[24].mxu0 %vm419_vm1, %v20488_v10 }
 0x1a8   : > { %16945 = vmatprep.mubr.msk.f32.mxu0 %vm419_vm1, %v20491_v42  ;;  %v20738_v42 = vsel %vm1330_vm2, %v2279_v24, %v2281_v31 }
 0x1ab   : > { %16946 = vmatmul.mubr.msk.f32.gmra.mrb[26].mxu0 %vm419_vm1, %v20500_v25 }
 0x1ac   : > { %16948 = vmatprep.mubr.msk.f32.mxu0 %vm419_vm1, %v20503_v35 }
 0x1af   : > { %16949 = vmatmul.mubr.msk.f32.gmra.mrb[28].mxu0 %vm419_vm1, %v20510_v1 }
 0x1b0   : > { %16951 = vmatprep.mubr.msk.f32.mxu0 %vm419_vm1, %v20731_v13 }
 0x1b3   : > { %16952 = vmatmul.mubr.msk.f32.gmra.mrb[30].mxu0 %vm419_vm1, %v20738_v42 }
 0x1b4   : > { %16956 = vmatprep.mubr.msk.f32.mxu0 %vm419_vm1, %v20146_v28  ;;  %v25040_v28 = vld [vmem:[#allocation12_spill] sm:$0xff] }
 0x1b7   : > { %16957 = vmatmul.mubr.msk.f32.vlgmr.msra.gmra.mrb[0].mxu0 %vm419_vm1, %v20156_v16  ;;  %v25041_v16 = vld [vmem:[#allocation13_spill] sm:$0xff] }
 0x1b8   : > { %17005 = vmatpush3.msk.msra.mxu0 %vm793_vm0, %v14200_v18  ;;  %16959 = vmatprep.mubr.msk.f32.mxu0 %vm419_vm1, %v20160_v40  ;;  %v25042_v40 = vld [vmem:[#allocation14_spill] sm:$0xff] }
 0x1b9   : > { %17054 = vmatprep.subr.msk.mxu0 %vm793_vm0, %v14234_v43 }
 0x1bb   : > { %16960 = vmatmul.mubr.msk.f32.gmra.mrb[2].mxu0 %vm419_vm1, %v20168_v44  ;;  %v25043_v44 = vld [vmem:[#allocation15_spill] sm:$0xff] }
 0x1bc   : > { %16962 = vmatprep.mubr.msk.f32.mxu0 %vm419_vm1, %v20172_v3  ;;  %v25044_v3 = vld [vmem:[#allocation16_spill] sm:$0xff] }
 0x1bf   : > { %16963 = vmatmul.mubr.msk.f32.gmra.mrb[4].mxu0 %vm419_vm1, %v20180_v11  ;;  %v25045_v11 = vld [vmem:[#allocation17_spill] sm:$0xff] }
 0x1c0   : > { %16965 = vmatprep.mubr.msk.f32.mxu0 %vm419_vm1, %v20184_v15  ;;  %v25046_v15 = vld [vmem:[#allocation18_spill] sm:$0xff] }
 0x1c3   : > { %16966 = vmatmul.mubr.msk.f32.gmra.mrb[6].mxu0 %vm419_vm1, %v20192_v19  ;;  %v593_v19 = vld [vmem:[#allocation2 + $0x220] sm:$0xff] }
 0x1c4   : > { %16968 = vmatprep.mubr.msk.f32.mxu0 %vm419_vm1, %v20196_v22  ;;  %v20797_v22 = vld [vmem:[#allocation2 + $0x228] sm:$0xff] }
 0x1c7   : > { %16969 = vmatmul.mubr.msk.f32.gmra.mrb[8].mxu0 %vm419_vm1, %v20204_v33  ;;  %v25047_v33 = vld [vmem:[#allocation20_spill] sm:$0xff] }
 0x1c8   : > { %16971 = vmatprep.mubr.msk.f32.mxu0 %vm419_vm1, %v20208_v39  ;;  %v25048_v39 = vld [vmem:[#allocation21_spill] sm:$0xff] }
 0x1cb   : > { %16972 = vmatmul.mubr.msk.f32.gmra.mrb[10].mxu0 %vm419_vm1, %v20216_v45  ;;  %v2552_v45 = vrot.slane %v593_v19, 7 }
 0x1cc   : > { %16974 = vmatprep.mubr.msk.f32.mxu0 %vm419_vm1, %v20220_v7  ;;  %v2553_v7 = vrot.slane %v20797_v22, 7 }
 0x1cf   : > { %16975 = vmatmul.mubr.msk.f32.gmra.mrb[12].mxu0 %vm419_vm1, %v20228_v17  ;;  %v20804_v17 = vld [vmem:[#allocation2 + $0x230] sm:$0xff] }
 0x1d0   : > { %16977 = vmatprep.mubr.msk.f32.mxu0 %vm419_vm1, %v20232_v21  ;;  %v2555_v21 = vrot.slane %v20804_v17, 7 }
 0x1d2   : > { %v2556_v31 = vsel %vm645_vm3, %v2553_v7, %v2555_v21 }
 0x1d3   : > { %16978 = vmatmul.mubr.msk.f32.gmra.mrb[14].mxu0 %vm419_vm1, %v25006_v30 }
 0x1d4   : > { %16980 = vmatprep.mubr.msk.f32.mxu0 %vm419_vm1, %v25040_v28 }
 0x1d7   : > { %16981 = vmatmul.mubr.msk.f32.gmra.mrb[16].mxu0 %vm419_vm1, %v25041_v16 }
 0x1d8   : > { %16983 = vmatprep.mubr.msk.f32.mxu0 %vm419_vm1, %v25042_v40 }
 0x1db   : > { %16984 = vmatmul.mubr.msk.f32.gmra.mrb[18].mxu0 %vm419_vm1, %v25043_v44 }
 0x1dc   : > { %16986 = vmatprep.mubr.msk.f32.mxu0 %vm419_vm1, %v25044_v3 }
 0x1df   : > { %16987 = vmatmul.mubr.msk.f32.gmra.mrb[20].mxu0 %vm419_vm1, %v25045_v11 }
 0x1e0   : > { %16989 = vmatprep.mubr.msk.f32.mxu0 %vm419_vm1, %v25046_v15 }
 0x1e3   : > { %16990 = vmatmul.mubr.msk.f32.gmra.mrb[22].mxu0 %vm419_vm1, %v20291_v29  ;;  %v2554_v29 = vsel %vm645_vm3, %v2552_v45, %v2553_v7 }
 0x1e4   : > { %16992 = vmatprep.mubr.msk.f32.mxu0 %vm419_vm1, %v25012_v8  ;;  %v19671_v8 = vmov 1.0  }
 0x1e7   : > { %16993 = vmatmul.mubr.msk.f32.gmra.mrb[24].mxu0 %vm419_vm1, %v25047_v33 }
 0x1e8   : > { %16995 = vmatprep.mubr.msk.f32.mxu0 %vm419_vm1, %v25048_v39 }
 0x1eb   : > { %16996 = vmatmul.mubr.msk.f32.gmra.mrb[26].mxu0 %vm419_vm1, %v20315_v9  ;;  %v3432_v9 = vlaneseq }
 0x1ec   : > { %16998 = vmatprep.mubr.msk.f32.mxu0 %vm419_vm1, %v20585_v20 }
 0x1ed   : > { %v20954_v30 = vand.u32 127, %v3432_v9 }
 0x1ef   : > { %16999 = vmatmul.mubr.msk.f32.gmra.mrb[28].mxu0 %vm419_vm1, %v20592_v27  ;;  %v20969_v27 = vld [vmem:[%s24736_s2] ss:$0 sm:$0xff] }
 0x1f0   : > { %17001 = vmatprep.mubr.msk.f32.mxu0 %vm419_vm1, %v2554_v29 }
 0x1f3   : > { %17002 = vmatmul.mubr.msk.f32.gmra.mrb[30].mxu0 %vm419_vm1, %v2556_v31 }
 0x1f4   : > { %17006 = vmatprep.mubr.msk.f32.mxu0 %vm419_vm1, %v19983_v32  ;;  %v25049_v32 = vld [vmem:[#allocation9_spill] sm:$0xff] }
 0x1f7   : > { %17007 = vmatmul.mubr.msk.f32.vlgmr.msra.gmra.mrb[0].mxu0 %vm419_vm1, %v19995_v34  ;;  %v25050_v34 = vld [vmem:[#allocation10_spill] sm:$0xff] }
 0x1f8   : > { %17055 = vmatpush3.msk.msra.mxu0 %vm793_vm0, %v14234_v43  ;;  %17009 = vmatprep.mubr.msk.f32.mxu0 %vm419_vm1, %v19999_v36  ;;  %v25051_v36 = vld [vmem:[#allocation23_spill] sm:$0xff] }
 0x1fb   : > { %17010 = vmatmul.mubr.msk.f32.gmra.mrb[2].mxu0 %vm419_vm1, %v20006_v37  ;;  %v25052_v37 = vld [vmem:[#allocation24_spill] sm:$0xff] }
 0x1fc   : > { %17012 = vmatprep.mubr.msk.f32.mxu0 %vm419_vm1, %v20008_v38  ;;  %v25053_v38 = vld [vmem:[#allocation25_spill] sm:$0xff] }
 0x1ff   : > { %17013 = vmatmul.mubr.msk.f32.gmra.mrb[4].mxu0 %vm419_vm1, %v20027_v46  ;;  %v25054_v46 = vld [vmem:[#allocation26_spill] sm:$0xff] }
 0x200   : > { %17015 = vmatprep.mubr.msk.f32.mxu0 %vm419_vm1, %v20030_v47  ;;  %v25055_v47 = vld [vmem:[#allocation27_spill] sm:$0xff] }
 0x203   : > { %17016 = vmatmul.mubr.msk.f32.gmra.mrb[6].mxu0 %vm419_vm1, %v20036_v48  ;;  %v25056_v48 = vld [vmem:[#allocation28_spill] sm:$0xff] }
 0x204   : > { %17018 = vmatprep.mubr.msk.f32.mxu0 %vm419_vm1, %v20038_v49  ;;  %v25057_v49 = vld [vmem:[#allocation29_spill] sm:$0xff] }
 0x207   : > { %17019 = vmatmul.mubr.msk.f32.gmra.mrb[8].mxu0 %vm419_vm1, %v20044_v50  ;;  %v25058_v50 = vld [vmem:[#allocation30_spill] sm:$0xff] }
 0x208   : > { %17021 = vmatprep.mubr.msk.f32.mxu0 %vm419_vm1, %v20046_v51  ;;  %v25059_v51 = vld [vmem:[#allocation31_spill] sm:$0xff] }
 0x20b   : > { %17022 = vmatmul.mubr.msk.f32.gmra.mrb[10].mxu0 %vm419_vm1, %v20052_v52  ;;  %v25060_v52 = vld [vmem:[#allocation32_spill] sm:$0xff] }
 0x20c   : > { %17024 = vmatprep.mubr.msk.f32.mxu0 %vm419_vm1, %v20054_v53  ;;  %v25061_v53 = vld [vmem:[#allocation33_spill] sm:$0xff] }
 0x20f   : > { %17025 = vmatmul.mubr.msk.f32.gmra.mrb[12].mxu0 %vm419_vm1, %v20060_v54  ;;  %v25062_v54 = vld [vmem:[#allocation34_spill] sm:$0xff] }
 0x210   : > { %17027 = vmatprep.mubr.msk.f32.mxu0 %vm419_vm1, %v20062_v55  ;;  %v25063_v55 = vld [vmem:[#allocation35_spill] sm:$0xff] }
 0x213   : > { %17028 = vmatmul.mubr.msk.f32.gmra.mrb[14].mxu0 %vm419_vm1, %v20068_v56  ;;  %v25064_v56 = vld [vmem:[#allocation37_spill] sm:$0xff] }
 0x214   : > { %17030 = vmatprep.mubr.msk.f32.mxu0 %vm419_vm1, %v20070_v57  ;;  %v25065_v57 = vld [vmem:[#allocation40_spill] sm:$0xff] }
 0x217   : > { %17031 = vmatmul.mubr.msk.f32.gmra.mrb[16].mxu0 %vm419_vm1, %v20076_v58  ;;  %v25066_v58 = vld [vmem:[#allocation41_spill] sm:$0xff] }
 0x218   : > { %17033 = vmatprep.mubr.msk.f32.mxu0 %vm419_vm1, %v20078_v59  ;;  %v25067_v59 = vld [vmem:[#allocation42_spill] sm:$0xff] }
 0x21b   : > { %17034 = vmatmul.mubr.msk.f32.gmra.mrb[18].mxu0 %vm419_vm1, %v20084_v60  ;;  %v25068_v60 = vld [vmem:[#allocation44_spill] sm:$0xff] }
 0x21c   : > { %17036 = vmatprep.mubr.msk.f32.mxu0 %vm419_vm1, %v20086_v61  ;;  %v25069_v61 = vld [vmem:[#allocation45_spill] sm:$0xff] }
 0x21f   : > { %17037 = vmatmul.mubr.msk.f32.gmra.mrb[20].mxu0 %vm419_vm1, %v20092_v62  ;;  %v25070_v62 = vld [vmem:[#allocation46_spill] sm:$0xff] }
 0x220   : > { %17039 = vmatprep.mubr.msk.f32.mxu0 %vm419_vm1, %v20094_v63  ;;  %v3090_v63 = vrot.slane %v20797_v22, 1 }
 0x223   : > { %17040 = vmatmul.mubr.msk.f32.gmra.mrb[22].mxu0 %vm419_vm1, %v20100_v0  ;;  %v3091_v0 = vrot.slane %v20804_v17, 1 }
 0x224   : > { %17042 = vmatprep.mubr.msk.f32.mxu0 %vm419_vm1, %v20102_v2  ;;  %v596_v2 = vld [vmem:[#allocation2 + $0x238] sm:$0xff] }
 0x227   : > { %17043 = vmatmul.mubr.msk.f32.gmra.mrb[24].mxu0 %vm419_vm1, %v20108_v4  ;;  %v3093_v4 = vrot.slane %v596_v2, 1 }
 0x228   : > { %17045 = vmatprep.mubr.msk.f32.mxu0 %vm419_vm1, %v25049_v32 }
 0x22b   : > { %17046 = vmatmul.mubr.msk.f32.gmra.mrb[26].mxu0 %vm419_vm1, %v25050_v34 }
 0x22c   : > { %17048 = vmatprep.mubr.msk.f32.mxu0 %vm419_vm1, %v20570_v5 }
 0x22f   : > { %17049 = vmatmul.mubr.msk.f32.gmra.mrb[28].mxu0 %vm419_vm1, %v20577_v26  ;;  %v20959_v26 = vadd.s32 128, %v20954_v30 }
 0x230   : > { %17051 = vmatprep.mubr.msk.f32.mxu0 %vm419_vm1, %v20797_v22 }
 0x233   : > { %17052 = vmatmul.mubr.msk.f32.gmra.mrb[30].mxu0 %vm419_vm1, %v20804_v17 }
 0x234   : > { %17056 = vmatprep.mubr.msk.f32.mxu0 %vm419_vm1, %v25051_v36 }
 0x237   : > { %17057 = vmatmul.mubr.msk.f32.vlgmr.msra.gmra.mrb[0].mxu0 %vm419_vm1, %v25052_v37 }
 0x238   : > { %17059 = vmatprep.mubr.msk.f32.mxu0 %vm419_vm1, %v25053_v38 }
 0x23b   : > { %17060 = vmatmul.mubr.msk.f32.gmra.mrb[2].mxu0 %vm419_vm1, %v25054_v46 }
 0x23c   : > { %17062 = vmatprep.mubr.msk.f32.mxu0 %vm419_vm1, %v25055_v47 }
 0x23f   : > { %17063 = vmatmul.mubr.msk.f32.gmra.mrb[4].mxu0 %vm419_vm1, %v25056_v48 }
 0x240   : > { %17065 = vmatprep.mubr.msk.f32.mxu0 %vm419_vm1, %v25057_v49 }
 0x243   : > { %17066 = vmatmul.mubr.msk.f32.gmra.mrb[6].mxu0 %vm419_vm1, %v25058_v50 }
 0x244   : > { %17068 = vmatprep.mubr.msk.f32.mxu0 %vm419_vm1, %v25059_v51 }
 0x247   : > { %17069 = vmatmul.mubr.msk.f32.gmra.mrb[8].mxu0 %vm419_vm1, %v25060_v52 }
 0x248   : > { %17071 = vmatprep.mubr.msk.f32.mxu0 %vm419_vm1, %v25061_v53 }
 0x24b   : > { %17072 = vmatmul.mubr.msk.f32.gmra.mrb[10].mxu0 %vm419_vm1, %v25062_v54 }
 0x24c   : > { %17074 = vmatprep.mubr.msk.f32.mxu0 %vm419_vm1, %v25063_v55 }
 0x24f   : > { %17075 = vmatmul.mubr.msk.f32.gmra.mrb[12].mxu0 %vm419_vm1, %v25031_v14 }
 0x250   : > { %17077 = vmatprep.mubr.msk.f32.mxu0 %vm419_vm1, %v25064_v56 }
 0x253   : > { %17078 = vmatmul.mubr.msk.f32.gmra.mrb[14].mxu0 %vm419_vm1, %v25033_v23 }
 0x254   : > { %17080 = vmatprep.mubr.msk.f32.mxu0 %vm419_vm1, %v25034_v6  ;;  %v3092_v6 = vsel %vm1330_vm2, %v3090_v63, %v3091_v0 }
 0x257   : > { %17081 = vmatmul.mubr.msk.f32.gmra.mrb[16].mxu0 %vm419_vm1, %v25065_v57 }
 0x258   : > { %17083 = vmatprep.mubr.msk.f32.mxu0 %vm419_vm1, %v25066_v58 }
 0x25b   : > { %17084 = vmatmul.mubr.msk.f32.gmra.mrb[18].mxu0 %vm419_vm1, %v25067_v59 }
 0x25c   : > { %17086 = vmatprep.mubr.msk.f32.mxu0 %vm419_vm1, %v25038_v12  ;;  %v3094_v12 = vsel %vm1330_vm2, %v3091_v0, %v3093_v4 }
 0x25f   : > { %17087 = vmatmul.mubr.msk.f32.gmra.mrb[20].mxu0 %vm419_vm1, %v25068_v60 }
 0x260   : > { %17089 = vmatprep.mubr.msk.f32.mxu0 %vm419_vm1, %v25069_v61 }
 0x263   : > { %17090 = vmatmul.mubr.msk.f32.gmra.mrb[22].mxu0 %vm419_vm1, %v20488_v10  ;;  %v20948_v10 = vshrl.u32 %v3432_v9, 7 }
 0x264   : > { %17092 = vmatprep.mubr.msk.f32.mxu0 %vm419_vm1, %v25070_v62 }
 0x267   : > { %17093 = vmatmul.mubr.msk.f32.gmra.mrb[24].mxu0 %vm419_vm1, %v20500_v25  ;;  %v3444_v25 = vshra.s32 %v20948_v10, 3 }
 0x268   : > { %17095 = vmatprep.mubr.msk.f32.mxu0 %vm419_vm1, %v20503_v35  ;;  %v3452_v35 = vand.u32 7, %v20948_v10 }
 0x26b   : > { %17096 = vmatmul.mubr.msk.f32.gmra.mrb[26].mxu0 %vm419_vm1, %v20510_v1  ;;  %v3460_v1 = vmul.u32 2, %v3444_v25 }
 0x26c   : > { %17098 = vmatprep.mubr.msk.f32.mxu0 %vm419_vm1, %v20731_v13 }
 0x26d   : > { %v3468_v20 = vmul.u32 16, %v3460_v1  ;;  %v3814_v23 = vadd.s32 1, %v3460_v1 }
 0x26f   : > { %17099 = vmatmul.mubr.msk.f32.gmra.mrb[28].mxu0 %vm419_vm1, %v20738_v42  ;;  %v3476_v42 = vmul.u32 2, %v3452_v35  ;;  %v3822_v13 = vmul.u32 16, %v3814_v23 }
 0x270   : > { %17101 = vmatprep.mubr.msk.f32.mxu0 %vm419_vm1, %v3092_v6 }
 0x271   : > { %v20961_v5 = vadd.s32 %v3476_v42, %v3468_v20  ;;  %v20973_v40 = vadd.s32 %v3822_v13, %v3476_v42 }
 0x273   : > { %17102 = vmatmul.mubr.msk.f32.gmra.mrb[30].mxu0 %vm419_vm1, %v3094_v12  ;;  %vm3493_vm4 = vcmp.eq.s32.totalorder %v20959_v26, %v20961_v5  ;;  %vm3492_vm5 = vcmp.eq.s32.totalorder %v20954_v30, %v20961_v5 }
 0x274   : > { %14285 = vmatprep.mubr.msk.f32.mxu1 %vm3493_vm4, %v19671_v8 }
 0x30a   : > { %v17058_v18 = vpop.f32.mrb[0].mxu0 }
 0x30b   : > { %v3369_v24 = vadd.f32 %v17058_v18, %v20969_v27  ;;  %v3170_v41 = vpop.f32.mrb[1].mxu0 }
 0x30c   : > { %v3368_v14 = vadd.f32 %v20969_v27, %v3170_v41 }
 0x30d   : > { %v3401_v43 = vmax.f32 %v3369_v24, 0.0 }
 0x30e   : > { %v3400_v28 = vmax.f32 %v3368_v14, 0.0  ;;  %v17061_v16 = vpop.f32.mrb[2].mxu0 }
 0x30f   : > { %v3371_v44 = vadd.f32 %v17061_v16, %v20969_v27  ;;  %v3180_v3 = vpop.f32.mrb[3].mxu0 }
 0x310   : > { %v20976_v11 = vpack.c.bf16 %v3401_v43, %v3400_v28  ;;  %v3370_v15 = vadd.f32 %v20969_v27, %v3180_v3 }
 0x311   : > { %v3403_v19 = vmax.f32 %v3371_v44, 0.0 }
 0x312   : > { %v3402_v22 = vmax.f32 %v3370_v15, 0.0  ;;  %v17064_v33 = vpop.f32.mrb[4].mxu0 }
 0x313   : > { %v3373_v39 = vadd.f32 %v17064_v33, %v20969_v27  ;;  %v3190_v45 = vpop.f32.mrb[5].mxu0 }
 0x314   : > { %v20980_v7 = vpack.c.bf16 %v3403_v19, %v3402_v22  ;;  %v3372_v17 = vadd.f32 %v20969_v27, %v3190_v45 }
 0x315   : > { %v3405_v21 = vmax.f32 %v3373_v39, 0.0 }
 0x316   : > { %v3404_v29 = vmax.f32 %v3372_v17, 0.0  ;;  %v17067_v31 = vpop.f32.mrb[6].mxu0 }
 0x317   : > { %v3375_v32 = vadd.f32 %v17067_v31, %v20969_v27  ;;  %v3200_v34 = vpop.f32.mrb[7].mxu0 }
 0x318   : > { %v20984_v36 = vpack.c.bf16 %v3405_v21, %v3404_v29  ;;  %v3374_v37 = vadd.f32 %v20969_v27, %v3200_v34 }
 0x319   : > { %v3407_v38 = vmax.f32 %v3375_v32, 0.0 }
 0x31a   : > { %v3406_v46 = vmax.f32 %v3374_v37, 0.0  ;;  %v17070_v47 = vpop.f32.mrb[8].mxu0 }
 0x31b   : > { %v3377_v48 = vadd.f32 %v17070_v47, %v20969_v27  ;;  %v3210_v49 = vpop.f32.mrb[9].mxu0 }
 0x31c   : > { %v20988_v50 = vpack.c.bf16 %v3407_v38, %v3406_v46  ;;  %v3376_v51 = vadd.f32 %v20969_v27, %v3210_v49 }
 0x31d   : > { %v3409_v52 = vmax.f32 %v3377_v48, 0.0 }
 0x31e   : > { %v3408_v53 = vmax.f32 %v3376_v51, 0.0  ;;  %v17073_v54 = vpop.f32.mrb[10].mxu0 }
 0x31f   : > { %v3379_v55 = vadd.f32 %v17073_v54, %v20969_v27  ;;  %v3220_v56 = vpop.f32.mrb[11].mxu0 }
 0x320   : > { %v20992_v57 = vpack.c.bf16 %v3409_v52, %v3408_v53  ;;  %v3378_v58 = vadd.f32 %v20969_v27, %v3220_v56 }
 0x321   : > { %v3411_v59 = vmax.f32 %v3379_v55, 0.0  ;;  %v21027_v55 = vadd.s32 8, %v20948_v10 }
 0x322   : > { %v3410_v60 = vmax.f32 %v3378_v58, 0.0  ;;  %v17076_v61 = vpop.f32.mrb[12].mxu0 }
 0x323   : > { %v3381_v62 = vadd.f32 %v17076_v61, %v20969_v27  ;;  %v3230_v63 = vpop.f32.mrb[13].mxu0 }
 0x324   : > { %v20996_v0 = vpack.c.bf16 %v3411_v59, %v3410_v60  ;;  %v3380_v2 = vadd.f32 %v20969_v27, %v3230_v63 }
 0x325   : > { %v3413_v4 = vmax.f32 %v3381_v62, 0.0 }
 0x326   : > { %v3412_v6 = vmax.f32 %v3380_v2, 0.0  ;;  %v17079_v12 = vpop.f32.mrb[14].mxu0  ;;  %v3445_v2 = vshra.s32 %v21027_v55, 3 }
 0x327   : > { %v3383_v9 = vadd.f32 %v17079_v12, %v20969_v27  ;;  %v3240_v1 = vpop.f32.mrb[15].mxu0  ;;  %v21040_v12 = vadd.s32 16, %v20948_v10 }
 0x328   : > { %v21000_v20 = vpack.c.bf16 %v3413_v4, %v3412_v6  ;;  %v3382_v42 = vadd.f32 %v20969_v27, %v3240_v1 }
 0x329   : > { %v3415_v18 = vmax.f32 %v3383_v9, 0.0 }
 0x32a   : > { %v3414_v23 = vmax.f32 %v3382_v42, 0.0  ;;  %v17082_v24 = vpop.f32.mrb[16].mxu0 }
 0x32b   : > { %v3385_v41 = vadd.f32 %v17082_v24, %v20969_v27  ;;  %v3250_v14 = vpop.f32.mrb[17].mxu0 }
 0x32c   : > { %v21004_v13 = vpack.c.bf16 %v3415_v18, %v3414_v23  ;;  %v3384_v43 = vadd.f32 %v20969_v27, %v3250_v14  ;;  %v21044_v18 = vadd.s32 24, %v20948_v10  ;;  %v21051_v14 = vmul.u32 2, %v3445_v2 }
 0x32d   : > { %v3417_v28 = vmax.f32 %v3385_v41, 0.0  ;;  %v3453_v41 = vand.u32 7, %v21027_v55 }
 0x32e   : > { %v3416_v16 = vmax.f32 %v3384_v43, 0.0  ;;  %v17085_v44 = vpop.f32.mrb[18].mxu0 }
 0x32f   : > { %v3387_v3 = vadd.f32 %v17085_v44, %v20969_v27  ;;  %v3260_v15 = vpop.f32.mrb[19].mxu0 }
 0x330   : > { %v21008_v19 = vpack.c.bf16 %v3417_v28, %v3416_v16  ;;  %v3386_v22 = vadd.f32 %v20969_v27, %v3260_v15  ;;  %v3446_v16 = vshra.s32 %v21040_v12, 3 }
 0x331   : > { %v3419_v33 = vmax.f32 %v3387_v3, 0.0 }
 0x332   : > { %v3418_v39 = vmax.f32 %v3386_v22, 0.0  ;;  %v17088_v45 = vpop.f32.mrb[20].mxu0  ;;  %18449 = vmatprep.subr.bf16.mxu1 %v21008_v19  ;;  %v3447_v22 = vshra.s32 %v21044_v18, 3 }
 0x333   : > { %v3389_v17 = vadd.f32 %v17088_v45, %v20969_v27  ;;  %v3270_v21 = vpop.f32.mrb[21].mxu0  ;;  %18451 = vmatpush3.bf16.msra.mxu1 %v20976_v11  ;;  %v3469_v45 = vmul.u32 16, %v21051_v14 }
 0x334   : > { %v21014_v29 = vpack.c.bf16 %v3419_v33, %v3418_v39  ;;  %v3388_v31 = vadd.f32 %v20969_v27, %v3270_v21  ;;  %v21067_v21 = vadd.s32 32, %v20948_v10 }
 0x335   : > { %v3421_v32 = vmax.f32 %v3389_v17, 0.0  ;;  %v21064_v17 = vmul.u32 2, %v3453_v41 }
 0x336   : > { %v3420_v34 = vmax.f32 %v3388_v31, 0.0  ;;  %v17091_v37 = vpop.f32.mrb[22].mxu0  ;;  %18453 = vmatprep.subr.bf16.mxu1 %v21014_v29 }
 0x337   : > { %v3391_v38 = vadd.f32 %v17091_v37, %v20969_v27  ;;  %v3280_v46 = vpop.f32.mrb[23].mxu0  ;;  %18455 = vmatpush3.bf16.msra.mxu1 %v20980_v7  ;;  %v21075_v37 = vmul.u32 2, %v3446_v16 }
 0x338   : > { %v21020_v47 = vpack.c.bf16 %v3421_v32, %v3420_v34  ;;  %v3390_v48 = vadd.f32 %v20969_v27, %v3280_v46  ;;  %v3454_v34 = vand.u32 7, %v21040_v12 }
 0x339   : > { %v3423_v49 = vmax.f32 %v3391_v38, 0.0 }
 0x33a   : > { %v3422_v51 = vmax.f32 %v3390_v48, 0.0  ;;  %v17094_v52 = vpop.f32.mrb[24].mxu0  ;;  %18457 = vmatprep.subr.bf16.mxu1 %v21020_v47  ;;  %v21080_v48 = vmul.u32 2, %v3447_v22 }
 0x33b   : > { %v3393_v53 = vadd.f32 %v17094_v52, %v20969_v27  ;;  %v3290_v54 = vpop.f32.mrb[25].mxu0  ;;  %18459 = vmatpush3.bf16.msra.mxu1 %v20984_v36 }
 0x33c   : > { %v21029_v56 = vpack.c.bf16 %v3423_v49, %v3422_v51  ;;  %v3392_v58 = vadd.f32 %v20969_v27, %v3290_v54  ;;  %v21084_v49 = vadd.s32 %v21064_v17, %v3469_v45  ;;  %v3448_v51 = vshra.s32 %v21067_v21, 3 }
 0x33d   : > { %v3425_v59 = vmax.f32 %v3393_v53, 0.0  ;;  %v3470_v53 = vmul.u32 16, %v21075_v37  ;;  %v21093_v54 = vmul.u32 2, %v3454_v34 }
 0x33e   : > { %v3424_v60 = vmax.f32 %v3392_v58, 0.0  ;;  %v17097_v61 = vpop.f32.mrb[26].mxu0  ;;  %18461 = vmatprep.subr.bf16.mxu1 %v21029_v56  ;;  %v21096_v58 = vadd.s32 40, %v20948_v10  ;;  %vm3495_vm6 = vcmp.eq.s32.totalorder %v20959_v26, %v21084_v49  ;;  %vm3494_vm7 = vcmp.eq.s32.totalorder %v20954_v30, %v21084_v49 }
 0x33f   : > { %v3395_v62 = vadd.f32 %v17097_v61, %v20969_v27  ;;  %v3300_v63 = vpop.f32.mrb[27].mxu0  ;;  %18463 = vmatpush3.bf16.msra.mxu1 %v20988_v50  ;;  %v3456_v61 = vand.u32 7, %v21067_v21 }
 0x340   : > { %v21036_v4 = vpack.c.bf16 %v3425_v59, %v3424_v60  ;;  %v3394_v6 = vadd.f32 %v20969_v27, %v3300_v63  ;;  %v3471_v59 = vmul.u32 16, %v21080_v48  ;;  %v21113_v63 = vadd.s32 48, %v20948_v10 }
 0x341   : > { %v3427_v9 = vmax.f32 %v3395_v62, 0.0  ;;  %v21110_v62 = vmul.u32 2, %v3448_v51 }
 0x342   : > { %v3426_v1 = vmax.f32 %v3394_v6, 0.0  ;;  %v17100_v42 = vpop.f32.mrb[28].mxu0  ;;  %18465 = vmatprep.subr.bf16.mxu1 %v21036_v4  ;;  %v21119_v6 = vadd.s32 %v21093_v54, %v3470_v53 }
 0x343   : > { %v3397_v23 = vadd.f32 %v17100_v42, %v20969_v27  ;;  %v3310_v24 = vpop.f32.mrb[29].mxu0  ;;  %18467 = vmatpush3.bf16.msra.mxu1 %v20992_v57  ;;  %v3472_v42 = vmul.u32 16, %v21110_v62 }
 0x344   : > { %v21053_v43 = vpack.c.bf16 %v3427_v9, %v3426_v1  ;;  %v3396_v28 = vadd.f32 %v20969_v27, %v3310_v24  ;;  %v3449_v9 = vshra.s32 %v21096_v58, 3  ;;  %v3450_v24 = vshra.s32 %v21113_v63, 3 }
 0x345   : > { %v3429_v44 = vmax.f32 %v3397_v23, 0.0  ;;  %v21133_v23 = vmul.u32 2, %v3456_v61  ;;  %vm3497_vm8 = vcmp.eq.s32.totalorder %v20959_v26, %v21119_v6  ;;  %vm3496_vm9 = vcmp.eq.s32.totalorder %v20954_v30, %v21119_v6 }
 0x346   : > { %v3428_v3 = vmax.f32 %v3396_v28, 0.0  ;;  %v17103_v15 = vpop.f32.mrb[30].mxu0  ;;  %18469 = vmatprep.subr.bf16.mxu1 %v21053_v43  ;;  %v24820_v28 = vand.u32 7, %v21096_v58 }
 0x347   : > { %v3399_v33 = vadd.f32 %v17103_v15, %v20969_v27  ;;  %v3320_v39 = vpop.f32.mrb[31].mxu0  ;;  %18471 = vmatpush3.bf16.msra.mxu1 %v20996_v0  ;;  %v21155_v15 = vadd.s32 %v21133_v23, %v3472_v42 }
 0x348   : > { %v21069_v31 = vpack.c.bf16 %v3429_v44, %v3428_v3  ;;  %v3398_v32 = vadd.f32 %v20969_v27, %v3320_v39  ;;  %v3455_v27 = vand.u32 7, %v21044_v18  ;;  %v21142_v44 = vmul.u32 2, %v3449_v9 }
 0x349   : > { %v3431_v38 = vmax.f32 %v3399_v33, 0.0  ;;  %v21145_v3 = vadd.s32 56, %v20948_v10  ;;  %v21159_v33 = vmul.u32 2, %v3450_v24  ;;  %v21165_v45 = vmul.u32 2, %v24820_v28 }
 0x34a   : > { %v3430_v46 = vmax.f32 %v3398_v32, 0.0  ;;  %18473 = vmatprep.subr.bf16.mxu1 %v21069_v31  ;;  %v21105_v60 = vmul.u32 2, %v3455_v27  ;;  %v3473_v39 = vmul.u32 16, %v21142_v44  ;;  %v24821_v32 = vand.u32 7, %v21113_v63 }
 0x34b   : > { %18475 = vmatpush3.bf16.msra.mxu1 %v21000_v20  ;;  %vm3501_vm12 = vcmp.eq.s32.totalorder %v20959_v26, %v21155_v15  ;;  %v24823_v42 = vand.u32 7, %v21145_v3  ;;  %vm3500_vm13 = vcmp.eq.s32.totalorder %v20954_v30, %v21155_v15 }
 0x34c   : > { %v21088_v52 = vpack.c.bf16 %v3431_v38, %v3430_v46  ;;  %v21128_v1 = vadd.s32 %v21105_v60, %v3471_v59  ;;  %v24822_v38 = vshra.s32 %v21145_v3, 3  ;;  %v3474_v46 = vmul.u32 16, %v21159_v33 }
 0x34d   : > { %v3489_v53 = vadd.s32 %v21165_v45, %v3473_v39  ;;  %v21181_v59 = vmul.u32 2, %v24821_v32 }
 0x34e   : > { %18477 = vmatprep.subr.bf16.mxu1 %v21088_v52  ;;  %vm3499_vm10 = vcmp.eq.s32.totalorder %v20959_v26, %v21128_v1  ;;  %vm3498_vm11 = vcmp.eq.s32.totalorder %v20954_v30, %v21128_v1  ;;  %v21186_v28 = vmul.u32 2, %v24822_v38  ;;  %v21199_v38 = vmul.u32 2, %v24823_v42 }
 0x34f   : > { %18479 = vmatpush3.bf16.msra.mxu1 %v21004_v13  ;;  %vm3503_vm14 = vcmp.eq.s32.totalorder %v20959_v26, %v3489_v53  ;;  %v3490_v39 = vadd.s32 %v21181_v59, %v3474_v46  ;;  %vm3502_vm15 = vcmp.eq.s32.totalorder %v20954_v30, %v3489_v53  ;;  %v3645_v42 = vadd.s32 1, %v20961_v5 }
 0x350   : > { %18481 = vmatprep.subr.bf16.mxu1 %v21008_v19  ;;  %v3475_v32 = vmul.u32 16, %v21186_v28  ;;  %v3647_v5 = vadd.s32 1, %v21119_v6  ;;  %v3649_v6 = vadd.s32 1, %v21155_v15 }
 0x351   : > { %vm3505_vm0 = vcmp.eq.s32.totalorder %v20959_v26, %v3490_v39  ;;  %vm3504_vm4 = vcmp.eq.s32.totalorder %v20954_v30, %v3490_v39  ;;  %v3651_v15 = vadd.s32 1, %v3490_v39 }
 0x352   : > { %14286 = vmatmul.mubr.msk.f32.vlgmr.msra.gmra.mrb[0].mxu1 %vm3492_vm5, %v19671_v8  ;;  %v3491_v46 = vadd.s32 %v21199_v38, %v3475_v32  ;;  %v3646_v32 = vadd.s32 1, %v21084_v49  ;;  %v3648_v49 = vadd.s32 1, %v21128_v1  ;;  %v3650_v1 = vadd.s32 1, %v3489_v53 }
 0x353   : > { %18483 = vmatpush3.bf16.msra.mxu1 %v20976_v11  ;;  %14287 = vmatprep.mubr.msk.f32.mxu1 %vm3495_vm6, %v19671_v8 }
 0x354   : > { %18485 = vmatprep.subr.bf16.mxu1 %v21014_v29  ;;  %vm3507_vm5 = vcmp.eq.s32.totalorder %v20959_v26, %v3491_v46  ;;  %vm3506_vm6 = vcmp.eq.s32.totalorder %v20954_v30, %v3491_v46  ;;  %v3652_v53 = vadd.s32 1, %v3491_v46 }
 0x356   : > { %14288 = vmatmul.mubr.msk.f32.gmra.mrb[2].mxu1 %vm3494_vm7, %v19671_v8  ;;  %vm3654_vm7 = vcmp.eq.s32.totalorder %v20959_v26, %v3645_v42 }
 0x357   : > { %18487 = vmatpush3.bf16.msra.mxu1 %v20980_v7  ;;  %14289 = vmatprep.mubr.msk.f32.mxu1 %vm3497_vm8, %v19671_v8  ;;  %vm3653_vm8 = vcmp.eq.s32.totalorder %v20954_v30, %v3645_v42  ;;  %v3815_v42 = vadd.s32 1, %v21051_v14 }
 0x358   : > { %18489 = vmatprep.subr.bf16.mxu1 %v21020_v47 }
 0x359   : > { %v3823_v39 = vmul.u32 16, %v3815_v42 }
 0x35a   : > { %14290 = vmatmul.mubr.msk.f32.gmra.mrb[4].mxu1 %vm3496_vm9, %v19671_v8  ;;  %vm3656_vm9 = vcmp.eq.s32.totalorder %v20959_v26, %v3646_v32 }
 0x35b   : > { %18491 = vmatpush3.bf16.msra.mxu1 %v20984_v36  ;;  %14291 = vmatprep.mubr.msk.f32.mxu1 %vm3499_vm10, %v19671_v8  ;;  %vm3655_vm10 = vcmp.eq.s32.totalorder %v20954_v30, %v3646_v32  ;;  %v3816_v32 = vadd.s32 1, %v21075_v37  ;;  %v21277_v14 = vadd.s32 %v3823_v39, %v21064_v17 }
 0x35c   : > { %18493 = vmatprep.subr.bf16.mxu1 %v21029_v56 }
 0x35d   : > { %v3824_v46 = vmul.u32 16, %v3816_v32 }
 0x35e   : > { %14292 = vmatmul.mubr.msk.f32.gmra.mrb[6].mxu1 %vm3498_vm11, %v19671_v8  ;;  %vm3658_vm11 = vcmp.eq.s32.totalorder %v20959_v26, %v3647_v5 }
 0x35f   : > { %18495 = vmatpush3.bf16.msra.mxu1 %v20988_v50  ;;  %14293 = vmatprep.mubr.msk.f32.mxu1 %vm3501_vm12, %v19671_v8  ;;  %vm3657_vm12 = vcmp.eq.s32.totalorder %v20954_v30, %v3647_v5  ;;  %v3817_v5 = vadd.s32 1, %v21080_v48  ;;  %v21289_v17 = vadd.s32 %v3824_v46, %v21093_v54  ;;  %v3818_v48 = vadd.s32 1, %v21110_v62 }
 0x360   : > { %18497 = vmatprep.subr.bf16.mxu1 %v21036_v4  ;;  %v3821_v62 = vadd.s32 1, %v21186_v28 }
 0x361   : > { %v3825_v37 = vmul.u32 16, %v3817_v5  ;;  %v3826_v54 = vmul.u32 16, %v3818_v48 }
 0x362   : > { %14294 = vmatmul.mubr.msk.f32.gmra.mrb[8].mxu1 %vm3500_vm13, %v19671_v8  ;;  %vm3660_vm13 = vcmp.eq.s32.totalorder %v20959_v26, %v3648_v49 }
 0x363   : > { %18499 = vmatpush3.bf16.msra.mxu1 %v20992_v57  ;;  %14295 = vmatprep.mubr.msk.f32.mxu1 %vm3503_vm14, %v19671_v8  ;;  %vm3659_vm14 = vcmp.eq.s32.totalorder %v20954_v30, %v3648_v49  ;;  %v3819_v49 = vadd.s32 1, %v21142_v44  ;;  %v4278_v44 = vld [vmem:[%s24737_s3] sm:$0xff] }
 0x364   : > { %18501 = vmatprep.subr.bf16.mxu1 %v21053_v43 }
 0x366   : > { %14296 = vmatmul.mubr.msk.f32.gmra.mrb[10].mxu1 %vm3502_vm15, %v19671_v8  ;;  %vm3662_vm15 = vcmp.eq.s32.totalorder %v20959_v26, %v3649_v6 }
 0x367   : > { %18503 = vmatpush3.bf16.msra.mxu1 %v20996_v0  ;;  %14297 = vmatprep.mubr.msk.f32.mxu1 %vm3505_vm0, %v19671_v8  ;;  %vm3661_vm0 = vcmp.eq.s32.totalorder %v20954_v30, %v3649_v6 }
 0x368   : > { %18505 = vmatprep.subr.bf16.mxu1 %v21069_v31 }
 0x36a   : > { %14298 = vmatmul.mubr.msk.f32.gmra.mrb[12].mxu1 %vm3504_vm4, %v19671_v8  ;;  %vm3664_vm4 = vcmp.eq.s32.totalorder %v20959_v26, %v3650_v1 }
 0x36b   : > { %18507 = vmatpush3.bf16.msra.mxu1 %v21000_v20  ;;  %14299 = vmatprep.mubr.msk.f32.mxu1 %vm3507_vm5, %v19671_v8  ;;  %vm3663_vm5 = vcmp.eq.s32.totalorder %v20954_v30, %v3650_v1 }
 0x36c   : > { %18509 = vmatprep.subr.bf16.mxu1 %v21088_v52 }
 0x36e   : > { %14300 = vmatmul.mubr.msk.f32.gmra.mrb[14].mxu1 %vm3506_vm6, %v19671_v8  ;;  %vm3666_vm6 = vcmp.eq.s32.totalorder %v20959_v26, %v3651_v15 }
 0x36f   : > { %18511 = vmatpush3.bf16.msra.mxu1 %v21004_v13  ;;  %14317 = vmatprep.mubr.msk.f32.mxu1 %vm3654_vm7, %v19671_v8  ;;  %vm3665_vm7 = vcmp.eq.s32.totalorder %v20954_v30, %v3651_v15 }
 0x370   : > { %18513 = vmatprep.subr.bf16.mxu1 %v21008_v19 }
 0x372   : > { %14318 = vmatmul.mubr.msk.f32.vlgmr.msra.gmra.mrb[16].mxu1 %vm3653_vm8, %v19671_v8  ;;  %vm3668_vm8 = vcmp.eq.s32.totalorder %v20959_v26, %v3652_v53 }
 0x373   : > { %18515 = vmatpush3.bf16.msra.mxu1 %v20976_v11  ;;  %14319 = vmatprep.mubr.msk.f32.mxu1 %vm3656_vm9, %v19671_v8  ;;  %vm3667_vm9 = vcmp.eq.s32.totalorder %v20954_v30, %v3652_v53 }
 0x374   : > { %18517 = vmatprep.subr.bf16.mxu1 %v21014_v29 }
 0x376   : > { %14320 = vmatmul.mubr.msk.f32.gmra.mrb[18].mxu1 %vm3655_vm10, %v19671_v8  ;;  %vm3839_vm10 = vcmp.eq.s32.totalorder %v20959_v26, %v20973_v40 }
 0x377   : > { %18519 = vmatpush3.bf16.msra.mxu1 %v20980_v7  ;;  %14321 = vmatprep.mubr.msk.f32.mxu1 %vm3658_vm11, %v19671_v8  ;;  %vm3838_vm11 = vcmp.eq.s32.totalorder %v20954_v30, %v20973_v40 }
 0x378   : > { %18521 = vmatprep.subr.bf16.mxu1 %v21020_v47 }
 0x37a   : > { %14322 = vmatmul.mubr.msk.f32.gmra.mrb[20].mxu1 %vm3657_vm12, %v19671_v8  ;;  %vm3841_vm12 = vcmp.eq.s32.totalorder %v20959_v26, %v21277_v14 }
 0x37b   : > { %18523 = vmatpush3.bf16.msra.mxu1 %v20984_v36  ;;  %14323 = vmatprep.mubr.msk.f32.mxu1 %vm3660_vm13, %v19671_v8  ;;  %vm3840_vm13 = vcmp.eq.s32.totalorder %v20954_v30, %v21277_v14 }
 0x37c   : > { %18525 = vmatprep.subr.bf16.mxu1 %v21029_v56 }
 0x37e   : > { %14324 = vmatmul.mubr.msk.f32.gmra.mrb[22].mxu1 %vm3659_vm14, %v19671_v8  ;;  %vm3843_vm14 = vcmp.eq.s32.totalorder %v20959_v26, %v21289_v17 }
 0x37f   : > { %18527 = vmatpush3.bf16.msra.mxu1 %v20988_v50  ;;  %14325 = vmatprep.mubr.msk.f32.mxu1 %vm3662_vm15, %v19671_v8  ;;  %vm3842_vm15 = vcmp.eq.s32.totalorder %v20954_v30, %v21289_v17 }
 0x380   : > { %18529 = vmatprep.subr.bf16.mxu1 %v21036_v4 }
 0x382   : > { %14326 = vmatmul.mubr.msk.f32.gmra.mrb[24].mxu1 %vm3661_vm0, %v19671_v8 }
 0x383   : > { %18531 = vmatpush3.bf16.msra.mxu1 %v20992_v57  ;;  %14327 = vmatprep.mubr.msk.f32.mxu1 %vm3664_vm4, %v19671_v8 }
 0x384   : > { %18533 = vmatprep.subr.bf16.mxu1 %v21053_v43 }
 0x386   : > { %14328 = vmatmul.mubr.msk.f32.gmra.mrb[26].mxu1 %vm3663_vm5, %v19671_v8 }
 0x387   : > { %18535 = vmatpush3.bf16.msra.mxu1 %v20996_v0  ;;  %14329 = vmatprep.mubr.msk.f32.mxu1 %vm3666_vm6, %v19671_v8 }
 0x388   : > { %18537 = vmatprep.subr.bf16.mxu1 %v21069_v31 }
 0x38a   : > { %14330 = vmatmul.mubr.msk.f32.gmra.mrb[28].mxu1 %vm3665_vm7, %v19671_v8 }
 0x38b   : > { %18539 = vmatpush3.bf16.msra.mxu1 %v21000_v20  ;;  %14331 = vmatprep.mubr.msk.f32.mxu1 %vm3668_vm8, %v19671_v8 }
 0x38c   : > { %18541 = vmatprep.subr.bf16.mxu1 %v21088_v52 }
 0x38e   : > { %14332 = vmatmul.mubr.msk.f32.gmra.mrb[30].mxu1 %vm3667_vm9, %v19671_v8 }
 0x38f   : > { %18543 = vmatpush3.bf16.msra.mxu1 %v21004_v13  ;;  %14349 = vmatprep.mubr.msk.f32.mxu1 %vm3839_vm10, %v19671_v8 }
 0x390   : > { %18545 = vmatprep.subr.bf16.mxu1 %v21008_v19  ;;  %v3833_v19 = vadd.s32 %v3825_v37, %v21105_v60  ;;  %v3820_v60 = vadd.s32 1, %v21159_v33  ;;  %v4279_v33 = vld [vmem:[%s24737_s3 + $0x8] sm:$0xff] }
 0x392   : > { %14350 = vmatmul.mubr.msk.f32.vlgmr.msra.gmra.mrb[32].mxu1 %vm3838_vm11, %v19671_v8  ;;  %vm3845_vm0 = vcmp.eq.s32.totalorder %v20959_v26, %v3833_v19  ;;  %vm3844_vm4 = vcmp.eq.s32.totalorder %v20954_v30, %v3833_v19 }
 0x393   : > { %18547 = vmatpush3.bf16.msra.mxu1 %v20976_v11  ;;  %14351 = vmatprep.mubr.msk.f32.mxu1 %vm3841_vm12, %v19671_v8  ;;  %v3834_v11 = vadd.s32 %v3826_v54, %v21133_v23  ;;  %v14398_v23 = vld [vmem:[%s24737_s3 + $0x18] sm:$0xff] }
 0x394   : > { %18549 = vmatprep.subr.bf16.mxu1 %v21014_v29  ;;  %v3827_v29 = vmul.u32 16, %v3819_v49 }
 0x395   : > { %vm3847_vm5 = vcmp.eq.s32.totalorder %v20959_v26, %v3834_v11  ;;  %vm3846_vm6 = vcmp.eq.s32.totalorder %v20954_v30, %v3834_v11 }
 0x396   : > { %14352 = vmatmul.mubr.msk.f32.gmra.mrb[34].mxu1 %vm3840_vm13, %v19671_v8 }
 0x397   : > { %18551 = vmatpush3.bf16.msra.mxu1 %v20980_v7  ;;  %14353 = vmatprep.mubr.msk.f32.mxu1 %vm3843_vm14, %v19671_v8  ;;  %v3835_v7 = vadd.s32 %v3827_v29, %v21165_v45  ;;  %v21601_v45 = vpack.c.bf16 %v4279_v33, %v4278_v44 }
 0x398   : > { %18553 = vmatprep.subr.bf16.mxu1 %v21020_v47  ;;  %v3828_v47 = vmul.u32 16, %v3820_v60 }
 0x399   : > { %vm3849_vm7 = vcmp.eq.s32.totalorder %v20959_v26, %v3835_v7  ;;  %vm3848_vm8 = vcmp.eq.s32.totalorder %v20954_v30, %v3835_v7 }
 0x39a   : > { %14354 = vmatmul.mubr.msk.f32.gmra.mrb[36].mxu1 %vm3842_vm15, %v19671_v8 }
 0x39b   : > { %18555 = vmatpush3.bf16.msra.mxu1 %v20984_v36  ;;  %14355 = vmatprep.mubr.msk.f32.mxu1 %vm3845_vm0, %v19671_v8  ;;  %v3836_v36 = vadd.s32 %v3828_v47, %v21181_v59 }
 0x39c   : > { %18557 = vmatprep.subr.bf16.mxu1 %v21029_v56  ;;  %v3829_v56 = vmul.u32 16, %v3821_v62 }
 0x39d   : > { %vm3851_vm9 = vcmp.eq.s32.totalorder %v20959_v26, %v3836_v36  ;;  %vm3850_vm10 = vcmp.eq.s32.totalorder %v20954_v30, %v3836_v36 }
 0x39e   : > { %14356 = vmatmul.mubr.msk.f32.gmra.mrb[38].mxu1 %vm3844_vm4, %v19671_v8 }
 0x39f   : > { %18559 = vmatpush3.bf16.msra.mxu1 %v20988_v50  ;;  %14357 = vmatprep.mubr.msk.f32.mxu1 %vm3847_vm5, %v19671_v8  ;;  %v3837_v50 = vadd.s32 %v3829_v56, %v21199_v38 }
 0x3a0   : > { %18561 = vmatprep.subr.bf16.mxu1 %v21036_v4  ;;  %v4004_v4 = vadd.s32 1, %v3835_v7 }
 0x3a1   : > { %vm3853_vm11 = vcmp.eq.s32.totalorder %v20959_v26, %v3837_v50  ;;  %vm3852_vm12 = vcmp.eq.s32.totalorder %v20954_v30, %v3837_v50 }
 0x3a2   : > { %14358 = vmatmul.mubr.msk.f32.gmra.mrb[40].mxu1 %vm3846_vm6, %v19671_v8 }
 0x3a3   : > { %18563 = vmatpush3.bf16.msra.mxu1 %v20992_v57  ;;  %14359 = vmatprep.mubr.msk.f32.mxu1 %vm3849_vm7, %v19671_v8  ;;  %v3999_v57 = vadd.s32 1, %v20973_v40  ;;  %v4001_v40 = vadd.s32 1, %v21289_v17 }
 0x3a4   : > { %18565 = vmatprep.subr.bf16.mxu1 %v21053_v43  ;;  %v4005_v43 = vadd.s32 1, %v3836_v36 }
 0x3a5   : > { %vm4008_vm13 = vcmp.eq.s32.totalorder %v20959_v26, %v3999_v57  ;;  %vm4007_vm14 = vcmp.eq.s32.totalorder %v20954_v30, %v3999_v57  ;;  %vm4012_vm4 = vcmp.eq.s32.totalorder %v20959_v26, %v4001_v40  ;;  %vm4011_vm5 = vcmp.eq.s32.totalorder %v20954_v30, %v4001_v40 }
 0x3a6   : > { %14360 = vmatmul.mubr.msk.f32.gmra.mrb[42].mxu1 %vm3848_vm8, %v19671_v8 }
 0x3a7   : > { %18567 = vmatpush3.bf16.msra.mxu1 %v20996_v0  ;;  %14361 = vmatprep.mubr.msk.f32.mxu1 %vm3851_vm9, %v19671_v8  ;;  %v4000_v0 = vadd.s32 1, %v21277_v14 }
 0x3a8   : > { %18569 = vmatprep.subr.bf16.mxu1 %v21069_v31  ;;  %v4006_v31 = vadd.s32 1, %v3837_v50 }
 0x3a9   : > { %vm4010_vm15 = vcmp.eq.s32.totalorder %v20959_v26, %v4000_v0  ;;  %vm4009_vm0 = vcmp.eq.s32.totalorder %v20954_v30, %v4000_v0 }
 0x3aa   : > { %14362 = vmatmul.mubr.msk.f32.gmra.mrb[44].mxu1 %vm3850_vm10, %v19671_v8  ;;  %vm4018_vm10 = vcmp.eq.s32.totalorder %v20959_v26, %v4004_v4 }
 0x3ab   : > { %18571 = vmatpush3.bf16.msra.mxu1 %v21000_v20  ;;  %14363 = vmatprep.mubr.msk.f32.mxu1 %vm3853_vm11, %v19671_v8  ;;  %v4002_v20 = vadd.s32 1, %v3833_v19  ;;  %vm4017_vm11 = vcmp.eq.s32.totalorder %v20954_v30, %v4004_v4 }
 0x3ac   : > { %18573 = vmatprep.subr.bf16.mxu1 %v21088_v52  ;;  %v14397_v52 = vld [vmem:[%s24737_s3 + $0x10] sm:$0xff] }
 0x3ad   : > { %vm4014_vm6 = vcmp.eq.s32.totalorder %v20959_v26, %v4002_v20  ;;  %vm4013_vm7 = vcmp.eq.s32.totalorder %v20954_v30, %v4002_v20  ;;  %v18576_v28 = vpack.c.bf16 %v14398_v23, %v14397_v52 }
 0x3ae   : > { %14364 = vmatmul.mubr.msk.f32.gmra.mrb[46].mxu1 %vm3852_vm12, %v19671_v8  ;;  %vm4020_vm12 = vcmp.eq.s32.totalorder %v20959_v26, %v4005_v43 }
 0x3af   : > { %18575 = vmatpush3.bf16.msra.mxu1 %v21004_v13  ;;  %14381 = vmatprep.mubr.msk.f32.mxu1 %vm4008_vm13, %v19671_v8  ;;  %v4003_v13 = vadd.s32 1, %v3834_v11  ;;  %vm4019_vm13 = vcmp.eq.s32.totalorder %v20954_v30, %v4005_v43 }
 0x3b0   : > { %18577 = vmatprep.subr.bf16.mxu1 %v18576_v28 }
 0x3b1   : > { %vm4016_vm8 = vcmp.eq.s32.totalorder %v20959_v26, %v4003_v13  ;;  %vm4015_vm9 = vcmp.eq.s32.totalorder %v20954_v30, %v4003_v13 }
 0x3b2   : > { %14382 = vmatmul.mubr.msk.f32.vlgmr.msra.gmra.mrb[48].mxu1 %vm4007_vm14, %v19671_v8  ;;  %vm4022_vm14 = vcmp.eq.s32.totalorder %v20959_v26, %v4006_v31  ;;  %v25071_v26 = vmov 0.0  }
 0x3b3   : > { %14383 = vmatprep.mubr.msk.f32.mxu1 %vm4010_vm15, %v19671_v8  ;;  %vm4021_vm15 = vcmp.eq.s32.totalorder %v20954_v30, %v4006_v31  ;;  %18579 = vmatpush3.bf16.msra.mxu1 %v18576_v28 }
 0x3b4   : > { %18581 = vmatprep.subr.bf16.mxu1 %v21601_v45 }
 0x3b6   : > { %14384 = vmatmul.mubr.msk.f32.gmra.mrb[50].mxu1 %vm4009_vm0, %v19671_v8  ;;  %vm4168_vm0 = vcmask 130048  }
 0x3b7   : > { %14385 = vmatprep.mubr.msk.f32.mxu1 %vm4012_vm4, %v19671_v8  ;;  %4173 = vst.msk [vmem:[#allocation3 + $0x20] sm:$0xff] %vm4168_vm0, %v25071_v26  ;;  %4169 = vst.msk [vmem:[#allocation3] sm:$0xff] %vm4168_vm0, %v25071_v26 }
 0x3b8   : > { %4170 = vst.msk [vmem:[#allocation3 + $0x8] sm:$0xff] %vm4168_vm0, %v25071_v26  ;;  %4171 = vst.msk [vmem:[#allocation3 + $0x10] sm:$0xff] %vm4168_vm0, %v25071_v26 }
 0x3b9   : > { %4172 = vst.msk [vmem:[#allocation3 + $0x18] sm:$0xff] %vm4168_vm0, %v25071_v26  ;;  %4174 = vst.msk [vmem:[#allocation3 + $0x28] sm:$0xff] %vm4168_vm0, %v25071_v26 }
 0x3ba   : > { %14386 = vmatmul.mubr.msk.f32.gmra.mrb[52].mxu1 %vm4011_vm5, %v19671_v8  ;;  %4175 = vst.msk [vmem:[#allocation3 + $0x30] sm:$0xff] %vm4168_vm0, %v25071_v26  ;;  %4176 = vst.msk [vmem:[#allocation3 + $0x38] sm:$0xff] %vm4168_vm0, %v25071_v26  ;;  %vm5456_vm5 = vcmask 523264  }
 0x3bb   : > { %14387 = vmatprep.mubr.msk.f32.mxu1 %vm4014_vm6, %v19671_v8  ;;  %4177 = vst.msk [vmem:[#allocation3 + $0x40] sm:$0xff] %vm4168_vm0, %v25071_v26  ;;  %4178 = vst.msk [vmem:[#allocation3 + $0x48] sm:$0xff] %vm4168_vm0, %v25071_v26 }
 0x3bc   : > { %4179 = vst.msk [vmem:[#allocation3 + $0x50] sm:$0xff] %vm4168_vm0, %v25071_v26  ;;  %4180 = vst.msk [vmem:[#allocation3 + $0x58] sm:$0xff] %vm4168_vm0, %v25071_v26 }
 0x3bd   : > { %4181 = vst.msk [vmem:[#allocation3 + $0x60] sm:$0xff] %vm4168_vm0, %v25071_v26  ;;  %4182 = vst.msk [vmem:[#allocation3 + $0x68] sm:$0xff] %vm4168_vm0, %v25071_v26 }
 0x3be   : > { %14388 = vmatmul.mubr.msk.f32.gmra.mrb[54].mxu1 %vm4013_vm7, %v19671_v8  ;;  %4183 = vst.msk [vmem:[#allocation3 + $0x70] sm:$0xff] %vm4168_vm0, %v25071_v26  ;;  %4184 = vst.msk [vmem:[#allocation3 + $0x78] sm:$0xff] %vm4168_vm0, %v25071_v26 }
 0x3bf   : > { %14389 = vmatprep.mubr.msk.f32.mxu1 %vm4016_vm8, %v19671_v8  ;;  %4185 = vst.msk [vmem:[#allocation3 + $0x80] sm:$0xff] %vm4168_vm0, %v25071_v26  ;;  %4186 = vst.msk [vmem:[#allocation3 + $0x88] sm:$0xff] %vm4168_vm0, %v25071_v26 }
 0x3c0   : > { %4187 = vst.msk [vmem:[#allocation3 + $0x90] sm:$0xff] %vm4168_vm0, %v25071_v26  ;;  %4188 = vst.msk [vmem:[#allocation3 + $0x98] sm:$0xff] %vm4168_vm0, %v25071_v26 }
 0x3c1   : > { %4189 = vst.msk [vmem:[#allocation3 + $0xa0] sm:$0xff] %vm4168_vm0, %v25071_v26  ;;  %4190 = vst.msk [vmem:[#allocation3 + $0xa8] sm:$0xff] %vm4168_vm0, %v25071_v26 }
 0x3c2   : > { %14390 = vmatmul.mubr.msk.f32.gmra.mrb[56].mxu1 %vm4015_vm9, %v19671_v8  ;;  %4191 = vst.msk [vmem:[#allocation3 + $0xb0] sm:$0xff] %vm4168_vm0, %v25071_v26  ;;  %4192 = vst.msk [vmem:[#allocation3 + $0xb8] sm:$0xff] %vm4168_vm0, %v25071_v26 }
 0x3c3   : > { %14391 = vmatprep.mubr.msk.f32.mxu1 %vm4018_vm10, %v19671_v8  ;;  %4193 = vst.msk [vmem:[#allocation3 + $0xc0] sm:$0xff] %vm4168_vm0, %v25071_v26  ;;  %4194 = vst.msk [vmem:[#allocation3 + $0xc8] sm:$0xff] %vm4168_vm0, %v25071_v26 }
 0x3c4   : > { %4195 = vst.msk [vmem:[#allocation3 + $0xd0] sm:$0xff] %vm4168_vm0, %v25071_v26  ;;  %4196 = vst.msk [vmem:[#allocation3 + $0xd8] sm:$0xff] %vm4168_vm0, %v25071_v26 }
 0x3c5   : > { %4197 = vst.msk [vmem:[#allocation3 + $0xe0] sm:$0xff] %vm4168_vm0, %v25071_v26  ;;  %4198 = vst.msk [vmem:[#allocation3 + $0xe8] sm:$0xff] %vm4168_vm0, %v25071_v26 }
 0x3c6   : > { %14392 = vmatmul.mubr.msk.f32.gmra.mrb[58].mxu1 %vm4017_vm11, %v19671_v8  ;;  %10876 = vst.msk [vmem:[#allocation6] sm:$0xff] %vm4168_vm0, %v25071_v26  ;;  %10877 = vst.msk [vmem:[#allocation6 + $0x8] sm:$0xff] %vm4168_vm0, %v25071_v26 }
 0x3c7   : > { %14393 = vmatprep.mubr.msk.f32.mxu1 %vm4020_vm12, %v19671_v8  ;;  %10878 = vst.msk [vmem:[#allocation6 + $0x10] sm:$0xff] %vm4168_vm0, %v25071_v26  ;;  %10879 = vst.msk [vmem:[#allocation6 + $0x18] sm:$0xff] %vm4168_vm0, %v25071_v26 }
 0x3c8   : > { %10880 = vst.msk [vmem:[#allocation6 + $0x20] sm:$0xff] %vm4168_vm0, %v25071_v26  ;;  %10881 = vst.msk [vmem:[#allocation6 + $0x28] sm:$0xff] %vm4168_vm0, %v25071_v26 }
 0x3c9   : > { %10882 = vst.msk [vmem:[#allocation6 + $0x30] sm:$0xff] %vm4168_vm0, %v25071_v26  ;;  %10883 = vst.msk [vmem:[#allocation6 + $0x38] sm:$0xff] %vm4168_vm0, %v25071_v26 }
 0x3ca   : > { %14394 = vmatmul.mubr.msk.f32.gmra.mrb[60].mxu1 %vm4019_vm13, %v19671_v8  ;;  %10884 = vst.msk [vmem:[#allocation6 + $0x40] sm:$0xff] %vm4168_vm0, %v25071_v26  ;;  %10885 = vst.msk [vmem:[#allocation6 + $0x48] sm:$0xff] %vm4168_vm0, %v25071_v26 }
 0x3cb   : > { %14395 = vmatprep.mubr.msk.f32.mxu1 %vm4022_vm14, %v19671_v8  ;;  %10886 = vst.msk [vmem:[#allocation6 + $0x50] sm:$0xff] %vm4168_vm0, %v25071_v26  ;;  %10887 = vst.msk [vmem:[#allocation6 + $0x58] sm:$0xff] %vm4168_vm0, %v25071_v26 }
 0x3cc   : > { %10888 = vst.msk [vmem:[#allocation6 + $0x60] sm:$0xff] %vm4168_vm0, %v25071_v26  ;;  %10889 = vst.msk [vmem:[#allocation6 + $0x68] sm:$0xff] %vm4168_vm0, %v25071_v26 }
 0x3cd   : > { %10890 = vst.msk [vmem:[#allocation6 + $0x70] sm:$0xff] %vm4168_vm0, %v25071_v26  ;;  %10891 = vst.msk [vmem:[#allocation6 + $0x78] sm:$0xff] %vm4168_vm0, %v25071_v26 }
 0x3ce   : > { %14396 = vmatmul.mubr.msk.f32.gmra.mrb[62].mxu1 %vm4021_vm15, %v19671_v8  ;;  %10892 = vst.msk [vmem:[#allocation6 + $0x80] sm:$0xff] %vm4168_vm0, %v25071_v26  ;;  %10893 = vst.msk [vmem:[#allocation6 + $0x88] sm:$0xff] %vm4168_vm0, %v25071_v26  ;;  %v21591_v8 = vld [vmem:[#allocation3 + $0x8] sm:$0xff] }
 0x3cf   : > { %10894 = vst.msk [vmem:[#allocation6 + $0x90] sm:$0xff] %vm4168_vm0, %v25071_v26  ;;  %10895 = vst.msk [vmem:[#allocation6 + $0x98] sm:$0xff] %vm4168_vm0, %v25071_v26  ;;  %17108 = vmatprep.mubr.msk.f32.mxu1 %vm4168_vm0, %v21591_v8 }
 0x3d0   : > { %10896 = vst.msk [vmem:[#allocation6 + $0xa0] sm:$0xff] %vm4168_vm0, %v25071_v26  ;;  %10897 = vst.msk [vmem:[#allocation6 + $0xa8] sm:$0xff] %vm4168_vm0, %v25071_v26 }
 0x3d1   : > { %10898 = vst.msk [vmem:[#allocation6 + $0xb0] sm:$0xff] %vm4168_vm0, %v25071_v26  ;;  %10899 = vst.msk [vmem:[#allocation6 + $0xb8] sm:$0xff] %vm4168_vm0, %v25071_v26 }
 0x3d2   : > { %10900 = vst.msk [vmem:[#allocation6 + $0xc0] sm:$0xff] %vm4168_vm0, %v25071_v26  ;;  %10901 = vst.msk [vmem:[#allocation6 + $0xc8] sm:$0xff] %vm4168_vm0, %v25071_v26 }
 0x3d3   : > { %10902 = vst.msk [vmem:[#allocation6 + $0xd0] sm:$0xff] %vm4168_vm0, %v25071_v26  ;;  %10903 = vst.msk [vmem:[#allocation6 + $0xd8] sm:$0xff] %vm4168_vm0, %v25071_v26 }
 0x3d4   : > { %10904 = vst.msk [vmem:[#allocation6 + $0xe0] sm:$0xff] %vm4168_vm0, %v25071_v26  ;;  %10905 = vst.msk [vmem:[#allocation6 + $0xe8] sm:$0xff] %vm4168_vm0, %v25071_v26 }
 0x3d5   : > { %10906 = vst.msk [vmem:[#allocation6 + $0xf0] sm:$0xff] %vm4168_vm0, %v25071_v26  ;;  %10907 = vst.msk [vmem:[#allocation6 + $0xf8] sm:$0xff] %vm4168_vm0, %v25071_v26 }
 0x3d6   : > { %10908 = vst.msk [vmem:[#allocation6 + $0x100] sm:$0xff] %vm4168_vm0, %v25071_v26  ;;  %10909 = vst.msk [vmem:[#allocation6 + $0x108] sm:$0xff] %vm4168_vm0, %v25071_v26 }
 0x3d7   : > { %10910 = vst.msk [vmem:[#allocation6 + $0x110] sm:$0xff] %vm4168_vm0, %v25071_v26  ;;  %10911 = vst.msk [vmem:[#allocation6 + $0x118] sm:$0xff] %vm4168_vm0, %v25071_v26 }
 0x3d8   : > { %10912 = vst.msk [vmem:[#allocation6 + $0x120] sm:$0xff] %vm4168_vm0, %v25071_v26  ;;  %10913 = vst.msk [vmem:[#allocation6 + $0x128] sm:$0xff] %vm4168_vm0, %v25071_v26 }
 0x3d9   : > { %10914 = vst.msk [vmem:[#allocation6 + $0x130] sm:$0xff] %vm4168_vm0, %v25071_v26  ;;  %10915 = vst.msk [vmem:[#allocation6 + $0x138] sm:$0xff] %vm4168_vm0, %v25071_v26 }
 0x3da   : > { %10916 = vst.msk [vmem:[#allocation6 + $0x140] sm:$0xff] %vm4168_vm0, %v25071_v26  ;;  %10917 = vst.msk [vmem:[#allocation6 + $0x148] sm:$0xff] %vm4168_vm0, %v25071_v26 }
 0x3db   : > { %10918 = vst.msk [vmem:[#allocation6 + $0x150] sm:$0xff] %vm4168_vm0, %v25071_v26  ;;  %10919 = vst.msk [vmem:[#allocation6 + $0x158] sm:$0xff] %vm4168_vm0, %v25071_v26 }
 0x3dc   : > { %10920 = vst.msk [vmem:[#allocation6 + $0x160] sm:$0xff] %vm4168_vm0, %v25071_v26  ;;  %10921 = vst.msk [vmem:[#allocation6 + $0x168] sm:$0xff] %vm4168_vm0, %v25071_v26 }
 0x3dd   : > { %10922 = vst.msk [vmem:[#allocation6 + $0x170] sm:$0xff] %vm4168_vm0, %v25071_v26  ;;  %10923 = vst.msk [vmem:[#allocation6 + $0x178] sm:$0xff] %vm4168_vm0, %v25071_v26 }
 0x3de   : > { %10924 = vst.msk [vmem:[#allocation6 + $0x180] sm:$0xff] %vm4168_vm0, %v25071_v26  ;;  %10925 = vst.msk [vmem:[#allocation6 + $0x188] sm:$0xff] %vm4168_vm0, %v25071_v26 }
 0x3df   : > { %10926 = vst.msk [vmem:[#allocation6 + $0x190] sm:$0xff] %vm4168_vm0, %v25071_v26  ;;  %10927 = vst.msk [vmem:[#allocation6 + $0x198] sm:$0xff] %vm4168_vm0, %v25071_v26 }
 0x3e0   : > { %10928 = vst.msk [vmem:[#allocation6 + $0x1a0] sm:$0xff] %vm4168_vm0, %v25071_v26  ;;  %10929 = vst.msk [vmem:[#allocation6 + $0x1a8] sm:$0xff] %vm4168_vm0, %v25071_v26 }
 0x3e1   : > { %10930 = vst.msk [vmem:[#allocation6 + $0x1b0] sm:$0xff] %vm4168_vm0, %v25071_v26  ;;  %10931 = vst.msk [vmem:[#allocation6 + $0x1b8] sm:$0xff] %vm4168_vm0, %v25071_v26 }
 0x3e2   : > { %10932 = vst.msk [vmem:[#allocation6 + $0x1c0] sm:$0xff] %vm4168_vm0, %v25071_v26  ;;  %10933 = vst.msk [vmem:[#allocation6 + $0x1c8] sm:$0xff] %vm4168_vm0, %v25071_v26 }
 0x3e3   : > { %10934 = vst.msk [vmem:[#allocation6 + $0x1d0] sm:$0xff] %vm4168_vm0, %v25071_v26  ;;  %10935 = vst.msk [vmem:[#allocation6 + $0x1d8] sm:$0xff] %vm4168_vm0, %v25071_v26 }
 0x3e4   : > { %10936 = vst.msk [vmem:[#allocation6 + $0x1e0] sm:$0xff] %vm4168_vm0, %v25071_v26  ;;  %10937 = vst.msk [vmem:[#allocation6 + $0x1e8] sm:$0xff] %vm4168_vm0, %v25071_v26 }
 0x3e5   : > { %10938 = vst.msk [vmem:[#allocation6 + $0x1f0] sm:$0xff] %vm4168_vm0, %v25071_v26  ;;  %10939 = vst.msk [vmem:[#allocation6 + $0x1f8] sm:$0xff] %vm4168_vm0, %v25071_v26 }
 0x3e6   : > { %10940 = vst.msk [vmem:[#allocation6 + $0x200] sm:$0xff] %vm4168_vm0, %v25071_v26  ;;  %10941 = vst.msk [vmem:[#allocation6 + $0x208] sm:$0xff] %vm4168_vm0, %v25071_v26 }
 0x3e7   : > { %10942 = vst.msk [vmem:[#allocation6 + $0x210] sm:$0xff] %vm4168_vm0, %v25071_v26  ;;  %10943 = vst.msk [vmem:[#allocation6 + $0x218] sm:$0xff] %vm4168_vm0, %v25071_v26 }
 0x3e8   : > { %10944 = vst.msk [vmem:[#allocation6 + $0x220] sm:$0xff] %vm4168_vm0, %v25071_v26  ;;  %10945 = vst.msk [vmem:[#allocation6 + $0x228] sm:$0xff] %vm4168_vm0, %v25071_v26 }
 0x3e9   : > { %10946 = vst.msk [vmem:[#allocation6 + $0x230] sm:$0xff] %vm4168_vm0, %v25071_v26  ;;  %10947 = vst.msk [vmem:[#allocation6 + $0x238] sm:$0xff] %vm4168_vm0, %v25071_v26 }
 0x425   : > { %v15598_v38 = vpop.f32.mrb[0].mxu1 }
 0x426   : > { %v15599_v59 = vpop.f32.mrb[1].mxu1 }
 0x427   : > { %v15600_v6 = vadd.f32 %v15599_v59, %v15598_v38 }
 0x429   : > { %v15601_v1 = vpop.f32.mrb[2].mxu1 }
 0x42a   : > { %v15602_v15 = vpop.f32.mrb[3].mxu1 }
 0x42b   : > { %v15603_v53 = vadd.f32 %v15602_v15, %v15601_v1 }
 0x42d   : > { %v15604_v42 = vpop.f32.mrb[4].mxu1 }
 0x42e   : > { %v15605_v39 = vpop.f32.mrb[5].mxu1 }
 0x42f   : > { %v15606_v32 = vadd.f32 %v15605_v39, %v15604_v42 }
 0x431   : > { %v15607_v14 = vpop.f32.mrb[6].mxu1 }
 0x432   : > { %v15608_v46 = vpop.f32.mrb[7].mxu1 }
 0x433   : > { %v15609_v5 = vadd.f32 %v15608_v46, %v15607_v14 }
 0x435   : > { %v15610_v17 = vpop.f32.mrb[8].mxu1 }
 0x436   : > { %v15611_v37 = vpop.f32.mrb[9].mxu1 }
 0x437   : > { %v15612_v48 = vadd.f32 %v15611_v37, %v15610_v17 }
 0x439   : > { %v15613_v19 = vpop.f32.mrb[10].mxu1 }
 0x43a   : > { %v15614_v54 = vpop.f32.mrb[11].mxu1 }
 0x43b   : > { %v21604_v49 = vadd.f32 %v15614_v54, %v15613_v19 }
 0x43d   : > { %v15616_v11 = vpop.f32.mrb[12].mxu1 }
 0x43e   : > { %v15617_v29 = vpop.f32.mrb[13].mxu1 }
 0x43f   : > { %v21606_v60 = vadd.f32 %v15617_v29, %v15616_v11 }
 0x441   : > { %v15619_v7 = vpop.f32.mrb[14].mxu1 }
 0x442   : > { %v15620_v47 = vpop.f32.mrb[15].mxu1 }
 0x443   : > { %v21608_v62 = vadd.f32 %v15620_v47, %v15619_v7 }
 0x445   : > { %v15654_v36 = vpop.f32.mrb[16].mxu1 }
 0x446   : > { %v15655_v56 = vpop.f32.mrb[17].mxu1 }
 0x447   : > { %v15656_v50 = vadd.f32 %v15655_v56, %v15654_v36 }
 0x449   : > { %v3806_v57 = vmax.f32 %v15600_v6, %v15656_v50  ;;  %v15657_v0 = vpop.f32.mrb[18].mxu1 }
 0x44a   : > { %v15658_v40 = vpop.f32.mrb[19].mxu1 }
 0x44b   : > { %v15659_v20 = vadd.f32 %v15658_v40, %v15657_v0 }
 0x44d   : > { %v3807_v13 = vmax.f32 %v15603_v53, %v15659_v20  ;;  %v15660_v4 = vpop.f32.mrb[20].mxu1 }
 0x44e   : > { %v15661_v43 = vpop.f32.mrb[21].mxu1 }
 0x44f   : > { %v15662_v31 = vadd.f32 %v15661_v43, %v15660_v4 }
 0x451   : > { %v3808_v52 = vmax.f32 %v15606_v32, %v15662_v31  ;;  %v15663_v23 = vpop.f32.mrb[22].mxu1 }
 0x452   : > { %v15664_v28 = vpop.f32.mrb[23].mxu1 }
 0x453   : > { %v15665_v44 = vadd.f32 %v15664_v28, %v15663_v23 }
 0x455   : > { %v3809_v33 = vmax.f32 %v15609_v5, %v15665_v44  ;;  %v15666_v38 = vpop.f32.mrb[24].mxu1 }
 0x456   : > { %v15667_v59 = vpop.f32.mrb[25].mxu1 }
 0x457   : > { %v15668_v1 = vadd.f32 %v15667_v59, %v15666_v38 }
 0x459   : > { %v3810_v15 = vmax.f32 %v15612_v48, %v15668_v1  ;;  %v15669_v42 = vpop.f32.mrb[26].mxu1 }
 0x45a   : > { %v15670_v39 = vpop.f32.mrb[27].mxu1 }
 0x45b   : > { %v15671_v14 = vadd.f32 %v15670_v39, %v15669_v42 }
 0x45d   : > { %v3811_v6 = vmax.f32 %v21604_v49, %v15671_v14  ;;  %v15672_v46 = vpop.f32.mrb[28].mxu1 }
 0x45e   : > { %v15673_v17 = vpop.f32.mrb[29].mxu1 }
 0x45f   : > { %v15674_v53 = vadd.f32 %v15673_v17, %v15672_v46 }
 0x461   : > { %v3812_v37 = vmax.f32 %v21606_v60, %v15674_v53  ;;  %v15675_v19 = vpop.f32.mrb[30].mxu1 }
 0x462   : > { %v15676_v32 = vpop.f32.mrb[31].mxu1 }
 0x463   : > { %v15677_v54 = vadd.f32 %v15676_v32, %v15675_v19 }
 0x465   : > { %v3813_v11 = vmax.f32 %v21608_v62, %v15677_v54  ;;  %v15710_v5 = vpop.f32.mrb[32].mxu1 }
 0x466   : > { %v15711_v29 = vpop.f32.mrb[33].mxu1 }
 0x467   : > { %v15712_v7 = vadd.f32 %v15711_v29, %v15710_v5 }
 0x469   : > { %v3991_v47 = vmax.f32 %v3806_v57, %v15712_v7  ;;  %v15713_v48 = vpop.f32.mrb[34].mxu1 }
 0x46a   : > { %v15714_v36 = vpop.f32.mrb[35].mxu1 }
 0x46b   : > { %v15715_v56 = vadd.f32 %v15714_v36, %v15713_v48 }
 0x46d   : > { %v3992_v50 = vmax.f32 %v3807_v13, %v15715_v56  ;;  %v15716_v0 = vpop.f32.mrb[36].mxu1 }
 0x46e   : > { %v15717_v49 = vpop.f32.mrb[37].mxu1 }
 0x46f   : > { %v15718_v40 = vadd.f32 %v15717_v49, %v15716_v0 }
 0x471   : > { %v3993_v20 = vmax.f32 %v3808_v52, %v15718_v40  ;;  %v15719_v4 = vpop.f32.mrb[38].mxu1 }
 0x472   : > { %v15720_v43 = vpop.f32.mrb[39].mxu1 }
 0x473   : > { %v15721_v60 = vadd.f32 %v15720_v43, %v15719_v4 }
 0x475   : > { %v3994_v31 = vmax.f32 %v3809_v33, %v15721_v60  ;;  %v15722_v23 = vpop.f32.mrb[40].mxu1 }
 0x476   : > { %v15723_v28 = vpop.f32.mrb[41].mxu1 }
 0x477   : > { %v15724_v44 = vadd.f32 %v15723_v28, %v15722_v23 }
 0x479   : > { %v3995_v62 = vmax.f32 %v3810_v15, %v15724_v44  ;;  %v15725_v38 = vpop.f32.mrb[42].mxu1 }
 0x47a   : > { %v15726_v59 = vpop.f32.mrb[43].mxu1 }
 0x47b   : > { %v15727_v1 = vadd.f32 %v15726_v59, %v15725_v38 }
 0x47d   : > { %v3996_v57 = vmax.f32 %v3811_v6, %v15727_v1  ;;  %v15728_v42 = vpop.f32.mrb[44].mxu1 }
 0x47e   : > { %v15729_v39 = vpop.f32.mrb[45].mxu1 }
 0x47f   : > { %v15730_v14 = vadd.f32 %v15729_v39, %v15728_v42 }
 0x481   : > { %v3997_v13 = vmax.f32 %v3812_v37, %v15730_v14  ;;  %v15731_v46 = vpop.f32.mrb[46].mxu1  ;;  %v14415_v37 = vld [vmem:[%s24737_s3 + $0x20] sm:$0xff] }
 0x482   : > { %v15732_v17 = vpop.f32.mrb[47].mxu1 }
 0x483   : > { %v15733_v53 = vadd.f32 %v15732_v17, %v15731_v46 }
 0x485   : > { %v3998_v52 = vmax.f32 %v3813_v11, %v15733_v53  ;;  %v15766_v19 = vpop.f32.mrb[48].mxu1  ;;  %v14416_v11 = vld [vmem:[%s24737_s3 + $0x28] sm:$0xff] }
 0x486   : > { %v15767_v32 = vpop.f32.mrb[49].mxu1  ;;  %v21621_v0 = vpack.c.bf16 %v14416_v11, %v14415_v37  ;;  %v14426_v37 = vld [vmem:[%s24737_s3 + $0x38] sm:$0xff] }
 0x487   : > { %v15768_v54 = vadd.f32 %v15767_v32, %v15766_v19  ;;  %v4208_v19 = vld [vmem:[#allocation3] sm:$0xff] }
 0x489   : > { %v4160_v33 = vmax.f32 %v3991_v47, %v15768_v54  ;;  %v15769_v5 = vpop.f32.mrb[50].mxu1 }
 0x48a   : > { %v15770_v29 = vpop.f32.mrb[51].mxu1 }
 0x48b   : > { %4200 = vst.msk [vmem:[#allocation3 + $0x20] sm:$0xff] %vm4168_vm0, %v4160_v33  ;;  %v15771_v15 = vadd.f32 %v15770_v29, %v15769_v5  ;;  %v4254_v33 = vrot.slane %v4208_v19, 7  ;;  %v4214_v29 = vld [vmem:[#allocation3 + $0x30] sm:$0xff] }
 0x48c   : > { %v4260_v11 = vrot.slane %v4214_v29, 7  ;;  %v4216_v29 = vld [vmem:[#allocation3 + $0x40] sm:$0xff] }
 0x48d   : > { %v4161_v7 = vmax.f32 %v3992_v50, %v15771_v15  ;;  %v15772_v48 = vpop.f32.mrb[52].mxu1 }
 0x48e   : > { %v15773_v6 = vpop.f32.mrb[53].mxu1 }
 0x48f   : > { %4201 = vst.msk [vmem:[#allocation3 + $0x38] sm:$0xff] %vm4168_vm0, %v4161_v7  ;;  %v15774_v36 = vadd.f32 %v15773_v6, %v15772_v48 }
 0x491   : > { %v4162_v47 = vmax.f32 %v3993_v20, %v15774_v36  ;;  %v15775_v56 = vpop.f32.mrb[54].mxu1 }
 0x492   : > { %v15776_v49 = vpop.f32.mrb[55].mxu1  ;;  %v21623_v40 = vld [vmem:[#allocation3 + $0x20] sm:$0xff] }
 0x493   : > { %4202 = vst.msk [vmem:[#allocation3 + $0x50] sm:$0xff] %vm4168_vm0, %v4162_v47  ;;  %v15777_v50 = vadd.f32 %v15776_v49, %v15775_v56  ;;  %17109 = vmatmul.mubr.msk.f32.vlgmr.msra.gmra.mrb[64].mxu1 %vm4168_vm0, %v21623_v40  ;;  %v4258_v7 = vrot.slane %v21623_v40, 7  ;;  %v4217_v47 = vld [vmem:[#allocation3 + $0x48] sm:$0xff]  ;;  %v4220_v56 = vld [vmem:[#allocation3 + $0x60] sm:$0xff] }
 0x494   : > { %18583 = vmatpush3.bf16.msra.mxu1 %v21601_v45 }
 0x495   : > { %v4163_v4 = vmax.f32 %v3994_v31, %v15777_v50  ;;  %v15778_v43 = vpop.f32.mrb[56].mxu1  ;;  %18585 = vmatprep.subr.bf16.mxu1 %v21621_v0 }
 0x496   : > { %v15779_v60 = vpop.f32.mrb[57].mxu1  ;;  %v21630_v20 = vld [vmem:[#allocation3 + $0x38] sm:$0xff] }
 0x497   : > { %4203 = vst.msk [vmem:[#allocation3 + $0x68] sm:$0xff] %vm4168_vm0, %v4163_v4  ;;  %v15780_v23 = vadd.f32 %v15779_v60, %v15778_v43  ;;  %17111 = vmatprep.mubr.msk.f32.mxu1 %vm4168_vm0, %v21630_v20  ;;  %v4261_v36 = vrot.slane %v21630_v20, 7  ;;  %v4263_v4 = vrot.slane %v4217_v47, 7  ;;  %v4219_v47 = vld [vmem:[#allocation3 + $0x58] sm:$0xff] }
 0x499   : > { %v4164_v28 = vmax.f32 %v3995_v62, %v15780_v23  ;;  %v15781_v44 = vpop.f32.mrb[58].mxu1  ;;  %v21677_v60 = vsel %vm645_vm3, %v4260_v11, %v4261_v36  ;;  %v4266_v23 = vrot.slane %v4220_v56, 7  ;;  %v4539_v11 = vrot.slane %v21630_v20, 1  ;;  %v4222_v56 = vld [vmem:[#allocation3 + $0x70] sm:$0xff] }
 0x49a   : > { %v15782_v38 = vpop.f32.mrb[59].mxu1  ;;  %v21635_v59 = vld [vmem:[#allocation3 + $0x50] sm:$0xff]  ;;  %v4540_v36 = vrot.slane %v4216_v29, 1 }
 0x49b   : > { %4204 = vst.msk [vmem:[#allocation3 + $0x80] sm:$0xff] %vm4168_vm0, %v4164_v28  ;;  %v15783_v45 = vadd.f32 %v15782_v38, %v15781_v44  ;;  %17112 = vmatmul.mubr.msk.f32.gmra.mrb[66].mxu1 %vm4168_vm0, %v21635_v59  ;;  %v4264_v43 = vrot.slane %v21635_v59, 7  ;;  %v4223_v44 = vld [vmem:[#allocation3 + $0x78] sm:$0xff]  ;;  %v4226_v38 = vld [vmem:[#allocation3 + $0x90] sm:$0xff] }
 0x49d   : > { %v4165_v31 = vmax.f32 %v3996_v57, %v15783_v45  ;;  %v15784_v1 = vpop.f32.mrb[60].mxu1  ;;  %v4255_v57 = vrot.slane %v21591_v8, 7  ;;  %v21684_v45 = vsel %vm645_vm3, %v4263_v4, %v4264_v43 }
 0x49e   : > { %v15785_v42 = vpop.f32.mrb[61].mxu1  ;;  %v21640_v39 = vld [vmem:[#allocation3 + $0x68] sm:$0xff] }
 0x49f   : > { %4205 = vst.msk [vmem:[#allocation3 + $0x98] sm:$0xff] %vm4168_vm0, %v4165_v31  ;;  %v15786_v14 = vadd.f32 %v15785_v42, %v15784_v1  ;;  %17114 = vmatprep.mubr.msk.f32.mxu1 %vm4168_vm0, %v21640_v39  ;;  %v4256_v15 = vsel %vm645_vm3, %v4254_v33, %v4255_v57  ;;  %v4267_v28 = vrot.slane %v21640_v39, 7  ;;  %v4269_v31 = vrot.slane %v4223_v44, 7  ;;  %v4210_v42 = vld [vmem:[#allocation3 + $0x10] sm:$0xff] }
 0x4a0   : > { %v4534_v19 = vrot.slane %v4210_v42, 1  ;;  %v21726_v44 = vsel %vm1330_vm2, %v4539_v11, %v4540_v36  ;;  %v4228_v42 = vld [vmem:[#allocation3 + $0xa0] sm:$0xff] }
 0x4a1   : > { %v4166_v62 = vmax.f32 %v3997_v13, %v15786_v14  ;;  %v15787_v46 = vpop.f32.mrb[62].mxu1  ;;  %v4211_v13 = vld [vmem:[#allocation3 + $0x18] sm:$0xff]  ;;  %v21690_v14 = vsel %vm645_vm3, %v4266_v23, %v4267_v28  ;;  %v4542_v23 = vrot.slane %v21635_v59, 1  ;;  %v4543_v28 = vrot.slane %v4219_v47, 1  ;;  %v4232_v11 = vld [vmem:[#allocation3 + $0xc0] sm:$0xff] }
 0x4a2   : > { %v15788_v17 = vpop.f32.mrb[63].mxu1  ;;  %v21645_v53 = vld [vmem:[#allocation3 + $0x80] sm:$0xff]  ;;  %v4257_v6 = vrot.slane %v4211_v13, 7  ;;  %v4213_v13 = vld [vmem:[#allocation3 + $0x28] sm:$0xff]  ;;  %v4691_v47 = vrot.slane %v4232_v11, 7  ;;  %v5439_v11 = vshra.s32 %v21027_v55, 2 }
 0x4a3   : > { %4206 = vst.msk [vmem:[#allocation3 + $0xb0] sm:$0xff] %vm4168_vm0, %v4166_v62  ;;  %v15789_v32 = vadd.f32 %v15788_v17, %v15787_v46  ;;  %17115 = vmatmul.mubr.msk.f32.gmra.mrb[68].mxu1 %vm4168_vm0, %v21645_v53  ;;  %v4270_v1 = vrot.slane %v21645_v53, 7  ;;  %v4272_v62 = vrot.slane %v4226_v38, 7  ;;  %v4229_v17 = vld [vmem:[#allocation3 + $0xa8] sm:$0xff]  ;;  %v4545_v38 = vrot.slane %v21640_v39, 1 }
 0x4a4   : > { %v21671_v50 = vsel %vm645_vm3, %v4257_v6, %v4258_v7  ;;  %v4275_v57 = vrot.slane %v4229_v17, 7  ;;  %v4537_v6 = vrot.slane %v4213_v13, 1 }
 0x4a5   : > { %v4167_v54 = vmax.f32 %v3998_v52, %v15789_v32  ;;  %v14425_v52 = vld [vmem:[%s24737_s3 + $0x30] sm:$0xff]  ;;  %v21697_v32 = vsel %vm645_vm3, %v4269_v31, %v4270_v1  ;;  %v4546_v31 = vrot.slane %v4222_v56, 1  ;;  %v4225_v1 = vld [vmem:[#allocation3 + $0x88] sm:$0xff] }
 0x4a6   : > { %v21651_v5 = vld [vmem:[#allocation3 + $0x98] sm:$0xff]  ;;  %v18588_v49 = vpack.c.bf16 %v14426_v37, %v14425_v52  ;;  %v14435_v52 = vld [vmem:[%s24737_s3 + $0x40] sm:$0xff]  ;;  %v14436_v37 = vld [vmem:[%s24737_s3 + $0x48] sm:$0xff]  ;;  %v4549_v17 = vrot.slane %v4225_v1, 1 }
 0x4a7   : > { %4207 = vst.msk [vmem:[#allocation3 + $0xc8] sm:$0xff] %vm4168_vm0, %v4167_v54  ;;  %17117 = vmatprep.mubr.msk.f32.mxu1 %vm4168_vm0, %v21651_v5  ;;  %v4273_v46 = vrot.slane %v21651_v5, 7  ;;  %v18592_v4 = vpack.c.bf16 %v14436_v37, %v14435_v52  ;;  %v14446_v52 = vld [vmem:[%s24737_s3 + $0x58] sm:$0xff]  ;;  %v4234_v1 = vld [vmem:[#allocation3 + $0xd0] sm:$0xff] }
 0x4a9   : > { %v21703_v33 = vsel %vm645_vm3, %v4272_v62, %v4273_v46  ;;  %v21732_v62 = vsel %vm1330_vm2, %v4542_v23, %v4543_v28  ;;  %v4548_v46 = vrot.slane %v21645_v53, 1  ;;  %v14456_v23 = vld [vmem:[%s24737_s3 + $0x68] sm:$0xff] }
 0x4aa   : > { %v21658_v48 = vld [vmem:[#allocation3 + $0xb0] sm:$0xff] }
 0x4ab   : > { %17118 = vmatmul.mubr.msk.f32.gmra.mrb[70].mxu1 %vm4168_vm0, %v21658_v48  ;;  %v4276_v54 = vrot.slane %v21658_v48, 7  ;;  %v4554_v13 = vrot.slane %v21658_v48, 1 }
 0x4ac   : > { %17124 = vmatprep.mubr.msk.f32.mxu1 %vm4168_vm0, %v4256_v15  ;;  %v4536_v15 = vrot.slane %v21623_v40, 1 }
 0x4ad   : > { %v21710_v7 = vsel %vm645_vm3, %v4275_v57, %v4276_v54  ;;  %v4552_v57 = vrot.slane %v4228_v42, 1  ;;  %v4231_v54 = vld [vmem:[#allocation3 + $0xb8] sm:$0xff] }
 0x4ae   : > { %v4538_v43 = vsel %vm1330_vm2, %v4536_v15, %v4537_v6  ;;  %v4555_v29 = vrot.slane %v4231_v54, 1  ;;  %v14445_v6 = vld [vmem:[%s24737_s3 + $0x50] sm:$0xff]  ;;  %v21773_v36 = vld [vmem:[#allocation3 + $0xc8] sm:$0xff]  ;;  %v4235_v54 = vld [vmem:[#allocation3 + $0xd8] sm:$0xff] }
 0x4af   : > { %17125 = vmatmul.mubr.msk.f32.vlgmr.msra.gmra.mrb[64].mxu1 %vm4168_vm0, %v21671_v50  ;;  %v18596_v37 = vpack.c.bf16 %v14446_v52, %v14445_v6  ;;  %v4931_v42 = vrot.slane %v21773_v36, 1 }
 0x4b0   : > { %17127 = vmatprep.mubr.msk.f32.mxu1 %vm4168_vm0, %v21677_v60  ;;  %18587 = vmatpush3.bf16.msra.mxu1 %v21621_v0  ;;  %v4533_v0 = vrot.slane %v21591_v8, 1  ;;  %v21755_v15 = vsel %vm1330_vm2, %v4554_v13, %v4555_v29  ;;  %v4236_v13 = vld [vmem:[#allocation3 + $0xe0] sm:$0xff]  ;;  %v5054_v29 = vrot.slane %v4235_v54, 7 }
 0x4b1   : > { %18589 = vmatprep.subr.bf16.mxu1 %v18588_v49  ;;  %v5055_v6 = vrot.slane %v4236_v13, 7 }
 0x4b2   : > { %v4535_v8 = vsel %vm1330_vm2, %v4533_v0, %v4534_v19  ;;  %v21738_v0 = vsel %vm1330_vm2, %v4545_v38, %v4546_v31  ;;  %v4551_v19 = vrot.slane %v21651_v5, 1  ;;  %v14466_v38 = vld [vmem:[%s24737_s3 + $0x78] sm:$0xff] }
 0x4b3   : > { %17128 = vmatmul.mubr.msk.f32.gmra.mrb[66].mxu1 %vm4168_vm0, %v21684_v45 }
 0x4b4   : > { %17130 = vmatprep.mubr.msk.f32.mxu1 %vm4168_vm0, %v21690_v14 }
 0x4b7   : > { %17131 = vmatmul.mubr.msk.f32.gmra.mrb[68].mxu1 %vm4168_vm0, %v21697_v32 }
 0x4b8   : > { %17133 = vmatprep.mubr.msk.f32.mxu1 %vm4168_vm0, %v21703_v33 }
 0x4bb   : > { %17134 = vmatmul.mubr.msk.f32.gmra.mrb[70].mxu1 %vm4168_vm0, %v21710_v7 }
 0x4bc   : > { %17140 = vmatprep.mubr.msk.f32.mxu1 %vm4168_vm0, %v4535_v8  ;;  %v21750_v8 = vsel %vm1330_vm2, %v4551_v19, %v4552_v57  ;;  %v14476_v19 = vld [vmem:[%s24737_s3 + $0x88] sm:$0xff] }
 0x4bf   : > { %17141 = vmatmul.mubr.msk.f32.vlgmr.msra.gmra.mrb[64].mxu1 %vm4168_vm0, %v4538_v43 }
 0x4c0   : > { %17143 = vmatprep.mubr.msk.f32.mxu1 %vm4168_vm0, %v21726_v44  ;;  %18591 = vmatpush3.bf16.msra.mxu1 %v18588_v49  ;;  %v21744_v49 = vsel %vm1330_vm2, %v4548_v46, %v4549_v17  ;;  %v4932_v46 = vrot.slane %v4234_v1, 1  ;;  %v14475_v17 = vld [vmem:[%s24737_s3 + $0x80] sm:$0xff] }
 0x4c1   : > { %18593 = vmatprep.subr.bf16.mxu1 %v18592_v4  ;;  %v18608_v57 = vpack.c.bf16 %v14476_v19, %v14475_v17 }
 0x4c3   : > { %17144 = vmatmul.mubr.msk.f32.gmra.mrb[66].mxu1 %vm4168_vm0, %v21732_v62 }
 0x4c4   : > { %17146 = vmatprep.mubr.msk.f32.mxu1 %vm4168_vm0, %v21738_v0 }
 0x4c7   : > { %17147 = vmatmul.mubr.msk.f32.gmra.mrb[68].mxu1 %vm4168_vm0, %v21744_v49 }
 0x4c8   : > { %17149 = vmatprep.mubr.msk.f32.mxu1 %vm4168_vm0, %v21750_v8 }
 0x4cb   : > { %17150 = vmatmul.mubr.msk.f32.gmra.mrb[70].mxu1 %vm4168_vm0, %v21755_v15 }
 0x4cc   : > { %17156 = vmatprep.mubr.msk.f32.mxu1 %vm4168_vm0, %v21671_v50  ;;  %v4692_v50 = vrot.slane %v21773_v36, 7 }
 0x4ce   : > { %v4693_v56 = vsel %vm645_vm3, %v4691_v47, %v4692_v50 }
 0x4cf   : > { %17157 = vmatmul.mubr.msk.f32.vlgmr.msra.gmra.mrb[64].mxu1 %vm4168_vm0, %v21677_v60 }
 0x4d0   : > { %17159 = vmatprep.mubr.msk.f32.mxu1 %vm4168_vm0, %v21684_v45  ;;  %18595 = vmatpush3.bf16.msra.mxu1 %v18592_v4  ;;  %v14455_v4 = vld [vmem:[%s24737_s3 + $0x60] sm:$0xff] }
 0x4d1   : > { %18597 = vmatprep.subr.bf16.mxu1 %v18596_v37  ;;  %v18600_v28 = vpack.c.bf16 %v14456_v23, %v14455_v4 }
 0x4d3   : > { %17160 = vmatmul.mubr.msk.f32.gmra.mrb[66].mxu1 %vm4168_vm0, %v21690_v14 }
 0x4d4   : > { %17162 = vmatprep.mubr.msk.f32.mxu1 %vm4168_vm0, %v21697_v32 }
 0x4d7   : > { %17163 = vmatmul.mubr.msk.f32.gmra.mrb[68].mxu1 %vm4168_vm0, %v21703_v33 }
 0x4d8   : > { %17165 = vmatprep.mubr.msk.f32.mxu1 %vm4168_vm0, %v21710_v7 }
 0x4db   : > { %17166 = vmatmul.mubr.msk.f32.gmra.mrb[70].mxu1 %vm4168_vm0, %v4693_v56 }
 0x4dc   : > { %17172 = vmatprep.mubr.msk.f32.mxu1 %vm4168_vm0, %v21623_v40  ;;  %v14465_v40 = vld [vmem:[%s24737_s3 + $0x70] sm:$0xff] }
 0x4dd   : > { %v18604_v31 = vpack.c.bf16 %v14466_v38, %v14465_v40  ;;  %v5441_v40 = vand.u32 3, %v21027_v55  ;;  %v5443_v38 = vmul.u32 2, %v5439_v11 }
 0x4df   : > { %17173 = vmatmul.mubr.msk.f32.vlgmr.msra.gmra.mrb[64].mxu1 %vm4168_vm0, %v21630_v20  ;;  %v5447_v54 = vmul.u32 2, %v5441_v40 }
 0x4e0   : > { %17175 = vmatprep.mubr.msk.f32.mxu1 %vm4168_vm0, %v21635_v59  ;;  %18599 = vmatpush3.bf16.msra.mxu1 %v18596_v37 }
 0x4e1   : > { %18601 = vmatprep.subr.bf16.mxu1 %v18600_v28 }
 0x4e3   : > { %17176 = vmatmul.mubr.msk.f32.gmra.mrb[66].mxu1 %vm4168_vm0, %v21640_v39 }
 0x4e4   : > { %17178 = vmatprep.mubr.msk.f32.mxu1 %vm4168_vm0, %v21645_v53 }
 0x4e7   : > { %17179 = vmatmul.mubr.msk.f32.gmra.mrb[68].mxu1 %vm4168_vm0, %v21651_v5 }
 0x4e8   : > { %17181 = vmatprep.mubr.msk.f32.mxu1 %vm4168_vm0, %v21658_v48 }
 0x4eb   : > { %17182 = vmatmul.mubr.msk.f32.gmra.mrb[70].mxu1 %vm4168_vm0, %v21773_v36 }
 0x4ec   : > { %17188 = vmatprep.mubr.msk.f32.mxu1 %vm4168_vm0, %v4538_v43  ;;  %v4933_v43 = vsel %vm1330_vm2, %v4931_v42, %v4932_v46 }
 0x4ef   : > { %17189 = vmatmul.mubr.msk.f32.vlgmr.msra.gmra.mrb[64].mxu1 %vm4168_vm0, %v21726_v44 }
 0x4f0   : > { %17191 = vmatprep.mubr.msk.f32.mxu1 %vm4168_vm0, %v21732_v62  ;;  %18603 = vmatpush3.bf16.msra.mxu1 %v18600_v28 }
 0x4f1   : > { %18605 = vmatprep.subr.bf16.mxu1 %v18604_v31 }
 0x4f3   : > { %17192 = vmatmul.mubr.msk.f32.gmra.mrb[66].mxu1 %vm4168_vm0, %v21738_v0 }
 0x4f4   : > { %17194 = vmatprep.mubr.msk.f32.mxu1 %vm4168_vm0, %v21744_v49 }
 0x4f7   : > { %17195 = vmatmul.mubr.msk.f32.gmra.mrb[68].mxu1 %vm4168_vm0, %v21750_v8 }
 0x4f8   : > { %17197 = vmatprep.mubr.msk.f32.mxu1 %vm4168_vm0, %v21755_v15 }
 0x4fb   : > { %17198 = vmatmul.mubr.msk.f32.gmra.mrb[70].mxu1 %vm4168_vm0, %v4933_v43 }
 0x4fc   : > { %17204 = vmatprep.mubr.msk.f32.mxu1 %vm4168_vm0, %v21677_v60  ;;  %v5056_v60 = vsel %vm645_vm3, %v5054_v29, %v5055_v6 }
 0x4ff   : > { %17205 = vmatmul.mubr.msk.f32.vlgmr.msra.gmra.mrb[64].mxu1 %vm4168_vm0, %v21684_v45 }
 0x500   : > { %17207 = vmatprep.mubr.msk.f32.mxu1 %vm4168_vm0, %v21690_v14  ;;  %18607 = vmatpush3.bf16.msra.mxu1 %v18604_v31 }
 0x501   : > { %18609 = vmatprep.subr.bf16.mxu1 %v18608_v57 }
 0x503   : > { %17208 = vmatmul.mubr.msk.f32.gmra.mrb[66].mxu1 %vm4168_vm0, %v21697_v32 }
 0x504   : > { %17210 = vmatprep.mubr.msk.f32.mxu1 %vm4168_vm0, %v21703_v33 }
 0x507   : > { %17211 = vmatmul.mubr.msk.f32.gmra.mrb[68].mxu1 %vm4168_vm0, %v21710_v7 }
 0x508   : > { %17213 = vmatprep.mubr.msk.f32.mxu1 %vm4168_vm0, %v4693_v56 }
 0x50b   : > { %17214 = vmatmul.mubr.msk.f32.gmra.mrb[70].mxu1 %vm4168_vm0, %v5056_v60 }
 0x50c   : > { %17220 = vmatprep.mubr.msk.f32.mxu1 %vm4168_vm0, %v21630_v20  ;;  %v4237_v20 = vld [vmem:[#allocation3 + $0xe8] sm:$0xff] }
 0x50f   : > { %17221 = vmatmul.mubr.msk.f32.vlgmr.msra.gmra.mrb[64].mxu1 %vm4168_vm0, %v21635_v59  ;;  %v5294_v59 = vrot.slane %v4236_v13, 1 }
 0x510   : > { %17223 = vmatprep.mubr.msk.f32.mxu1 %vm4168_vm0, %v21640_v39  ;;  %18611 = vmatpush3.bf16.msra.mxu1 %v18608_v57  ;;  %v5295_v39 = vrot.slane %v4237_v20, 1  ;;  %v5445_v57 = vmul.u32 8, %v5443_v38 }
 0x513   : > { %17224 = vmatmul.mubr.msk.f32.gmra.mrb[66].mxu1 %vm4168_vm0, %v21645_v53  ;;  %v5296_v53 = vsel %vm1330_vm2, %v5294_v59, %v5295_v39 }
 0x514   : > { %17226 = vmatprep.mubr.msk.f32.mxu1 %vm4168_vm0, %v21651_v5  ;;  %v5438_v5 = vshra.s32 %v20948_v10, 2 }
 0x516   : > { %v5442_v45 = vmul.u32 2, %v5438_v5 }
 0x517   : > { %17227 = vmatmul.mubr.msk.f32.gmra.mrb[68].mxu1 %vm4168_vm0, %v21658_v48  ;;  %v5440_v48 = vand.u32 3, %v20948_v10 }
 0x518   : > { %17229 = vmatprep.mubr.msk.f32.mxu1 %vm4168_vm0, %v21773_v36  ;;  %v5444_v14 = vmul.u32 8, %v5442_v45 }
 0x519   : > { %v5446_v32 = vmul.u32 2, %v5440_v48 }
 0x51b   : > { %17230 = vmatmul.mubr.msk.f32.gmra.mrb[70].mxu1 %vm4168_vm0, %v4236_v13  ;;  %v5448_v33 = vadd.s32 %v5446_v32, %v5444_v14 }
 0x51c   : > { %17236 = vmatprep.mubr.msk.f32.mxu1 %vm4168_vm0, %v21726_v44  ;;  %v5629_v44 = vadd.s32 1, %v5442_v45 }
 0x51d   : > { %vm5450_vm4 = vcmp.eq.s32.totalorder %v20954_v30, %v5448_v33  ;;  %v5538_v48 = vadd.s32 1, %v5448_v33 }
 0x51e   : > { %v14486_v7 = vsel %vm5450_vm4, 1.0, %v25071_v26 }
 0x51f   : > { %17237 = vmatmul.mubr.msk.f32.vlgmr.msra.gmra.mrb[64].mxu1 %vm4168_vm0, %v21732_v62  ;;  %v5631_v62 = vmul.u32 8, %v5629_v44  ;;  %vm5540_vm7 = vcmp.eq.s32.totalorder %v20954_v30, %v5538_v48 }
 0x520   : > { %17239 = vmatprep.mubr.msk.f32.mxu1 %vm4168_vm0, %v21738_v0 }
 0x521   : > { %v21884_v0 = vadd.s32 %v5631_v62, %v5446_v32 }
 0x523   : > { %17240 = vmatmul.mubr.msk.f32.gmra.mrb[66].mxu1 %vm4168_vm0, %v21744_v49  ;;  %v14485_v49 = vld [vmem:[%s24738_s4] ss:$0 sm:$0xff]  ;;  %vm5635_vm9 = vcmp.eq.s32.totalorder %v20954_v30, %v21884_v0 }
 0x524   : > { %17242 = vmatprep.mubr.msk.f32.mxu1 %vm4168_vm0, %v21750_v8  ;;  %v14494_v62 = vsel %vm5635_vm9, 1.0, %v25071_v26 }
 0x527   : > { %17243 = vmatmul.mubr.msk.f32.gmra.mrb[68].mxu1 %vm4168_vm0, %v21755_v15 }
 0x528   : > { %17245 = vmatprep.mubr.msk.f32.mxu1 %vm4168_vm0, %v4933_v43 }
 0x52b   : > { %17246 = vmatmul.mubr.msk.f32.gmra.mrb[70].mxu1 %vm4168_vm0, %v5296_v53  ;;  %v5449_v53 = vadd.s32 %v5447_v54, %v5445_v57 }
 0x52c   : > { %17264 = vmatprep.mubr.msk.f32.mxu1 %vm5456_vm5, %v14486_v7  ;;  %v14490_v7 = vsel %vm5540_vm7, 1.0, %v25071_v26 }
 0x52d   : > { %vm5451_vm6 = vcmp.eq.s32.totalorder %v20954_v30, %v5449_v53  ;;  %v5539_v33 = vadd.s32 1, %v5449_v53 }
 0x52e   : > { %v14487_v32 = vsel %vm5451_vm6, 1.0, %v25071_v26 }
 0x52f   : > { %vm5541_vm8 = vcmp.eq.s32.totalorder %v20954_v30, %v5539_v33 }
 0x530   : > { %v14491_v44 = vsel %vm5541_vm8, 1.0, %v25071_v26 }
 0x5f2   : > { %v17238_v8 = vpop.f32.mrb[64].mxu1 }
 0x5f3   : > { %v5423_v15 = vadd.f32 %v17238_v8, %v14485_v49  ;;  %v5368_v52 = vpop.f32.mrb[65].mxu1 }
 0x5f4   : > { %v5422_v37 = vadd.f32 %v14485_v49, %v5368_v52  ;;  %v5724_v52 = vadd.s32 1, %v21884_v0 }
 0x5f5   : > { %v5431_v36 = vmax.f32 %v5423_v15, 0.0 }
 0x5f6   : > { %v5430_v47 = vmax.f32 %v5422_v37, 0.0  ;;  %v17241_v50 = vpop.f32.mrb[66].mxu1  ;;  %vm5726_vm11 = vcmp.eq.s32.totalorder %v20954_v30, %v5724_v52 }
 0x5f7   : > { %v5425_v56 = vadd.f32 %v17241_v50, %v14485_v49  ;;  %v5378_v4 = vpop.f32.mrb[67].mxu1  ;;  %v14498_v11 = vsel %vm5726_vm11, 1.0, %v25071_v26 }
 0x5f8   : > { %v21890_v23 = vpack.c.bf16 %v5431_v36, %v5430_v47  ;;  %v5424_v28 = vadd.f32 %v14485_v49, %v5378_v4  ;;  %v5815_v47 = vshra.s32 %v3444_v25, 1 }
 0x5f9   : > { %v5433_v31 = vmax.f32 %v5425_v56, 0.0  ;;  %v5831_v56 = vshra.s32 %v3452_v35, 1  ;;  %v5816_v35 = vshra.s32 %v3445_v2, 1 }
 0x5fa   : > { %v5432_v1 = vmax.f32 %v5424_v28, 0.0  ;;  %v17244_v42 = vpop.f32.mrb[68].mxu1  ;;  %18613 = vmatprep.subr.bf16.mxu1 %v21890_v23  ;;  %v5823_v50 = vmul.u32 4, %v5815_v47 }
 0x5fb   : > { %v5427_v46 = vadd.f32 %v17244_v42, %v14485_v49  ;;  %v5388_v43 = vpop.f32.mrb[69].mxu1  ;;  %18615 = vmatpush3.bf16.msra.mxu1 %v21890_v23  ;;  %v5824_v57 = vmul.u32 4, %v5816_v35  ;;  %v14535_v35 = vld [vmem:[%s24739_s5 + $0x10] sm:$0xff] }
 0x5fc   : > { %v21895_v17 = vpack.c.bf16 %v5433_v31, %v5432_v1  ;;  %v5426_v19 = vadd.f32 %v14485_v49, %v5388_v43  ;;  %v5839_v4 = vadd.s32 %v5831_v56, %v5823_v50 }
 0x5fd   : > { %v5435_v13 = vmax.f32 %v5427_v46, 0.0 }
 0x5fe   : > { %v5434_v29 = vmax.f32 %v5426_v19, 0.0  ;;  %v17247_v6 = vpop.f32.mrb[70].mxu1  ;;  %18617 = vmatprep.subr.bf16.mxu1 %v21895_v17  ;;  %vm5847_vm13 = vcmp.eq.s32.totalorder %v20954_v30, %v5839_v4  ;;  %v5817_v19 = vshra.s32 %v3446_v16, 1  ;;  %v5834_v16 = vshra.s32 %v3455_v27, 1 }
 0x5ff   : > { %v5429_v60 = vadd.f32 %v17247_v6, %v14485_v49  ;;  %v5398_v20 = vpop.f32.mrb[71].mxu1  ;;  %18619 = vmatpush3.bf16.msra.mxu1 %v21895_v17  ;;  %v5818_v6 = vshra.s32 %v3447_v22, 1  ;;  %v5821_v22 = vshra.s32 %v3450_v24, 1  ;;  %v14518_v24 = vld [vmem:[%s24739_s5 + $0x8] sm:$0xff] }
 0x600   : > { %v18620_v59 = vpack.c.bf16 %v5435_v13, %v5434_v29  ;;  %v5428_v39 = vadd.f32 %v14485_v49, %v5398_v20  ;;  %v5630_v49 = vadd.s32 1, %v5443_v38  ;;  %v5825_v13 = vmul.u32 4, %v5817_v19 }
 0x601   : > { %v5437_v5 = vmax.f32 %v5429_v60, 0.0  ;;  %v5833_v29 = vshra.s32 %v3454_v34, 1  ;;  %v5819_v60 = vshra.s32 %v3448_v51, 1  ;;  %v5826_v2 = vmul.u32 4, %v5818_v6 }
 0x602   : > { %v5436_v45 = vmax.f32 %v5428_v39, 0.0  ;;  %18621 = vmatprep.subr.bf16.mxu1 %v18620_v59  ;;  %v5632_v8 = vmul.u32 8, %v5630_v49  ;;  %v5835_v34 = vshra.s32 %v3456_v61, 1  ;;  %v25074_v61 = vand.u32 7, %v21113_v63 }
 0x603   : > { %18623 = vmatpush3.bf16.msra.mxu1 %v18620_v59  ;;  %v5827_v48 = vmul.u32 4, %v5819_v60 }
 0x604   : > { %v18624_v14 = vpack.c.bf16 %v5437_v5, %v5436_v45  ;;  %v5634_v15 = vadd.s32 %v5632_v8, %v5447_v54  ;;  %v5832_v54 = vshra.s32 %v3453_v41, 1  ;;  %v5820_v41 = vshra.s32 %v3449_v9, 1 }
 0x605   : > { %v5842_v45 = vadd.s32 %v5834_v16, %v5826_v2  ;;  %v5837_v49 = vshra.s32 %v25074_v61, 1 }
 0x606   : > { %18625 = vmatprep.subr.bf16.mxu1 %v18624_v14  ;;  %vm5636_vm10 = vcmp.eq.s32.totalorder %v20954_v30, %v5634_v15  ;;  %v5725_v0 = vadd.s32 1, %v5634_v15  ;;  %v5840_v20 = vadd.s32 %v5832_v54, %v5824_v57 }
 0x607   : > { %18627 = vmatpush3.bf16.msra.mxu1 %v18624_v14  ;;  %v14495_v37 = vsel %vm5636_vm10, 1.0, %v25071_v26  ;;  %vm5850_vm4 = vcmp.eq.s32.totalorder %v20954_v30, %v5842_v45  ;;  %vm6000_vm10 = vcmask 64512  }
 0x608   : > { %18629 = vmatprep.subr.bf16.mxu1 %v21890_v23  ;;  %vm5727_vm12 = vcmp.eq.s32.totalorder %v20954_v30, %v5725_v0  ;;  %vm5848_vm14 = vcmp.eq.s32.totalorder %v20954_v30, %v5840_v20  ;;  %v14505_v47 = vsel %vm5850_vm4, 1.0, %v25071_v26  ;;  %6008 = vst.msk [vmem:[#allocation4 + $0x38] sm:$0xff] %vm6000_vm10, %v25071_v26  ;;  %6001 = vst.msk [vmem:[#allocation4] sm:$0xff] %vm6000_vm10, %v25071_v26 }
 0x609   : > { %v14499_v36 = vsel %vm5727_vm12, 1.0, %v25071_v26  ;;  %v14503_v8 = vsel %vm5848_vm14, 1.0, %v25071_v26  ;;  %6002 = vst.msk [vmem:[#allocation4 + $0x8] sm:$0xff] %vm6000_vm10, %v25071_v26  ;;  %6003 = vst.msk [vmem:[#allocation4 + $0x10] sm:$0xff] %vm6000_vm10, %v25071_v26 }
 0x60a   : > { %17265 = vmatmul.mubr.msk.f32.vlgmr.msra.gmra.mrb[72].mxu1 %vm5456_vm5, %v14487_v32  ;;  %v25072_v32 = vand.u32 7, %v21096_v58  ;;  %6004 = vst.msk [vmem:[#allocation4 + $0x18] sm:$0xff] %vm6000_vm10, %v25071_v26  ;;  %6005 = vst.msk [vmem:[#allocation4 + $0x20] sm:$0xff] %vm6000_vm10, %v25071_v26 }
 0x60b   : > { %18631 = vmatpush3.bf16.msra.mxu1 %v21890_v23  ;;  %17283 = vmatprep.mubr.msk.f32.mxu1 %vm5456_vm5, %v14490_v7  ;;  %v25073_v7 = vshra.s32 %v21145_v3, 3  ;;  %6006 = vst.msk [vmem:[#allocation4 + $0x28] sm:$0xff] %vm6000_vm10, %v25071_v26  ;;  %6007 = vst.msk [vmem:[#allocation4 + $0x30] sm:$0xff] %vm6000_vm10, %v25071_v26 }
 0x60c   : > { %18633 = vmatprep.subr.bf16.mxu1 %v21895_v17  ;;  %v5836_v9 = vshra.s32 %v25072_v32, 1  ;;  %6009 = vst.msk [vmem:[#allocation4 + $0x40] sm:$0xff] %vm6000_vm10, %v25071_v26  ;;  %6010 = vst.msk [vmem:[#allocation4 + $0x48] sm:$0xff] %vm6000_vm10, %v25071_v26 }
 0x60d   : > { %v5822_v33 = vshra.s32 %v25073_v7, 1  ;;  %6011 = vst.msk [vmem:[#allocation4 + $0x50] sm:$0xff] %vm6000_vm10, %v25071_v26  ;;  %6012 = vst.msk [vmem:[#allocation4 + $0x58] sm:$0xff] %vm6000_vm10, %v25071_v26 }
 0x60e   : > { %6013 = vst.msk [vmem:[#allocation4 + $0x60] sm:$0xff] %vm6000_vm10, %v25071_v26  ;;  %6014 = vst.msk [vmem:[#allocation4 + $0x68] sm:$0xff] %vm6000_vm10, %v25071_v26 }
 0x60f   : > { %18635 = vmatpush3.bf16.msra.mxu1 %v21895_v17  ;;  %6015 = vst.msk [vmem:[#allocation4 + $0x70] sm:$0xff] %vm6000_vm10, %v25071_v26  ;;  %6016 = vst.msk [vmem:[#allocation4 + $0x78] sm:$0xff] %vm6000_vm10, %v25071_v26 }
 0x610   : > { %18637 = vmatprep.subr.bf16.mxu1 %v18620_v59  ;;  %6017 = vst.msk [vmem:[#allocation4 + $0x80] sm:$0xff] %vm6000_vm10, %v25071_v26  ;;  %6018 = vst.msk [vmem:[#allocation4 + $0x88] sm:$0xff] %vm6000_vm10, %v25071_v26 }
 0x611   : > { %6019 = vst.msk [vmem:[#allocation4 + $0x90] sm:$0xff] %vm6000_vm10, %v25071_v26  ;;  %6020 = vst.msk [vmem:[#allocation4 + $0x98] sm:$0xff] %vm6000_vm10, %v25071_v26  ;;  %v6043_v16 = vld [vmem:[#allocation4 + $0x18] sm:$0xff] }
 0x612   : > { %6021 = vst.msk [vmem:[#allocation4 + $0xa0] sm:$0xff] %vm6000_vm10, %v25071_v26  ;;  %6022 = vst.msk [vmem:[#allocation4 + $0xa8] sm:$0xff] %vm6000_vm10, %v25071_v26 }
 0x613   : > { %18639 = vmatpush3.bf16.msra.mxu1 %v18620_v59  ;;  %6023 = vst.msk [vmem:[#allocation4 + $0xb0] sm:$0xff] %vm6000_vm10, %v25071_v26  ;;  %6024 = vst.msk [vmem:[#allocation4 + $0xb8] sm:$0xff] %vm6000_vm10, %v25071_v26 }
 0x614   : > { %18641 = vmatprep.subr.bf16.mxu1 %v18624_v14  ;;  %6025 = vst.msk [vmem:[#allocation4 + $0xc0] sm:$0xff] %vm6000_vm10, %v25071_v26  ;;  %6026 = vst.msk [vmem:[#allocation4 + $0xc8] sm:$0xff] %vm6000_vm10, %v25071_v26 }
 0x615   : > { %6027 = vst.msk [vmem:[#allocation4 + $0xd0] sm:$0xff] %vm6000_vm10, %v25071_v26  ;;  %6028 = vst.msk [vmem:[#allocation4 + $0xd8] sm:$0xff] %vm6000_vm10, %v25071_v26  ;;  %v6052_v45 = vld [vmem:[#allocation4 + $0x60] sm:$0xff] }
 0x616   : > { %6029 = vst.msk [vmem:[#allocation4 + $0xe0] sm:$0xff] %vm6000_vm10, %v25071_v26  ;;  %6030 = vst.msk [vmem:[#allocation4 + $0xe8] sm:$0xff] %vm6000_vm10, %v25071_v26 }
 0x617   : > { %18643 = vmatpush3.bf16.msra.mxu1 %v18624_v14  ;;  %7894 = vst.msk [vmem:[#allocation5] sm:$0xff] %vm6000_vm10, %v25071_v26  ;;  %7895 = vst.msk [vmem:[#allocation5 + $0x8] sm:$0xff] %vm6000_vm10, %v25071_v26 }
 0x618   : > { %18645 = vmatprep.subr.bf16.mxu1 %v21890_v23  ;;  %7896 = vst.msk [vmem:[#allocation5 + $0x10] sm:$0xff] %vm6000_vm10, %v25071_v26  ;;  %7897 = vst.msk [vmem:[#allocation5 + $0x18] sm:$0xff] %vm6000_vm10, %v25071_v26  ;;  %v6058_v61 = vld [vmem:[#allocation4 + $0x90] sm:$0xff] }
 0x619   : > { %7898 = vst.msk [vmem:[#allocation5 + $0x20] sm:$0xff] %vm6000_vm10, %v25071_v26  ;;  %7899 = vst.msk [vmem:[#allocation5 + $0x28] sm:$0xff] %vm6000_vm10, %v25071_v26 }
 0x61a   : > { %17284 = vmatmul.mubr.msk.f32.vlgmr.msra.gmra.mrb[74].mxu1 %vm5456_vm5, %v14491_v44  ;;  %v5843_v44 = vadd.s32 %v5835_v34, %v5827_v48  ;;  %7900 = vst.msk [vmem:[#allocation5 + $0x30] sm:$0xff] %vm6000_vm10, %v25071_v26  ;;  %7901 = vst.msk [vmem:[#allocation5 + $0x38] sm:$0xff] %vm6000_vm10, %v25071_v26  ;;  %v6089_v48 = vrot.slane %v6043_v16, 7 }
 0x61b   : > { %18647 = vmatpush3.bf16.msra.mxu1 %v21890_v23  ;;  %17302 = vmatprep.mubr.msk.f32.mxu1 %vm5456_vm5, %v14494_v62  ;;  %v5829_v62 = vmul.u32 4, %v5821_v22  ;;  %7902 = vst.msk [vmem:[#allocation5 + $0x40] sm:$0xff] %vm6000_vm10, %v25071_v26  ;;  %7903 = vst.msk [vmem:[#allocation5 + $0x48] sm:$0xff] %vm6000_vm10, %v25071_v26 }
 0x61c   : > { %18649 = vmatprep.subr.bf16.mxu1 %v21895_v17  ;;  %vm5851_vm6 = vcmp.eq.s32.totalorder %v20954_v30, %v5843_v44  ;;  %7904 = vst.msk [vmem:[#allocation5 + $0x50] sm:$0xff] %vm6000_vm10, %v25071_v26  ;;  %7905 = vst.msk [vmem:[#allocation5 + $0x58] sm:$0xff] %vm6000_vm10, %v25071_v26 }
 0x61d   : > { %v14506_v50 = vsel %vm5851_vm6, 1.0, %v25071_v26  ;;  %7906 = vst.msk [vmem:[#allocation5 + $0x60] sm:$0xff] %vm6000_vm10, %v25071_v26  ;;  %7907 = vst.msk [vmem:[#allocation5 + $0x68] sm:$0xff] %vm6000_vm10, %v25071_v26 }
 0x61e   : > { %7908 = vst.msk [vmem:[#allocation5 + $0x70] sm:$0xff] %vm6000_vm10, %v25071_v26  ;;  %7909 = vst.msk [vmem:[#allocation5 + $0x78] sm:$0xff] %vm6000_vm10, %v25071_v26 }
 0x61f   : > { %18651 = vmatpush3.bf16.msra.mxu1 %v21895_v17  ;;  %7910 = vst.msk [vmem:[#allocation5 + $0x80] sm:$0xff] %vm6000_vm10, %v25071_v26  ;;  %7911 = vst.msk [vmem:[#allocation5 + $0x88] sm:$0xff] %vm6000_vm10, %v25071_v26 }
 0x620   : > { %18653 = vmatprep.subr.bf16.mxu1 %v18620_v59  ;;  %7912 = vst.msk [vmem:[#allocation5 + $0x90] sm:$0xff] %vm6000_vm10, %v25071_v26  ;;  %7913 = vst.msk [vmem:[#allocation5 + $0x98] sm:$0xff] %vm6000_vm10, %v25071_v26 }
 0x621   : > { %7914 = vst.msk [vmem:[#allocation5 + $0xa0] sm:$0xff] %vm6000_vm10, %v25071_v26  ;;  %7915 = vst.msk [vmem:[#allocation5 + $0xa8] sm:$0xff] %vm6000_vm10, %v25071_v26 }
 0x622   : > { %7916 = vst.msk [vmem:[#allocation5 + $0xb0] sm:$0xff] %vm6000_vm10, %v25071_v26  ;;  %7917 = vst.msk [vmem:[#allocation5 + $0xb8] sm:$0xff] %vm6000_vm10, %v25071_v26 }
 0x623   : > { %18655 = vmatpush3.bf16.msra.mxu1 %v18620_v59  ;;  %7918 = vst.msk [vmem:[#allocation5 + $0xc0] sm:$0xff] %vm6000_vm10, %v25071_v26  ;;  %7919 = vst.msk [vmem:[#allocation5 + $0xc8] sm:$0xff] %vm6000_vm10, %v25071_v26 }
 0x624   : > { %18657 = vmatprep.subr.bf16.mxu1 %v18624_v14  ;;  %7920 = vst.msk [vmem:[#allocation5 + $0xd0] sm:$0xff] %vm6000_vm10, %v25071_v26  ;;  %7921 = vst.msk [vmem:[#allocation5 + $0xd8] sm:$0xff] %vm6000_vm10, %v25071_v26 }
 0x625   : > { %7922 = vst.msk [vmem:[#allocation5 + $0xe0] sm:$0xff] %vm6000_vm10, %v25071_v26  ;;  %7923 = vst.msk [vmem:[#allocation5 + $0xe8] sm:$0xff] %vm6000_vm10, %v25071_v26 }
 0x626   : > { %7924 = vst.msk [vmem:[#allocation5 + $0xf0] sm:$0xff] %vm6000_vm10, %v25071_v26  ;;  %7925 = vst.msk [vmem:[#allocation5 + $0xf8] sm:$0xff] %vm6000_vm10, %v25071_v26 }
 0x627   : > { %18659 = vmatpush3.bf16.msra.mxu1 %v18624_v14  ;;  %7926 = vst.msk [vmem:[#allocation5 + $0x100] sm:$0xff] %vm6000_vm10, %v25071_v26  ;;  %7927 = vst.msk [vmem:[#allocation5 + $0x108] sm:$0xff] %vm6000_vm10, %v25071_v26 }
 0x628   : > { %18661 = vmatprep.subr.bf16.mxu1 %v21890_v23  ;;  %7928 = vst.msk [vmem:[#allocation5 + $0x110] sm:$0xff] %vm6000_vm10, %v25071_v26  ;;  %7929 = vst.msk [vmem:[#allocation5 + $0x118] sm:$0xff] %vm6000_vm10, %v25071_v26 }
 0x629   : > { %7930 = vst.msk [vmem:[#allocation5 + $0x120] sm:$0xff] %vm6000_vm10, %v25071_v26  ;;  %7931 = vst.msk [vmem:[#allocation5 + $0x128] sm:$0xff] %vm6000_vm10, %v25071_v26 }
 0x62a   : > { %17303 = vmatmul.mubr.msk.f32.vlgmr.msra.gmra.mrb[76].mxu1 %vm5456_vm5, %v14495_v37  ;;  %v5830_v37 = vmul.u32 4, %v5822_v33  ;;  %7932 = vst.msk [vmem:[#allocation5 + $0x130] sm:$0xff] %vm6000_vm10, %v25071_v26  ;;  %7933 = vst.msk [vmem:[#allocation5 + $0x138] sm:$0xff] %vm6000_vm10, %v25071_v26  ;;  %v6098_v33 = vrot.slane %v6052_v45, 7 }
 0x62b   : > { %18663 = vmatpush3.bf16.msra.mxu1 %v21890_v23  ;;  %17321 = vmatprep.mubr.msk.f32.mxu1 %vm5456_vm5, %v14498_v11  ;;  %v14502_v23 = vsel %vm5847_vm13, 1.0, %v25071_v26  ;;  %v25075_v11 = vand.u32 7, %v21145_v3  ;;  %7934 = vst.msk [vmem:[#allocation5 + $0x140] sm:$0xff] %vm6000_vm10, %v25071_v26  ;;  %7935 = vst.msk [vmem:[#allocation5 + $0x148] sm:$0xff] %vm6000_vm10, %v25071_v26 }
 0x62c   : > { %18665 = vmatprep.subr.bf16.mxu1 %v21895_v17  ;;  %7936 = vst.msk [vmem:[#allocation5 + $0x150] sm:$0xff] %vm6000_vm10, %v25071_v26  ;;  %7937 = vst.msk [vmem:[#allocation5 + $0x158] sm:$0xff] %vm6000_vm10, %v25071_v26 }
 0x62d   : > { %v5838_v0 = vshra.s32 %v25075_v11, 1  ;;  %7938 = vst.msk [vmem:[#allocation5 + $0x160] sm:$0xff] %vm6000_vm10, %v25071_v26  ;;  %7939 = vst.msk [vmem:[#allocation5 + $0x168] sm:$0xff] %vm6000_vm10, %v25071_v26 }
 0x62e   : > { %7940 = vst.msk [vmem:[#allocation5 + $0x170] sm:$0xff] %vm6000_vm10, %v25071_v26  ;;  %7941 = vst.msk [vmem:[#allocation5 + $0x178] sm:$0xff] %vm6000_vm10, %v25071_v26 }
 0x62f   : > { %18667 = vmatpush3.bf16.msra.mxu1 %v21895_v17  ;;  %v5846_v56 = vadd.s32 %v5838_v0, %v5830_v37  ;;  %7942 = vst.msk [vmem:[#allocation5 + $0x180] sm:$0xff] %vm6000_vm10, %v25071_v26  ;;  %7943 = vst.msk [vmem:[#allocation5 + $0x188] sm:$0xff] %vm6000_vm10, %v25071_v26  ;;  %v6104_v37 = vrot.slane %v6058_v61, 7  ;;  %v6061_v0 = vld [vmem:[#allocation4 + $0xa8] sm:$0xff] }
 0x630   : > { %18669 = vmatprep.subr.bf16.mxu1 %v18620_v59  ;;  %7944 = vst.msk [vmem:[#allocation5 + $0x190] sm:$0xff] %vm6000_vm10, %v25071_v26  ;;  %7945 = vst.msk [vmem:[#allocation5 + $0x198] sm:$0xff] %vm6000_vm10, %v25071_v26 }
 0x631   : > { %vm5854_vm9 = vcmp.eq.s32.totalorder %v20954_v30, %v5846_v56  ;;  %7946 = vst.msk [vmem:[#allocation5 + $0x1a0] sm:$0xff] %vm6000_vm10, %v25071_v26  ;;  %7947 = vst.msk [vmem:[#allocation5 + $0x1a8] sm:$0xff] %vm6000_vm10, %v25071_v26  ;;  %v6107_v56 = vrot.slane %v6061_v0, 7  ;;  %v14571_v0 = vld [vmem:[%s24739_s5 + $0x30] sm:$0xff] }
 0x632   : > { %7948 = vst.msk [vmem:[#allocation5 + $0x1b0] sm:$0xff] %vm6000_vm10, %v25071_v26  ;;  %7949 = vst.msk [vmem:[#allocation5 + $0x1b8] sm:$0xff] %vm6000_vm10, %v25071_v26 }
 0x633   : > { %18671 = vmatpush3.bf16.msra.mxu1 %v18620_v59  ;;  %v5841_v59 = vadd.s32 %v5833_v29, %v5825_v13  ;;  %7950 = vst.msk [vmem:[#allocation5 + $0x1c0] sm:$0xff] %vm6000_vm10, %v25071_v26  ;;  %7951 = vst.msk [vmem:[#allocation5 + $0x1c8] sm:$0xff] %vm6000_vm10, %v25071_v26  ;;  %v6040_v29 = vld [vmem:[#allocation4] sm:$0xff] }
 0x634   : > { %18673 = vmatprep.subr.bf16.mxu1 %v18624_v14  ;;  %7952 = vst.msk [vmem:[#allocation5 + $0x1d0] sm:$0xff] %vm6000_vm10, %v25071_v26  ;;  %7953 = vst.msk [vmem:[#allocation5 + $0x1d8] sm:$0xff] %vm6000_vm10, %v25071_v26  ;;  %v6086_v20 = vrot.slane %v6040_v29, 7 }
 0x635   : > { %vm5849_vm15 = vcmp.eq.s32.totalorder %v20954_v30, %v5841_v59  ;;  %7954 = vst.msk [vmem:[#allocation5 + $0x1e0] sm:$0xff] %vm6000_vm10, %v25071_v26  ;;  %7955 = vst.msk [vmem:[#allocation5 + $0x1e8] sm:$0xff] %vm6000_vm10, %v25071_v26 }
 0x636   : > { %v14504_v15 = vsel %vm5849_vm15, 1.0, %v25071_v26  ;;  %7956 = vst.msk [vmem:[#allocation5 + $0x1f0] sm:$0xff] %vm6000_vm10, %v25071_v26  ;;  %7957 = vst.msk [vmem:[#allocation5 + $0x1f8] sm:$0xff] %vm6000_vm10, %v25071_v26 }
 0x637   : > { %18675 = vmatpush3.bf16.msra.mxu1 %v18624_v14  ;;  %v5828_v14 = vmul.u32 4, %v5820_v41  ;;  %7958 = vst.msk [vmem:[#allocation5 + $0x200] sm:$0xff] %vm6000_vm10, %v25071_v26  ;;  %7959 = vst.msk [vmem:[#allocation5 + $0x208] sm:$0xff] %vm6000_vm10, %v25071_v26 }
 0x638   : > { %7960 = vst.msk [vmem:[#allocation5 + $0x210] sm:$0xff] %vm6000_vm10, %v25071_v26  ;;  %7961 = vst.msk [vmem:[#allocation5 + $0x218] sm:$0xff] %vm6000_vm10, %v25071_v26 }
 0x639   : > { %v5844_v52 = vadd.s32 %v5836_v9, %v5828_v14  ;;  %7962 = vst.msk [vmem:[#allocation5 + $0x220] sm:$0xff] %vm6000_vm10, %v25071_v26  ;;  %7963 = vst.msk [vmem:[#allocation5 + $0x228] sm:$0xff] %vm6000_vm10, %v25071_v26  ;;  %v14544_v9 = vld [vmem:[%s24739_s5 + $0x18] sm:$0xff] }
 0x63a   : > { %17322 = vmatmul.mubr.msk.f32.vlgmr.msra.gmra.mrb[78].mxu1 %vm5456_vm5, %v14499_v36  ;;  %v5845_v36 = vadd.s32 %v5837_v49, %v5829_v62  ;;  %7964 = vst.msk [vmem:[#allocation5 + $0x230] sm:$0xff] %vm6000_vm10, %v25071_v26  ;;  %7965 = vst.msk [vmem:[#allocation5 + $0x238] sm:$0xff] %vm6000_vm10, %v25071_v26  ;;  %v6055_v62 = vld [vmem:[#allocation4 + $0x78] sm:$0xff] }
 0x63b   : > { %17328 = vmatprep.mubr.msk.f32.mxu1 %vm4168_vm0, %v14502_v23  ;;  %vm5852_vm7 = vcmp.eq.s32.totalorder %v20954_v30, %v5844_v52 }
 0x63c   : > { %vm5853_vm8 = vcmp.eq.s32.totalorder %v20954_v30, %v5845_v36  ;;  %v14507_v4 = vsel %vm5852_vm7, 1.0, %v25071_v26 }
 0x63d   : > { %v14508_v23 = vsel %vm5853_vm8, 1.0, %v25071_v26 }
 0x6dd   : > { %v17266_v28 = vpop.f32.mrb[72].mxu1 }
 0x6de   : > { %v5529_v40 = vpop.f32.mrb[73].mxu1 }
 0x6ed   : > { %v17285_v38 = vpop.f32.mrb[74].mxu1 }
 0x6ee   : > { %v5628_v31 = vmax.f32 %v17266_v28, %v17285_v38  ;;  %v5618_v1 = vpop.f32.mrb[75].mxu1  ;;  %v14509_v28 = vsel %vm5854_vm9, 1.0, %v25071_v26  ;;  %v6110_v38 = vld [vmem:[%s24739_s5] sm:$0xff] }
 0x6ef   : > { %v5627_v42 = vmax.f32 %v5529_v40, %v5618_v1  ;;  %v22197_v40 = vld [vmem:[#allocation4 + $0x8] sm:$0xff] }
 0x6f0   : > { %v6087_v60 = vrot.slane %v22197_v40, 7  ;;  %v6363_v36 = vrot.slane %v22197_v40, 1 }
 0x6f2   : > { %v6088_v41 = vsel %vm645_vm3, %v6086_v20, %v6087_v60  ;;  %v14553_v60 = vld [vmem:[%s24739_s5 + $0x20] sm:$0xff] }
 0x6fd   : > { %v17304_v46 = vpop.f32.mrb[76].mxu1 }
 0x6fe   : > { %v5723_v43 = vmax.f32 %v5628_v31, %v17304_v46  ;;  %v5713_v25 = vpop.f32.mrb[77].mxu1 }
 0x6ff   : > { %v5722_v17 = vmax.f32 %v5627_v42, %v5713_v25 }
 0x70d   : > { %v17323_v39 = vpop.f32.mrb[78].mxu1 }
 0x70e   : > { %v5814_v53 = vmax.f32 %v5723_v43, %v17323_v39  ;;  %v5804_v5 = vpop.f32.mrb[79].mxu1  ;;  %v6046_v39 = vld [vmem:[#allocation4 + $0x30] sm:$0xff] }
 0x70f   : > { %v5813_v51 = vmax.f32 %v5722_v17, %v5804_v5  ;;  %v6092_v34 = vrot.slane %v6046_v39, 7 }
 0x711   : > { %v18676_v27 = vpack.c.bf16 %v5814_v53, %v5813_v51  ;;  %v6049_v51 = vld [vmem:[#allocation4 + $0x48] sm:$0xff] }
 0x712   : > { %v6095_v14 = vrot.slane %v6049_v51, 7 }
 0x713   : > { %18677 = vmatprep.subr.bf16.mxu1 %v18676_v27 }
 0x714   : > { %18679 = vmatpush3.bf16.msra.mxu1 %v18676_v27 }
 0x715   : > { %17340 = vmatprep.subr.mxu1 %v14518_v24 }
 0x717   : > { %17329 = vmatmul.mubr.msk.f32.vlgmr.msra.gmra.mrb[80].mxu1 %vm4168_vm0, %v14503_v8 }
 0x718   : > { %17331 = vmatprep.mubr.msk.f32.mxu1 %vm4168_vm0, %v14504_v15  ;;  %17341 = vmatpush3.msra.mxu1 %v14518_v24  ;;  %v6101_v24 = vrot.slane %v6055_v62, 7  ;;  %v6042_v15 = vld [vmem:[#allocation4 + $0x10] sm:$0xff] }
 0x719   : > { %17354 = vmatprep.subr.mxu1 %v6110_v38 }
 0x71b   : > { %17332 = vmatmul.mubr.msk.f32.gmra.mrb[82].mxu1 %vm4168_vm0, %v14505_v47  ;;  %v6364_v47 = vrot.slane %v6042_v15, 1 }
 0x71c   : > { %17334 = vmatprep.mubr.msk.f32.mxu1 %vm4168_vm0, %v14506_v50 }
 0x71f   : > { %17335 = vmatmul.mubr.msk.f32.gmra.mrb[84].mxu1 %vm4168_vm0, %v14507_v4 }
 0x720   : > { %17337 = vmatprep.mubr.msk.f32.mxu1 %vm4168_vm0, %v14508_v23 }
 0x723   : > { %17338 = vmatmul.mubr.msk.f32.gmra.mrb[86].mxu1 %vm4168_vm0, %v14509_v28  ;;  %v6045_v28 = vld [vmem:[#allocation4 + $0x28] sm:$0xff] }
 0x724   : > { %17342 = vmatprep.mubr.msk.f32.mxu1 %vm6000_vm10, %v22197_v40  ;;  %v6365_v40 = vsel %vm1330_vm2, %v6363_v36, %v6364_v47  ;;  %v6066_v36 = vld [vmem:[#allocation4 + $0xd0] sm:$0xff] }
 0x7ea   : > { %v17330_v31 = vpop.f32.mrb[80].mxu1 }
 0x7eb   : > { %6033 = vst.msk [vmem:[#allocation4 + $0x38] sm:$0xff] %vm6000_vm10, %v17330_v31  ;;  %v5961_v1 = vpop.f32.mrb[81].mxu1 }
 0x7ec   : > { %6032 = vst.msk [vmem:[#allocation4 + $0x20] sm:$0xff] %vm6000_vm10, %v5961_v1 }
 0x7ee   : > { %v17333_v42 = vpop.f32.mrb[82].mxu1 }
 0x7ef   : > { %6035 = vst.msk [vmem:[#allocation4 + $0x68] sm:$0xff] %vm6000_vm10, %v17333_v42  ;;  %v5971_v46 = vpop.f32.mrb[83].mxu1  ;;  %v6367_v42 = vrot.slane %v6045_v28, 1  ;;  %v14589_v28 = vld [vmem:[%s24739_s5 + $0x40] sm:$0xff] }
 0x7f0   : > { %6034 = vst.msk [vmem:[#allocation4 + $0x50] sm:$0xff] %vm6000_vm10, %v5971_v46 }
 0x7f2   : > { %v17336_v43 = vpop.f32.mrb[84].mxu1  ;;  %v22217_v19 = vld [vmem:[#allocation4 + $0x38] sm:$0xff] }
 0x7f3   : > { %6037 = vst.msk [vmem:[#allocation4 + $0x98] sm:$0xff] %vm6000_vm10, %v17336_v43  ;;  %v5981_v25 = vpop.f32.mrb[85].mxu1  ;;  %v22209_v17 = vld [vmem:[#allocation4 + $0x20] sm:$0xff]  ;;  %v6093_v22 = vrot.slane %v22217_v19, 7  ;;  %v6369_v46 = vrot.slane %v22217_v19, 1 }
 0x7f4   : > { %6036 = vst.msk [vmem:[#allocation4 + $0x80] sm:$0xff] %vm6000_vm10, %v5981_v25  ;;  %17343 = vmatmul.mubr.msk.f32.vlgmr.msra.gmra.mrb[88].mxu1 %vm6000_vm10, %v22209_v17  ;;  %v6090_v53 = vrot.slane %v22209_v17, 7  ;;  %v6366_v31 = vrot.slane %v22209_v17, 1  ;;  %v6051_v25 = vld [vmem:[#allocation4 + $0x58] sm:$0xff] }
 0x7f5   : > { %17345 = vmatprep.mubr.msk.f32.mxu1 %vm6000_vm10, %v22217_v19  ;;  %17355 = vmatpush3.msra.mxu1 %v6110_v38  ;;  %v22258_v7 = vsel %vm645_vm3, %v6092_v34, %v6093_v22  ;;  %v6048_v38 = vld [vmem:[#allocation4 + $0x40] sm:$0xff]  ;;  %v6373_v29 = vrot.slane %v6051_v25, 1  ;;  %v7287_v25 = vshra.s32 %v21040_v12, 4 }
 0x7f6   : > { %v17339_v57 = vpop.f32.mrb[86].mxu1  ;;  %17368 = vmatprep.subr.mxu1 %v14535_v35  ;;  %v22227_v6 = vld [vmem:[#allocation4 + $0x68] sm:$0xff]  ;;  %v22249_v27 = vsel %vm645_vm3, %v6089_v48, %v6090_v53  ;;  %v6370_v43 = vrot.slane %v6048_v38, 1  ;;  %v6060_v53 = vld [vmem:[#allocation4 + $0xa0] sm:$0xff]  ;;  %v6067_v38 = vld [vmem:[#allocation4 + $0xd8] sm:$0xff] }
 0x7f7   : > { %6039 = vst.msk [vmem:[#allocation4 + $0xc8] sm:$0xff] %vm6000_vm10, %v17339_v57  ;;  %v5991_v54 = vpop.f32.mrb[87].mxu1  ;;  %v22222_v13 = vld [vmem:[#allocation4 + $0x50] sm:$0xff]  ;;  %v6099_v44 = vrot.slane %v22227_v6, 7  ;;  %v6368_v57 = vsel %vm1330_vm2, %v6366_v31, %v6367_v42  ;;  %v6375_v16 = vrot.slane %v22227_v6, 1 }
 0x7f8   : > { %6038 = vst.msk [vmem:[#allocation4 + $0xb0] sm:$0xff] %vm6000_vm10, %v5991_v54  ;;  %17346 = vmatmul.mubr.msk.f32.gmra.mrb[90].mxu1 %vm6000_vm10, %v22222_v13  ;;  %v6096_v32 = vrot.slane %v22222_v13, 7  ;;  %v6372_v54 = vrot.slane %v22222_v13, 1  ;;  %v22303_v20 = vsel %vm1330_vm2, %v6369_v46, %v6370_v43  ;;  %v14663_v46 = vld [vmem:[%s24741_s7 + $0x8] sm:$0xff]  ;;  %v7286_v43 = vshra.s32 %v21027_v55, 4 }
 0x7f9   : > { %17348 = vmatprep.mubr.msk.f32.mxu1 %vm6000_vm10, %v22227_v6  ;;  %v22270_v52 = vsel %vm645_vm3, %v6098_v33, %v6099_v44  ;;  %17530 = vmatprep.subr.mxu0 %v14663_v46 }
 0x7fa   : > { %v22236_v2 = vld [vmem:[#allocation4 + $0x98] sm:$0xff]  ;;  %v22264_v49 = vsel %vm645_vm3, %v6095_v14, %v6096_v32  ;;  %v22309_v48 = vsel %vm1330_vm2, %v6372_v54, %v6373_v29  ;;  %v6382_v14 = vrot.slane %v6060_v53, 1  ;;  %17531 = vmatpush3.msra.mxu0 %v14663_v46  ;;  %v7319_v54 = vand.u32 15, %v21040_v12  ;;  %v22454_v53 = vld [vmem:[%s24740_s6] ss:$0 sm:$0xff] }
 0x7fb   : > { %v22232_v59 = vld [vmem:[#allocation4 + $0x80] sm:$0xff]  ;;  %v6105_v11 = vrot.slane %v22236_v2, 7  ;;  %v6381_v45 = vrot.slane %v22236_v2, 1  ;;  %v6063_v32 = vld [vmem:[#allocation4 + $0xb8] sm:$0xff]  ;;  %v7351_v29 = vshra.s32 %v7287_v25, 1  ;;  %v7263_v46 = vadd.s32 80, %v20948_v10 }
 0x7fc   : > { %17349 = vmatmul.mubr.msk.f32.gmra.mrb[92].mxu1 %vm6000_vm10, %v22232_v59  ;;  %v6102_v8 = vrot.slane %v22232_v59, 7  ;;  %v6378_v34 = vrot.slane %v22232_v59, 1  ;;  %v6385_v44 = vrot.slane %v6063_v32, 1 }
 0x7fd   : > { %17351 = vmatprep.mubr.msk.f32.mxu1 %vm6000_vm10, %v22236_v2  ;;  %v22283_v23 = vsel %vm645_vm3, %v6104_v37, %v6105_v11  ;;  %v22327_v62 = vsel %vm1330_vm2, %v6381_v45, %v6382_v14 }
 0x7fe   : > { %v22277_v50 = vsel %vm645_vm3, %v6101_v24, %v6102_v8  ;;  %v14562_v24 = vld [vmem:[%s24739_s5 + $0x28] sm:$0xff]  ;;  %v6064_v8 = vld [vmem:[#allocation4 + $0xc0] sm:$0xff]  ;;  %v6065_v15 = vld [vmem:[#allocation4 + $0xc8] sm:$0xff] }
 0x7ff   : > { %v22242_v5 = vld [vmem:[#allocation4 + $0xb0] sm:$0xff]  ;;  %v6521_v37 = vrot.slane %v6065_v15, 7  ;;  %v6758_v47 = vrot.slane %v6065_v15, 1 }
 0x800   : > { %17352 = vmatmul.mubr.msk.f32.gmra.mrb[94].mxu1 %vm6000_vm10, %v22242_v5  ;;  %v6108_v4 = vrot.slane %v22242_v5, 7  ;;  %v6384_v33 = vrot.slane %v22242_v5, 1 }
 0x801   : > { %17356 = vmatprep.mubr.msk.f32.mxu1 %vm6000_vm10, %v6088_v41  ;;  %v6057_v41 = vld [vmem:[#allocation4 + $0x88] sm:$0xff] }
 0x802   : > { %v22290_v1 = vsel %vm645_vm3, %v6107_v56, %v6108_v4  ;;  %v6379_v22 = vrot.slane %v6057_v41, 1  ;;  %v22332_v61 = vsel %vm1330_vm2, %v6384_v33, %v6385_v44  ;;  %v6759_v56 = vrot.slane %v6066_v36, 1 }
 0x803   : > { %v7415_v41 = vshra.s32 %v7319_v54, 1 }
 0x804   : > { %17357 = vmatmul.mubr.msk.f32.vlgmr.msra.gmra.mrb[88].mxu1 %vm6000_vm10, %v22249_v27  ;;  %v6760_v4 = vsel %vm1330_vm2, %v6758_v47, %v6759_v56  ;;  %v7261_v47 = vadd.s32 64, %v20948_v10 }
 0x805   : > { %17359 = vmatprep.mubr.msk.f32.mxu1 %vm6000_vm10, %v22258_v7  ;;  %17369 = vmatpush3.msra.mxu1 %v14535_v35  ;;  %v6054_v35 = vld [vmem:[#allocation4 + $0x70] sm:$0xff] }
 0x806   : > { %17382 = vmatprep.subr.mxu1 %v14544_v9  ;;  %v6376_v39 = vrot.slane %v6054_v35, 1  ;;  %v7318_v35 = vand.u32 15, %v21027_v55  ;;  %v7289_v55 = vshra.s32 %v21067_v21, 4 }
 0x808   : > { %17360 = vmatmul.mubr.msk.f32.gmra.mrb[90].mxu1 %vm6000_vm10, %v22264_v49  ;;  %v22315_v51 = vsel %vm1330_vm2, %v6375_v16, %v6376_v39  ;;  %v7288_v16 = vshra.s32 %v21044_v18, 4  ;;  %v7383_v39 = vmul.u32 8, %v7351_v29 }
 0x809   : > { %17362 = vmatprep.mubr.msk.f32.mxu1 %vm6000_vm10, %v22270_v52 }
 0x80a   : > { %v7447_v14 = vadd.s32 %v7415_v41, %v7383_v39 }
 0x80c   : > { %17363 = vmatmul.mubr.msk.f32.gmra.mrb[92].mxu1 %vm6000_vm10, %v22277_v50  ;;  %vm7479_vm13 = vcmp.eq.s32.totalorder %v20954_v30, %v7447_v14 }
 0x80d   : > { %17365 = vmatprep.mubr.msk.f32.mxu1 %vm6000_vm10, %v22283_v23 }
 0x810   : > { %17366 = vmatmul.mubr.msk.f32.gmra.mrb[94].mxu1 %vm6000_vm10, %v22290_v1 }
 0x811   : > { %17370 = vmatprep.mubr.msk.f32.mxu1 %vm6000_vm10, %v6365_v40  ;;  %v6068_v40 = vld [vmem:[#allocation4 + $0xe0] sm:$0xff] }
 0x812   : > { %v6881_v31 = vrot.slane %v6068_v40, 7 }
 0x814   : > { %17371 = vmatmul.mubr.msk.f32.vlgmr.msra.gmra.mrb[88].mxu1 %vm6000_vm10, %v6368_v57 }
 0x815   : > { %17373 = vmatprep.mubr.msk.f32.mxu1 %vm6000_vm10, %v22303_v20  ;;  %17383 = vmatpush3.msra.mxu1 %v14544_v9  ;;  %v22321_v9 = vsel %vm1330_vm2, %v6378_v34, %v6379_v22  ;;  %v7352_v34 = vshra.s32 %v7288_v16, 1  ;;  %v7320_v22 = vand.u32 15, %v21044_v18  ;;  %v7321_v18 = vand.u32 15, %v21067_v21 }
 0x816   : > { %17396 = vmatprep.subr.mxu1 %v14553_v60  ;;  %v7325_v16 = vand.u32 15, %v7261_v47 }
 0x817   : > { %v7416_v44 = vshra.s32 %v7320_v22, 1 }
 0x818   : > { %17374 = vmatmul.mubr.msk.f32.gmra.mrb[90].mxu1 %vm6000_vm10, %v22309_v48 }
 0x819   : > { %17376 = vmatprep.mubr.msk.f32.mxu1 %vm6000_vm10, %v22315_v51 }
 0x81c   : > { %17377 = vmatmul.mubr.msk.f32.gmra.mrb[92].mxu1 %vm6000_vm10, %v22321_v9 }
 0x81d   : > { %17379 = vmatprep.mubr.msk.f32.mxu1 %vm6000_vm10, %v22327_v62 }
 0x820   : > { %17380 = vmatmul.mubr.msk.f32.gmra.mrb[94].mxu1 %vm6000_vm10, %v22332_v61 }
 0x821   : > { %17384 = vmatprep.mubr.msk.f32.mxu1 %vm6000_vm10, %v22249_v27  ;;  %v6520_v27 = vrot.slane %v6064_v8, 7 }
 0x823   : > { %v6522_v11 = vsel %vm645_vm3, %v6520_v27, %v6521_v37 }
 0x824   : > { %17385 = vmatmul.mubr.msk.f32.vlgmr.msra.gmra.mrb[88].mxu1 %vm6000_vm10, %v22258_v7 }
 0x825   : > { %17387 = vmatprep.mubr.msk.f32.mxu1 %vm6000_vm10, %v22264_v49  ;;  %17397 = vmatpush3.msra.mxu1 %v14553_v60 }
 0x826   : > { %17410 = vmatprep.subr.mxu1 %v14562_v24 }
 0x828   : > { %17388 = vmatmul.mubr.msk.f32.gmra.mrb[90].mxu1 %vm6000_vm10, %v22270_v52 }
 0x829   : > { %17390 = vmatprep.mubr.msk.f32.mxu1 %vm6000_vm10, %v22277_v50 }
 0x82c   : > { %17391 = vmatmul.mubr.msk.f32.gmra.mrb[92].mxu1 %vm6000_vm10, %v22283_v23 }
 0x82d   : > { %17393 = vmatprep.mubr.msk.f32.mxu1 %vm6000_vm10, %v22290_v1 }
 0x830   : > { %17394 = vmatmul.mubr.msk.f32.gmra.mrb[94].mxu1 %vm6000_vm10, %v6522_v11 }
 0x831   : > { %17398 = vmatprep.mubr.msk.f32.mxu1 %vm6000_vm10, %v22209_v17  ;;  %v14580_v17 = vld [vmem:[%s24739_s5 + $0x38] sm:$0xff] }
 0x834   : > { %17399 = vmatmul.mubr.msk.f32.vlgmr.msra.gmra.mrb[88].mxu1 %vm6000_vm10, %v22217_v19 }
 0x835   : > { %17401 = vmatprep.mubr.msk.f32.mxu1 %vm6000_vm10, %v22222_v13  ;;  %17411 = vmatpush3.msra.mxu1 %v14562_v24 }
 0x836   : > { %17424 = vmatprep.subr.mxu1 %v14571_v0 }
 0x838   : > { %17402 = vmatmul.mubr.msk.f32.gmra.mrb[90].mxu1 %vm6000_vm10, %v22227_v6 }
 0x839   : > { %17404 = vmatprep.mubr.msk.f32.mxu1 %vm6000_vm10, %v22232_v59 }
 0x83c   : > { %17405 = vmatmul.mubr.msk.f32.gmra.mrb[92].mxu1 %vm6000_vm10, %v22236_v2 }
 0x83d   : > { %17407 = vmatprep.mubr.msk.f32.mxu1 %vm6000_vm10, %v22242_v5 }
 0x840   : > { %17408 = vmatmul.mubr.msk.f32.gmra.mrb[94].mxu1 %vm6000_vm10, %v6065_v15 }
 0x841   : > { %17412 = vmatprep.mubr.msk.f32.mxu1 %vm6000_vm10, %v6368_v57  ;;  %v7350_v57 = vshra.s32 %v7286_v43, 1 }
 0x843   : > { %v7382_v60 = vmul.u32 8, %v7350_v57  ;;  %v7265_v57 = vadd.s32 96, %v20948_v10 }
 0x844   : > { %17413 = vmatmul.mubr.msk.f32.vlgmr.msra.gmra.mrb[88].mxu1 %vm6000_vm10, %v22303_v20 }
 0x845   : > { %17415 = vmatprep.mubr.msk.f32.mxu1 %vm6000_vm10, %v22309_v48  ;;  %17425 = vmatpush3.msra.mxu1 %v14571_v0  ;;  %v7297_v14 = vshra.s32 %v7265_v57, 4 }
 0x846   : > { %17438 = vmatprep.subr.mxu1 %v14580_v17 }
 0x848   : > { %17416 = vmatmul.mubr.msk.f32.gmra.mrb[90].mxu1 %vm6000_vm10, %v22315_v51 }
 0x849   : > { %17418 = vmatprep.mubr.msk.f32.mxu1 %vm6000_vm10, %v22321_v9 }
 0x84c   : > { %17419 = vmatmul.mubr.msk.f32.gmra.mrb[92].mxu1 %vm6000_vm10, %v22327_v62 }
 0x84d   : > { %17421 = vmatprep.mubr.msk.f32.mxu1 %vm6000_vm10, %v22332_v61 }
 0x850   : > { %17422 = vmatmul.mubr.msk.f32.gmra.mrb[94].mxu1 %vm6000_vm10, %v6760_v4 }
 0x851   : > { %17426 = vmatprep.mubr.msk.f32.mxu1 %vm6000_vm10, %v22258_v7  ;;  %v6880_v7 = vrot.slane %v6067_v38, 7 }
 0x854   : > { %17427 = vmatmul.mubr.msk.f32.vlgmr.msra.gmra.mrb[88].mxu1 %vm6000_vm10, %v22264_v49  ;;  %v6882_v49 = vsel %vm645_vm3, %v6880_v7, %v6881_v31  ;;  %v7417_v7 = vshra.s32 %v7321_v18, 1  ;;  %v7327_v18 = vand.u32 15, %v7263_v46 }
 0x855   : > { %17429 = vmatprep.mubr.msk.f32.mxu1 %vm6000_vm10, %v22270_v52  ;;  %17439 = vmatpush3.msra.mxu1 %v14580_v17 }
 0x856   : > { %17452 = vmatprep.subr.mxu1 %v14589_v28 }
 0x858   : > { %17430 = vmatmul.mubr.msk.f32.gmra.mrb[90].mxu1 %vm6000_vm10, %v22277_v50 }
 0x859   : > { %17432 = vmatprep.mubr.msk.f32.mxu1 %vm6000_vm10, %v22283_v23 }
 0x85c   : > { %17433 = vmatmul.mubr.msk.f32.gmra.mrb[92].mxu1 %vm6000_vm10, %v22290_v1 }
 0x85d   : > { %17435 = vmatprep.mubr.msk.f32.mxu1 %vm6000_vm10, %v6522_v11  ;;  %v7322_v11 = vand.u32 15, %v21096_v58 }
 0x860   : > { %17436 = vmatmul.mubr.msk.f32.gmra.mrb[94].mxu1 %vm6000_vm10, %v6882_v49 }
 0x861   : > { %17440 = vmatprep.mubr.msk.f32.mxu1 %vm6000_vm10, %v22217_v19  ;;  %v6069_v19 = vld [vmem:[#allocation4 + $0xe8] sm:$0xff] }
 0x864   : > { %17441 = vmatmul.mubr.msk.f32.vlgmr.msra.gmra.mrb[88].mxu1 %vm6000_vm10, %v22222_v13  ;;  %v7118_v13 = vrot.slane %v6068_v40, 1 }
 0x865   : > { %17443 = vmatprep.mubr.msk.f32.mxu1 %vm6000_vm10, %v22227_v6  ;;  %17453 = vmatpush3.msra.mxu1 %v14589_v28  ;;  %v7119_v6 = vrot.slane %v6069_v19, 1 }
 0x868   : > { %17444 = vmatmul.mubr.msk.f32.gmra.mrb[90].mxu1 %vm6000_vm10, %v22232_v59  ;;  %v7120_v59 = vsel %vm1330_vm2, %v7118_v13, %v7119_v6  ;;  %v7418_v13 = vshra.s32 %v7322_v11, 1  ;;  %v7323_v6 = vand.u32 15, %v21113_v63 }
 0x869   : > { %17446 = vmatprep.mubr.msk.f32.mxu1 %vm6000_vm10, %v22236_v2  ;;  %v7285_v2 = vshra.s32 %v20948_v10, 4 }
 0x86b   : > { %v7349_v52 = vshra.s32 %v7285_v2, 1 }
 0x86c   : > { %17447 = vmatmul.mubr.msk.f32.gmra.mrb[92].mxu1 %vm6000_vm10, %v22242_v5  ;;  %v7317_v5 = vand.u32 15, %v20948_v10 }
 0x86d   : > { %17449 = vmatprep.mubr.msk.f32.mxu1 %vm6000_vm10, %v6065_v15  ;;  %v7381_v50 = vmul.u32 8, %v7349_v52  ;;  %v7291_v15 = vshra.s32 %v21113_v63, 4  ;;  %v7293_v52 = vshra.s32 %v7261_v47, 4  ;;  %v7264_v63 = vadd.s32 88, %v20948_v10 }
 0x86e   : > { %v7413_v23 = vshra.s32 %v7317_v5, 1 }
 0x86f   : > { %v7355_v31 = vshra.s32 %v7291_v15, 1  ;;  %v7357_v41 = vshra.s32 %v7293_v52, 1 }
 0x870   : > { %17450 = vmatmul.mubr.msk.f32.gmra.mrb[94].mxu1 %vm6000_vm10, %v6068_v40  ;;  %v7445_v1 = vadd.s32 %v7413_v23, %v7381_v50  ;;  %v7262_v50 = vadd.s32 72, %v20948_v10 }
 0x871   : > { %17454 = vmatprep.mubr.msk.f32.mxu1 %vm6000_vm10, %v22303_v20  ;;  %v7414_v20 = vshra.s32 %v7318_v35, 1  ;;  %v7387_v35 = vmul.u32 8, %v7355_v31  ;;  %v7423_v31 = vshra.s32 %v7327_v18, 1 }
 0x872   : > { %vm7477_vm11 = vcmp.eq.s32.totalorder %v20954_v30, %v7445_v1 }
 0x873   : > { %v14599_v42 = vsel %vm7477_vm11, 1.0, %v25071_v26 }
 0x874   : > { %17455 = vmatmul.mubr.msk.f32.vlgmr.msra.gmra.mrb[88].mxu1 %vm6000_vm10, %v22309_v48  ;;  %v7446_v48 = vadd.s32 %v7414_v20, %v7382_v60  ;;  %v7419_v60 = vshra.s32 %v7323_v6, 1 }
 0x875   : > { %17457 = vmatprep.mubr.msk.f32.mxu1 %vm6000_vm10, %v22315_v51 }
 0x876   : > { %vm7478_vm12 = vcmp.eq.s32.totalorder %v20954_v30, %v7446_v48  ;;  %v7294_v48 = vshra.s32 %v7262_v50, 4 }
 0x877   : > { %v22471_v36 = vsel %vm7478_vm12, 1.0, %v25071_v26 }
 0x878   : > { %17458 = vmatmul.mubr.msk.f32.gmra.mrb[90].mxu1 %vm6000_vm10, %v22321_v9  ;;  %v7384_v9 = vmul.u32 8, %v7352_v34 }
 0x879   : > { %17460 = vmatprep.mubr.msk.f32.mxu1 %vm6000_vm10, %v22327_v62  ;;  %v7353_v62 = vshra.s32 %v7289_v55, 1 }
 0x87a   : > { %v22474_v56 = vadd.s32 %v7416_v44, %v7384_v9  ;;  %v7451_v9 = vadd.s32 %v7419_v60, %v7387_v35 }
 0x87c   : > { %17461 = vmatmul.mubr.msk.f32.gmra.mrb[92].mxu1 %vm6000_vm10, %v22332_v61  ;;  %v7290_v61 = vshra.s32 %v21096_v58, 4  ;;  %v22477_v58 = vsel %vm7479_vm13, 1.0, %v25071_v26  ;;  %vm7480_vm14 = vcmp.eq.s32.totalorder %v20954_v30, %v22474_v56  ;;  %vm7483_vm6 = vcmp.eq.s32.totalorder %v20954_v30, %v7451_v9 }
 0x87d   : > { %17463 = vmatprep.mubr.msk.f32.mxu1 %vm6000_vm10, %v6760_v4  ;;  %v7385_v4 = vmul.u32 8, %v7353_v62 }
 0x87e   : > { %v7354_v28 = vshra.s32 %v7290_v61, 1  ;;  %v7389_v61 = vmul.u32 8, %v7357_v41 }
 0x87f   : > { %v7449_v22 = vadd.s32 %v7417_v7, %v7385_v4 }
 0x880   : > { %17464 = vmatmul.mubr.msk.f32.gmra.mrb[94].mxu1 %vm6000_vm10, %v7120_v59  ;;  %v7292_v59 = vshra.s32 %v21145_v3, 4  ;;  %v7386_v1 = vmul.u32 8, %v7354_v28 }
 0x881   : > { %17482 = vmatprep.mubr.msk.f32.mxu1 %vm5456_vm5, %v14599_v42  ;;  %v7324_v42 = vand.u32 15, %v21145_v3  ;;  %vm7481_vm15 = vcmp.eq.s32.totalorder %v20954_v30, %v7449_v22  ;;  %v7273_v22 = vadd.s32 160, %v20948_v10 }
 0x882   : > { %v7356_v20 = vshra.s32 %v7292_v59, 1  ;;  %v7450_v55 = vadd.s32 %v7418_v13, %v7386_v1  ;;  %v14603_v52 = vsel %vm7481_vm15, 1.0, %v25071_v26 }
 0x883   : > { %v7420_v44 = vshra.s32 %v7324_v42, 1  ;;  %v7305_v18 = vshra.s32 %v7273_v22, 4 }
 0x884   : > { %vm7482_vm4 = vcmp.eq.s32.totalorder %v20954_v30, %v7450_v55 }
 0x947   : > { %v17456_v51 = vpop.f32.mrb[88].mxu1 }
 0x948   : > { %v7246_v12 = vadd.f32 %v17456_v51, %v22454_v53  ;;  %v7191_v45 = vpop.f32.mrb[89].mxu1  ;;  %v7295_v51 = vshra.s32 %v7263_v46, 4  ;;  %v7270_v46 = vadd.s32 136, %v20948_v10 }
 0x949   : > { %v7245_v32 = vadd.f32 %v22454_v53, %v7191_v45  ;;  %v7296_v45 = vshra.s32 %v7264_v63, 4 }
 0x94a   : > { %v7254_v33 = vmax.f32 %v7246_v12, 0.0  ;;  %v7359_v15 = vshra.s32 %v7295_v51, 1  ;;  %v7302_v41 = vshra.s32 %v7270_v46, 4 }
 0x94b   : > { %v7253_v24 = vmax.f32 %v7245_v32, 0.0  ;;  %v17459_v8 = vpop.f32.mrb[90].mxu1  ;;  %v7266_v32 = vadd.s32 104, %v20948_v10  ;;  %v7360_v11 = vshra.s32 %v7296_v45, 1 }
 0x94c   : > { %v7248_v27 = vadd.f32 %v17459_v8, %v22454_v53  ;;  %v7201_v37 = vpop.f32.mrb[91].mxu1  ;;  %v7358_v8 = vshra.s32 %v7294_v48, 1  ;;  %v7391_v7 = vmul.u32 8, %v7359_v15  ;;  %v7272_v48 = vadd.s32 152, %v20948_v10 }
 0x94d   : > { %v18680_v0 = vpack.c.bf16 %v7254_v33, %v7253_v24  ;;  %v7247_v17 = vadd.f32 %v22454_v53, %v7201_v37  ;;  %v7388_v33 = vmul.u32 8, %v7356_v20  ;;  %v7421_v24 = vshra.s32 %v7325_v16, 1 }
 0x94e   : > { %v7256_v21 = vmax.f32 %v7248_v27, 0.0  ;;  %v7328_v27 = vand.u32 15, %v7264_v63  ;;  %v7329_v37 = vand.u32 15, %v7265_v57  ;;  %v7390_v28 = vmul.u32 8, %v7358_v8 }
 0x94f   : > { %v7255_v38 = vmax.f32 %v7247_v17, 0.0  ;;  %v17462_v40 = vpop.f32.mrb[92].mxu1  ;;  %18681 = vmatprep.subr.bf16.mxu1 %v18680_v0  ;;  %v7298_v17 = vshra.s32 %v7266_v32, 4  ;;  %v7452_v47 = vadd.s32 %v7420_v44, %v7388_v33  ;;  %v7453_v4 = vadd.s32 %v7421_v24, %v7389_v61 }
 0x950   : > { %v7250_v49 = vadd.f32 %v17462_v40, %v22454_v53  ;;  %v7211_v19 = vpop.f32.mrb[93].mxu1  ;;  %18683 = vmatpush3.bf16.msra.mxu1 %v18680_v0  ;;  %v7361_v0 = vshra.s32 %v7297_v14, 1  ;;  %v7268_v40 = vadd.s32 120, %v20948_v10  ;;  %v7392_v13 = vmul.u32 8, %v7360_v11 }
 0x951   : > { %v18684_v2 = vpack.c.bf16 %v7256_v21, %v7255_v38  ;;  %v7249_v5 = vadd.f32 %v22454_v53, %v7211_v19  ;;  %v7267_v21 = vadd.s32 112, %v20948_v10  ;;  %v7425_v19 = vshra.s32 %v7329_v37, 1 }
 0x952   : > { %v7258_v23 = vmax.f32 %v7250_v49, 0.0  ;;  %v7424_v49 = vshra.s32 %v7328_v27, 1  ;;  %v7393_v6 = vmul.u32 8, %v7361_v0  ;;  %v7330_v59 = vand.u32 15, %v7266_v32 }
 0x953   : > { %v7257_v43 = vmax.f32 %v7249_v5, 0.0  ;;  %v17465_v25 = vpop.f32.mrb[94].mxu1  ;;  %18685 = vmatprep.subr.bf16.mxu1 %v18684_v2  ;;  %v14602_v5 = vsel %vm7480_vm14, 1.0, %v25071_v26  ;;  %vm7484_vm7 = vcmp.eq.s32.totalorder %v20954_v30, %v7452_v47  ;;  %v7300_v1 = vshra.s32 %v7268_v40, 4 }
 0x954   : > { %v7252_v54 = vadd.f32 %v17465_v25, %v22454_v53  ;;  %v7221_v29 = vpop.f32.mrb[95].mxu1  ;;  %18687 = vmatpush3.bf16.msra.mxu1 %v18684_v2  ;;  %v7362_v2 = vshra.s32 %v7298_v17, 1  ;;  %vm7485_vm8 = vcmp.eq.s32.totalorder %v20954_v30, %v7453_v4  ;;  %v7455_v42 = vadd.s32 %v7423_v31, %v7391_v7 }
 0x955   : > { %v18688_v39 = vpack.c.bf16 %v7258_v23, %v7257_v43  ;;  %v7251_v3 = vadd.f32 %v22454_v53, %v7221_v29  ;;  %v7326_v53 = vand.u32 15, %v7262_v50  ;;  %v7299_v50 = vshra.s32 %v7267_v21, 4 }
 0x956   : > { %v7260_v34 = vmax.f32 %v7252_v54, 0.0  ;;  %v7269_v23 = vadd.s32 128, %v20948_v10  ;;  %v7456_v43 = vadd.s32 %v7424_v49, %v7392_v13  ;;  %v7457_v25 = vadd.s32 %v7425_v19, %v7393_v6 }
 0x957   : > { %v7259_v12 = vmax.f32 %v7251_v3, 0.0  ;;  %18689 = vmatprep.subr.bf16.mxu1 %v18688_v39  ;;  %v7422_v38 = vshra.s32 %v7326_v53, 1  ;;  %v7394_v35 = vmul.u32 8, %v7362_v2  ;;  %v7426_v63 = vshra.s32 %v7330_v59, 1 }
 0x958   : > { %18691 = vmatpush3.bf16.msra.mxu1 %v18688_v39  ;;  %v14606_v57 = vsel %vm7484_vm7, 1.0, %v25071_v26  ;;  %v7331_v54 = vand.u32 15, %v7267_v21  ;;  %v7363_v29 = vshra.s32 %v7299_v50, 1  ;;  %v7301_v60 = vshra.s32 %v7269_v23, 4 }
 0x959   : > { %v18692_v62 = vpack.c.bf16 %v7260_v34, %v7259_v12  ;;  %v7454_v56 = vadd.s32 %v7422_v38, %v7390_v28  ;;  %v14607_v20 = vsel %vm7485_vm8, 1.0, %v25071_v26  ;;  %v7332_v16 = vand.u32 15, %v7268_v40 }
 0x95a   : > { %v7364_v39 = vshra.s32 %v7300_v1, 1  ;;  %v7271_v3 = vadd.s32 144, %v20948_v10  ;;  %vm7487_vm11 = vcmp.eq.s32.totalorder %v20954_v30, %v7455_v42  ;;  %vm7488_vm12 = vcmp.eq.s32.totalorder %v20954_v30, %v7456_v43 }
 0x95b   : > { %18693 = vmatprep.subr.bf16.mxu1 %v18692_v62  ;;  %vm7486_vm9 = vcmp.eq.s32.totalorder %v20954_v30, %v7454_v56  ;;  %vm7489_vm13 = vcmp.eq.s32.totalorder %v20954_v30, %v7457_v25  ;;  %v7458_v34 = vadd.s32 %v7426_v63, %v7394_v35  ;;  %v7395_v55 = vmul.u32 8, %v7363_v29 }
 0x95c   : > { %18695 = vmatpush3.bf16.msra.mxu1 %v18692_v62  ;;  %v7427_v51 = vshra.s32 %v7331_v54, 1  ;;  %v7333_v12 = vand.u32 15, %v7269_v23  ;;  %v7365_v45 = vshra.s32 %v7301_v60, 1  ;;  %v14608_v14 = vsel %vm7486_vm9, 1.0, %v25071_v26 }
 0x95d   : > { %v7396_v32 = vmul.u32 8, %v7364_v39  ;;  %v7428_v9 = vshra.s32 %v7332_v16, 1  ;;  %v7303_v33 = vshra.s32 %v7271_v3, 4  ;;  %v14609_v44 = vsel %vm7487_vm11, 1.0, %v25071_v26 }
 0x95e   : > { %v7334_v53 = vand.u32 15, %v7270_v46  ;;  %v7366_v62 = vshra.s32 %v7302_v41, 1  ;;  %v7304_v61 = vshra.s32 %v7272_v48, 4  ;;  %v14610_v24 = vsel %vm7488_vm12, 1.0, %v25071_v26 }
 0x95f   : > { %17483 = vmatmul.mubr.msk.f32.vlgmr.msra.gmra.mrb[96].mxu1 %vm5456_vm5, %v22471_v36  ;;  %v14604_v36 = vsel %vm7482_vm4, 1.0, %v25071_v26  ;;  %v14611_v8 = vsel %vm7489_vm13, 1.0, %v25071_v26  ;;  %v7274_v15 = vadd.s32 168, %v20948_v10  ;;  %vm7490_vm14 = vcmp.eq.s32.totalorder %v20954_v30, %v7458_v34 }
 0x960   : > { %17485 = vmatprep.mubr.msk.f32.mxu1 %vm5456_vm5, %v22477_v58  ;;  %v14605_v58 = vsel %vm7483_vm6, 1.0, %v25071_v26  ;;  %v7459_v27 = vadd.s32 %v7427_v51, %v7395_v55  ;;  %v7397_v37 = vmul.u32 8, %v7365_v45  ;;  %v7429_v11 = vshra.s32 %v7333_v12, 1 }
 0x961   : > { %v7460_v0 = vadd.s32 %v7428_v9, %v7396_v32  ;;  %v7335_v17 = vand.u32 15, %v7271_v3  ;;  %v7367_v47 = vshra.s32 %v7303_v33, 1  ;;  %v7275_v21 = vadd.s32 176, %v20948_v10 }
 0x962   : > { %v7398_v4 = vmul.u32 8, %v7366_v62  ;;  %v7430_v28 = vshra.s32 %v7334_v53, 1  ;;  %v7336_v38 = vand.u32 15, %v7272_v48  ;;  %v7368_v40 = vshra.s32 %v7304_v61, 1 }
 0x963   : > { %17486 = vmatmul.mubr.msk.f32.gmra.mrb[98].mxu1 %vm5456_vm5, %v14602_v5  ;;  %v14612_v7 = vsel %vm7490_vm14, 1.0, %v25071_v26  ;;  %v7337_v31 = vand.u32 15, %v7273_v22  ;;  %v7369_v49 = vshra.s32 %v7305_v18, 1  ;;  %v7306_v19 = vshra.s32 %v7274_v15, 4 }
 0x964   : > { %17488 = vmatprep.mubr.msk.f32.mxu1 %vm5456_vm5, %v14603_v52  ;;  %vm7491_vm15 = vcmp.eq.s32.totalorder %v20954_v30, %v7459_v27  ;;  %v7461_v13 = vadd.s32 %v7429_v11, %v7397_v37  ;;  %v7276_v6 = vadd.s32 184, %v20948_v10  ;;  %v7277_v59 = vadd.s32 192, %v20948_v10 }
 0x965   : > { %vm7492_vm4 = vcmp.eq.s32.totalorder %v20954_v30, %v7460_v0  ;;  %v7399_v2 = vmul.u32 8, %v7367_v47  ;;  %v7431_v5 = vshra.s32 %v7335_v17, 1  ;;  %v7307_v52 = vshra.s32 %v7275_v21, 4 }
 0x966   : > { %v7462_v50 = vadd.s32 %v7430_v28, %v7398_v4  ;;  %v7400_v23 = vmul.u32 8, %v7368_v40  ;;  %v14613_v1 = vsel %vm7491_vm15, 1.0, %v25071_v26  ;;  %v7401_v56 = vmul.u32 8, %v7369_v49 }
 0x967   : > { %17489 = vmatmul.mubr.msk.f32.gmra.mrb[100].mxu1 %vm5456_vm5, %v14604_v36  ;;  %v7432_v36 = vshra.s32 %v7336_v38, 1  ;;  %v7433_v42 = vshra.s32 %v7337_v31, 1  ;;  %v7370_v46 = vshra.s32 %v7306_v19, 1  ;;  %v14614_v43 = vsel %vm7492_vm4, 1.0, %v25071_v26 }
 0x968   : > { %17491 = vmatprep.mubr.msk.f32.mxu1 %vm5456_vm5, %v14605_v58  ;;  %v7338_v58 = vand.u32 15, %v7274_v15  ;;  %v7308_v25 = vshra.s32 %v7276_v6, 4  ;;  %v7309_v35 = vshra.s32 %v7277_v59, 4  ;;  %v7278_v63 = vadd.s32 200, %v20948_v10 }
 0x969   : > { %vm7493_vm6 = vcmp.eq.s32.totalorder %v20954_v30, %v7461_v13  ;;  %v7339_v54 = vand.u32 15, %v7275_v21  ;;  %v7371_v29 = vshra.s32 %v7307_v52, 1  ;;  %vm7494_vm7 = vcmp.eq.s32.totalorder %v20954_v30, %v7462_v50 }
 0x96a   : > { %v7464_v60 = vadd.s32 %v7432_v36, %v7400_v23  ;;  %v7279_v16 = vadd.s32 208, %v20948_v10  ;;  %v7465_v39 = vadd.s32 %v7433_v42, %v7401_v56  ;;  %v7402_v3 = vmul.u32 8, %v7370_v46 }
 0x96b   : > { %17492 = vmatmul.mubr.msk.f32.gmra.mrb[102].mxu1 %vm5456_vm5, %v14606_v57  ;;  %v7463_v57 = vadd.s32 %v7431_v5, %v7399_v2  ;;  %v7340_v41 = vand.u32 15, %v7276_v6  ;;  %v7341_v48 = vand.u32 15, %v7277_v59  ;;  %v14615_v34 = vsel %vm7493_vm6, 1.0, %v25071_v26 }
 0x96c   : > { %17494 = vmatprep.mubr.msk.f32.mxu1 %vm5456_vm5, %v14607_v20  ;;  %v7434_v20 = vshra.s32 %v7338_v58, 1  ;;  %v7372_v22 = vshra.s32 %v7308_v25, 1  ;;  %v7373_v55 = vshra.s32 %v7309_v35, 1  ;;  %v7310_v51 = vshra.s32 %v7278_v63, 4 }
 0x96d   : > { %v14616_v12 = vsel %vm7494_vm7, 1.0, %v25071_v26  ;;  %v7403_v45 = vmul.u32 8, %v7371_v29  ;;  %v7280_v32 = vadd.s32 216, %v20948_v10  ;;  %vm7495_vm8 = vcmp.eq.s32.totalorder %v20954_v30, %v7463_v57 }
 0x96e   : > { %vm7496_vm9 = vcmp.eq.s32.totalorder %v20954_v30, %v7464_v60  ;;  %v7311_v9 = vshra.s32 %v7279_v16, 4  ;;  %v7281_v33 = vadd.s32 224, %v20948_v10  ;;  %vm7497_vm11 = vcmp.eq.s32.totalorder %v20954_v30, %v7465_v39 }
 0x96f   : > { %17495 = vmatmul.mubr.msk.f32.gmra.mrb[104].mxu1 %vm5456_vm5, %v14608_v14  ;;  %v7435_v14 = vshra.s32 %v7339_v54, 1  ;;  %v7436_v53 = vshra.s32 %v7340_v41, 1  ;;  %v7437_v62 = vshra.s32 %v7341_v48, 1  ;;  %v7404_v61 = vmul.u32 8, %v7372_v22  ;;  %v22612_v41 = vld [vmem:[#allocation5 + $0x8] sm:$0xff]  ;;  %v22616_v48 = vld [vmem:[#allocation5 + $0x10] sm:$0xff] }
 0x970   : > { %17497 = vmatprep.mubr.msk.f32.mxu1 %vm5456_vm5, %v14609_v44  ;;  %v7466_v44 = vadd.s32 %v7434_v20, %v7402_v3  ;;  %v7374_v18 = vshra.s32 %v7310_v51, 1  ;;  %v14617_v15 = vsel %vm7495_vm8, 1.0, %v25071_v26  ;;  %v7312_v37 = vshra.s32 %v7280_v32, 4  ;;  %17532 = vmatprep.mubr.msk.f32.mxu0 %vm6000_vm10, %v22612_v41 }
 0x971   : > { %v7467_v27 = vadd.s32 %v7435_v14, %v7403_v45  ;;  %v7282_v11 = vadd.s32 232, %v20948_v10  ;;  %v7343_v0 = vand.u32 15, %v7279_v16  ;;  %v7375_v17 = vshra.s32 %v7311_v9, 1  ;;  %17533 = vmatmul.mubr.msk.f32.vlgmr.msra.gmra.mrb[32].mxu0 %vm6000_vm10, %v22616_v48 }
 0x972   : > { %v7313_v47 = vshra.s32 %v7281_v33, 4  ;;  %v14618_v21 = vsel %vm7496_vm9, 1.0, %v25071_v26  ;;  %v14619_v4 = vsel %vm7497_vm11, 1.0, %v25071_v26  ;;  %vm7498_vm12 = vcmp.eq.s32.totalorder %v20954_v30, %v7466_v44 }
 0x973   : > { %17498 = vmatmul.mubr.msk.f32.gmra.mrb[106].mxu1 %vm5456_vm5, %v14610_v24  ;;  %v7405_v24 = vmul.u32 8, %v7373_v55  ;;  %v7468_v28 = vadd.s32 %v7436_v53, %v7404_v61  ;;  %v7406_v40 = vmul.u32 8, %v7374_v18  ;;  %vm7499_vm13 = vcmp.eq.s32.totalorder %v20954_v30, %v7467_v27  ;;  %v22634_v18 = vld [vmem:[%s24741_s7 + $0x10] sm:$0xff] }
 0x974   : > { %17500 = vmatprep.mubr.msk.f32.mxu1 %vm5456_vm5, %v14611_v8  ;;  %v7342_v8 = vand.u32 15, %v7278_v63  ;;  %v7344_v31 = vand.u32 15, %v7280_v32  ;;  %v7376_v49 = vshra.s32 %v7312_v37, 1  ;;  %v7314_v19 = vshra.s32 %v7282_v11, 4 }
 0x975   : > { %v7469_v38 = vadd.s32 %v7437_v62, %v7405_v24  ;;  %v7407_v13 = vmul.u32 8, %v7375_v17  ;;  %v7439_v6 = vshra.s32 %v7343_v0, 1  ;;  %v7345_v59 = vand.u32 15, %v7281_v33 }
 0x976   : > { %v7377_v2 = vshra.s32 %v7313_v47, 1  ;;  %v14620_v5 = vsel %vm7498_vm12, 1.0, %v25071_v26  ;;  %v14621_v52 = vsel %vm7499_vm13, 1.0, %v25071_v26  ;;  %vm7500_vm14 = vcmp.eq.s32.totalorder %v20954_v30, %v7468_v28 }
 0x977   : > { %17501 = vmatmul.mubr.msk.f32.gmra.mrb[108].mxu1 %vm5456_vm5, %v14612_v7  ;;  %v7438_v7 = vshra.s32 %v7342_v8, 1  ;;  %vm7501_vm15 = vcmp.eq.s32.totalorder %v20954_v30, %v7469_v38  ;;  %v7408_v23 = vmul.u32 8, %v7376_v49  ;;  %v7440_v36 = vshra.s32 %v7344_v31, 1 }
 0x978   : > { %17503 = vmatprep.mubr.msk.f32.mxu1 %vm5456_vm5, %v14613_v1  ;;  %v7346_v58 = vand.u32 15, %v7282_v11  ;;  %v7378_v1 = vshra.s32 %v7314_v19, 1  ;;  %v7471_v56 = vadd.s32 %v7439_v6, %v7407_v13  ;;  %v7409_v42 = vmul.u32 8, %v7377_v2 }
 0x979   : > { %v7470_v50 = vadd.s32 %v7438_v7, %v7406_v40  ;;  %v7441_v46 = vshra.s32 %v7345_v59, 1  ;;  %v14623_v25 = vsel %vm7501_vm15, 1.0, %v25071_v26  ;;  %v7472_v35 = vadd.s32 %v7440_v36, %v7408_v23 }
 0x97a   : > { %v7410_v63 = vmul.u32 8, %v7378_v1  ;;  %v7442_v57 = vshra.s32 %v7346_v58, 1  ;;  %vm7503_vm6 = vcmp.eq.s32.totalorder %v20954_v30, %v7471_v56  ;;  %v7283_v22 = vadd.s32 240, %v20948_v10 }
 0x97b   : > { %17504 = vmatmul.mubr.msk.f32.gmra.mrb[110].mxu1 %vm5456_vm5, %v14614_v43  ;;  %v14622_v43 = vsel %vm7500_vm14, 1.0, %v25071_v26  ;;  %vm7502_vm4 = vcmp.eq.s32.totalorder %v20954_v30, %v7470_v50  ;;  %v7473_v54 = vadd.s32 %v7441_v46, %v7409_v42  ;;  %v14625_v60 = vsel %vm7503_vm6, 1.0, %v25071_v26 }
 0x97c   : > { %17506 = vmatprep.mubr.msk.f32.mxu1 %vm5456_vm5, %v14615_v34  ;;  %v14624_v29 = vsel %vm7502_vm4, 1.0, %v25071_v26  ;;  %vm7504_vm7 = vcmp.eq.s32.totalorder %v20954_v30, %v7472_v35  ;;  %v7474_v20 = vadd.s32 %v7442_v57, %v7410_v63  ;;  %v8199_v34 = vld [vmem:[%s24741_s7] sm:$0xff]  ;;  %v7284_v55 = vadd.s32 248, %v20948_v10 }
 0x97d   : > { %vm7505_vm8 = vcmp.eq.s32.totalorder %v20954_v30, %v7473_v54  ;;  %v14626_v16 = vsel %vm7504_vm7, 1.0, %v25071_v26  ;;  %17580 = vmatprep.subr.mxu0 %v8199_v34  ;;  %v7315_v51 = vshra.s32 %v7283_v22, 4  ;;  %v7347_v45 = vand.u32 15, %v7283_v22 }
 0x97e   : > { %v14627_v39 = vsel %vm7505_vm8, 1.0, %v25071_v26  ;;  %vm7506_vm9 = vcmp.eq.s32.totalorder %v20954_v30, %v7474_v20  ;;  %17581 = vmatpush3.msra.mxu0 %v8199_v34  ;;  %v7348_v32 = vand.u32 15, %v7284_v55 }
 0x97f   : > { %17507 = vmatmul.mubr.msk.f32.gmra.mrb[112].mxu1 %vm5456_vm5, %v14616_v12  ;;  %v14628_v3 = vsel %vm7506_vm9, 1.0, %v25071_v26  ;;  %v7316_v12 = vshra.s32 %v7284_v55, 4  ;;  %v7379_v14 = vshra.s32 %v7315_v51, 1  ;;  %v7443_v44 = vshra.s32 %v7347_v45, 1  ;;  %17630 = vmatprep.subr.mxu0 %v22634_v18 }
 0x980   : > { %17509 = vmatprep.mubr.msk.f32.mxu1 %vm5456_vm5, %v14617_v15  ;;  %v7444_v62 = vshra.s32 %v7348_v32, 1 }
 0x981   : > { %v7380_v9 = vshra.s32 %v7316_v12, 1  ;;  %v7411_v33 = vmul.u32 8, %v7379_v14 }
 0x983   : > { %17510 = vmatmul.mubr.msk.f32.gmra.mrb[114].mxu1 %vm5456_vm5, %v14618_v21  ;;  %v7412_v53 = vmul.u32 8, %v7380_v9  ;;  %v7475_v61 = vadd.s32 %v7443_v44, %v7411_v33 }
 0x984   : > { %17512 = vmatprep.mubr.msk.f32.mxu1 %vm5456_vm5, %v14619_v4 }
 0x985   : > { %v7476_v24 = vadd.s32 %v7444_v62, %v7412_v53  ;;  %vm7507_vm11 = vcmp.eq.s32.totalorder %v20954_v30, %v7475_v61  ;;  %v7999_v62 = vld [vmem:[#allocation5] sm:$0xff]  ;;  %v8120_v61 = vrot.slane %v22612_v41, 7 }
 0x986   : > { %v14629_v8 = vsel %vm7507_vm11, 1.0, %v25071_v26 }
 0x987   : > { %17513 = vmatmul.mubr.msk.f32.gmra.mrb[116].mxu1 %vm5456_vm5, %v14620_v5  ;;  %vm7508_vm12 = vcmp.eq.s32.totalorder %v20954_v30, %v7476_v24 }
 0x988   : > { %17515 = vmatprep.mubr.msk.f32.mxu1 %vm5456_vm5, %v14621_v52  ;;  %v14630_v10 = vsel %vm7508_vm12, 1.0, %v25071_v26 }
 0x98b   : > { %17516 = vmatmul.mubr.msk.f32.gmra.mrb[118].mxu1 %vm5456_vm5, %v14622_v43 }
 0x98c   : > { %17518 = vmatprep.mubr.msk.f32.mxu1 %vm5456_vm5, %v14623_v25 }
 0x98f   : > { %17519 = vmatmul.mubr.msk.f32.gmra.mrb[120].mxu1 %vm5456_vm5, %v14624_v29 }
 0x990   : > { %17521 = vmatprep.mubr.msk.f32.mxu1 %vm5456_vm5, %v14625_v60 }
 0x993   : > { %17522 = vmatmul.mubr.msk.f32.gmra.mrb[122].mxu1 %vm5456_vm5, %v14626_v16 }
 0x994   : > { %17524 = vmatprep.mubr.msk.f32.mxu1 %vm5456_vm5, %v14627_v39 }
 0x997   : > { %17525 = vmatmul.mubr.msk.f32.gmra.mrb[124].mxu1 %vm5456_vm5, %v14628_v3 }
 0x998   : > { %17527 = vmatprep.mubr.msk.f32.mxu1 %vm5456_vm5, %v14629_v8  ;;  %v8119_v8 = vrot.slane %v7999_v62, 7 }
 0x99b   : > { %17528 = vmatmul.mubr.msk.f32.gmra.mrb[126].mxu1 %vm5456_vm5, %v14630_v10 }
 0xa32   : > { %v17484_v15 = vpop.f32.mrb[96].mxu1 }
 0xa33   : > { %7968 = vst.msk [vmem:[#allocation5 + $0x30] sm:$0xff] %vm6000_vm10, %v17484_v15  ;;  %v7735_v27 = vpop.f32.mrb[97].mxu1  ;;  %v8122_v15 = vrot.slane %v22616_v48, 7 }
 0xa34   : > { %7967 = vst.msk [vmem:[#allocation5 + $0x28] sm:$0xff] %vm6000_vm10, %v7735_v27  ;;  %v8003_v27 = vld [vmem:[#allocation5 + $0x20] sm:$0xff] }
 0xa36   : > { %v17487_v30 = vpop.f32.mrb[98].mxu1 }
 0xa37   : > { %7970 = vst.msk [vmem:[#allocation5 + $0x50] sm:$0xff] %vm6000_vm10, %v17487_v30  ;;  %v7745_v37 = vpop.f32.mrb[99].mxu1 }
 0xa38   : > { %7969 = vst.msk [vmem:[#allocation5 + $0x48] sm:$0xff] %vm6000_vm10, %v7745_v37  ;;  %v8121_v37 = vsel %vm645_vm3, %v8119_v8, %v8120_v61 }
 0xa3a   : > { %v17490_v26 = vpop.f32.mrb[100].mxu1  ;;  %v22647_v17 = vld [vmem:[#allocation5 + $0x30] sm:$0xff] }
 0xa3b   : > { %7972 = vst.msk [vmem:[#allocation5 + $0x70] sm:$0xff] %vm6000_vm10, %v17490_v26  ;;  %v7755_v11 = vpop.f32.mrb[101].mxu1  ;;  %v22642_v0 = vld [vmem:[#allocation5 + $0x28] sm:$0xff]  ;;  %25076 = vst [vmem:[#allocation11_spill] sm:$0xff] %v22647_v17 }
 0xa3c   : > { %7971 = vst.msk [vmem:[#allocation5 + $0x68] sm:$0xff] %vm6000_vm10, %v7755_v11  ;;  %17535 = vmatprep.mubr.msk.f32.mxu0 %vm6000_vm10, %v22642_v0  ;;  %v8125_v11 = vrot.slane %v22642_v0, 7 }
 0xa3d   : > { %17536 = vmatmul.mubr.msk.f32.gmra.mrb[34].mxu0 %vm6000_vm10, %v22647_v17 }
 0xa3e   : > { %v17493_v47 = vpop.f32.mrb[102].mxu1  ;;  %v22657_v28 = vld [vmem:[#allocation5 + $0x50] sm:$0xff] }
 0xa3f   : > { %7974 = vst.msk [vmem:[#allocation5 + $0x90] sm:$0xff] %vm6000_vm10, %v17493_v47  ;;  %v7765_v21 = vpop.f32.mrb[103].mxu1  ;;  %v22652_v4 = vld [vmem:[#allocation5 + $0x48] sm:$0xff]  ;;  %v8124_v47 = vrot.slane %v8003_v27, 7 }
 0xa40   : > { %7973 = vst.msk [vmem:[#allocation5 + $0x88] sm:$0xff] %vm6000_vm10, %v7765_v21  ;;  %17538 = vmatprep.mubr.msk.f32.mxu0 %vm6000_vm10, %v22652_v4  ;;  %v8123_v21 = vsel %vm645_vm3, %v8120_v61, %v8122_v15  ;;  %v8023_v61 = vld [vmem:[#allocation5 + $0xc0] sm:$0xff] }
 0xa41   : > { %17539 = vmatmul.mubr.msk.f32.gmra.mrb[36].mxu0 %vm6000_vm10, %v22657_v28 }
 0xa42   : > { %v17496_v38 = vpop.f32.mrb[104].mxu1  ;;  %v22667_v31 = vld [vmem:[#allocation5 + $0x70] sm:$0xff] }
 0xa43   : > { %7976 = vst.msk [vmem:[#allocation5 + $0xb0] sm:$0xff] %vm6000_vm10, %v17496_v38  ;;  %v7775_v40 = vpop.f32.mrb[105].mxu1  ;;  %v22662_v7 = vld [vmem:[#allocation5 + $0x68] sm:$0xff]  ;;  %v8007_v38 = vld [vmem:[#allocation5 + $0x40] sm:$0xff] }
 0xa44   : > { %7975 = vst.msk [vmem:[#allocation5 + $0xa8] sm:$0xff] %vm6000_vm10, %v7775_v40  ;;  %17541 = vmatprep.mubr.msk.f32.mxu0 %vm6000_vm10, %v22662_v7  ;;  %v8127_v40 = vrot.slane %v22647_v17, 7 }
 0xa45   : > { %17542 = vmatmul.mubr.msk.f32.gmra.mrb[38].mxu0 %vm6000_vm10, %v22667_v31 }
 0xa46   : > { %v17499_v49 = vpop.f32.mrb[106].mxu1  ;;  %v22677_v6 = vld [vmem:[#allocation5 + $0x90] sm:$0xff] }
 0xa47   : > { %7978 = vst.msk [vmem:[#allocation5 + $0xd0] sm:$0xff] %vm6000_vm10, %v17499_v49  ;;  %v7785_v19 = vpop.f32.mrb[107].mxu1  ;;  %v22672_v13 = vld [vmem:[#allocation5 + $0x88] sm:$0xff]  ;;  %v22797_v49 = vld [vmem:[%s24741_s7 + $0x18] sm:$0xff] }
 0xa48   : > { %7977 = vst.msk [vmem:[#allocation5 + $0xc8] sm:$0xff] %vm6000_vm10, %v7785_v19  ;;  %17544 = vmatprep.mubr.msk.f32.mxu0 %vm6000_vm10, %v22672_v13  ;;  %v22801_v19 = vsel %vm645_vm3, %v8124_v47, %v8125_v11  ;;  %v8027_v47 = vld [vmem:[#allocation5 + $0xe0] sm:$0xff] }
 0xa49   : > { %17545 = vmatmul.mubr.msk.f32.gmra.mrb[40].mxu0 %vm6000_vm10, %v22677_v6 }
 0xa4a   : > { %v17502_v59 = vpop.f32.mrb[108].mxu1  ;;  %v22687_v52 = vld [vmem:[#allocation5 + $0xb0] sm:$0xff] }
 0xa4b   : > { %7980 = vst.msk [vmem:[#allocation5 + $0xf0] sm:$0xff] %vm6000_vm10, %v17502_v59  ;;  %v7795_v2 = vpop.f32.mrb[109].mxu1  ;;  %v22682_v5 = vld [vmem:[#allocation5 + $0xa8] sm:$0xff]  ;;  %v8129_v59 = vrot.slane %v8007_v38, 7  ;;  %v8147_v15 = vrot.slane %v22687_v52, 7 }
 0xa4c   : > { %7979 = vst.msk [vmem:[#allocation5 + $0xe8] sm:$0xff] %vm6000_vm10, %v7795_v2  ;;  %17547 = vmatprep.mubr.msk.f32.mxu0 %vm6000_vm10, %v22682_v5  ;;  %v8130_v2 = vrot.slane %v22652_v4, 7  ;;  %v8145_v62 = vrot.slane %v22682_v5, 7 }
 0xa4d   : > { %17548 = vmatmul.mubr.msk.f32.gmra.mrb[42].mxu0 %vm6000_vm10, %v22687_v52 }
 0xa4e   : > { %v17505_v50 = vpop.f32.mrb[110].mxu1  ;;  %v22697_v58 = vld [vmem:[#allocation5 + $0xd0] sm:$0xff] }
 0xa4f   : > { %7982 = vst.msk [vmem:[#allocation5 + $0x110] sm:$0xff] %vm6000_vm10, %v17505_v50  ;;  %v7805_v23 = vpop.f32.mrb[111].mxu1  ;;  %v22692_v36 = vld [vmem:[#allocation5 + $0xc8] sm:$0xff]  ;;  %v8011_v50 = vld [vmem:[#allocation5 + $0x60] sm:$0xff]  ;;  %v8152_v38 = vrot.slane %v22697_v58, 7 }
 0xa50   : > { %7981 = vst.msk [vmem:[#allocation5 + $0x108] sm:$0xff] %vm6000_vm10, %v7805_v23  ;;  %17550 = vmatprep.mubr.msk.f32.mxu0 %vm6000_vm10, %v22692_v36  ;;  %v22809_v23 = vsel %vm645_vm3, %v8125_v11, %v8127_v40  ;;  %v8150_v11 = vrot.slane %v22692_v36, 7 }
 0xa51   : > { %17551 = vmatmul.mubr.msk.f32.gmra.mrb[44].mxu0 %vm6000_vm10, %v22697_v58 }
 0xa52   : > { %v17508_v1 = vpop.f32.mrb[112].mxu1  ;;  %v22707_v46 = vld [vmem:[#allocation5 + $0xf0] sm:$0xff] }
 0xa53   : > { %7984 = vst.msk [vmem:[#allocation5 + $0x130] sm:$0xff] %vm6000_vm10, %v17508_v1  ;;  %v7815_v56 = vpop.f32.mrb[113].mxu1  ;;  %v22702_v42 = vld [vmem:[#allocation5 + $0xe8] sm:$0xff]  ;;  %v8132_v1 = vrot.slane %v22657_v28, 7 }
 0xa54   : > { %7983 = vst.msk [vmem:[#allocation5 + $0x128] sm:$0xff] %vm6000_vm10, %v7815_v56  ;;  %17553 = vmatprep.mubr.msk.f32.mxu0 %vm6000_vm10, %v22702_v42  ;;  %v22815_v56 = vsel %vm645_vm3, %v8129_v59, %v8130_v2  ;;  %v8154_v59 = vrot.slane %v8027_v47, 7 }
 0xa55   : > { %17554 = vmatmul.mubr.msk.f32.gmra.mrb[46].mxu0 %vm6000_vm10, %v22707_v46 }
 0xa56   : > { %v17511_v43 = vpop.f32.mrb[114].mxu1  ;;  %v22717_v63 = vld [vmem:[#allocation5 + $0x110] sm:$0xff] }
 0xa57   : > { %7986 = vst.msk [vmem:[#allocation5 + $0x150] sm:$0xff] %vm6000_vm10, %v17511_v43  ;;  %v7825_v25 = vpop.f32.mrb[115].mxu1  ;;  %v22712_v35 = vld [vmem:[#allocation5 + $0x108] sm:$0xff]  ;;  %v8134_v43 = vrot.slane %v8011_v50, 7  ;;  %v8031_v50 = vld [vmem:[#allocation5 + $0x100] sm:$0xff] }
 0xa58   : > { %7985 = vst.msk [vmem:[#allocation5 + $0x148] sm:$0xff] %vm6000_vm10, %v7825_v25  ;;  %17556 = vmatprep.mubr.msk.f32.mxu0 %vm6000_vm10, %v22712_v35  ;;  %v8135_v25 = vrot.slane %v22662_v7, 7 }
 0xa59   : > { %17557 = vmatmul.mubr.msk.f32.gmra.mrb[48].mxu0 %vm6000_vm10, %v22717_v63 }
 0xa5a   : > { %v17514_v57 = vpop.f32.mrb[116].mxu1  ;;  %v22727_v60 = vld [vmem:[#allocation5 + $0x130] sm:$0xff] }
 0xa5b   : > { %7988 = vst.msk [vmem:[#allocation5 + $0x170] sm:$0xff] %vm6000_vm10, %v17514_v57  ;;  %v7835_v54 = vpop.f32.mrb[117].mxu1  ;;  %v22722_v29 = vld [vmem:[#allocation5 + $0x128] sm:$0xff]  ;;  %v22821_v57 = vsel %vm645_vm3, %v8130_v2, %v8132_v1  ;;  %v8155_v2 = vrot.slane %v22702_v42, 7  ;;  %v22869_v1 = vsel %vm645_vm3, %v8150_v11, %v8152_v38 }
 0xa5c   : > { %7987 = vst.msk [vmem:[#allocation5 + $0x168] sm:$0xff] %vm6000_vm10, %v7835_v54  ;;  %17559 = vmatprep.mubr.msk.f32.mxu0 %vm6000_vm10, %v22722_v29  ;;  %v8137_v54 = vrot.slane %v22667_v31, 7 }
 0xa5d   : > { %17560 = vmatmul.mubr.msk.f32.gmra.mrb[50].mxu0 %vm6000_vm10, %v22727_v60 }
 0xa5e   : > { %v17517_v20 = vpop.f32.mrb[118].mxu1  ;;  %v22737_v3 = vld [vmem:[#allocation5 + $0x150] sm:$0xff] }
 0xa5f   : > { %7990 = vst.msk [vmem:[#allocation5 + $0x190] sm:$0xff] %vm6000_vm10, %v17517_v20  ;;  %v7845_v16 = vpop.f32.mrb[119].mxu1  ;;  %v22732_v39 = vld [vmem:[#allocation5 + $0x148] sm:$0xff]  ;;  %v22827_v20 = vsel %vm645_vm3, %v8134_v43, %v8135_v25  ;;  %v8157_v43 = vrot.slane %v22707_v46, 7 }
 0xa60   : > { %7989 = vst.msk [vmem:[#allocation5 + $0x188] sm:$0xff] %vm6000_vm10, %v7845_v16  ;;  %17562 = vmatprep.mubr.msk.f32.mxu0 %vm6000_vm10, %v22732_v39  ;;  %v8170_v38 = vrot.slane %v22732_v39, 7 }
 0xa61   : > { %17563 = vmatmul.mubr.msk.f32.gmra.mrb[52].mxu0 %vm6000_vm10, %v22737_v3 }
 0xa62   : > { %v17520_v34 = vpop.f32.mrb[120].mxu1  ;;  %v22747_v51 = vld [vmem:[#allocation5 + $0x170] sm:$0xff] }
 0xa63   : > { %7992 = vst.msk [vmem:[#allocation5 + $0x1b0] sm:$0xff] %vm6000_vm10, %v17520_v34  ;;  %v7855_v22 = vpop.f32.mrb[121].mxu1  ;;  %v22742_v55 = vld [vmem:[#allocation5 + $0x168] sm:$0xff]  ;;  %v8140_v34 = vrot.slane %v22672_v13, 7 }
 0xa64   : > { %7991 = vst.msk [vmem:[#allocation5 + $0x1a8] sm:$0xff] %vm6000_vm10, %v7855_v22  ;;  %17565 = vmatprep.mubr.msk.f32.mxu0 %vm6000_vm10, %v22742_v55  ;;  %v8019_v22 = vld [vmem:[#allocation5 + $0xa0] sm:$0xff] }
 0xa65   : > { %17566 = vmatmul.mubr.msk.f32.gmra.mrb[54].mxu0 %vm6000_vm10, %v22747_v51 }
 0xa66   : > { %v17523_v12 = vpop.f32.mrb[122].mxu1  ;;  %v22757_v32 = vld [vmem:[#allocation5 + $0x190] sm:$0xff] }
 0xa67   : > { %7994 = vst.msk [vmem:[#allocation5 + $0x1d0] sm:$0xff] %vm6000_vm10, %v17523_v12  ;;  %v7865_v45 = vpop.f32.mrb[123].mxu1  ;;  %v22752_v14 = vld [vmem:[#allocation5 + $0x188] sm:$0xff]  ;;  %v22833_v12 = vsel %vm645_vm3, %v8135_v25, %v8137_v54  ;;  %v22875_v25 = vsel %vm645_vm3, %v8154_v59, %v8155_v2  ;;  %v8160_v54 = vrot.slane %v22712_v35, 7  ;;  %v8043_v59 = vld [vmem:[#allocation5 + $0x160] sm:$0xff] }
 0xa68   : > { %7993 = vst.msk [vmem:[#allocation5 + $0x1c8] sm:$0xff] %vm6000_vm10, %v7865_v45  ;;  %17568 = vmatprep.mubr.msk.f32.mxu0 %vm6000_vm10, %v22752_v14  ;;  %v8142_v45 = vrot.slane %v22677_v6, 7 }
 0xa69   : > { %17569 = vmatmul.mubr.msk.f32.gmra.mrb[56].mxu0 %vm6000_vm10, %v22757_v32 }
 0xa6a   : > { %v17526_v9 = vpop.f32.mrb[124].mxu1  ;;  %v22767_v53 = vld [vmem:[#allocation5 + $0x1b0] sm:$0xff]  ;;  %v22845_v8 = vsel %vm645_vm3, %v8140_v34, %v8142_v45 }
 0xa6b   : > { %7996 = vst.msk [vmem:[#allocation5 + $0x1f0] sm:$0xff] %vm6000_vm10, %v17526_v9  ;;  %v7875_v33 = vpop.f32.mrb[125].mxu1  ;;  %v22762_v44 = vld [vmem:[#allocation5 + $0x1a8] sm:$0xff] }
 0xa6c   : > { %7995 = vst.msk [vmem:[#allocation5 + $0x1e8] sm:$0xff] %vm6000_vm10, %v7875_v33  ;;  %17571 = vmatprep.mubr.msk.f32.mxu0 %vm6000_vm10, %v22762_v44  ;;  %v8144_v33 = vrot.slane %v8019_v22, 7  ;;  %v8162_v22 = vrot.slane %v22717_v63, 7 }
 0xa6d   : > { %17572 = vmatmul.mubr.msk.f32.gmra.mrb[58].mxu0 %vm6000_vm10, %v22767_v53 }
 0xa6e   : > { %v22776_v10 = vld [vmem:[#allocation5 + $0x1d0] sm:$0xff]  ;;  %v22851_v27 = vsel %vm645_vm3, %v8144_v33, %v8145_v62 }
 0xa6f   : > { %v22772_v24 = vld [vmem:[#allocation5 + $0x1c8] sm:$0xff] }
 0xa70   : > { %17574 = vmatprep.mubr.msk.f32.mxu0 %vm6000_vm10, %v22772_v24 }
 0xa71   : > { %17575 = vmatmul.mubr.msk.f32.gmra.mrb[60].mxu0 %vm6000_vm10, %v22776_v10 }
 0xa72   : > { %v22786_v26 = vld [vmem:[#allocation5 + $0x1f0] sm:$0xff] }
 0xa73   : > { %v22781_v30 = vld [vmem:[#allocation5 + $0x1e8] sm:$0xff] }
 0xa74   : > { %17577 = vmatprep.mubr.msk.f32.mxu0 %vm6000_vm10, %v22781_v30 }
 0xa75   : > { %17578 = vmatmul.mubr.msk.f32.gmra.mrb[62].mxu0 %vm6000_vm10, %v22786_v26 }
 0xa76   : > { %17582 = vmatprep.mubr.msk.f32.mxu0 %vm6000_vm10, %v8121_v37  ;;  %v8149_v37 = vrot.slane %v8023_v61, 7  ;;  %v8039_v61 = vld [vmem:[#allocation5 + $0x140] sm:$0xff] }
 0xa77   : > { %v8169_v47 = vrot.slane %v8039_v61, 7 }
 0xa78   : > { %v22863_v40 = vsel %vm645_vm3, %v8149_v37, %v8150_v11  ;;  %v8167_v37 = vrot.slane %v22727_v60, 7 }
 0xa79   : > { %17583 = vmatmul.mubr.msk.f32.vlgmr.msra.gmra.mrb[32].mxu0 %vm6000_vm10, %v8123_v21  ;;  %v22857_v21 = vsel %vm645_vm3, %v8145_v62, %v8147_v15  ;;  %v8165_v62 = vrot.slane %v22722_v29, 7  ;;  %v22893_v15 = vsel %vm645_vm3, %v8160_v54, %v8162_v22 }
 0xa7a   : > { %17585 = vmatprep.mubr.msk.f32.mxu0 %vm6000_vm10, %v22801_v19  ;;  %17631 = vmatpush3.msra.mxu0 %v22634_v18  ;;  %v8015_v18 = vld [vmem:[#allocation5 + $0x80] sm:$0xff] }
 0xa7b   : > { %17680 = vmatprep.subr.mxu0 %v22797_v49  ;;  %v8139_v16 = vrot.slane %v8015_v18, 7  ;;  %v8159_v18 = vrot.slane %v8031_v50, 7  ;;  %v8172_v50 = vrot.slane %v22737_v3, 7 }
 0xa7d   : > { %17586 = vmatmul.mubr.msk.f32.gmra.mrb[34].mxu0 %vm6000_vm10, %v22809_v23  ;;  %v22839_v9 = vsel %vm645_vm3, %v8139_v16, %v8140_v34  ;;  %v8035_v16 = vld [vmem:[#allocation5 + $0x120] sm:$0xff]  ;;  %v22881_v34 = vsel %vm645_vm3, %v8155_v2, %v8157_v43  ;;  %v22887_v45 = vsel %vm645_vm3, %v8159_v18, %v8160_v54  ;;  %v22905_v2 = vsel %vm645_vm3, %v8165_v62, %v8167_v37 }
 0xa7e   : > { %17588 = vmatprep.mubr.msk.f32.mxu0 %vm6000_vm10, %v22815_v56  ;;  %v8164_v33 = vrot.slane %v8035_v16, 7  ;;  %v22911_v43 = vsel %vm645_vm3, %v8169_v47, %v8170_v38  ;;  %v8174_v18 = vrot.slane %v8043_v59, 7  ;;  %v8175_v54 = vrot.slane %v22742_v55, 7  ;;  %v8047_v16 = vld [vmem:[#allocation5 + $0x180] sm:$0xff] }
 0xa7f   : > { %25077 = vst [vmem:[#allocation19_spill] sm:$0xff] %v22911_v43  ;;  %v22917_v22 = vsel %vm645_vm3, %v8170_v38, %v8172_v50  ;;  %v8179_v61 = vrot.slane %v8047_v16, 7  ;;  %v8180_v37 = vrot.slane %v22752_v14, 7  ;;  %v8051_v47 = vld [vmem:[#allocation5 + $0x1a0] sm:$0xff]  ;;  %v8182_v38 = vrot.slane %v22757_v32, 7 }
 0xa80   : > { %v22899_v11 = vsel %vm645_vm3, %v8164_v33, %v8165_v62  ;;  %25078 = vst [vmem:[#allocation7_spill] sm:$0xff] %v22917_v22  ;;  %v8177_v33 = vrot.slane %v22747_v51, 7  ;;  %v22923_v62 = vsel %vm645_vm3, %v8174_v18, %v8175_v54  ;;  %v8184_v18 = vrot.slane %v8051_v47, 7 }
 0xa81   : > { %17589 = vmatmul.mubr.msk.f32.gmra.mrb[36].mxu0 %vm6000_vm10, %v22821_v57  ;;  %25079 = vst [vmem:[#allocation8_spill] sm:$0xff] %v22923_v62  ;;  %v22935_v50 = vsel %vm645_vm3, %v8179_v61, %v8180_v37  ;;  %v8185_v16 = vrot.slane %v22762_v44, 7 }
 0xa82   : > { %17591 = vmatprep.mubr.msk.f32.mxu0 %vm6000_vm10, %v22827_v20  ;;  %v22929_v59 = vsel %vm645_vm3, %v8175_v54, %v8177_v33  ;;  %25081 = vst [vmem:[#allocation36_spill] sm:$0xff] %v22935_v50  ;;  %v22942_v33 = vsel %vm645_vm3, %v8180_v37, %v8182_v38  ;;  %v8192_v38 = vrot.slane %v22776_v10, 7 }
 0xa83   : > { %25080 = vst [vmem:[#allocation22_spill] sm:$0xff] %v22929_v59  ;;  %25082 = vst [vmem:[#allocation38_spill] sm:$0xff] %v22942_v33  ;;  %v22949_v61 = vsel %vm645_vm3, %v8184_v18, %v8185_v16 }
 0xa84   : > { %25083 = vst [vmem:[#allocation39_spill] sm:$0xff] %v22949_v61 }
 0xa85   : > { %17592 = vmatmul.mubr.msk.f32.gmra.mrb[38].mxu0 %vm6000_vm10, %v22833_v12 }
 0xa86   : > { %17594 = vmatprep.mubr.msk.f32.mxu0 %vm6000_vm10, %v22839_v9 }
 0xa89   : > { %17595 = vmatmul.mubr.msk.f32.gmra.mrb[40].mxu0 %vm6000_vm10, %v22845_v8 }
 0xa8a   : > { %17597 = vmatprep.mubr.msk.f32.mxu0 %vm6000_vm10, %v22851_v27 }
 0xa8d   : > { %17598 = vmatmul.mubr.msk.f32.gmra.mrb[42].mxu0 %vm6000_vm10, %v22857_v21 }
 0xa8e   : > { %17600 = vmatprep.mubr.msk.f32.mxu0 %vm6000_vm10, %v22863_v40 }
 0xa91   : > { %17601 = vmatmul.mubr.msk.f32.gmra.mrb[44].mxu0 %vm6000_vm10, %v22869_v1 }
 0xa92   : > { %17603 = vmatprep.mubr.msk.f32.mxu0 %vm6000_vm10, %v22875_v25 }
 0xa95   : > { %17604 = vmatmul.mubr.msk.f32.gmra.mrb[46].mxu0 %vm6000_vm10, %v22881_v34 }
 0xa96   : > { %17606 = vmatprep.mubr.msk.f32.mxu0 %vm6000_vm10, %v22887_v45 }
 0xa99   : > { %17607 = vmatmul.mubr.msk.f32.gmra.mrb[48].mxu0 %vm6000_vm10, %v22893_v15 }
 0xa9a   : > { %17609 = vmatprep.mubr.msk.f32.mxu0 %vm6000_vm10, %v22899_v11 }
 0xa9d   : > { %17610 = vmatmul.mubr.msk.f32.gmra.mrb[50].mxu0 %vm6000_vm10, %v22905_v2 }
 0xa9e   : > { %17612 = vmatprep.mubr.msk.f32.mxu0 %vm6000_vm10, %v22911_v43  ;;  %v8187_v43 = vrot.slane %v22767_v53, 7 }
 0xaa0   : > { %v22955_v37 = vsel %vm645_vm3, %v8185_v16, %v8187_v43  ;;  %v8002_v43 = vld [vmem:[#allocation5 + $0x18] sm:$0xff] }
 0xaa1   : > { %17613 = vmatmul.mubr.msk.f32.gmra.mrb[52].mxu0 %vm6000_vm10, %v22917_v22  ;;  %v8055_v22 = vld [vmem:[#allocation5 + $0x1c0] sm:$0xff] }
 0xaa2   : > { %17615 = vmatprep.mubr.msk.f32.mxu0 %vm6000_vm10, %v22923_v62  ;;  %v17529_v62 = vpop.f32.mrb[126].mxu1  ;;  %v8189_v47 = vrot.slane %v8055_v22, 7  ;;  %v8195_v22 = vrot.slane %v22781_v30, 7 }
 0xaa3   : > { %7998 = vst.msk [vmem:[#allocation5 + $0x210] sm:$0xff] %vm6000_vm10, %v17529_v62  ;;  %v7885_v54 = vpop.f32.mrb[127].mxu1  ;;  %v8059_v62 = vld [vmem:[#allocation5 + $0x1e0] sm:$0xff] }
 0xaa4   : > { %7997 = vst.msk [vmem:[#allocation5 + $0x208] sm:$0xff] %vm6000_vm10, %v7885_v54  ;;  %v8194_v18 = vrot.slane %v8059_v62, 7  ;;  %v8799_v62 = vrot.slane %v8002_v43, 1  ;;  %v8807_v43 = vrot.slane %v22657_v28, 1 }
 0xaa5   : > { %17616 = vmatmul.mubr.msk.f32.gmra.mrb[54].mxu0 %vm6000_vm10, %v22929_v59  ;;  %v8197_v59 = vrot.slane %v22786_v26, 7 }
 0xaa6   : > { %17618 = vmatprep.mubr.msk.f32.mxu0 %vm6000_vm10, %v22935_v50  ;;  %v8190_v50 = vrot.slane %v22772_v24, 7 }
 0xaa8   : > { %v22961_v54 = vsel %vm645_vm3, %v8189_v47, %v8190_v50  ;;  %v22969_v16 = vsel %vm645_vm3, %v8190_v50, %v8192_v38  ;;  %v22975_v47 = vsel %vm645_vm3, %v8194_v18, %v8195_v22  ;;  %v8801_v50 = vrot.slane %v22642_v0, 1 }
 0xaa9   : > { %17619 = vmatmul.mubr.msk.f32.gmra.mrb[56].mxu0 %vm6000_vm10, %v22942_v33  ;;  %25084 = vst [vmem:[#allocation43_spill] sm:$0xff] %v22961_v54  ;;  %v8797_v33 = vrot.slane %v22616_v48, 1  ;;  %25085 = vst [vmem:[#allocation12_spill] sm:$0xff] %v22969_v16  ;;  %v22981_v48 = vsel %vm645_vm3, %v8195_v22, %v8197_v59  ;;  %v8802_v38 = vrot.slane %v22647_v17, 1  ;;  %v8806_v22 = vrot.slane %v22652_v4, 1  ;;  %v8010_v17 = vld [vmem:[#allocation5 + $0x58] sm:$0xff] }
 0xaaa   : > { %17621 = vmatprep.mubr.msk.f32.mxu0 %vm6000_vm10, %v22949_v61  ;;  %v8796_v61 = vrot.slane %v22612_v41, 1  ;;  %25086 = vst [vmem:[#allocation13_spill] sm:$0xff] %v22975_v47 }
 0xaab   : > { %v8800_v18 = vsel %vm1330_vm2, %v8797_v33, %v8799_v62  ;;  %v22996_v59 = vsel %vm1330_vm2, %v8801_v50, %v8802_v38  ;;  %v23010_v62 = vsel %vm1330_vm2, %v8806_v22, %v8807_v43  ;;  %v8812_v50 = vrot.slane %v22667_v31, 1 }
 0xaac   : > { %v8798_v41 = vsel %vm1330_vm2, %v8796_v61, %v8797_v33  ;;  %v22992_v61 = vld [vmem:[%s24741_s7 + $0x20] sm:$0xff]  ;;  %25088 = vst [vmem:[#allocation15_spill] sm:$0xff] %v23010_v62  ;;  %v8817_v22 = vrot.slane %v22677_v6, 1 }
 0xaad   : > { %17622 = vmatmul.mubr.msk.f32.gmra.mrb[58].mxu0 %vm6000_vm10, %v22955_v37 }
 0xaae   : > { %17624 = vmatprep.mubr.msk.f32.mxu0 %vm6000_vm10, %v22961_v54 }
 0xab1   : > { %17625 = vmatmul.mubr.msk.f32.gmra.mrb[60].mxu0 %vm6000_vm10, %v22969_v16  ;;  %v8006_v16 = vld [vmem:[#allocation5 + $0x38] sm:$0xff] }
 0xab2   : > { %17627 = vmatprep.mubr.msk.f32.mxu0 %vm6000_vm10, %v22975_v47  ;;  %v8804_v54 = vrot.slane %v8006_v16, 1  ;;  %v8809_v16 = vrot.slane %v8010_v17, 1 }
 0xab4   : > { %v23005_v33 = vsel %vm1330_vm2, %v8802_v38, %v8804_v54  ;;  %v8816_v38 = vrot.slane %v22672_v13, 1 }
 0xab5   : > { %17628 = vmatmul.mubr.msk.f32.gmra.mrb[62].mxu0 %vm6000_vm10, %v22981_v48  ;;  %25087 = vst [vmem:[#allocation14_spill] sm:$0xff] %v23005_v33 }
 0xab6   : > { %17632 = vmatprep.mubr.msk.f32.mxu0 %vm6000_vm10, %v8798_v41  ;;  %v8811_v41 = vrot.slane %v22662_v7, 1 }
 0xab8   : > { %v23022_v17 = vsel %vm1330_vm2, %v8811_v41, %v8812_v50  ;;  %v8821_v41 = vrot.slane %v22682_v5, 1 }
 0xab9   : > { %17633 = vmatmul.mubr.msk.f32.vlgmr.msra.gmra.mrb[32].mxu0 %vm6000_vm10, %v8800_v18  ;;  %v8014_v18 = vld [vmem:[#allocation5 + $0x78] sm:$0xff]  ;;  %25090 = vst [vmem:[#allocation17_spill] sm:$0xff] %v23022_v17 }
 0xaba   : > { %17635 = vmatprep.mubr.msk.f32.mxu0 %vm6000_vm10, %v22996_v59  ;;  %17681 = vmatpush3.msra.mxu0 %v22797_v49  ;;  %v23017_v49 = vsel %vm1330_vm2, %v8807_v43, %v8809_v16  ;;  %v8814_v54 = vrot.slane %v8014_v18, 1  ;;  %v23034_v16 = vsel %vm1330_vm2, %v8816_v38, %v8817_v22  ;;  %v8822_v18 = vrot.slane %v22687_v52, 1 }
 0xabb   : > { %17730 = vmatprep.subr.mxu0 %v22992_v61  ;;  %25089 = vst [vmem:[#allocation16_spill] sm:$0xff] %v23017_v49  ;;  %25092 = vst [vmem:[#allocation20_spill] sm:$0xff] %v23034_v16  ;;  %v8827_v38 = vrot.slane %v22697_v58, 1 }
 0xabd   : > { %17636 = vmatmul.mubr.msk.f32.gmra.mrb[34].mxu0 %vm6000_vm10, %v23005_v33  ;;  %v8018_v33 = vld [vmem:[#allocation5 + $0x98] sm:$0xff] }
 0xabe   : > { %17638 = vmatprep.mubr.msk.f32.mxu0 %vm6000_vm10, %v23010_v62  ;;  %v23029_v62 = vsel %vm1330_vm2, %v8812_v50, %v8814_v54  ;;  %v8819_v43 = vrot.slane %v8018_v33, 1  ;;  %v23046_v33 = vsel %vm1330_vm2, %v8821_v41, %v8822_v18  ;;  %v8826_v54 = vrot.slane %v22692_v36, 1 }
 0xabf   : > { %25091 = vst [vmem:[#allocation18_spill] sm:$0xff] %v23029_v62  ;;  %25094 = vst [vmem:[#allocation9_spill] sm:$0xff] %v23046_v33  ;;  %v8832_v41 = vrot.slane %v22707_v46, 1 }
 0xac1   : > { %17639 = vmatmul.mubr.msk.f32.gmra.mrb[36].mxu0 %vm6000_vm10, %v23017_v49  ;;  %v8022_v49 = vld [vmem:[#allocation5 + $0xb8] sm:$0xff] }
 0xac2   : > { %17641 = vmatprep.mubr.msk.f32.mxu0 %vm6000_vm10, %v23022_v17  ;;  %v23041_v17 = vsel %vm1330_vm2, %v8817_v22, %v8819_v43  ;;  %v8824_v50 = vrot.slane %v8022_v49, 1  ;;  %v23058_v49 = vsel %vm1330_vm2, %v8826_v54, %v8827_v38  ;;  %v8831_v43 = vrot.slane %v22702_v42, 1 }
 0xac3   : > { %25093 = vst [vmem:[#allocation21_spill] sm:$0xff] %v23041_v17  ;;  %25096 = vst [vmem:[#allocation23_spill] sm:$0xff] %v23058_v49  ;;  %v8837_v54 = vrot.slane %v22717_v63, 1 }
 0xac5   : > { %17642 = vmatmul.mubr.msk.f32.gmra.mrb[38].mxu0 %vm6000_vm10, %v23029_v62  ;;  %v8026_v62 = vld [vmem:[#allocation5 + $0xd8] sm:$0xff] }
 0xac6   : > { %17644 = vmatprep.mubr.msk.f32.mxu0 %vm6000_vm10, %v23034_v16  ;;  %v23053_v16 = vsel %vm1330_vm2, %v8822_v18, %v8824_v50  ;;  %v8829_v22 = vrot.slane %v8026_v62, 1  ;;  %v23070_v62 = vsel %vm1330_vm2, %v8831_v43, %v8832_v41  ;;  %v8836_v50 = vrot.slane %v22712_v35, 1 }
 0xac7   : > { %25095 = vst [vmem:[#allocation10_spill] sm:$0xff] %v23053_v16  ;;  %25098 = vst [vmem:[#allocation25_spill] sm:$0xff] %v23070_v62  ;;  %v8842_v43 = vrot.slane %v22727_v60, 1 }
 0xac9   : > { %17645 = vmatmul.mubr.msk.f32.gmra.mrb[40].mxu0 %vm6000_vm10, %v23041_v17  ;;  %v8030_v17 = vld [vmem:[#allocation5 + $0xf8] sm:$0xff] }
 0xaca   : > { %17647 = vmatprep.mubr.msk.f32.mxu0 %vm6000_vm10, %v23046_v33  ;;  %v23065_v33 = vsel %vm1330_vm2, %v8827_v38, %v8829_v22  ;;  %v8834_v18 = vrot.slane %v8030_v17, 1  ;;  %v23082_v17 = vsel %vm1330_vm2, %v8836_v50, %v8837_v54  ;;  %v8841_v22 = vrot.slane %v22722_v29, 1 }
 0xacb   : > { %25097 = vst [vmem:[#allocation24_spill] sm:$0xff] %v23065_v33  ;;  %25100 = vst [vmem:[#allocation27_spill] sm:$0xff] %v23082_v17  ;;  %v8847_v50 = vrot.slane %v22737_v3, 1 }
 0xacd   : > { %17648 = vmatmul.mubr.msk.f32.gmra.mrb[42].mxu0 %vm6000_vm10, %v23053_v16  ;;  %v8034_v16 = vld [vmem:[#allocation5 + $0x118] sm:$0xff] }
 0xace   : > { %17650 = vmatprep.mubr.msk.f32.mxu0 %vm6000_vm10, %v23058_v49  ;;  %v23077_v49 = vsel %vm1330_vm2, %v8832_v41, %v8834_v18  ;;  %v8839_v38 = vrot.slane %v8034_v16, 1  ;;  %v23094_v16 = vsel %vm1330_vm2, %v8841_v22, %v8842_v43  ;;  %v8846_v18 = vrot.slane %v22732_v39, 1 }
 0xacf   : > { %25099 = vst [vmem:[#allocation26_spill] sm:$0xff] %v23077_v49  ;;  %25102 = vst [vmem:[#allocation29_spill] sm:$0xff] %v23094_v16  ;;  %v8852_v22 = vrot.slane %v22747_v51, 1 }
 0xad1   : > { %17651 = vmatmul.mubr.msk.f32.gmra.mrb[44].mxu0 %vm6000_vm10, %v23065_v33  ;;  %v8038_v33 = vld [vmem:[#allocation5 + $0x138] sm:$0xff] }
 0xad2   : > { %17653 = vmatprep.mubr.msk.f32.mxu0 %vm6000_vm10, %v23070_v62  ;;  %v23089_v62 = vsel %vm1330_vm2, %v8837_v54, %v8839_v38  ;;  %v8844_v41 = vrot.slane %v8038_v33, 1  ;;  %v23106_v33 = vsel %vm1330_vm2, %v8846_v18, %v8847_v50  ;;  %v8851_v38 = vrot.slane %v22742_v55, 1 }
 0xad3   : > { %25101 = vst [vmem:[#allocation28_spill] sm:$0xff] %v23089_v62  ;;  %25104 = vst [vmem:[#allocation31_spill] sm:$0xff] %v23106_v33  ;;  %v8857_v18 = vrot.slane %v22757_v32, 1 }
 0xad5   : > { %17654 = vmatmul.mubr.msk.f32.gmra.mrb[46].mxu0 %vm6000_vm10, %v23077_v49  ;;  %v8042_v49 = vld [vmem:[#allocation5 + $0x158] sm:$0xff] }
 0xad6   : > { %17656 = vmatprep.mubr.msk.f32.mxu0 %vm6000_vm10, %v23082_v17  ;;  %v23101_v17 = vsel %vm1330_vm2, %v8842_v43, %v8844_v41  ;;  %v8849_v54 = vrot.slane %v8042_v49, 1  ;;  %v23118_v49 = vsel %vm1330_vm2, %v8851_v38, %v8852_v22  ;;  %v8856_v41 = vrot.slane %v22752_v14, 1 }
 0xad7   : > { %25103 = vst [vmem:[#allocation30_spill] sm:$0xff] %v23101_v17  ;;  %25106 = vst [vmem:[#allocation33_spill] sm:$0xff] %v23118_v49  ;;  %v8862_v38 = vrot.slane %v22767_v53, 1 }
 0xad9   : > { %17657 = vmatmul.mubr.msk.f32.gmra.mrb[48].mxu0 %vm6000_vm10, %v23089_v62  ;;  %v8046_v62 = vld [vmem:[#allocation5 + $0x178] sm:$0xff] }
 0xada   : > { %17659 = vmatprep.mubr.msk.f32.mxu0 %vm6000_vm10, %v23094_v16  ;;  %v23113_v16 = vsel %vm1330_vm2, %v8847_v50, %v8849_v54  ;;  %v8854_v43 = vrot.slane %v8046_v62, 1  ;;  %v23130_v62 = vsel %vm1330_vm2, %v8856_v41, %v8857_v18  ;;  %v8861_v54 = vrot.slane %v22762_v44, 1 }
 0xadb   : > { %25105 = vst [vmem:[#allocation32_spill] sm:$0xff] %v23113_v16  ;;  %25108 = vst [vmem:[#allocation35_spill] sm:$0xff] %v23130_v62  ;;  %v8867_v41 = vrot.slane %v22776_v10, 1 }
 0xadd   : > { %17660 = vmatmul.mubr.msk.f32.gmra.mrb[50].mxu0 %vm6000_vm10, %v23101_v17  ;;  %v8050_v17 = vld [vmem:[#allocation5 + $0x198] sm:$0xff] }
 0xade   : > { %17662 = vmatprep.mubr.msk.f32.mxu0 %vm6000_vm10, %v23106_v33  ;;  %v23125_v33 = vsel %vm1330_vm2, %v8852_v22, %v8854_v43  ;;  %v8859_v50 = vrot.slane %v8050_v17, 1  ;;  %v23142_v17 = vsel %vm1330_vm2, %v8861_v54, %v8862_v38  ;;  %v8866_v43 = vrot.slane %v22772_v24, 1 }
 0xadf   : > { %25107 = vst [vmem:[#allocation34_spill] sm:$0xff] %v23125_v33  ;;  %25110 = vst [vmem:[#allocation40_spill] sm:$0xff] %v23142_v17  ;;  %v8872_v54 = vrot.slane %v22786_v26, 1 }
 0xae1   : > { %17663 = vmatmul.mubr.msk.f32.gmra.mrb[52].mxu0 %vm6000_vm10, %v23113_v16  ;;  %v8054_v16 = vld [vmem:[#allocation5 + $0x1b8] sm:$0xff] }
 0xae2   : > { %17665 = vmatprep.mubr.msk.f32.mxu0 %vm6000_vm10, %v23118_v49  ;;  %v23137_v49 = vsel %vm1330_vm2, %v8857_v18, %v8859_v50  ;;  %v8864_v22 = vrot.slane %v8054_v16, 1  ;;  %v23154_v16 = vsel %vm1330_vm2, %v8866_v43, %v8867_v41  ;;  %v8871_v50 = vrot.slane %v22781_v30, 1  ;;  %v25116_v43 = vld [vmem:[#allocation22_spill] sm:$0xff] }
 0xae3   : > { %25109 = vst [vmem:[#allocation37_spill] sm:$0xff] %v23137_v49 }
 0xae5   : > { %17666 = vmatmul.mubr.msk.f32.gmra.mrb[54].mxu0 %vm6000_vm10, %v23125_v33  ;;  %v8058_v33 = vld [vmem:[#allocation5 + $0x1d8] sm:$0xff] }
 0xae6   : > { %17668 = vmatprep.mubr.msk.f32.mxu0 %vm6000_vm10, %v23130_v62  ;;  %v23149_v62 = vsel %vm1330_vm2, %v8862_v38, %v8864_v22  ;;  %v8869_v18 = vrot.slane %v8058_v33, 1  ;;  %v23166_v33 = vsel %vm1330_vm2, %v8871_v50, %v8872_v54  ;;  %v25119_v50 = vld [vmem:[#allocation39_spill] sm:$0xff] }
 0xae7   : > { %25111 = vst [vmem:[#allocation41_spill] sm:$0xff] %v23149_v62 }
 0xae9   : > { %17669 = vmatmul.mubr.msk.f32.gmra.mrb[56].mxu0 %vm6000_vm10, %v23137_v49  ;;  %v8062_v49 = vld [vmem:[#allocation5 + $0x1f8] sm:$0xff] }
 0xaea   : > { %17671 = vmatprep.mubr.msk.f32.mxu0 %vm6000_vm10, %v23142_v17  ;;  %v23161_v17 = vsel %vm1330_vm2, %v8867_v41, %v8869_v18  ;;  %v8874_v38 = vrot.slane %v8062_v49, 1  ;;  %v14827_v49 = vld [vmem:[%s24741_s7 + $0x28] sm:$0xff]  ;;  %v25118_v18 = vld [vmem:[#allocation38_spill] sm:$0xff] }
 0xaeb   : > { %25112 = vst [vmem:[#allocation42_spill] sm:$0xff] %v23161_v17  ;;  %v25117_v41 = vld [vmem:[#allocation36_spill] sm:$0xff] }
 0xaec   : > { %v23171_v22 = vsel %vm1330_vm2, %v8872_v54, %v8874_v38  ;;  %v8063_v54 = vld [vmem:[#allocation5 + $0x200] sm:$0xff]  ;;  %v23229_v38 = vld [vmem:[#allocation5 + $0x208] sm:$0xff] }
 0xaed   : > { %17672 = vmatmul.mubr.msk.f32.gmra.mrb[58].mxu0 %vm6000_vm10, %v23149_v62 }
 0xaee   : > { %17674 = vmatprep.mubr.msk.f32.mxu0 %vm6000_vm10, %v23154_v16 }
 0xaf1   : > { %17675 = vmatmul.mubr.msk.f32.gmra.mrb[60].mxu0 %vm6000_vm10, %v23161_v17 }
 0xaf2   : > { %17677 = vmatprep.mubr.msk.f32.mxu0 %vm6000_vm10, %v23166_v33 }
 0xaf5   : > { %17678 = vmatmul.mubr.msk.f32.gmra.mrb[62].mxu0 %vm6000_vm10, %v23171_v22 }
 0xaf6   : > { %17682 = vmatprep.mubr.msk.f32.mxu0 %vm6000_vm10, %v22801_v19  ;;  %v25113_v19 = vld [vmem:[#allocation19_spill] sm:$0xff] }
 0xaf9   : > { %17683 = vmatmul.mubr.msk.f32.vlgmr.msra.gmra.mrb[32].mxu0 %vm6000_vm10, %v22809_v23  ;;  %v25114_v23 = vld [vmem:[#allocation7_spill] sm:$0xff] }
 0xafa   : > { %17685 = vmatprep.mubr.msk.f32.mxu0 %vm6000_vm10, %v22815_v56  ;;  %17731 = vmatpush3.msra.mxu0 %v22992_v61  ;;  %v25115_v61 = vld [vmem:[#allocation8_spill] sm:$0xff] }
 0xafb   : > { %17780 = vmatprep.subr.mxu0 %v14827_v49 }
 0xafd   : > { %17686 = vmatmul.mubr.msk.f32.gmra.mrb[34].mxu0 %vm6000_vm10, %v22821_v57 }
 0xafe   : > { %17688 = vmatprep.mubr.msk.f32.mxu0 %vm6000_vm10, %v22827_v20 }
 0xb01   : > { %17689 = vmatmul.mubr.msk.f32.gmra.mrb[36].mxu0 %vm6000_vm10, %v22833_v12 }
 0xb02   : > { %17691 = vmatprep.mubr.msk.f32.mxu0 %vm6000_vm10, %v22839_v9 }
 0xb05   : > { %17692 = vmatmul.mubr.msk.f32.gmra.mrb[38].mxu0 %vm6000_vm10, %v22845_v8 }
 0xb06   : > { %17694 = vmatprep.mubr.msk.f32.mxu0 %vm6000_vm10, %v22851_v27 }
 0xb09   : > { %17695 = vmatmul.mubr.msk.f32.gmra.mrb[40].mxu0 %vm6000_vm10, %v22857_v21 }
 0xb0a   : > { %17697 = vmatprep.mubr.msk.f32.mxu0 %vm6000_vm10, %v22863_v40 }
 0xb0d   : > { %17698 = vmatmul.mubr.msk.f32.gmra.mrb[42].mxu0 %vm6000_vm10, %v22869_v1 }
 0xb0e   : > { %17700 = vmatprep.mubr.msk.f32.mxu0 %vm6000_vm10, %v22875_v25 }
 0xb11   : > { %17701 = vmatmul.mubr.msk.f32.gmra.mrb[44].mxu0 %vm6000_vm10, %v22881_v34 }
 0xb12   : > { %17703 = vmatprep.mubr.msk.f32.mxu0 %vm6000_vm10, %v22887_v45 }
 0xb15   : > { %17704 = vmatmul.mubr.msk.f32.gmra.mrb[46].mxu0 %vm6000_vm10, %v22893_v15 }
 0xb16   : > { %17706 = vmatprep.mubr.msk.f32.mxu0 %vm6000_vm10, %v22899_v11 }
 0xb19   : > { %17707 = vmatmul.mubr.msk.f32.gmra.mrb[48].mxu0 %vm6000_vm10, %v22905_v2 }
 0xb1a   : > { %17709 = vmatprep.mubr.msk.f32.mxu0 %vm6000_vm10, %v25113_v19  ;;  %v25121_v19 = vld [vmem:[#allocation12_spill] sm:$0xff] }
 0xb1d   : > { %17710 = vmatmul.mubr.msk.f32.gmra.mrb[50].mxu0 %vm6000_vm10, %v25114_v23  ;;  %v25120_v23 = vld [vmem:[#allocation43_spill] sm:$0xff] }
 0xb1e   : > { %17712 = vmatprep.mubr.msk.f32.mxu0 %vm6000_vm10, %v25115_v61  ;;  %v9202_v61 = vrot.slane %v8063_v54, 7 }
 0xb21   : > { %17713 = vmatmul.mubr.msk.f32.gmra.mrb[52].mxu0 %vm6000_vm10, %v25116_v43  ;;  %v9203_v43 = vrot.slane %v23229_v38, 7 }
 0xb22   : > { %17715 = vmatprep.mubr.msk.f32.mxu0 %vm6000_vm10, %v25117_v41  ;;  %v23238_v41 = vld [vmem:[#allocation5 + $0x210] sm:$0xff] }
 0xb25   : > { %17716 = vmatmul.mubr.msk.f32.gmra.mrb[54].mxu0 %vm6000_vm10, %v25118_v18  ;;  %v9205_v18 = vrot.slane %v23238_v41, 7 }
 0xb26   : > { %17718 = vmatprep.mubr.msk.f32.mxu0 %vm6000_vm10, %v25119_v50  ;;  %v23243_v50 = vsel %vm645_vm3, %v9202_v61, %v9203_v43  ;;  %v14860_v61 = vld [vmem:[%s24741_s7 + $0x30] sm:$0xff] }
 0xb27   : > { %v23251_v54 = vsel %vm645_vm3, %v9203_v43, %v9205_v18  ;;  %v25134_v43 = vld [vmem:[#allocation25_spill] sm:$0xff]  ;;  %v25135_v18 = vld [vmem:[#allocation26_spill] sm:$0xff] }
 0xb29   : > { %17719 = vmatmul.mubr.msk.f32.gmra.mrb[56].mxu0 %vm6000_vm10, %v22955_v37 }
 0xb2a   : > { %17721 = vmatprep.mubr.msk.f32.mxu0 %vm6000_vm10, %v25120_v23 }
 0xb2d   : > { %17722 = vmatmul.mubr.msk.f32.gmra.mrb[58].mxu0 %vm6000_vm10, %v25121_v19 }
 0xb2e   : > { %17724 = vmatprep.mubr.msk.f32.mxu0 %vm6000_vm10, %v22975_v47  ;;  %v25122_v47 = vld [vmem:[#allocation11_spill] sm:$0xff] }
 0xb31   : > { %17725 = vmatmul.mubr.msk.f32.gmra.mrb[60].mxu0 %vm6000_vm10, %v22981_v48 }
 0xb32   : > { %17727 = vmatprep.mubr.msk.f32.mxu0 %vm6000_vm10, %v23243_v50 }
 0xb35   : > { %17728 = vmatmul.mubr.msk.f32.gmra.mrb[62].mxu0 %vm6000_vm10, %v23251_v54 }
 0xb36   : > { %17732 = vmatprep.mubr.msk.f32.mxu0 %vm6000_vm10, %v22642_v0  ;;  %v14893_v0 = vld [vmem:[%s24741_s7 + $0x38] sm:$0xff] }
 0xb39   : > { %17733 = vmatmul.mubr.msk.f32.vlgmr.msra.gmra.mrb[32].mxu0 %vm6000_vm10, %v25122_v47  ;;  %v25131_v47 = vld [vmem:[#allocation10_spill] sm:$0xff] }
 0xb3a   : > { %17735 = vmatprep.mubr.msk.f32.mxu0 %vm6000_vm10, %v22652_v4  ;;  %17781 = vmatpush3.msra.mxu0 %v14827_v49  ;;  %v25123_v4 = vld [vmem:[#allocation14_spill] sm:$0xff]  ;;  %v25133_v49 = vld [vmem:[#allocation24_spill] sm:$0xff] }
 0xb3b   : > { %17830 = vmatprep.subr.mxu0 %v14860_v61 }
 0xb3d   : > { %17736 = vmatmul.mubr.msk.f32.gmra.mrb[34].mxu0 %vm6000_vm10, %v22657_v28  ;;  %v25124_v28 = vld [vmem:[#allocation15_spill] sm:$0xff] }
 0xb3e   : > { %17738 = vmatprep.mubr.msk.f32.mxu0 %vm6000_vm10, %v22662_v7  ;;  %v25125_v7 = vld [vmem:[#allocation16_spill] sm:$0xff] }
 0xb41   : > { %17739 = vmatmul.mubr.msk.f32.gmra.mrb[36].mxu0 %vm6000_vm10, %v22667_v31  ;;  %v25126_v31 = vld [vmem:[#allocation17_spill] sm:$0xff] }
 0xb42   : > { %17741 = vmatprep.mubr.msk.f32.mxu0 %vm6000_vm10, %v22672_v13  ;;  %v25127_v13 = vld [vmem:[#allocation18_spill] sm:$0xff] }
 0xb45   : > { %17742 = vmatmul.mubr.msk.f32.gmra.mrb[38].mxu0 %vm6000_vm10, %v22677_v6  ;;  %v25128_v6 = vld [vmem:[#allocation20_spill] sm:$0xff] }
 0xb46   : > { %17744 = vmatprep.mubr.msk.f32.mxu0 %vm6000_vm10, %v22682_v5  ;;  %v25129_v5 = vld [vmem:[#allocation21_spill] sm:$0xff] }
 0xb49   : > { %17745 = vmatmul.mubr.msk.f32.gmra.mrb[40].mxu0 %vm6000_vm10, %v22687_v52  ;;  %v25130_v52 = vld [vmem:[#allocation9_spill] sm:$0xff] }
 0xb4a   : > { %17747 = vmatprep.mubr.msk.f32.mxu0 %vm6000_vm10, %v22692_v36 }
 0xb4d   : > { %17748 = vmatmul.mubr.msk.f32.gmra.mrb[42].mxu0 %vm6000_vm10, %v22697_v58 }
 0xb4e   : > { %17750 = vmatprep.mubr.msk.f32.mxu0 %vm6000_vm10, %v22702_v42 }
 0xb51   : > { %17751 = vmatmul.mubr.msk.f32.gmra.mrb[44].mxu0 %vm6000_vm10, %v22707_v46 }
 0xb52   : > { %17753 = vmatprep.mubr.msk.f32.mxu0 %vm6000_vm10, %v22712_v35 }
 0xb55   : > { %17754 = vmatmul.mubr.msk.f32.gmra.mrb[46].mxu0 %vm6000_vm10, %v22717_v63 }
 0xb56   : > { %17756 = vmatprep.mubr.msk.f32.mxu0 %vm6000_vm10, %v22722_v29 }
 0xb59   : > { %17757 = vmatmul.mubr.msk.f32.gmra.mrb[48].mxu0 %vm6000_vm10, %v22727_v60 }
 0xb5a   : > { %17759 = vmatprep.mubr.msk.f32.mxu0 %vm6000_vm10, %v22732_v39 }
 0xb5d   : > { %17760 = vmatmul.mubr.msk.f32.gmra.mrb[50].mxu0 %vm6000_vm10, %v22737_v3 }
 0xb5e   : > { %17762 = vmatprep.mubr.msk.f32.mxu0 %vm6000_vm10, %v22742_v55 }
 0xb61   : > { %17763 = vmatmul.mubr.msk.f32.gmra.mrb[52].mxu0 %vm6000_vm10, %v22747_v51 }
 0xb62   : > { %17765 = vmatprep.mubr.msk.f32.mxu0 %vm6000_vm10, %v22752_v14 }
 0xb65   : > { %17766 = vmatmul.mubr.msk.f32.gmra.mrb[54].mxu0 %vm6000_vm10, %v22757_v32 }
 0xb66   : > { %17768 = vmatprep.mubr.msk.f32.mxu0 %vm6000_vm10, %v22762_v44 }
 0xb69   : > { %17769 = vmatmul.mubr.msk.f32.gmra.mrb[56].mxu0 %vm6000_vm10, %v22767_v53 }
 0xb6a   : > { %17771 = vmatprep.mubr.msk.f32.mxu0 %vm6000_vm10, %v22772_v24 }
 0xb6d   : > { %17772 = vmatmul.mubr.msk.f32.gmra.mrb[58].mxu0 %vm6000_vm10, %v22776_v10 }
 0xb6e   : > { %17774 = vmatprep.mubr.msk.f32.mxu0 %vm6000_vm10, %v22781_v30 }
 0xb71   : > { %17775 = vmatmul.mubr.msk.f32.gmra.mrb[60].mxu0 %vm6000_vm10, %v22786_v26 }
 0xb72   : > { %17777 = vmatprep.mubr.msk.f32.mxu0 %vm6000_vm10, %v23229_v38 }
 0xb75   : > { %17778 = vmatmul.mubr.msk.f32.gmra.mrb[62].mxu0 %vm6000_vm10, %v23238_v41 }
 0xb76   : > { %17782 = vmatprep.mubr.msk.f32.mxu0 %vm6000_vm10, %v22996_v59  ;;  %v25132_v59 = vld [vmem:[#allocation23_spill] sm:$0xff] }
 0xb79   : > { %17783 = vmatmul.mubr.msk.f32.vlgmr.msra.gmra.mrb[32].mxu0 %vm6000_vm10, %v25123_v4  ;;  %v25137_v4 = vld [vmem:[#allocation28_spill] sm:$0xff] }
 0xb7a   : > { %17785 = vmatprep.mubr.msk.f32.mxu0 %vm6000_vm10, %v25124_v28  ;;  %17831 = vmatpush3.msra.mxu0 %v14860_v61  ;;  %v25136_v61 = vld [vmem:[#allocation27_spill] sm:$0xff] }
 0xb7b   : > { %17880 = vmatprep.subr.mxu0 %v14893_v0 }
 0xb7d   : > { %17786 = vmatmul.mubr.msk.f32.gmra.mrb[34].mxu0 %vm6000_vm10, %v25125_v7 }
 0xb7e   : > { %17788 = vmatprep.mubr.msk.f32.mxu0 %vm6000_vm10, %v25126_v31 }
 0xb81   : > { %17789 = vmatmul.mubr.msk.f32.gmra.mrb[36].mxu0 %vm6000_vm10, %v25127_v13 }
 0xb82   : > { %17791 = vmatprep.mubr.msk.f32.mxu0 %vm6000_vm10, %v25128_v6 }
 0xb85   : > { %17792 = vmatmul.mubr.msk.f32.gmra.mrb[38].mxu0 %vm6000_vm10, %v25129_v5 }
 0xb86   : > { %17794 = vmatprep.mubr.msk.f32.mxu0 %vm6000_vm10, %v25130_v52  ;;  %v25138_v52 = vld [vmem:[#allocation29_spill] sm:$0xff] }
 0xb89   : > { %17795 = vmatmul.mubr.msk.f32.gmra.mrb[40].mxu0 %vm6000_vm10, %v25131_v47  ;;  %v25139_v47 = vld [vmem:[#allocation30_spill] sm:$0xff] }
 0xb8a   : > { %17797 = vmatprep.mubr.msk.f32.mxu0 %vm6000_vm10, %v25132_v59  ;;  %v25140_v59 = vld [vmem:[#allocation31_spill] sm:$0xff] }
 0xb8d   : > { %17798 = vmatmul.mubr.msk.f32.gmra.mrb[42].mxu0 %vm6000_vm10, %v25133_v49  ;;  %v25141_v49 = vld [vmem:[#allocation32_spill] sm:$0xff] }
 0xb8e   : > { %17800 = vmatprep.mubr.msk.f32.mxu0 %vm6000_vm10, %v25134_v43  ;;  %v25142_v43 = vld [vmem:[#allocation33_spill] sm:$0xff] }
 0xb91   : > { %17801 = vmatmul.mubr.msk.f32.gmra.mrb[44].mxu0 %vm6000_vm10, %v25135_v18  ;;  %v25143_v18 = vld [vmem:[#allocation34_spill] sm:$0xff] }
 0xb92   : > { %17803 = vmatprep.mubr.msk.f32.mxu0 %vm6000_vm10, %v25136_v61  ;;  %v25144_v61 = vld [vmem:[#allocation35_spill] sm:$0xff] }
 0xb95   : > { %17804 = vmatmul.mubr.msk.f32.gmra.mrb[46].mxu0 %vm6000_vm10, %v25137_v4  ;;  %v25145_v4 = vld [vmem:[#allocation37_spill] sm:$0xff] }
 0xb96   : > { %17806 = vmatprep.mubr.msk.f32.mxu0 %vm6000_vm10, %v25138_v52  ;;  %v25146_v52 = vld [vmem:[#allocation40_spill] sm:$0xff] }
 0xb99   : > { %17807 = vmatmul.mubr.msk.f32.gmra.mrb[48].mxu0 %vm6000_vm10, %v25139_v47 }
 0xb9a   : > { %17809 = vmatprep.mubr.msk.f32.mxu0 %vm6000_vm10, %v25140_v59 }
 0xb9d   : > { %17810 = vmatmul.mubr.msk.f32.gmra.mrb[50].mxu0 %vm6000_vm10, %v25141_v49 }
 0xb9e   : > { %17812 = vmatprep.mubr.msk.f32.mxu0 %vm6000_vm10, %v25142_v43  ;;  %v9735_v43 = vrot.slane %v23238_v41, 1 }
 0xba1   : > { %17813 = vmatmul.mubr.msk.f32.gmra.mrb[52].mxu0 %vm6000_vm10, %v25143_v18  ;;  %v9734_v18 = vrot.slane %v23229_v38, 1 }
 0xba2   : > { %17815 = vmatprep.mubr.msk.f32.mxu0 %vm6000_vm10, %v25144_v61  ;;  %v8066_v61 = vld [vmem:[#allocation5 + $0x218] sm:$0xff] }
 0xba5   : > { %17816 = vmatmul.mubr.msk.f32.gmra.mrb[54].mxu0 %vm6000_vm10, %v25145_v4  ;;  %v9737_v4 = vrot.slane %v8066_v61, 1  ;;  %v14926_v61 = vld [vmem:[%s24741_s7 + $0x40] sm:$0xff] }
 0xba6   : > { %17818 = vmatprep.mubr.msk.f32.mxu0 %vm6000_vm10, %v25146_v52 }
 0xba9   : > { %17819 = vmatmul.mubr.msk.f32.gmra.mrb[56].mxu0 %vm6000_vm10, %v23149_v62  ;;  %v23388_v62 = vsel %vm1330_vm2, %v9734_v18, %v9735_v43  ;;  %v19643_v18 = vld [vmem:[#allocation5 + $0x90] sm:$0xff] }
 0xbaa   : > { %17821 = vmatprep.mubr.msk.f32.mxu0 %vm6000_vm10, %v23154_v16 }
 0xbad   : > { %17822 = vmatmul.mubr.msk.f32.gmra.mrb[58].mxu0 %vm6000_vm10, %v23161_v17  ;;  %v23393_v17 = vsel %vm1330_vm2, %v9735_v43, %v9737_v4  ;;  %v19642_v43 = vld [vmem:[#allocation5 + $0x88] sm:$0xff] }
 0xbae   : > { %17824 = vmatprep.mubr.msk.f32.mxu0 %vm6000_vm10, %v23166_v33  ;;  %v19644_v4 = vld [vmem:[#allocation5 + $0xa8] sm:$0xff] }
 0xbb1   : > { %17825 = vmatmul.mubr.msk.f32.gmra.mrb[60].mxu0 %vm6000_vm10, %v23171_v22 }
 0xbb2   : > { %17827 = vmatprep.mubr.msk.f32.mxu0 %vm6000_vm10, %v23388_v62 }
 0xbb5   : > { %17828 = vmatmul.mubr.msk.f32.gmra.mrb[62].mxu0 %vm6000_vm10, %v23393_v17 }
 0xbb6   : > { %17832 = vmatprep.mubr.msk.f32.mxu0 %vm6000_vm10, %v22815_v56  ;;  %v25147_v56 = vld [vmem:[#allocation19_spill] sm:$0xff] }
 0xbb9   : > { %17833 = vmatmul.mubr.msk.f32.vlgmr.msra.gmra.mrb[32].mxu0 %vm6000_vm10, %v22821_v57  ;;  %v25148_v57 = vld [vmem:[#allocation7_spill] sm:$0xff] }
 0xbba   : > { %17835 = vmatprep.mubr.msk.f32.mxu0 %vm6000_vm10, %v22827_v20  ;;  %17881 = vmatpush3.msra.mxu0 %v14893_v0  ;;  %v25149_v20 = vld [vmem:[#allocation8_spill] sm:$0xff]  ;;  %v19641_v0 = vld [vmem:[#allocation5 + $0x70] sm:$0xff] }
 0xbbb   : > { %17930 = vmatprep.subr.mxu0 %v14926_v61 }
 0xbbd   : > { %17836 = vmatmul.mubr.msk.f32.gmra.mrb[34].mxu0 %vm6000_vm10, %v22833_v12  ;;  %v25150_v12 = vld [vmem:[#allocation22_spill] sm:$0xff] }
 0xbbe   : > { %17838 = vmatprep.mubr.msk.f32.mxu0 %vm6000_vm10, %v22839_v9  ;;  %v25151_v9 = vld [vmem:[#allocation36_spill] sm:$0xff] }
 0xbc1   : > { %17839 = vmatmul.mubr.msk.f32.gmra.mrb[36].mxu0 %vm6000_vm10, %v22845_v8  ;;  %v25152_v8 = vld [vmem:[#allocation38_spill] sm:$0xff] }
 0xbc2   : > { %17841 = vmatprep.mubr.msk.f32.mxu0 %vm6000_vm10, %v22851_v27  ;;  %v25153_v27 = vld [vmem:[#allocation39_spill] sm:$0xff] }
 0xbc5   : > { %17842 = vmatmul.mubr.msk.f32.gmra.mrb[38].mxu0 %vm6000_vm10, %v22857_v21  ;;  %v8067_v21 = vld [vmem:[#allocation5 + $0x220] sm:$0xff] }
 0xbc6   : > { %17844 = vmatprep.mubr.msk.f32.mxu0 %vm6000_vm10, %v22863_v40  ;;  %v23450_v40 = vld [vmem:[#allocation5 + $0x228] sm:$0xff] }
 0xbc9   : > { %17845 = vmatmul.mubr.msk.f32.gmra.mrb[40].mxu0 %vm6000_vm10, %v22869_v1  ;;  %v25154_v1 = vld [vmem:[#allocation13_spill] sm:$0xff] }
 0xbca   : > { %17847 = vmatprep.mubr.msk.f32.mxu0 %vm6000_vm10, %v22875_v25  ;;  %v10005_v25 = vrot.slane %v8067_v21, 7 }
 0xbcd   : > { %17848 = vmatmul.mubr.msk.f32.gmra.mrb[42].mxu0 %vm6000_vm10, %v22881_v34  ;;  %v10006_v34 = vrot.slane %v23450_v40, 7 }
 0xbce   : > { %17850 = vmatprep.mubr.msk.f32.mxu0 %vm6000_vm10, %v22887_v45  ;;  %v23457_v45 = vld [vmem:[#allocation5 + $0x230] sm:$0xff] }
 0xbd1   : > { %17851 = vmatmul.mubr.msk.f32.gmra.mrb[44].mxu0 %vm6000_vm10, %v22893_v15  ;;  %v10008_v15 = vrot.slane %v23457_v45, 7 }
 0xbd2   : > { %17853 = vmatprep.mubr.msk.f32.mxu0 %vm6000_vm10, %v22899_v11  ;;  %v10007_v11 = vsel %vm645_vm3, %v10005_v25, %v10006_v34 }
 0xbd5   : > { %17854 = vmatmul.mubr.msk.f32.gmra.mrb[46].mxu0 %vm6000_vm10, %v22905_v2  ;;  %v10009_v2 = vsel %vm645_vm3, %v10006_v34, %v10008_v15 }
 0xbd6   : > { %17856 = vmatprep.mubr.msk.f32.mxu0 %vm6000_vm10, %v25147_v56  ;;  %v19645_v56 = vld [vmem:[#allocation5 + $0xb0] sm:$0xff] }
 0xbd9   : > { %17857 = vmatmul.mubr.msk.f32.gmra.mrb[48].mxu0 %vm6000_vm10, %v25148_v57 }
 0xbda   : > { %17859 = vmatprep.mubr.msk.f32.mxu0 %vm6000_vm10, %v25149_v20 }
 0xbdd   : > { %17860 = vmatmul.mubr.msk.f32.gmra.mrb[50].mxu0 %vm6000_vm10, %v25150_v12 }
 0xbde   : > { %17862 = vmatprep.mubr.msk.f32.mxu0 %vm6000_vm10, %v25151_v9 }
 0xbe1   : > { %17863 = vmatmul.mubr.msk.f32.gmra.mrb[52].mxu0 %vm6000_vm10, %v25152_v8 }
 0xbe2   : > { %17865 = vmatprep.mubr.msk.f32.mxu0 %vm6000_vm10, %v25153_v27 }
 0xbe5   : > { %17866 = vmatmul.mubr.msk.f32.gmra.mrb[54].mxu0 %vm6000_vm10, %v22955_v37  ;;  %v14960_v37 = vld [vmem:[%s24743_s9 + $0x10] sm:$0xff] }
 0xbe6   : > { %17868 = vmatprep.mubr.msk.f32.mxu0 %vm6000_vm10, %v25120_v23 }
 0xbe9   : > { %17869 = vmatmul.mubr.msk.f32.gmra.mrb[56].mxu0 %vm6000_vm10, %v25121_v19  ;;  %v19638_v19 = vld [vmem:[#allocation5 + $0x48] sm:$0xff] }
 0xbea   : > { %17871 = vmatprep.mubr.msk.f32.mxu0 %vm6000_vm10, %v25154_v1 }
 0xbed   : > { %17872 = vmatmul.mubr.msk.f32.gmra.mrb[58].mxu0 %vm6000_vm10, %v22981_v48  ;;  %v14961_v48 = vld [vmem:[%s24743_s9 + $0x18] sm:$0xff] }
 0xbee   : > { %17874 = vmatprep.mubr.msk.f32.mxu0 %vm6000_vm10, %v23243_v50  ;;  %v18696_v23 = vpack.c.bf16 %v14961_v48, %v14960_v37  ;;  %v19639_v50 = vld [vmem:[#allocation5 + $0x50] sm:$0xff] }
 0xbf0   : > { %18697 = vmatprep.subr.bf16.mxu1 %v18696_v23 }
 0xbf1   : > { %17875 = vmatmul.mubr.msk.f32.gmra.mrb[60].mxu0 %vm6000_vm10, %v23251_v54  ;;  %18699 = vmatpush3.bf16.msra.mxu1 %v18696_v23  ;;  %v19640_v54 = vld [vmem:[#allocation5 + $0x68] sm:$0xff] }
 0xbf2   : > { %17877 = vmatprep.mubr.msk.f32.mxu0 %vm6000_vm10, %v10007_v11 }
 0xbf5   : > { %17878 = vmatmul.mubr.msk.f32.gmra.mrb[62].mxu0 %vm6000_vm10, %v10009_v2 }
 0xbf6   : > { %17882 = vmatprep.mubr.msk.f32.mxu0 %vm6000_vm10, %v19638_v19 }
 0xbf9   : > { %17883 = vmatmul.mubr.msk.f32.vlgmr.msra.gmra.mrb[32].mxu0 %vm6000_vm10, %v19639_v50 }
 0xbfa   : > { %17885 = vmatprep.mubr.msk.f32.mxu0 %vm6000_vm10, %v19640_v54  ;;  %17931 = vmatpush3.msra.mxu0 %v14926_v61 }
 0xbfd   : > { %17886 = vmatmul.mubr.msk.f32.gmra.mrb[34].mxu0 %vm6000_vm10, %v19641_v0 }
 0xbfe   : > { %17888 = vmatprep.mubr.msk.f32.mxu0 %vm6000_vm10, %v19642_v43 }
 0xc01   : > { %17889 = vmatmul.mubr.msk.f32.gmra.mrb[36].mxu0 %vm6000_vm10, %v19643_v18 }
 0xc02   : > { %17891 = vmatprep.mubr.msk.f32.mxu0 %vm6000_vm10, %v19644_v4 }
 0xc05   : > { %17892 = vmatmul.mubr.msk.f32.gmra.mrb[38].mxu0 %vm6000_vm10, %v19645_v56 }
 0xc06   : > { %17894 = vmatprep.mubr.msk.f32.mxu0 %vm6000_vm10, %v22692_v36  ;;  %v25155_v36 = vld [vmem:[#allocation9_spill] sm:$0xff] }
 0xc09   : > { %17895 = vmatmul.mubr.msk.f32.gmra.mrb[40].mxu0 %vm6000_vm10, %v22697_v58  ;;  %v25156_v58 = vld [vmem:[#allocation10_spill] sm:$0xff] }
 0xc0a   : > { %17897 = vmatprep.mubr.msk.f32.mxu0 %vm6000_vm10, %v22702_v42  ;;  %v25157_v42 = vld [vmem:[#allocation23_spill] sm:$0xff] }
 0xc0d   : > { %17898 = vmatmul.mubr.msk.f32.gmra.mrb[42].mxu0 %vm6000_vm10, %v22707_v46  ;;  %v25158_v46 = vld [vmem:[#allocation24_spill] sm:$0xff] }
 0xc0e   : > { %17900 = vmatprep.mubr.msk.f32.mxu0 %vm6000_vm10, %v22712_v35  ;;  %v25159_v35 = vld [vmem:[#allocation25_spill] sm:$0xff] }
 0xc11   : > { %17901 = vmatmul.mubr.msk.f32.gmra.mrb[44].mxu0 %vm6000_vm10, %v22717_v63  ;;  %v25160_v63 = vld [vmem:[#allocation26_spill] sm:$0xff] }
 0xc12   : > { %17903 = vmatprep.mubr.msk.f32.mxu0 %vm6000_vm10, %v22722_v29  ;;  %v25161_v29 = vld [vmem:[#allocation27_spill] sm:$0xff] }
 0xc15   : > { %17904 = vmatmul.mubr.msk.f32.gmra.mrb[46].mxu0 %vm6000_vm10, %v22727_v60  ;;  %v25162_v60 = vld [vmem:[#allocation28_spill] sm:$0xff] }
 0xc16   : > { %17906 = vmatprep.mubr.msk.f32.mxu0 %vm6000_vm10, %v22732_v39  ;;  %v25163_v39 = vld [vmem:[#allocation29_spill] sm:$0xff] }
 0xc19   : > { %17907 = vmatmul.mubr.msk.f32.gmra.mrb[48].mxu0 %vm6000_vm10, %v22737_v3  ;;  %v25164_v3 = vld [vmem:[#allocation33_spill] sm:$0xff] }
 0xc1a   : > { %17909 = vmatprep.mubr.msk.f32.mxu0 %vm6000_vm10, %v22742_v55  ;;  %v25165_v55 = vld [vmem:[#allocation34_spill] sm:$0xff] }
 0xc1d   : > { %17910 = vmatmul.mubr.msk.f32.gmra.mrb[50].mxu0 %vm6000_vm10, %v22747_v51  ;;  %v25166_v51 = vld [vmem:[#allocation35_spill] sm:$0xff] }
 0xc1e   : > { %17912 = vmatprep.mubr.msk.f32.mxu0 %vm6000_vm10, %v22752_v14  ;;  %v25167_v14 = vld [vmem:[#allocation37_spill] sm:$0xff] }
 0xc21   : > { %17913 = vmatmul.mubr.msk.f32.gmra.mrb[52].mxu0 %vm6000_vm10, %v22757_v32  ;;  %v25168_v32 = vld [vmem:[#allocation41_spill] sm:$0xff] }
 0xc22   : > { %17915 = vmatprep.mubr.msk.f32.mxu0 %vm6000_vm10, %v22762_v44  ;;  %v25169_v44 = vld [vmem:[#allocation42_spill] sm:$0xff] }
 0xc25   : > { %17916 = vmatmul.mubr.msk.f32.gmra.mrb[54].mxu0 %vm6000_vm10, %v22767_v53  ;;  %v10537_v53 = vrot.slane %v23450_v40, 1 }
 0xc26   : > { %17918 = vmatprep.mubr.msk.f32.mxu0 %vm6000_vm10, %v22772_v24  ;;  %v10538_v24 = vrot.slane %v23457_v45, 1 }
 0xc29   : > { %17919 = vmatmul.mubr.msk.f32.gmra.mrb[56].mxu0 %vm6000_vm10, %v22776_v10  ;;  %v8070_v10 = vld [vmem:[#allocation5 + $0x238] sm:$0xff] }
 0xc2a   : > { %17921 = vmatprep.mubr.msk.f32.mxu0 %vm6000_vm10, %v22781_v30  ;;  %v10540_v30 = vrot.slane %v8070_v10, 1 }
 0xc2d   : > { %17922 = vmatmul.mubr.msk.f32.gmra.mrb[58].mxu0 %vm6000_vm10, %v22786_v26  ;;  %v10539_v26 = vsel %vm1330_vm2, %v10537_v53, %v10538_v24 }
 0xc2e   : > { %17924 = vmatprep.mubr.msk.f32.mxu0 %vm6000_vm10, %v23229_v38  ;;  %v15026_v38 = vld [vmem:[%s24743_s9 + $0x20] sm:$0xff] }
 0xc31   : > { %17925 = vmatmul.mubr.msk.f32.gmra.mrb[60].mxu0 %vm6000_vm10, %v23238_v41 }
 0xc32   : > { %17927 = vmatprep.mubr.msk.f32.mxu0 %vm6000_vm10, %v23450_v40 }
 0xc35   : > { %17928 = vmatmul.mubr.msk.f32.gmra.mrb[62].mxu0 %vm6000_vm10, %v23457_v45 }
 0xc36   : > { %17932 = vmatprep.mubr.msk.f32.mxu0 %vm6000_vm10, %v25124_v28  ;;  %v15027_v28 = vld [vmem:[%s24743_s9 + $0x28] sm:$0xff] }
 0xc39   : > { %17933 = vmatmul.mubr.msk.f32.vlgmr.msra.gmra.mrb[32].mxu0 %vm6000_vm10, %v25125_v7  ;;  %v23618_v7 = vpack.c.bf16 %v15027_v28, %v15026_v38 }
 0xc3a   : > { %17935 = vmatprep.mubr.msk.f32.mxu0 %vm6000_vm10, %v25126_v31  ;;  %v23624_v31 = vld [vmem:[%s24742_s8] ss:$0 sm:$0xff] }
 0xc3d   : > { %17936 = vmatmul.mubr.msk.f32.gmra.mrb[34].mxu0 %vm6000_vm10, %v25127_v13 }
 0xc3e   : > { %17938 = vmatprep.mubr.msk.f32.mxu0 %vm6000_vm10, %v25128_v6 }
 0xc41   : > { %17939 = vmatmul.mubr.msk.f32.gmra.mrb[36].mxu0 %vm6000_vm10, %v25129_v5 }
 0xc42   : > { %17941 = vmatprep.mubr.msk.f32.mxu0 %vm6000_vm10, %v25155_v36 }
 0xc45   : > { %17942 = vmatmul.mubr.msk.f32.gmra.mrb[38].mxu0 %vm6000_vm10, %v25156_v58 }
 0xc46   : > { %17944 = vmatprep.mubr.msk.f32.mxu0 %vm6000_vm10, %v25157_v42 }
 0xc49   : > { %17945 = vmatmul.mubr.msk.f32.gmra.mrb[40].mxu0 %vm6000_vm10, %v25158_v46 }
 0xc4a   : > { %17947 = vmatprep.mubr.msk.f32.mxu0 %vm6000_vm10, %v25159_v35 }
 0xc4d   : > { %17948 = vmatmul.mubr.msk.f32.gmra.mrb[42].mxu0 %vm6000_vm10, %v25160_v63 }
 0xc4e   : > { %17950 = vmatprep.mubr.msk.f32.mxu0 %vm6000_vm10, %v25161_v29 }
 0xc51   : > { %17951 = vmatmul.mubr.msk.f32.gmra.mrb[44].mxu0 %vm6000_vm10, %v25162_v60 }
 0xc52   : > { %17953 = vmatprep.mubr.msk.f32.mxu0 %vm6000_vm10, %v25163_v39 }
 0xc55   : > { %17954 = vmatmul.mubr.msk.f32.gmra.mrb[46].mxu0 %vm6000_vm10, %v25139_v47 }
 0xc56   : > { %17956 = vmatprep.mubr.msk.f32.mxu0 %vm6000_vm10, %v25140_v59 }
 0xc59   : > { %17957 = vmatmul.mubr.msk.f32.gmra.mrb[48].mxu0 %vm6000_vm10, %v25141_v49 }
 0xc5a   : > { %17959 = vmatprep.mubr.msk.f32.mxu0 %vm6000_vm10, %v25164_v3 }
 0xc5d   : > { %17960 = vmatmul.mubr.msk.f32.gmra.mrb[50].mxu0 %vm6000_vm10, %v25165_v55 }
 0xc5e   : > { %17962 = vmatprep.mubr.msk.f32.mxu0 %vm6000_vm10, %v25166_v51 }
 0xc61   : > { %17963 = vmatmul.mubr.msk.f32.gmra.mrb[52].mxu0 %vm6000_vm10, %v25167_v14 }
 0xc62   : > { %17965 = vmatprep.mubr.msk.f32.mxu0 %vm6000_vm10, %v25146_v52 }
 0xc65   : > { %17966 = vmatmul.mubr.msk.f32.gmra.mrb[54].mxu0 %vm6000_vm10, %v25168_v32 }
 0xc66   : > { %17968 = vmatprep.mubr.msk.f32.mxu0 %vm6000_vm10, %v23154_v16  ;;  %v10541_v16 = vsel %vm1330_vm2, %v10538_v24, %v10540_v30 }
 0xc69   : > { %17969 = vmatmul.mubr.msk.f32.gmra.mrb[56].mxu0 %vm6000_vm10, %v25169_v44 }
 0xc6a   : > { %17971 = vmatprep.mubr.msk.f32.mxu0 %vm6000_vm10, %v23166_v33  ;;  %v23598_v33 = vld [vmem:[#allocation6 + $0x8] sm:$0xff] }
 0xc6b   : > { %17984 = vmatprep.mubr.msk.f32.mxu1 %vm4168_vm0, %v23598_v33 }
 0xc6d   : > { %17972 = vmatmul.mubr.msk.f32.gmra.mrb[58].mxu0 %vm6000_vm10, %v23171_v22  ;;  %v23602_v22 = vld [vmem:[#allocation6 + $0x10] sm:$0xff] }
 0xc6e   : > { %17974 = vmatprep.mubr.msk.f32.mxu0 %vm6000_vm10, %v23388_v62  ;;  %17985 = vmatmul.mubr.msk.f32.vlgmr.msra.gmra.mrb[128].mxu1 %vm4168_vm0, %v23602_v22  ;;  %v11181_v62 = vld [vmem:[%s24743_s9] sm:$0xff] }
 0xc71   : > { %17975 = vmatmul.mubr.msk.f32.gmra.mrb[60].mxu0 %vm6000_vm10, %v23393_v17  ;;  %v11182_v17 = vld [vmem:[%s24743_s9 + $0x8] sm:$0xff] }
 0xc72   : > { %17977 = vmatprep.mubr.msk.f32.mxu0 %vm6000_vm10, %v10539_v26  ;;  %v18700_v41 = vpack.c.bf16 %v11182_v17, %v11181_v62 }
 0xc74   : > { %18701 = vmatprep.subr.bf16.mxu1 %v18700_v41 }
 0xc75   : > { %17978 = vmatmul.mubr.msk.f32.gmra.mrb[62].mxu0 %vm6000_vm10, %v10541_v16  ;;  %18703 = vmatpush3.bf16.msra.mxu1 %v18700_v41 }
 0xc76   : > { %18705 = vmatprep.subr.bf16.mxu1 %v23618_v7 }
 0xd0c   : > { %v17934_v13 = vpop.f32.mrb[32].mxu0 }
 0xd0d   : > { %v10813_v6 = vadd.f32 %v17934_v13, %v23624_v31  ;;  %v10614_v5 = vpop.f32.mrb[33].mxu0 }
 0xd0e   : > { %v10812_v52 = vadd.f32 %v23624_v31, %v10614_v5 }
 0xd0f   : > { %v10845_v47 = vmax.f32 %v10813_v6, 0.0 }
 0xd10   : > { %v10844_v59 = vmax.f32 %v10812_v52, 0.0  ;;  %v17937_v49 = vpop.f32.mrb[34].mxu0 }
 0xd11   : > { %10950 = vst.msk [vmem:[#allocation6 + $0x30] sm:$0xff] %vm4168_vm0, %v10845_v47  ;;  %v10815_v61 = vadd.f32 %v17937_v49, %v23624_v31  ;;  %v10624_v57 = vpop.f32.mrb[35].mxu0 }
 0xd12   : > { %10949 = vst.msk [vmem:[#allocation6 + $0x28] sm:$0xff] %vm4168_vm0, %v10844_v59  ;;  %v10814_v20 = vadd.f32 %v23624_v31, %v10624_v57 }
 0xd13   : > { %v10847_v12 = vmax.f32 %v10815_v61, 0.0 }
 0xd14   : > { %v10846_v9 = vmax.f32 %v10814_v20, 0.0  ;;  %v17940_v8 = vpop.f32.mrb[36].mxu0 }
 0xd15   : > { %10952 = vst.msk [vmem:[#allocation6 + $0x50] sm:$0xff] %vm4168_vm0, %v10847_v12  ;;  %v10817_v27 = vadd.f32 %v17940_v8, %v23624_v31  ;;  %v10634_v21 = vpop.f32.mrb[37].mxu0 }
 0xd16   : > { %10951 = vst.msk [vmem:[#allocation6 + $0x48] sm:$0xff] %vm4168_vm0, %v10846_v9  ;;  %v10816_v40 = vadd.f32 %v23624_v31, %v10634_v21 }
 0xd17   : > { %v10849_v1 = vmax.f32 %v10817_v27, 0.0 }
 0xd18   : > { %v10848_v25 = vmax.f32 %v10816_v40, 0.0  ;;  %v17943_v34 = vpop.f32.mrb[38].mxu0  ;;  %v23644_v37 = vld [vmem:[#allocation6 + $0x30] sm:$0xff] }
 0xd19   : > { %10954 = vst.msk [vmem:[#allocation6 + $0x70] sm:$0xff] %vm4168_vm0, %v10849_v1  ;;  %v10819_v45 = vadd.f32 %v17943_v34, %v23624_v31  ;;  %v10644_v15 = vpop.f32.mrb[39].mxu0  ;;  %v23638_v11 = vld [vmem:[#allocation6 + $0x28] sm:$0xff]  ;;  %25171 = vst [vmem:[#allocation45_spill] sm:$0xff] %v23644_v37 }
 0xd1a   : > { %25170 = vst [vmem:[#allocation44_spill] sm:$0xff] %v23638_v11  ;;  %10953 = vst.msk [vmem:[#allocation6 + $0x68] sm:$0xff] %vm4168_vm0, %v10848_v25  ;;  %v10818_v2 = vadd.f32 %v23624_v31, %v10644_v15  ;;  %17987 = vmatprep.mubr.msk.f32.mxu1 %vm4168_vm0, %v23638_v11 }
 0xd1b   : > { %v10851_v48 = vmax.f32 %v10819_v45, 0.0  ;;  %17988 = vmatmul.mubr.msk.f32.gmra.mrb[130].mxu1 %vm4168_vm0, %v23644_v37 }
 0xd1c   : > { %v10850_v19 = vmax.f32 %v10818_v2, 0.0  ;;  %v17946_v23 = vpop.f32.mrb[40].mxu0  ;;  %v23656_v18 = vld [vmem:[#allocation6 + $0x50] sm:$0xff] }
 0xd1d   : > { %10956 = vst.msk [vmem:[#allocation6 + $0x90] sm:$0xff] %vm4168_vm0, %v10851_v48  ;;  %v10821_v50 = vadd.f32 %v17946_v23, %v23624_v31  ;;  %v10654_v54 = vpop.f32.mrb[41].mxu0  ;;  %v23650_v0 = vld [vmem:[#allocation6 + $0x48] sm:$0xff] }
 0xd1e   : > { %10955 = vst.msk [vmem:[#allocation6 + $0x88] sm:$0xff] %vm4168_vm0, %v10850_v19  ;;  %v10820_v43 = vadd.f32 %v23624_v31, %v10654_v54  ;;  %17990 = vmatprep.mubr.msk.f32.mxu1 %vm4168_vm0, %v23650_v0 }
 0xd1f   : > { %v10853_v4 = vmax.f32 %v10821_v50, 0.0  ;;  %17991 = vmatmul.mubr.msk.f32.gmra.mrb[132].mxu1 %vm4168_vm0, %v23656_v18 }
 0xd20   : > { %v10852_v56 = vmax.f32 %v10820_v43, 0.0  ;;  %v17949_v36 = vpop.f32.mrb[42].mxu0  ;;  %v23668_v63 = vld [vmem:[#allocation6 + $0x70] sm:$0xff] }
 0xd21   : > { %10958 = vst.msk [vmem:[#allocation6 + $0xb0] sm:$0xff] %vm4168_vm0, %v10853_v4  ;;  %v10823_v58 = vadd.f32 %v17949_v36, %v23624_v31  ;;  %v10664_v42 = vpop.f32.mrb[43].mxu0  ;;  %v23662_v46 = vld [vmem:[#allocation6 + $0x68] sm:$0xff] }
 0xd22   : > { %10957 = vst.msk [vmem:[#allocation6 + $0xa8] sm:$0xff] %vm4168_vm0, %v10852_v56  ;;  %v10822_v35 = vadd.f32 %v23624_v31, %v10664_v42  ;;  %17993 = vmatprep.mubr.msk.f32.mxu1 %vm4168_vm0, %v23662_v46 }
 0xd23   : > { %v10855_v29 = vmax.f32 %v10823_v58, 0.0  ;;  %17994 = vmatmul.mubr.msk.f32.gmra.mrb[134].mxu1 %vm4168_vm0, %v23668_v63 }
 0xd24   : > { %v10854_v60 = vmax.f32 %v10822_v35, 0.0  ;;  %v17952_v39 = vpop.f32.mrb[44].mxu0  ;;  %v23680_v32 = vld [vmem:[#allocation6 + $0x90] sm:$0xff] }
 0xd25   : > { %10960 = vst.msk [vmem:[#allocation6 + $0xd0] sm:$0xff] %vm4168_vm0, %v10855_v29  ;;  %v10825_v3 = vadd.f32 %v17952_v39, %v23624_v31  ;;  %v10674_v55 = vpop.f32.mrb[45].mxu0  ;;  %v23674_v51 = vld [vmem:[#allocation6 + $0x88] sm:$0xff] }
 0xd26   : > { %10959 = vst.msk [vmem:[#allocation6 + $0xc8] sm:$0xff] %vm4168_vm0, %v10854_v60  ;;  %v10824_v14 = vadd.f32 %v23624_v31, %v10674_v55  ;;  %17996 = vmatprep.mubr.msk.f32.mxu1 %vm4168_vm0, %v23674_v51 }
 0xd27   : > { %v10857_v44 = vmax.f32 %v10825_v3, 0.0  ;;  %17997 = vmatmul.mubr.msk.f32.gmra.mrb[136].mxu1 %vm4168_vm0, %v23680_v32 }
 0xd28   : > { %v10856_v53 = vmax.f32 %v10824_v14, 0.0  ;;  %v17955_v24 = vpop.f32.mrb[46].mxu0  ;;  %v23692_v62 = vld [vmem:[#allocation6 + $0xb0] sm:$0xff] }
 0xd29   : > { %10962 = vst.msk [vmem:[#allocation6 + $0xf0] sm:$0xff] %vm4168_vm0, %v10857_v44  ;;  %v10827_v10 = vadd.f32 %v17955_v24, %v23624_v31  ;;  %v10684_v30 = vpop.f32.mrb[47].mxu0  ;;  %v23686_v26 = vld [vmem:[#allocation6 + $0xa8] sm:$0xff] }
 0xd2a   : > { %10961 = vst.msk [vmem:[#allocation6 + $0xe8] sm:$0xff] %vm4168_vm0, %v10856_v53  ;;  %v10826_v16 = vadd.f32 %v23624_v31, %v10684_v30  ;;  %17999 = vmatprep.mubr.msk.f32.mxu1 %vm4168_vm0, %v23686_v26 }
 0xd2b   : > { %v10859_v17 = vmax.f32 %v10827_v10, 0.0  ;;  %18000 = vmatmul.mubr.msk.f32.gmra.mrb[138].mxu1 %vm4168_vm0, %v23692_v62 }
 0xd2c   : > { %v10858_v41 = vmax.f32 %v10826_v16, 0.0  ;;  %v17958_v38 = vpop.f32.mrb[48].mxu0  ;;  %v23704_v52 = vld [vmem:[#allocation6 + $0xd0] sm:$0xff] }
 0xd2d   : > { %10964 = vst.msk [vmem:[#allocation6 + $0x110] sm:$0xff] %vm4168_vm0, %v10859_v17  ;;  %v10829_v28 = vadd.f32 %v17958_v38, %v23624_v31  ;;  %v10694_v13 = vpop.f32.mrb[49].mxu0  ;;  %v23698_v6 = vld [vmem:[#allocation6 + $0xc8] sm:$0xff] }
 0xd2e   : > { %10963 = vst.msk [vmem:[#allocation6 + $0x108] sm:$0xff] %vm4168_vm0, %v10858_v41  ;;  %v10828_v5 = vadd.f32 %v23624_v31, %v10694_v13  ;;  %18002 = vmatprep.mubr.msk.f32.mxu1 %vm4168_vm0, %v23698_v6 }
 0xd2f   : > { %v10861_v47 = vmax.f32 %v10829_v28, 0.0  ;;  %18003 = vmatmul.mubr.msk.f32.gmra.mrb[140].mxu1 %vm4168_vm0, %v23704_v52 }
 0xd30   : > { %v10860_v59 = vmax.f32 %v10828_v5, 0.0  ;;  %v17961_v49 = vpop.f32.mrb[50].mxu0  ;;  %v23716_v9 = vld [vmem:[#allocation6 + $0xf0] sm:$0xff] }
 0xd31   : > { %10966 = vst.msk [vmem:[#allocation6 + $0x130] sm:$0xff] %vm4168_vm0, %v10861_v47  ;;  %v10831_v61 = vadd.f32 %v17961_v49, %v23624_v31  ;;  %v10704_v57 = vpop.f32.mrb[51].mxu0  ;;  %v23710_v20 = vld [vmem:[#allocation6 + $0xe8] sm:$0xff] }
 0xd32   : > { %10965 = vst.msk [vmem:[#allocation6 + $0x128] sm:$0xff] %vm4168_vm0, %v10860_v59  ;;  %v10830_v12 = vadd.f32 %v23624_v31, %v10704_v57  ;;  %18005 = vmatprep.mubr.msk.f32.mxu1 %vm4168_vm0, %v23710_v20 }
 0xd33   : > { %v10863_v8 = vmax.f32 %v10831_v61, 0.0  ;;  %18006 = vmatmul.mubr.msk.f32.gmra.mrb[142].mxu1 %vm4168_vm0, %v23716_v9 }
 0xd34   : > { %v10862_v27 = vmax.f32 %v10830_v12, 0.0  ;;  %v17964_v21 = vpop.f32.mrb[52].mxu0  ;;  %v23728_v45 = vld [vmem:[#allocation6 + $0x110] sm:$0xff] }
 0xd35   : > { %10968 = vst.msk [vmem:[#allocation6 + $0x150] sm:$0xff] %vm4168_vm0, %v10863_v8  ;;  %v10833_v40 = vadd.f32 %v17964_v21, %v23624_v31  ;;  %v10714_v1 = vpop.f32.mrb[53].mxu0  ;;  %v23722_v25 = vld [vmem:[#allocation6 + $0x108] sm:$0xff]  ;;  %v10981_v21 = vld [vmem:[#allocation6] sm:$0xff] }
 0xd36   : > { %10967 = vst.msk [vmem:[#allocation6 + $0x148] sm:$0xff] %vm4168_vm0, %v10862_v27  ;;  %v10832_v34 = vadd.f32 %v23624_v31, %v10714_v1  ;;  %18008 = vmatprep.mubr.msk.f32.mxu1 %vm4168_vm0, %v23722_v25 }
 0xd37   : > { %v10865_v15 = vmax.f32 %v10833_v40, 0.0  ;;  %18009 = vmatmul.mubr.msk.f32.gmra.mrb[144].mxu1 %vm4168_vm0, %v23728_v45 }
 0xd38   : > { %v10864_v2 = vmax.f32 %v10832_v34, 0.0  ;;  %v17967_v48 = vpop.f32.mrb[54].mxu0  ;;  %v23740_v43 = vld [vmem:[#allocation6 + $0x130] sm:$0xff]  ;;  %v11102_v34 = vrot.slane %v23598_v33, 7 }
 0xd39   : > { %10970 = vst.msk [vmem:[#allocation6 + $0x170] sm:$0xff] %vm4168_vm0, %v10865_v15  ;;  %v10835_v19 = vadd.f32 %v17967_v48, %v23624_v31  ;;  %v10724_v23 = vpop.f32.mrb[55].mxu0  ;;  %v23734_v50 = vld [vmem:[#allocation6 + $0x128] sm:$0xff]  ;;  %v11104_v48 = vrot.slane %v23602_v22, 7 }
 0xd3a   : > { %10969 = vst.msk [vmem:[#allocation6 + $0x168] sm:$0xff] %vm4168_vm0, %v10864_v2  ;;  %v10834_v54 = vadd.f32 %v23624_v31, %v10724_v23  ;;  %18011 = vmatprep.mubr.msk.f32.mxu1 %vm4168_vm0, %v23734_v50  ;;  %v11101_v2 = vrot.slane %v10981_v21, 7 }
 0xd3b   : > { %v10867_v4 = vmax.f32 %v10835_v19, 0.0  ;;  %18012 = vmatmul.mubr.msk.f32.gmra.mrb[146].mxu1 %vm4168_vm0, %v23740_v43  ;;  %v10985_v19 = vld [vmem:[#allocation6 + $0x20] sm:$0xff] }
 0xd3c   : > { %v10866_v56 = vmax.f32 %v10834_v54, 0.0  ;;  %v17970_v36 = vpop.f32.mrb[56].mxu0  ;;  %v23752_v60 = vld [vmem:[#allocation6 + $0x150] sm:$0xff]  ;;  %v11103_v54 = vsel %vm645_vm3, %v11101_v2, %v11102_v34  ;;  %v11127_v2 = vrot.slane %v23686_v26, 7 }
 0xd3d   : > { %10972 = vst.msk [vmem:[#allocation6 + $0x190] sm:$0xff] %vm4168_vm0, %v10867_v4  ;;  %v10837_v58 = vadd.f32 %v17970_v36, %v23624_v31  ;;  %v10734_v42 = vpop.f32.mrb[57].mxu0  ;;  %v23746_v35 = vld [vmem:[#allocation6 + $0x148] sm:$0xff]  ;;  %v15061_v36 = vld [vmem:[%s24743_s9 + $0x38] sm:$0xff] }
 0xd3e   : > { %10971 = vst.msk [vmem:[#allocation6 + $0x188] sm:$0xff] %vm4168_vm0, %v10866_v56  ;;  %v10836_v29 = vadd.f32 %v23624_v31, %v10734_v42  ;;  %18014 = vmatprep.mubr.msk.f32.mxu1 %vm4168_vm0, %v23746_v35  ;;  %v15060_v56 = vld [vmem:[%s24743_s9 + $0x30] sm:$0xff]  ;;  %v11106_v42 = vrot.slane %v10985_v19, 7 }
 0xd3f   : > { %v10869_v39 = vmax.f32 %v10837_v58, 0.0  ;;  %18015 = vmatmul.mubr.msk.f32.gmra.mrb[148].mxu1 %vm4168_vm0, %v23752_v60  ;;  %v11107_v58 = vrot.slane %v23638_v11, 7 }
 0xd40   : > { %v10868_v3 = vmax.f32 %v10836_v29, 0.0  ;;  %v17973_v55 = vpop.f32.mrb[58].mxu0  ;;  %v23764_v10 = vld [vmem:[#allocation6 + $0x170] sm:$0xff]  ;;  %v11105_v29 = vsel %vm645_vm3, %v11102_v34, %v11104_v48  ;;  %v11005_v48 = vld [vmem:[#allocation6 + $0xc0] sm:$0xff] }
 0xd41   : > { %10974 = vst.msk [vmem:[#allocation6 + $0x1b0] sm:$0xff] %vm4168_vm0, %v10869_v39  ;;  %v10839_v14 = vadd.f32 %v17973_v55, %v23624_v31  ;;  %v10744_v44 = vpop.f32.mrb[59].mxu0  ;;  %v23758_v53 = vld [vmem:[#allocation6 + $0x168] sm:$0xff]  ;;  %v10989_v39 = vld [vmem:[#allocation6 + $0x40] sm:$0xff]  ;;  %v11109_v55 = vrot.slane %v23644_v37, 7 }
 0xd42   : > { %10973 = vst.msk [vmem:[#allocation6 + $0x1a8] sm:$0xff] %vm4168_vm0, %v10868_v3  ;;  %v10838_v24 = vadd.f32 %v23624_v31, %v10744_v44  ;;  %18017 = vmatprep.mubr.msk.f32.mxu1 %vm4168_vm0, %v23758_v53  ;;  %v23822_v3 = vpack.c.bf16 %v15061_v36, %v15060_v56  ;;  %v11111_v44 = vrot.slane %v10989_v39, 7  ;;  %v11131_v36 = vrot.slane %v11005_v48, 7  ;;  %v11021_v48 = vld [vmem:[#allocation6 + $0x140] sm:$0xff] }
 0xd43   : > { %v10871_v30 = vmax.f32 %v10839_v14, 0.0  ;;  %18018 = vmatmul.mubr.msk.f32.gmra.mrb[150].mxu1 %vm4168_vm0, %v23764_v10  ;;  %v23827_v14 = vsel %vm645_vm3, %v11106_v42, %v11107_v58  ;;  %v11009_v42 = vld [vmem:[#allocation6 + $0xe0] sm:$0xff]  ;;  %v11134_v39 = vrot.slane %v23704_v52, 7 }
 0xd44   : > { %v10870_v16 = vmax.f32 %v10838_v24, 0.0  ;;  %v17976_v17 = vpop.f32.mrb[60].mxu0  ;;  %v23776_v5 = vld [vmem:[#allocation6 + $0x190] sm:$0xff]  ;;  %v11112_v24 = vrot.slane %v23650_v0, 7 }
 0xd45   : > { %10976 = vst.msk [vmem:[#allocation6 + $0x1d0] sm:$0xff] %vm4168_vm0, %v10871_v30  ;;  %v10841_v41 = vadd.f32 %v17976_v17, %v23624_v31  ;;  %v10754_v38 = vpop.f32.mrb[61].mxu0  ;;  %v23770_v28 = vld [vmem:[#allocation6 + $0x188] sm:$0xff]  ;;  %v10993_v30 = vld [vmem:[#allocation6 + $0x60] sm:$0xff]  ;;  %v11114_v17 = vrot.slane %v23656_v18, 7 }
 0xd46   : > { %10975 = vst.msk [vmem:[#allocation6 + $0x1c8] sm:$0xff] %vm4168_vm0, %v10870_v16  ;;  %v10840_v13 = vadd.f32 %v23624_v31, %v10754_v38  ;;  %18020 = vmatprep.mubr.msk.f32.mxu1 %vm4168_vm0, %v23770_v28  ;;  %v23835_v16 = vsel %vm645_vm3, %v11107_v58, %v11109_v55  ;;  %v11116_v38 = vrot.slane %v10993_v30, 7  ;;  %v11132_v58 = vrot.slane %v23698_v6, 7  ;;  %v11013_v30 = vld [vmem:[#allocation6 + $0x100] sm:$0xff] }
 0xd47   : > { %v10873_v47 = vmax.f32 %v10841_v41, 0.0  ;;  %18021 = vmatmul.mubr.msk.f32.gmra.mrb[152].mxu1 %vm4168_vm0, %v23776_v5  ;;  %v23841_v41 = vsel %vm645_vm3, %v11111_v44, %v11112_v24  ;;  %v11136_v44 = vrot.slane %v11009_v42, 7  ;;  %v11151_v42 = vrot.slane %v11021_v48, 7 }
 0xd48   : > { %v10872_v59 = vmax.f32 %v10840_v13, 0.0  ;;  %v17979_v49 = vpop.f32.mrb[62].mxu0  ;;  %v23788_v27 = vld [vmem:[#allocation6 + $0x1b0] sm:$0xff]  ;;  %v11117_v13 = vrot.slane %v23662_v46, 7  ;;  %v23889_v55 = vsel %vm645_vm3, %v11131_v36, %v11132_v58  ;;  %v11149_v36 = vrot.slane %v23740_v43, 7 }
 0xd49   : > { %10978 = vst.msk [vmem:[#allocation6 + $0x1f0] sm:$0xff] %vm4168_vm0, %v10873_v47  ;;  %v10843_v61 = vadd.f32 %v17979_v49, %v23624_v31  ;;  %v10764_v57 = vpop.f32.mrb[63].mxu0  ;;  %v23782_v12 = vld [vmem:[#allocation6 + $0x1a8] sm:$0xff]  ;;  %v23847_v47 = vsel %vm645_vm3, %v11112_v24, %v11114_v17  ;;  %v11137_v24 = vrot.slane %v23710_v20, 7  ;;  %v23895_v17 = vsel %vm645_vm3, %v11132_v58, %v11134_v39 }
 0xd4a   : > { %10977 = vst.msk [vmem:[#allocation6 + $0x1e8] sm:$0xff] %vm4168_vm0, %v10872_v59  ;;  %v10842_v8 = vadd.f32 %v23624_v31, %v10764_v57  ;;  %18023 = vmatprep.mubr.msk.f32.mxu1 %vm4168_vm0, %v23782_v12  ;;  %v11119_v59 = vrot.slane %v23668_v63, 7  ;;  %v23853_v49 = vsel %vm645_vm3, %v11116_v38, %v11117_v13  ;;  %v11122_v57 = vrot.slane %v23674_v51, 7 }
 0xd4b   : > { %v10875_v40 = vmax.f32 %v10843_v61, 0.0  ;;  %18024 = vmatmul.mubr.msk.f32.gmra.mrb[154].mxu1 %vm4168_vm0, %v23788_v27  ;;  %v11139_v38 = vrot.slane %v23716_v9, 7  ;;  %v11152_v39 = vrot.slane %v23746_v35, 7 }
 0xd4c   : > { %v10874_v1 = vmax.f32 %v10842_v8, 0.0  ;;  %v23799_v31 = vld [vmem:[#allocation6 + $0x1d0] sm:$0xff]  ;;  %v11001_v8 = vld [vmem:[#allocation6 + $0xa0] sm:$0xff]  ;;  %v23859_v21 = vsel %vm645_vm3, %v11117_v13, %v11119_v59  ;;  %v23901_v13 = vsel %vm645_vm3, %v11136_v44, %v11137_v24  ;;  %v11142_v59 = vrot.slane %v23722_v25, 7 }
 0xd4d   : > { %10980 = vst.msk [vmem:[#allocation6 + $0x210] sm:$0xff] %vm4168_vm0, %v10875_v40  ;;  %v23794_v15 = vld [vmem:[#allocation6 + $0x1c8] sm:$0xff]  ;;  %v11124_v40 = vrot.slane %v23680_v32, 7  ;;  %v11126_v34 = vrot.slane %v11001_v8, 7  ;;  %v11144_v8 = vrot.slane %v23728_v45, 7  ;;  %v11025_v44 = vld [vmem:[#allocation6 + $0x160] sm:$0xff] }
 0xd4e   : > { %10979 = vst.msk [vmem:[#allocation6 + $0x208] sm:$0xff] %vm4168_vm0, %v10874_v1  ;;  %18026 = vmatprep.mubr.msk.f32.mxu1 %vm4168_vm0, %v23794_v15 }
 0xd4f   : > { %18027 = vmatmul.mubr.msk.f32.gmra.mrb[156].mxu1 %vm4168_vm0, %v23799_v31  ;;  %v23871_v19 = vsel %vm645_vm3, %v11122_v57, %v11124_v40  ;;  %v23877_v56 = vsel %vm645_vm3, %v11126_v34, %v11127_v2 }
 0xd50   : > { %v23809_v4 = vld [vmem:[#allocation6 + $0x1f0] sm:$0xff] }
 0xd51   : > { %v23804_v23 = vld [vmem:[#allocation6 + $0x1e8] sm:$0xff] }
 0xd52   : > { %18029 = vmatprep.mubr.msk.f32.mxu1 %vm4168_vm0, %v23804_v23 }
 0xd53   : > { %18030 = vmatmul.mubr.msk.f32.gmra.mrb[158].mxu1 %vm4168_vm0, %v23809_v4 }
 0xd54   : > { %18036 = vmatprep.mubr.msk.f32.mxu1 %vm4168_vm0, %v11103_v54  ;;  %v11129_v54 = vrot.slane %v23692_v62, 7 }
 0xd57   : > { %18037 = vmatmul.mubr.msk.f32.vlgmr.msra.gmra.mrb[128].mxu1 %vm4168_vm0, %v11105_v29  ;;  %v23883_v29 = vsel %vm645_vm3, %v11127_v2, %v11129_v54  ;;  %v11147_v2 = vrot.slane %v23734_v50, 7  ;;  %v23919_v54 = vsel %vm645_vm3, %v11142_v59, %v11144_v8 }
 0xd58   : > { %18039 = vmatprep.mubr.msk.f32.mxu1 %vm4168_vm0, %v23827_v14  ;;  %18707 = vmatpush3.bf16.msra.mxu1 %v23618_v7  ;;  %v10997_v7 = vld [vmem:[#allocation6 + $0x80] sm:$0xff] }
 0xd59   : > { %18709 = vmatprep.subr.bf16.mxu1 %v23822_v3  ;;  %v11121_v61 = vrot.slane %v10997_v7, 7  ;;  %v11141_v7 = vrot.slane %v11013_v30, 7  ;;  %v11154_v30 = vrot.slane %v23752_v60, 7 }
 0xd5b   : > { %18040 = vmatmul.mubr.msk.f32.gmra.mrb[130].mxu1 %vm4168_vm0, %v23835_v16  ;;  %v23865_v1 = vsel %vm645_vm3, %v11121_v61, %v11122_v57  ;;  %v11017_v61 = vld [vmem:[#allocation6 + $0x120] sm:$0xff]  ;;  %v23907_v57 = vsel %vm645_vm3, %v11137_v24, %v11139_v38  ;;  %v23913_v40 = vsel %vm645_vm3, %v11141_v7, %v11142_v59  ;;  %v23931_v24 = vsel %vm645_vm3, %v11147_v2, %v11149_v36 }
 0xd5c   : > { %18042 = vmatprep.mubr.msk.f32.mxu1 %vm4168_vm0, %v23841_v41  ;;  %v11146_v34 = vrot.slane %v11017_v61, 7  ;;  %v23937_v38 = vsel %vm645_vm3, %v11151_v42, %v11152_v39  ;;  %v11156_v7 = vrot.slane %v11025_v44, 7  ;;  %v11157_v59 = vrot.slane %v23758_v53, 7  ;;  %v11029_v61 = vld [vmem:[#allocation6 + $0x180] sm:$0xff] }
 0xd5d   : > { %25172 = vst [vmem:[#allocation46_spill] sm:$0xff] %v23937_v38  ;;  %v23943_v8 = vsel %vm645_vm3, %v11152_v39, %v11154_v30  ;;  %v11161_v48 = vrot.slane %v11029_v61, 7  ;;  %v11162_v36 = vrot.slane %v23770_v28, 7  ;;  %v11033_v42 = vld [vmem:[#allocation6 + $0x1a0] sm:$0xff]  ;;  %v11164_v39 = vrot.slane %v23776_v5, 7 }
 0xd5e   : > { %v23925_v58 = vsel %vm645_vm3, %v11146_v34, %v11147_v2  ;;  %25173 = vst [vmem:[#allocation43_spill] sm:$0xff] %v23943_v8  ;;  %v11159_v34 = vrot.slane %v23764_v10, 7  ;;  %v23949_v2 = vsel %vm645_vm3, %v11156_v7, %v11157_v59  ;;  %v11166_v7 = vrot.slane %v11033_v42, 7 }
 0xd5f   : > { %18043 = vmatmul.mubr.msk.f32.gmra.mrb[132].mxu1 %vm4168_vm0, %v23847_v47  ;;  %25174 = vst [vmem:[#allocation12_spill] sm:$0xff] %v23949_v2  ;;  %v23961_v30 = vsel %vm645_vm3, %v11161_v48, %v11162_v36  ;;  %v11167_v61 = vrot.slane %v23782_v12, 7  ;;  %v11172_v42 = vrot.slane %v23794_v15, 7 }
 0xd60   : > { %18045 = vmatprep.mubr.msk.f32.mxu1 %vm4168_vm0, %v23853_v49  ;;  %v23955_v44 = vsel %vm645_vm3, %v11157_v59, %v11159_v34  ;;  %25176 = vst [vmem:[#allocation14_spill] sm:$0xff] %v23961_v30  ;;  %v11169_v59 = vrot.slane %v23788_v27, 7 }
 0xd61   : > { %25175 = vst [vmem:[#allocation11_spill] sm:$0xff] %v23955_v44  ;;  %v23973_v34 = vsel %vm645_vm3, %v11166_v7, %v11167_v61 }
 0xd62   : > { %25178 = vst [vmem:[#allocation16_spill] sm:$0xff] %v23973_v34 }
 0xd63   : > { %18046 = vmatmul.mubr.msk.f32.gmra.mrb[134].mxu1 %vm4168_vm0, %v23859_v21 }
 0xd64   : > { %18048 = vmatprep.mubr.msk.f32.mxu1 %vm4168_vm0, %v23865_v1 }
 0xd67   : > { %18049 = vmatmul.mubr.msk.f32.gmra.mrb[136].mxu1 %vm4168_vm0, %v23871_v19 }
 0xd68   : > { %18051 = vmatprep.mubr.msk.f32.mxu1 %vm4168_vm0, %v23877_v56 }
 0xd6b   : > { %18052 = vmatmul.mubr.msk.f32.gmra.mrb[138].mxu1 %vm4168_vm0, %v23883_v29 }
 0xd6c   : > { %18054 = vmatprep.mubr.msk.f32.mxu1 %vm4168_vm0, %v23889_v55 }
 0xd6f   : > { %18055 = vmatmul.mubr.msk.f32.gmra.mrb[140].mxu1 %vm4168_vm0, %v23895_v17 }
 0xd70   : > { %18057 = vmatprep.mubr.msk.f32.mxu1 %vm4168_vm0, %v23901_v13 }
 0xd73   : > { %18058 = vmatmul.mubr.msk.f32.gmra.mrb[142].mxu1 %vm4168_vm0, %v23907_v57 }
 0xd74   : > { %18060 = vmatprep.mubr.msk.f32.mxu1 %vm4168_vm0, %v23913_v40 }
 0xd77   : > { %18061 = vmatmul.mubr.msk.f32.gmra.mrb[144].mxu1 %vm4168_vm0, %v23919_v54 }
 0xd78   : > { %18063 = vmatprep.mubr.msk.f32.mxu1 %vm4168_vm0, %v23925_v58 }
 0xd7b   : > { %18064 = vmatmul.mubr.msk.f32.gmra.mrb[146].mxu1 %vm4168_vm0, %v23931_v24 }
 0xd7c   : > { %18066 = vmatprep.mubr.msk.f32.mxu1 %vm4168_vm0, %v23937_v38  ;;  %v11179_v38 = vrot.slane %v23809_v4, 7 }
 0xd7f   : > { %18067 = vmatmul.mubr.msk.f32.gmra.mrb[148].mxu1 %vm4168_vm0, %v23943_v8  ;;  %v11037_v8 = vld [vmem:[#allocation6 + $0x1c0] sm:$0xff] }
 0xd80   : > { %18069 = vmatprep.mubr.msk.f32.mxu1 %vm4168_vm0, %v23949_v2  ;;  %v23967_v2 = vsel %vm645_vm3, %v11162_v36, %v11164_v39  ;;  %v11171_v48 = vrot.slane %v11037_v8, 7  ;;  %v11174_v36 = vrot.slane %v23799_v31, 7  ;;  %v11177_v8 = vrot.slane %v23804_v23, 7 }
 0xd81   : > { %25177 = vst [vmem:[#allocation15_spill] sm:$0xff] %v23967_v2 }
 0xd82   : > { %v23985_v39 = vsel %vm645_vm3, %v11171_v48, %v11172_v42 }
 0xd83   : > { %18070 = vmatmul.mubr.msk.f32.gmra.mrb[150].mxu1 %vm4168_vm0, %v23955_v44  ;;  %v11041_v44 = vld [vmem:[#allocation6 + $0x1e0] sm:$0xff]  ;;  %25180 = vst [vmem:[#allocation18_spill] sm:$0xff] %v23985_v39 }
 0xd84   : > { %18072 = vmatprep.mubr.msk.f32.mxu1 %vm4168_vm0, %v23961_v30  ;;  %v23979_v30 = vsel %vm645_vm3, %v11167_v61, %v11169_v59  ;;  %v11176_v7 = vrot.slane %v11041_v44, 7  ;;  %v10984_v61 = vld [vmem:[#allocation6 + $0x18] sm:$0xff]  ;;  %v23993_v59 = vsel %vm645_vm3, %v11172_v42, %v11174_v36  ;;  %v15094_v42 = vld [vmem:[%s24743_s9 + $0x40] sm:$0xff]  ;;  %v15095_v36 = vld [vmem:[%s24743_s9 + $0x48] sm:$0xff] }
 0xd85   : > { %25179 = vst [vmem:[#allocation17_spill] sm:$0xff] %v23979_v30  ;;  %25181 = vst [vmem:[#allocation20_spill] sm:$0xff] %v23993_v59  ;;  %v11783_v48 = vrot.slane %v10984_v61, 1  ;;  %v10988_v61 = vld [vmem:[#allocation6 + $0x38] sm:$0xff] }
 0xd86   : > { %v23999_v44 = vsel %vm645_vm3, %v11176_v7, %v11177_v8  ;;  %v11785_v7 = vrot.slane %v23638_v11, 1  ;;  %v11790_v11 = vrot.slane %v23650_v0, 1 }
 0xd87   : > { %18073 = vmatmul.mubr.msk.f32.gmra.mrb[152].mxu1 %vm4168_vm0, %v23967_v2  ;;  %v11781_v2 = vrot.slane %v23602_v22, 1  ;;  %25182 = vst [vmem:[#allocation21_spill] sm:$0xff] %v23999_v44  ;;  %v24005_v22 = vsel %vm645_vm3, %v11177_v8, %v11179_v38  ;;  %v11788_v8 = vrot.slane %v10988_v61, 1  ;;  %v11801_v61 = vrot.slane %v23680_v32, 1 }
 0xd88   : > { %18075 = vmatprep.mubr.msk.f32.mxu1 %vm4168_vm0, %v23973_v34  ;;  %v11780_v34 = vrot.slane %v23598_v33, 1  ;;  %25183 = vst [vmem:[#allocation30_spill] sm:$0xff] %v24005_v22 }
 0xd89   : > { %v11784_v38 = vsel %vm1330_vm2, %v11781_v2, %v11783_v48 }
 0xd8a   : > { %v11782_v33 = vsel %vm1330_vm2, %v11780_v34, %v11781_v2  ;;  %v24019_v34 = vpack.c.bf16 %v15095_v36, %v15094_v42  ;;  %v11795_v42 = vrot.slane %v23662_v46, 1  ;;  %v11796_v36 = vrot.slane %v23668_v63, 1 }
 0xd8b   : > { %18076 = vmatmul.mubr.msk.f32.gmra.mrb[154].mxu1 %vm4168_vm0, %v23979_v30 }
 0xd8c   : > { %18078 = vmatprep.mubr.msk.f32.mxu1 %vm4168_vm0, %v23985_v39  ;;  %v10992_v39 = vld [vmem:[#allocation6 + $0x58] sm:$0xff] }
 0xd8d   : > { %v11793_v48 = vrot.slane %v10992_v39, 1  ;;  %v24049_v39 = vsel %vm1330_vm2, %v11795_v42, %v11796_v36  ;;  %v11805_v42 = vrot.slane %v23686_v26, 1 }
 0xd8e   : > { %25185 = vst [vmem:[#allocation32_spill] sm:$0xff] %v24049_v39 }
 0xd8f   : > { %18079 = vmatmul.mubr.msk.f32.gmra.mrb[156].mxu1 %vm4168_vm0, %v23993_v59  ;;  %v11786_v59 = vrot.slane %v23644_v37, 1  ;;  %v11791_v37 = vrot.slane %v23656_v18, 1 }
 0xd90   : > { %18081 = vmatprep.mubr.msk.f32.mxu1 %vm4168_vm0, %v23999_v44 }
 0xd91   : > { %v24023_v44 = vsel %vm1330_vm2, %v11785_v7, %v11786_v59  ;;  %v24032_v2 = vsel %vm1330_vm2, %v11786_v59, %v11788_v8  ;;  %v10996_v7 = vld [vmem:[#allocation6 + $0x78] sm:$0xff] }
 0xd92   : > { %v11798_v59 = vrot.slane %v10996_v7, 1  ;;  %v11806_v7 = vrot.slane %v23692_v62, 1 }
 0xd93   : > { %18082 = vmatmul.mubr.msk.f32.gmra.mrb[158].mxu1 %vm4168_vm0, %v24005_v22 }
 0xd94   : > { %18088 = vmatprep.mubr.msk.f32.mxu1 %vm4168_vm0, %v11782_v33  ;;  %v24037_v33 = vsel %vm1330_vm2, %v11790_v11, %v11791_v37  ;;  %v11800_v11 = vrot.slane %v23674_v51, 1  ;;  %v24056_v8 = vsel %vm1330_vm2, %v11796_v36, %v11798_v59  ;;  %v24073_v59 = vsel %vm1330_vm2, %v11805_v42, %v11806_v7 }
 0xd95   : > { %25186 = vst [vmem:[#allocation40_spill] sm:$0xff] %v24056_v8  ;;  %25189 = vst [vmem:[#allocation8_spill] sm:$0xff] %v24073_v59  ;;  %v11816_v42 = vrot.slane %v23716_v9, 1 }
 0xd97   : > { %18089 = vmatmul.mubr.msk.f32.vlgmr.msra.gmra.mrb[128].mxu1 %vm4168_vm0, %v11784_v38  ;;  %v11000_v38 = vld [vmem:[#allocation6 + $0x98] sm:$0xff] }
 0xd98   : > { %18091 = vmatprep.mubr.msk.f32.mxu1 %vm4168_vm0, %v24023_v44  ;;  %18711 = vmatpush3.bf16.msra.mxu1 %v23822_v3  ;;  %v24044_v3 = vsel %vm1330_vm2, %v11791_v37, %v11793_v48  ;;  %v11803_v37 = vrot.slane %v11000_v38, 1  ;;  %v24061_v48 = vsel %vm1330_vm2, %v11800_v11, %v11801_v61  ;;  %v11810_v11 = vrot.slane %v23698_v6, 1 }
 0xd99   : > { %18713 = vmatprep.subr.bf16.mxu1 %v24019_v34  ;;  %25184 = vst [vmem:[#allocation31_spill] sm:$0xff] %v24044_v3  ;;  %25187 = vst [vmem:[#allocation19_spill] sm:$0xff] %v24061_v48  ;;  %v11811_v38 = vrot.slane %v23704_v52, 1 }
 0xd9b   : > { %18092 = vmatmul.mubr.msk.f32.gmra.mrb[130].mxu1 %vm4168_vm0, %v24032_v2 }
 0xd9c   : > { %18094 = vmatprep.mubr.msk.f32.mxu1 %vm4168_vm0, %v24037_v33 }
 0xd9f   : > { %18095 = vmatmul.mubr.msk.f32.gmra.mrb[132].mxu1 %vm4168_vm0, %v24044_v3  ;;  %v11004_v3 = vld [vmem:[#allocation6 + $0xb8] sm:$0xff] }
 0xda0   : > { %18097 = vmatprep.mubr.msk.f32.mxu1 %vm4168_vm0, %v24049_v39  ;;  %v24068_v39 = vsel %vm1330_vm2, %v11801_v61, %v11803_v37  ;;  %v11808_v36 = vrot.slane %v11004_v3, 1  ;;  %v24085_v3 = vsel %vm1330_vm2, %v11810_v11, %v11811_v38  ;;  %v11815_v37 = vrot.slane %v23710_v20, 1 }
 0xda1   : > { %25188 = vst [vmem:[#allocation7_spill] sm:$0xff] %v24068_v39  ;;  %25191 = vst [vmem:[#allocation36_spill] sm:$0xff] %v24085_v3  ;;  %v11821_v11 = vrot.slane %v23728_v45, 1 }
 0xda3   : > { %18098 = vmatmul.mubr.msk.f32.gmra.mrb[134].mxu1 %vm4168_vm0, %v24056_v8  ;;  %v11008_v8 = vld [vmem:[#allocation6 + $0xd8] sm:$0xff] }
 0xda4   : > { %18100 = vmatprep.mubr.msk.f32.mxu1 %vm4168_vm0, %v24061_v48  ;;  %v24080_v48 = vsel %vm1330_vm2, %v11806_v7, %v11808_v36  ;;  %v11813_v61 = vrot.slane %v11008_v8, 1  ;;  %v24097_v8 = vsel %vm1330_vm2, %v11815_v37, %v11816_v42  ;;  %v11820_v36 = vrot.slane %v23722_v25, 1 }
 0xda5   : > { %25190 = vst [vmem:[#allocation22_spill] sm:$0xff] %v24080_v48  ;;  %25193 = vst [vmem:[#allocation39_spill] sm:$0xff] %v24097_v8  ;;  %v11826_v37 = vrot.slane %v23740_v43, 1 }
 0xda7   : > { %18101 = vmatmul.mubr.msk.f32.gmra.mrb[136].mxu1 %vm4168_vm0, %v24068_v39  ;;  %v11012_v39 = vld [vmem:[#allocation6 + $0xf8] sm:$0xff] }
 0xda8   : > { %18103 = vmatprep.mubr.msk.f32.mxu1 %vm4168_vm0, %v24073_v59  ;;  %v24092_v59 = vsel %vm1330_vm2, %v11811_v38, %v11813_v61  ;;  %v11818_v7 = vrot.slane %v11012_v39, 1  ;;  %v24109_v39 = vsel %vm1330_vm2, %v11820_v36, %v11821_v11  ;;  %v11825_v61 = vrot.slane %v23734_v50, 1 }
 0xda9   : > { %25192 = vst [vmem:[#allocation38_spill] sm:$0xff] %v24092_v59  ;;  %25195 = vst [vmem:[#allocation9_spill] sm:$0xff] %v24109_v39  ;;  %v11831_v36 = vrot.slane %v23752_v60, 1 }
 0xdab   : > { %18104 = vmatmul.mubr.msk.f32.gmra.mrb[138].mxu1 %vm4168_vm0, %v24080_v48  ;;  %v11016_v48 = vld [vmem:[#allocation6 + $0x118] sm:$0xff] }
 0xdac   : > { %18106 = vmatprep.mubr.msk.f32.mxu1 %vm4168_vm0, %v24085_v3  ;;  %v24104_v3 = vsel %vm1330_vm2, %v11816_v42, %v11818_v7  ;;  %v11823_v38 = vrot.slane %v11016_v48, 1  ;;  %v24121_v48 = vsel %vm1330_vm2, %v11825_v61, %v11826_v37  ;;  %v11830_v7 = vrot.slane %v23746_v35, 1 }
 0xdad   : > { %25194 = vst [vmem:[#allocation13_spill] sm:$0xff] %v24104_v3  ;;  %25197 = vst [vmem:[#allocation23_spill] sm:$0xff] %v24121_v48  ;;  %v11836_v61 = vrot.slane %v23764_v10, 1 }
 0xdaf   : > { %18107 = vmatmul.mubr.msk.f32.gmra.mrb[140].mxu1 %vm4168_vm0, %v24092_v59  ;;  %v11020_v59 = vld [vmem:[#allocation6 + $0x138] sm:$0xff] }
 0xdb0   : > { %18109 = vmatprep.mubr.msk.f32.mxu1 %vm4168_vm0, %v24097_v8  ;;  %v24116_v8 = vsel %vm1330_vm2, %v11821_v11, %v11823_v38  ;;  %v11828_v42 = vrot.slane %v11020_v59, 1  ;;  %v24133_v59 = vsel %vm1330_vm2, %v11830_v7, %v11831_v36  ;;  %v11835_v38 = vrot.slane %v23758_v53, 1 }
 0xdb1   : > { %25196 = vst [vmem:[#allocation10_spill] sm:$0xff] %v24116_v8  ;;  %25199 = vst [vmem:[#allocation25_spill] sm:$0xff] %v24133_v59  ;;  %v11841_v7 = vrot.slane %v23776_v5, 1 }
 0xdb3   : > { %18110 = vmatmul.mubr.msk.f32.gmra.mrb[142].mxu1 %vm4168_vm0, %v24104_v3  ;;  %v11024_v3 = vld [vmem:[#allocation6 + $0x158] sm:$0xff] }
 0xdb4   : > { %18112 = vmatprep.mubr.msk.f32.mxu1 %vm4168_vm0, %v24109_v39  ;;  %v24128_v39 = vsel %vm1330_vm2, %v11826_v37, %v11828_v42  ;;  %v11833_v11 = vrot.slane %v11024_v3, 1  ;;  %v24145_v3 = vsel %vm1330_vm2, %v11835_v38, %v11836_v61  ;;  %v11840_v42 = vrot.slane %v23770_v28, 1 }
 0xdb5   : > { %25198 = vst [vmem:[#allocation24_spill] sm:$0xff] %v24128_v39  ;;  %25201 = vst [vmem:[#allocation27_spill] sm:$0xff] %v24145_v3  ;;  %v11846_v38 = vrot.slane %v23788_v27, 1 }
 0xdb7   : > { %18113 = vmatmul.mubr.msk.f32.gmra.mrb[144].mxu1 %vm4168_vm0, %v24116_v8  ;;  %v11028_v8 = vld [vmem:[#allocation6 + $0x178] sm:$0xff] }
 0xdb8   : > { %18115 = vmatprep.mubr.msk.f32.mxu1 %vm4168_vm0, %v24121_v48  ;;  %v24140_v48 = vsel %vm1330_vm2, %v11831_v36, %v11833_v11  ;;  %v11838_v37 = vrot.slane %v11028_v8, 1  ;;  %v24157_v8 = vsel %vm1330_vm2, %v11840_v42, %v11841_v7  ;;  %v11845_v11 = vrot.slane %v23782_v12, 1 }
 0xdb9   : > { %25200 = vst [vmem:[#allocation26_spill] sm:$0xff] %v24140_v48  ;;  %25203 = vst [vmem:[#allocation29_spill] sm:$0xff] %v24157_v8  ;;  %v11851_v42 = vrot.slane %v23799_v31, 1 }
 0xdbb   : > { %18116 = vmatmul.mubr.msk.f32.gmra.mrb[146].mxu1 %vm4168_vm0, %v24128_v39  ;;  %v11032_v39 = vld [vmem:[#allocation6 + $0x198] sm:$0xff] }
 0xdbc   : > { %18118 = vmatprep.mubr.msk.f32.mxu1 %vm4168_vm0, %v24133_v59  ;;  %v24152_v59 = vsel %vm1330_vm2, %v11836_v61, %v11838_v37  ;;  %v11843_v36 = vrot.slane %v11032_v39, 1  ;;  %v24169_v39 = vsel %vm1330_vm2, %v11845_v11, %v11846_v38  ;;  %v11850_v37 = vrot.slane %v23794_v15, 1 }
 0xdbd   : > { %25202 = vst [vmem:[#allocation28_spill] sm:$0xff] %v24152_v59  ;;  %25205 = vst [vmem:[#allocation34_spill] sm:$0xff] %v24169_v39  ;;  %v11856_v11 = vrot.slane %v23809_v4, 1 }
 0xdbf   : > { %18119 = vmatmul.mubr.msk.f32.gmra.mrb[148].mxu1 %vm4168_vm0, %v24140_v48  ;;  %v11036_v48 = vld [vmem:[#allocation6 + $0x1b8] sm:$0xff] }
 0xdc0   : > { %18121 = vmatprep.mubr.msk.f32.mxu1 %vm4168_vm0, %v24145_v3  ;;  %v24164_v3 = vsel %vm1330_vm2, %v11841_v7, %v11843_v36  ;;  %v11848_v61 = vrot.slane %v11036_v48, 1  ;;  %v24181_v48 = vsel %vm1330_vm2, %v11850_v37, %v11851_v42  ;;  %v11855_v36 = vrot.slane %v23804_v23, 1  ;;  %v15128_v37 = vld [vmem:[%s24743_s9 + $0x50] sm:$0xff] }
 0xdc1   : > { %25204 = vst [vmem:[#allocation33_spill] sm:$0xff] %v24164_v3  ;;  %25207 = vst [vmem:[#allocation37_spill] sm:$0xff] %v24181_v48 }
 0xdc3   : > { %18122 = vmatmul.mubr.msk.f32.gmra.mrb[150].mxu1 %vm4168_vm0, %v24152_v59  ;;  %v11040_v59 = vld [vmem:[#allocation6 + $0x1d8] sm:$0xff] }
 0xdc4   : > { %18124 = vmatprep.mubr.msk.f32.mxu1 %vm4168_vm0, %v24157_v8  ;;  %v24176_v8 = vsel %vm1330_vm2, %v11846_v38, %v11848_v61  ;;  %v11853_v7 = vrot.slane %v11040_v59, 1  ;;  %v24193_v59 = vsel %vm1330_vm2, %v11855_v36, %v11856_v11  ;;  %v25213_v36 = vld [vmem:[#allocation14_spill] sm:$0xff] }
 0xdc5   : > { %25206 = vst [vmem:[#allocation35_spill] sm:$0xff] %v24176_v8 }
 0xdc7   : > { %18125 = vmatmul.mubr.msk.f32.gmra.mrb[152].mxu1 %vm4168_vm0, %v24164_v3  ;;  %v11044_v3 = vld [vmem:[#allocation6 + $0x1f8] sm:$0xff] }
 0xdc8   : > { %18127 = vmatprep.mubr.msk.f32.mxu1 %vm4168_vm0, %v24169_v39  ;;  %v24188_v39 = vsel %vm1330_vm2, %v11851_v42, %v11853_v7  ;;  %v11858_v38 = vrot.slane %v11044_v3, 1  ;;  %v15129_v3 = vld [vmem:[%s24743_s9 + $0x58] sm:$0xff]  ;;  %v25212_v7 = vld [vmem:[#allocation11_spill] sm:$0xff] }
 0xdc9   : > { %25208 = vst [vmem:[#allocation41_spill] sm:$0xff] %v24188_v39  ;;  %v18716_v42 = vpack.c.bf16 %v15129_v3, %v15128_v37  ;;  %v25216_v37 = vld [vmem:[#allocation18_spill] sm:$0xff]  ;;  %v11045_v3 = vld [vmem:[#allocation6 + $0x200] sm:$0xff] }
 0xdca   : > { %v24198_v61 = vsel %vm1330_vm2, %v11856_v11, %v11858_v38  ;;  %v25214_v11 = vld [vmem:[#allocation15_spill] sm:$0xff]  ;;  %v25215_v38 = vld [vmem:[#allocation16_spill] sm:$0xff] }
 0xdcb   : > { %18128 = vmatmul.mubr.msk.f32.gmra.mrb[154].mxu1 %vm4168_vm0, %v24176_v8 }
 0xdcc   : > { %18130 = vmatprep.mubr.msk.f32.mxu1 %vm4168_vm0, %v24181_v48 }
 0xdcf   : > { %18131 = vmatmul.mubr.msk.f32.gmra.mrb[156].mxu1 %vm4168_vm0, %v24188_v39 }
 0xdd0   : > { %18133 = vmatprep.mubr.msk.f32.mxu1 %vm4168_vm0, %v24193_v59 }
 0xdd3   : > { %18134 = vmatmul.mubr.msk.f32.gmra.mrb[158].mxu1 %vm4168_vm0, %v24198_v61 }
 0xdd4   : > { %18140 = vmatprep.mubr.msk.f32.mxu1 %vm4168_vm0, %v23827_v14  ;;  %v25209_v14 = vld [vmem:[#allocation46_spill] sm:$0xff] }
 0xdd7   : > { %18141 = vmatmul.mubr.msk.f32.vlgmr.msra.gmra.mrb[128].mxu1 %vm4168_vm0, %v23835_v16  ;;  %v25210_v16 = vld [vmem:[#allocation43_spill] sm:$0xff] }
 0xdd8   : > { %18143 = vmatprep.mubr.msk.f32.mxu1 %vm4168_vm0, %v23841_v41  ;;  %18715 = vmatpush3.bf16.msra.mxu1 %v24019_v34  ;;  %v25211_v34 = vld [vmem:[#allocation12_spill] sm:$0xff] }
 0xdd9   : > { %18717 = vmatprep.subr.bf16.mxu1 %v18716_v42 }
 0xddb   : > { %18144 = vmatmul.mubr.msk.f32.gmra.mrb[130].mxu1 %vm4168_vm0, %v23847_v47 }
 0xddc   : > { %18146 = vmatprep.mubr.msk.f32.mxu1 %vm4168_vm0, %v23853_v49 }
 0xddf   : > { %18147 = vmatmul.mubr.msk.f32.gmra.mrb[132].mxu1 %vm4168_vm0, %v23859_v21 }
 0xde0   : > { %18149 = vmatprep.mubr.msk.f32.mxu1 %vm4168_vm0, %v23865_v1 }
 0xde3   : > { %18150 = vmatmul.mubr.msk.f32.gmra.mrb[134].mxu1 %vm4168_vm0, %v23871_v19 }
 0xde4   : > { %18152 = vmatprep.mubr.msk.f32.mxu1 %vm4168_vm0, %v23877_v56 }
 0xde7   : > { %18153 = vmatmul.mubr.msk.f32.gmra.mrb[136].mxu1 %vm4168_vm0, %v23883_v29 }
 0xde8   : > { %18155 = vmatprep.mubr.msk.f32.mxu1 %vm4168_vm0, %v23889_v55 }
 0xdeb   : > { %18156 = vmatmul.mubr.msk.f32.gmra.mrb[138].mxu1 %vm4168_vm0, %v23895_v17 }
 0xdec   : > { %18158 = vmatprep.mubr.msk.f32.mxu1 %vm4168_vm0, %v23901_v13 }
 0xdef   : > { %18159 = vmatmul.mubr.msk.f32.gmra.mrb[140].mxu1 %vm4168_vm0, %v23907_v57 }
 0xdf0   : > { %18161 = vmatprep.mubr.msk.f32.mxu1 %vm4168_vm0, %v23913_v40 }
 0xdf3   : > { %18162 = vmatmul.mubr.msk.f32.gmra.mrb[142].mxu1 %vm4168_vm0, %v23919_v54 }
 0xdf4   : > { %18164 = vmatprep.mubr.msk.f32.mxu1 %vm4168_vm0, %v23925_v58 }
 0xdf7   : > { %18165 = vmatmul.mubr.msk.f32.gmra.mrb[144].mxu1 %vm4168_vm0, %v23931_v24 }
 0xdf8   : > { %18167 = vmatprep.mubr.msk.f32.mxu1 %vm4168_vm0, %v25209_v14  ;;  %v24268_v14 = vld [vmem:[#allocation6 + $0x210] sm:$0xff] }
 0xdfb   : > { %18168 = vmatmul.mubr.msk.f32.gmra.mrb[146].mxu1 %vm4168_vm0, %v25210_v16  ;;  %v25217_v16 = vld [vmem:[#allocation20_spill] sm:$0xff] }
 0xdfc   : > { %18170 = vmatprep.mubr.msk.f32.mxu1 %vm4168_vm0, %v25211_v34  ;;  %v24263_v34 = vld [vmem:[#allocation6 + $0x208] sm:$0xff] }
 0xdff   : > { %18171 = vmatmul.mubr.msk.f32.gmra.mrb[148].mxu1 %vm4168_vm0, %v25212_v7  ;;  %v12187_v7 = vrot.slane %v11045_v3, 7 }
 0xe00   : > { %18173 = vmatprep.mubr.msk.f32.mxu1 %vm4168_vm0, %v25213_v36  ;;  %v12188_v36 = vrot.slane %v24263_v34, 7 }
 0xe03   : > { %18174 = vmatmul.mubr.msk.f32.gmra.mrb[150].mxu1 %vm4168_vm0, %v25214_v11  ;;  %v25218_v11 = vld [vmem:[#allocation21_spill] sm:$0xff] }
 0xe04   : > { %18176 = vmatprep.mubr.msk.f32.mxu1 %vm4168_vm0, %v25215_v38  ;;  %v12190_v38 = vrot.slane %v24268_v14, 7 }
 0xe06   : > { %v24281_v3 = vsel %vm645_vm3, %v12188_v36, %v12190_v38  ;;  %v25242_v38 = vld [vmem:[#allocation34_spill] sm:$0xff] }
 0xe07   : > { %18177 = vmatmul.mubr.msk.f32.gmra.mrb[152].mxu1 %vm4168_vm0, %v23979_v30  ;;  %v25220_v30 = vld [vmem:[#allocation45_spill] sm:$0xff] }
 0xe08   : > { %18179 = vmatprep.mubr.msk.f32.mxu1 %vm4168_vm0, %v25216_v37  ;;  %v24276_v37 = vsel %vm645_vm3, %v12187_v7, %v12188_v36  ;;  %v25240_v36 = vld [vmem:[#allocation29_spill] sm:$0xff] }
 0xe0b   : > { %18180 = vmatmul.mubr.msk.f32.gmra.mrb[154].mxu1 %vm4168_vm0, %v25217_v16  ;;  %v15162_v16 = vld [vmem:[%s24743_s9 + $0x60] sm:$0xff] }
 0xe0c   : > { %18182 = vmatprep.mubr.msk.f32.mxu1 %vm4168_vm0, %v25218_v11  ;;  %v15163_v11 = vld [vmem:[%s24743_s9 + $0x68] sm:$0xff] }
 0xe0d   : > { %v18720_v7 = vpack.c.bf16 %v15163_v11, %v15162_v16  ;;  %v25239_v16 = vld [vmem:[#allocation28_spill] sm:$0xff]  ;;  %v25241_v11 = vld [vmem:[#allocation33_spill] sm:$0xff] }
 0xe0f   : > { %18183 = vmatmul.mubr.msk.f32.gmra.mrb[156].mxu1 %vm4168_vm0, %v24005_v22  ;;  %v25219_v22 = vld [vmem:[#allocation44_spill] sm:$0xff] }
 0xe10   : > { %18185 = vmatprep.mubr.msk.f32.mxu1 %vm4168_vm0, %v24276_v37 }
 0xe13   : > { %18186 = vmatmul.mubr.msk.f32.gmra.mrb[158].mxu1 %vm4168_vm0, %v24281_v3 }
 0xe14   : > { %18192 = vmatprep.mubr.msk.f32.mxu1 %vm4168_vm0, %v25219_v22  ;;  %v25236_v22 = vld [vmem:[#allocation25_spill] sm:$0xff] }
 0xe17   : > { %18193 = vmatmul.mubr.msk.f32.vlgmr.msra.gmra.mrb[128].mxu1 %vm4168_vm0, %v25220_v30  ;;  %v25234_v30 = vld [vmem:[#allocation23_spill] sm:$0xff] }
 0xe18   : > { %18195 = vmatprep.mubr.msk.f32.mxu1 %vm4168_vm0, %v23650_v0  ;;  %18719 = vmatpush3.bf16.msra.mxu1 %v18716_v42  ;;  %v15196_v0 = vld [vmem:[%s24743_s9 + $0x70] sm:$0xff]  ;;  %v25238_v42 = vld [vmem:[#allocation27_spill] sm:$0xff] }
 0xe19   : > { %18721 = vmatprep.subr.bf16.mxu1 %v18720_v7 }
 0xe1b   : > { %18196 = vmatmul.mubr.msk.f32.gmra.mrb[130].mxu1 %vm4168_vm0, %v23656_v18  ;;  %v15197_v18 = vld [vmem:[%s24743_s9 + $0x78] sm:$0xff] }
 0xe1c   : > { %18198 = vmatprep.mubr.msk.f32.mxu1 %vm4168_vm0, %v23662_v46  ;;  %v18724_v46 = vpack.c.bf16 %v15197_v18, %v15196_v0  ;;  %v12722_v0 = vrot.slane %v24268_v14, 1  ;;  %v11048_v18 = vld [vmem:[#allocation6 + $0x218] sm:$0xff] }
 0xe1f   : > { %18199 = vmatmul.mubr.msk.f32.gmra.mrb[132].mxu1 %vm4168_vm0, %v23668_v63  ;;  %v25221_v63 = vld [vmem:[#allocation31_spill] sm:$0xff] }
 0xe20   : > { %18201 = vmatprep.mubr.msk.f32.mxu1 %vm4168_vm0, %v23674_v51  ;;  %v25222_v51 = vld [vmem:[#allocation32_spill] sm:$0xff] }
 0xe23   : > { %18202 = vmatmul.mubr.msk.f32.gmra.mrb[134].mxu1 %vm4168_vm0, %v23680_v32  ;;  %v25223_v32 = vld [vmem:[#allocation40_spill] sm:$0xff] }
 0xe24   : > { %18204 = vmatprep.mubr.msk.f32.mxu1 %vm4168_vm0, %v23686_v26  ;;  %v25224_v26 = vld [vmem:[#allocation19_spill] sm:$0xff] }
 0xe27   : > { %18205 = vmatmul.mubr.msk.f32.gmra.mrb[136].mxu1 %vm4168_vm0, %v23692_v62  ;;  %v25225_v62 = vld [vmem:[#allocation7_spill] sm:$0xff] }
 0xe28   : > { %18207 = vmatprep.mubr.msk.f32.mxu1 %vm4168_vm0, %v23698_v6  ;;  %v25226_v6 = vld [vmem:[#allocation8_spill] sm:$0xff] }
 0xe2b   : > { %18208 = vmatmul.mubr.msk.f32.gmra.mrb[138].mxu1 %vm4168_vm0, %v23704_v52  ;;  %v25227_v52 = vld [vmem:[#allocation22_spill] sm:$0xff] }
 0xe2c   : > { %18210 = vmatprep.mubr.msk.f32.mxu1 %vm4168_vm0, %v23710_v20  ;;  %v25228_v20 = vld [vmem:[#allocation36_spill] sm:$0xff] }
 0xe2f   : > { %18211 = vmatmul.mubr.msk.f32.gmra.mrb[140].mxu1 %vm4168_vm0, %v23716_v9  ;;  %v25229_v9 = vld [vmem:[#allocation38_spill] sm:$0xff] }
 0xe30   : > { %18213 = vmatprep.mubr.msk.f32.mxu1 %vm4168_vm0, %v23722_v25  ;;  %v25230_v25 = vld [vmem:[#allocation39_spill] sm:$0xff] }
 0xe33   : > { %18214 = vmatmul.mubr.msk.f32.gmra.mrb[142].mxu1 %vm4168_vm0, %v23728_v45  ;;  %v25231_v45 = vld [vmem:[#allocation13_spill] sm:$0xff] }
 0xe34   : > { %18216 = vmatprep.mubr.msk.f32.mxu1 %vm4168_vm0, %v23734_v50  ;;  %v25232_v50 = vld [vmem:[#allocation9_spill] sm:$0xff] }
 0xe37   : > { %18217 = vmatmul.mubr.msk.f32.gmra.mrb[144].mxu1 %vm4168_vm0, %v23740_v43  ;;  %v25233_v43 = vld [vmem:[#allocation10_spill] sm:$0xff] }
 0xe38   : > { %18219 = vmatprep.mubr.msk.f32.mxu1 %vm4168_vm0, %v23746_v35 }
 0xe3b   : > { %18220 = vmatmul.mubr.msk.f32.gmra.mrb[146].mxu1 %vm4168_vm0, %v23752_v60 }
 0xe3c   : > { %18222 = vmatprep.mubr.msk.f32.mxu1 %vm4168_vm0, %v23758_v53 }
 0xe3f   : > { %18223 = vmatmul.mubr.msk.f32.gmra.mrb[148].mxu1 %vm4168_vm0, %v23764_v10 }
 0xe40   : > { %18225 = vmatprep.mubr.msk.f32.mxu1 %vm4168_vm0, %v23770_v28 }
 0xe43   : > { %18226 = vmatmul.mubr.msk.f32.gmra.mrb[150].mxu1 %vm4168_vm0, %v23776_v5 }
 0xe44   : > { %18228 = vmatprep.mubr.msk.f32.mxu1 %vm4168_vm0, %v23782_v12 }
 0xe47   : > { %18229 = vmatmul.mubr.msk.f32.gmra.mrb[152].mxu1 %vm4168_vm0, %v23788_v27 }
 0xe48   : > { %18231 = vmatprep.mubr.msk.f32.mxu1 %vm4168_vm0, %v23794_v15 }
 0xe4b   : > { %18232 = vmatmul.mubr.msk.f32.gmra.mrb[154].mxu1 %vm4168_vm0, %v23799_v31 }
 0xe4c   : > { %18234 = vmatprep.mubr.msk.f32.mxu1 %vm4168_vm0, %v23804_v23 }
 0xe4f   : > { %18235 = vmatmul.mubr.msk.f32.gmra.mrb[156].mxu1 %vm4168_vm0, %v23809_v4 }
 0xe50   : > { %18237 = vmatprep.mubr.msk.f32.mxu1 %vm4168_vm0, %v24263_v34 }
 0xe53   : > { %18238 = vmatmul.mubr.msk.f32.gmra.mrb[158].mxu1 %vm4168_vm0, %v24268_v14 }
 0xe54   : > { %18244 = vmatprep.mubr.msk.f32.mxu1 %vm4168_vm0, %v24023_v44  ;;  %v25235_v44 = vld [vmem:[#allocation24_spill] sm:$0xff] }
 0xe57   : > { %18245 = vmatmul.mubr.msk.f32.vlgmr.msra.gmra.mrb[128].mxu1 %vm4168_vm0, %v24032_v2  ;;  %v25237_v2 = vld [vmem:[#allocation26_spill] sm:$0xff] }
 0xe58   : > { %18247 = vmatprep.mubr.msk.f32.mxu1 %vm4168_vm0, %v24037_v33  ;;  %18723 = vmatpush3.bf16.msra.mxu1 %v18720_v7  ;;  %v12721_v7 = vrot.slane %v24263_v34, 1 }
 0xe59   : > { %18725 = vmatprep.subr.bf16.mxu1 %v18724_v46 }
 0xe5b   : > { %18248 = vmatmul.mubr.msk.f32.gmra.mrb[130].mxu1 %vm4168_vm0, %v25221_v63 }
 0xe5c   : > { %18250 = vmatprep.mubr.msk.f32.mxu1 %vm4168_vm0, %v25222_v51 }
 0xe5f   : > { %18251 = vmatmul.mubr.msk.f32.gmra.mrb[132].mxu1 %vm4168_vm0, %v25223_v32 }
 0xe60   : > { %18253 = vmatprep.mubr.msk.f32.mxu1 %vm4168_vm0, %v25224_v26 }
 0xe63   : > { %18254 = vmatmul.mubr.msk.f32.gmra.mrb[134].mxu1 %vm4168_vm0, %v25225_v62 }
 0xe64   : > { %18256 = vmatprep.mubr.msk.f32.mxu1 %vm4168_vm0, %v25226_v6 }
 0xe67   : > { %18257 = vmatmul.mubr.msk.f32.gmra.mrb[136].mxu1 %vm4168_vm0, %v25227_v52 }
 0xe68   : > { %18259 = vmatprep.mubr.msk.f32.mxu1 %vm4168_vm0, %v25228_v20 }
 0xe6b   : > { %18260 = vmatmul.mubr.msk.f32.gmra.mrb[138].mxu1 %vm4168_vm0, %v25229_v9 }
 0xe6c   : > { %18262 = vmatprep.mubr.msk.f32.mxu1 %vm4168_vm0, %v25230_v25 }
 0xe6f   : > { %18263 = vmatmul.mubr.msk.f32.gmra.mrb[140].mxu1 %vm4168_vm0, %v25231_v45 }
 0xe70   : > { %18265 = vmatprep.mubr.msk.f32.mxu1 %vm4168_vm0, %v25232_v50 }
 0xe73   : > { %18266 = vmatmul.mubr.msk.f32.gmra.mrb[142].mxu1 %vm4168_vm0, %v25233_v43 }
 0xe74   : > { %18268 = vmatprep.mubr.msk.f32.mxu1 %vm4168_vm0, %v25234_v30 }
 0xe77   : > { %18269 = vmatmul.mubr.msk.f32.gmra.mrb[144].mxu1 %vm4168_vm0, %v25235_v44 }
 0xe78   : > { %18271 = vmatprep.mubr.msk.f32.mxu1 %vm4168_vm0, %v25236_v22 }
 0xe7b   : > { %18272 = vmatmul.mubr.msk.f32.gmra.mrb[146].mxu1 %vm4168_vm0, %v25237_v2 }
 0xe7c   : > { %18274 = vmatprep.mubr.msk.f32.mxu1 %vm4168_vm0, %v25238_v42 }
 0xe7f   : > { %18275 = vmatmul.mubr.msk.f32.gmra.mrb[148].mxu1 %vm4168_vm0, %v25239_v16 }
 0xe80   : > { %18277 = vmatprep.mubr.msk.f32.mxu1 %vm4168_vm0, %v25240_v36 }
 0xe83   : > { %18278 = vmatmul.mubr.msk.f32.gmra.mrb[150].mxu1 %vm4168_vm0, %v25241_v11  ;;  %v12724_v11 = vrot.slane %v11048_v18, 1  ;;  %v15231_v18 = vld [vmem:[%s24743_s9 + $0x88] sm:$0xff] }
 0xe84   : > { %18280 = vmatprep.mubr.msk.f32.mxu1 %vm4168_vm0, %v25242_v38 }
 0xe87   : > { %18281 = vmatmul.mubr.msk.f32.gmra.mrb[152].mxu1 %vm4168_vm0, %v24176_v8  ;;  %v24424_v8 = vsel %vm1330_vm2, %v12721_v7, %v12722_v0 }
 0xe88   : > { %18283 = vmatprep.mubr.msk.f32.mxu1 %vm4168_vm0, %v24181_v48  ;;  %v15230_v48 = vld [vmem:[%s24743_s9 + $0x80] sm:$0xff] }
 0xe89   : > { %v18728_v7 = vpack.c.bf16 %v15231_v18, %v15230_v48  ;;  %v25254_v48 = vld [vmem:[#allocation30_spill] sm:$0xff]  ;;  %v19646_v18 = vld [vmem:[#allocation6 + $0x48] sm:$0xff] }
 0xe8b   : > { %18284 = vmatmul.mubr.msk.f32.gmra.mrb[154].mxu1 %vm4168_vm0, %v24188_v39  ;;  %v24429_v39 = vsel %vm1330_vm2, %v12722_v0, %v12724_v11 }
 0xe8c   : > { %18286 = vmatprep.mubr.msk.f32.mxu1 %vm4168_vm0, %v24193_v59 }
 0xe8f   : > { %18287 = vmatmul.mubr.msk.f32.gmra.mrb[156].mxu1 %vm4168_vm0, %v24198_v61 }
 0xe90   : > { %18289 = vmatprep.mubr.msk.f32.mxu1 %vm4168_vm0, %v24424_v8 }
 0xe93   : > { %18290 = vmatmul.mubr.msk.f32.gmra.mrb[158].mxu1 %vm4168_vm0, %v24429_v39 }
 0xe94   : > { %18296 = vmatprep.mubr.msk.f32.mxu1 %vm4168_vm0, %v23841_v41  ;;  %v25243_v41 = vld [vmem:[#allocation46_spill] sm:$0xff] }
 0xe97   : > { %18297 = vmatmul.mubr.msk.f32.vlgmr.msra.gmra.mrb[128].mxu1 %vm4168_vm0, %v23847_v47  ;;  %v25244_v47 = vld [vmem:[#allocation43_spill] sm:$0xff] }
 0xe98   : > { %18299 = vmatprep.mubr.msk.f32.mxu1 %vm4168_vm0, %v23853_v49  ;;  %18727 = vmatpush3.bf16.msra.mxu1 %v18724_v46  ;;  %v25245_v49 = vld [vmem:[#allocation12_spill] sm:$0xff] }
 0xe99   : > { %18729 = vmatprep.subr.bf16.mxu1 %v18728_v7 }
 0xe9b   : > { %18300 = vmatmul.mubr.msk.f32.gmra.mrb[130].mxu1 %vm4168_vm0, %v23859_v21  ;;  %v25246_v21 = vld [vmem:[#allocation11_spill] sm:$0xff] }
 0xe9c   : > { %18302 = vmatprep.mubr.msk.f32.mxu1 %vm4168_vm0, %v23865_v1  ;;  %v25247_v1 = vld [vmem:[#allocation14_spill] sm:$0xff] }
 0xe9f   : > { %18303 = vmatmul.mubr.msk.f32.gmra.mrb[132].mxu1 %vm4168_vm0, %v23871_v19  ;;  %v25248_v19 = vld [vmem:[#allocation15_spill] sm:$0xff] }
 0xea0   : > { %18305 = vmatprep.mubr.msk.f32.mxu1 %vm4168_vm0, %v23877_v56  ;;  %v25249_v56 = vld [vmem:[#allocation16_spill] sm:$0xff] }
 0xea3   : > { %18306 = vmatmul.mubr.msk.f32.gmra.mrb[134].mxu1 %vm4168_vm0, %v23883_v29  ;;  %v25250_v29 = vld [vmem:[#allocation17_spill] sm:$0xff] }
 0xea4   : > { %18308 = vmatprep.mubr.msk.f32.mxu1 %vm4168_vm0, %v23889_v55  ;;  %v25251_v55 = vld [vmem:[#allocation18_spill] sm:$0xff] }
 0xea7   : > { %18309 = vmatmul.mubr.msk.f32.gmra.mrb[136].mxu1 %vm4168_vm0, %v23895_v17  ;;  %v11049_v17 = vld [vmem:[#allocation6 + $0x220] sm:$0xff] }
 0xea8   : > { %18311 = vmatprep.mubr.msk.f32.mxu1 %vm4168_vm0, %v23901_v13  ;;  %v24489_v13 = vld [vmem:[#allocation6 + $0x228] sm:$0xff] }
 0xeab   : > { %18312 = vmatmul.mubr.msk.f32.gmra.mrb[138].mxu1 %vm4168_vm0, %v23907_v57  ;;  %v25252_v57 = vld [vmem:[#allocation20_spill] sm:$0xff] }
 0xeac   : > { %18314 = vmatprep.mubr.msk.f32.mxu1 %vm4168_vm0, %v23913_v40  ;;  %v25253_v40 = vld [vmem:[#allocation21_spill] sm:$0xff] }
 0xeaf   : > { %18315 = vmatmul.mubr.msk.f32.gmra.mrb[140].mxu1 %vm4168_vm0, %v23919_v54  ;;  %v12993_v54 = vrot.slane %v11049_v17, 7  ;;  %v19659_v17 = vld [vmem:[#allocation6 + $0x110] sm:$0xff] }
 0xeb0   : > { %18317 = vmatprep.mubr.msk.f32.mxu1 %vm4168_vm0, %v23925_v58  ;;  %v12994_v58 = vrot.slane %v24489_v13, 7 }
 0xeb2   : > { %v12995_v11 = vsel %vm645_vm3, %v12993_v54, %v12994_v58 }
 0xeb3   : > { %18318 = vmatmul.mubr.msk.f32.gmra.mrb[142].mxu1 %vm4168_vm0, %v23931_v24  ;;  %v24496_v24 = vld [vmem:[#allocation6 + $0x230] sm:$0xff] }
 0xeb4   : > { %18320 = vmatprep.mubr.msk.f32.mxu1 %vm4168_vm0, %v25243_v41  ;;  %v12996_v46 = vrot.slane %v24496_v24, 7  ;;  %v19647_v41 = vld [vmem:[#allocation6 + $0x50] sm:$0xff] }
 0xeb6   : > { %v12997_v0 = vsel %vm645_vm3, %v12994_v58, %v12996_v46 }
 0xeb7   : > { %18321 = vmatmul.mubr.msk.f32.gmra.mrb[144].mxu1 %vm4168_vm0, %v25244_v47  ;;  %v19649_v47 = vld [vmem:[#allocation6 + $0x70] sm:$0xff] }
 0xeb8   : > { %18323 = vmatprep.mubr.msk.f32.mxu1 %vm4168_vm0, %v25245_v49  ;;  %v19651_v49 = vld [vmem:[#allocation6 + $0x90] sm:$0xff] }
 0xebb   : > { %18324 = vmatmul.mubr.msk.f32.gmra.mrb[146].mxu1 %vm4168_vm0, %v25246_v21  ;;  %v19652_v21 = vld [vmem:[#allocation6 + $0xa8] sm:$0xff] }
 0xebc   : > { %18326 = vmatprep.mubr.msk.f32.mxu1 %vm4168_vm0, %v25247_v1  ;;  %v19653_v1 = vld [vmem:[#allocation6 + $0xb0] sm:$0xff] }
 0xebf   : > { %18327 = vmatmul.mubr.msk.f32.gmra.mrb[148].mxu1 %vm4168_vm0, %v25248_v19  ;;  %v19654_v19 = vld [vmem:[#allocation6 + $0xc8] sm:$0xff] }
 0xec0   : > { %18329 = vmatprep.mubr.msk.f32.mxu1 %vm4168_vm0, %v25249_v56  ;;  %v19655_v56 = vld [vmem:[#allocation6 + $0xd0] sm:$0xff] }
 0xec3   : > { %18330 = vmatmul.mubr.msk.f32.gmra.mrb[150].mxu1 %vm4168_vm0, %v25250_v29  ;;  %v19657_v29 = vld [vmem:[#allocation6 + $0xf0] sm:$0xff] }
 0xec4   : > { %18332 = vmatprep.mubr.msk.f32.mxu1 %vm4168_vm0, %v25251_v55  ;;  %v19658_v55 = vld [vmem:[#allocation6 + $0x108] sm:$0xff] }
 0xec7   : > { %18333 = vmatmul.mubr.msk.f32.gmra.mrb[152].mxu1 %vm4168_vm0, %v25252_v57  ;;  %v19660_v57 = vld [vmem:[#allocation6 + $0x128] sm:$0xff] }
 0xec8   : > { %18335 = vmatprep.mubr.msk.f32.mxu1 %vm4168_vm0, %v25253_v40  ;;  %v19661_v40 = vld [vmem:[#allocation6 + $0x130] sm:$0xff] }
 0xecb   : > { %18336 = vmatmul.mubr.msk.f32.gmra.mrb[154].mxu1 %vm4168_vm0, %v25254_v48 }
 0xecc   : > { %18338 = vmatprep.mubr.msk.f32.mxu1 %vm4168_vm0, %v24276_v37  ;;  %v19648_v37 = vld [vmem:[#allocation6 + $0x68] sm:$0xff] }
 0xecf   : > { %18339 = vmatmul.mubr.msk.f32.gmra.mrb[156].mxu1 %vm4168_vm0, %v24281_v3  ;;  %v19650_v3 = vld [vmem:[#allocation6 + $0x88] sm:$0xff] }
 0xed0   : > { %18341 = vmatprep.mubr.msk.f32.mxu1 %vm4168_vm0, %v12995_v11 }
 0xed3   : > { %18342 = vmatmul.mubr.msk.f32.gmra.mrb[158].mxu1 %vm4168_vm0, %v12997_v0 }
 0xed4   : > { %18348 = vmatprep.mubr.msk.f32.mxu1 %vm4168_vm0, %v19646_v18 }
 0xed7   : > { %18349 = vmatmul.mubr.msk.f32.vlgmr.msra.gmra.mrb[128].mxu1 %vm4168_vm0, %v19647_v41 }
 0xed8   : > { %18351 = vmatprep.mubr.msk.f32.mxu1 %vm4168_vm0, %v19648_v37  ;;  %18731 = vmatpush3.bf16.msra.mxu1 %v18728_v7  ;;  %v19656_v7 = vld [vmem:[#allocation6 + $0xe8] sm:$0xff] }
 0xedb   : > { %18352 = vmatmul.mubr.msk.f32.gmra.mrb[130].mxu1 %vm4168_vm0, %v19649_v47 }
 0xedc   : > { %18354 = vmatprep.mubr.msk.f32.mxu1 %vm4168_vm0, %v19650_v3 }
 0xedf   : > { %18355 = vmatmul.mubr.msk.f32.gmra.mrb[132].mxu1 %vm4168_vm0, %v19651_v49 }
 0xee0   : > { %18357 = vmatprep.mubr.msk.f32.mxu1 %vm4168_vm0, %v19652_v21 }
 0xee3   : > { %18358 = vmatmul.mubr.msk.f32.gmra.mrb[134].mxu1 %vm4168_vm0, %v19653_v1 }
 0xee4   : > { %18360 = vmatprep.mubr.msk.f32.mxu1 %vm4168_vm0, %v19654_v19 }
 0xee7   : > { %18361 = vmatmul.mubr.msk.f32.gmra.mrb[136].mxu1 %vm4168_vm0, %v19655_v56 }
 0xee8   : > { %18363 = vmatprep.mubr.msk.f32.mxu1 %vm4168_vm0, %v19656_v7 }
 0xeeb   : > { %18364 = vmatmul.mubr.msk.f32.gmra.mrb[138].mxu1 %vm4168_vm0, %v19657_v29 }
 0xeec   : > { %18366 = vmatprep.mubr.msk.f32.mxu1 %vm4168_vm0, %v19658_v55 }
 0xeef   : > { %18367 = vmatmul.mubr.msk.f32.gmra.mrb[140].mxu1 %vm4168_vm0, %v19659_v17 }
 0xef0   : > { %18369 = vmatprep.mubr.msk.f32.mxu1 %vm4168_vm0, %v19660_v57 }
 0xef3   : > { %18370 = vmatmul.mubr.msk.f32.gmra.mrb[142].mxu1 %vm4168_vm0, %v19661_v40 }
 0xef4   : > { %18372 = vmatprep.mubr.msk.f32.mxu1 %vm4168_vm0, %v23746_v35  ;;  %v25255_v35 = vld [vmem:[#allocation33_spill] sm:$0xff] }
 0xef7   : > { %18373 = vmatmul.mubr.msk.f32.gmra.mrb[144].mxu1 %vm4168_vm0, %v23752_v60  ;;  %v25256_v60 = vld [vmem:[#allocation35_spill] sm:$0xff] }
 0xef8   : > { %18375 = vmatprep.mubr.msk.f32.mxu1 %vm4168_vm0, %v23758_v53  ;;  %v25257_v53 = vld [vmem:[#allocation37_spill] sm:$0xff] }
 0xefb   : > { %18376 = vmatmul.mubr.msk.f32.gmra.mrb[146].mxu1 %vm4168_vm0, %v23764_v10  ;;  %v25258_v10 = vld [vmem:[#allocation41_spill] sm:$0xff] }
 0xefc   : > { %18378 = vmatprep.mubr.msk.f32.mxu1 %vm4168_vm0, %v23770_v28  ;;  %v13527_v28 = vrot.slane %v24489_v13, 1 }
 0xeff   : > { %18379 = vmatmul.mubr.msk.f32.gmra.mrb[148].mxu1 %vm4168_vm0, %v23776_v5  ;;  %v13528_v5 = vrot.slane %v24496_v24, 1 }
 0xf00   : > { %18381 = vmatprep.mubr.msk.f32.mxu1 %vm4168_vm0, %v23782_v12  ;;  %v11052_v12 = vld [vmem:[#allocation6 + $0x238] sm:$0xff] }
 0xf03   : > { %18382 = vmatmul.mubr.msk.f32.gmra.mrb[150].mxu1 %vm4168_vm0, %v23788_v27  ;;  %v13530_v27 = vrot.slane %v11052_v12, 1 }
 0xf04   : > { %18384 = vmatprep.mubr.msk.f32.mxu1 %vm4168_vm0, %v23794_v15  ;;  %v13529_v15 = vsel %vm1330_vm2, %v13527_v28, %v13528_v5 }
 0xf07   : > { %18385 = vmatmul.mubr.msk.f32.gmra.mrb[152].mxu1 %vm4168_vm0, %v23799_v31  ;;  %v13531_v31 = vsel %vm1330_vm2, %v13528_v5, %v13530_v27 }
 0xf08   : > { %18387 = vmatprep.mubr.msk.f32.mxu1 %vm4168_vm0, %v23804_v23  ;;  %v24626_v23 = vld [vmem:[%s24744_s10] ss:$0 sm:$0xff] }
 0xf0b   : > { %18388 = vmatmul.mubr.msk.f32.gmra.mrb[154].mxu1 %vm4168_vm0, %v23809_v4 }
 0xf0c   : > { %18390 = vmatprep.mubr.msk.f32.mxu1 %vm4168_vm0, %v24263_v34 }
 0xf0f   : > { %18391 = vmatmul.mubr.msk.f32.gmra.mrb[156].mxu1 %vm4168_vm0, %v24268_v14 }
 0xf10   : > { %18393 = vmatprep.mubr.msk.f32.mxu1 %vm4168_vm0, %v24489_v13 }
 0xf13   : > { %18394 = vmatmul.mubr.msk.f32.gmra.mrb[158].mxu1 %vm4168_vm0, %v24496_v24 }
 0xf14   : > { %18400 = vmatprep.mubr.msk.f32.mxu1 %vm4168_vm0, %v24037_v33 }
 0xf17   : > { %18401 = vmatmul.mubr.msk.f32.vlgmr.msra.gmra.mrb[128].mxu1 %vm4168_vm0, %v25221_v63 }
 0xf18   : > { %18403 = vmatprep.mubr.msk.f32.mxu1 %vm4168_vm0, %v25222_v51 }
 0xf1b   : > { %18404 = vmatmul.mubr.msk.f32.gmra.mrb[130].mxu1 %vm4168_vm0, %v25223_v32 }
 0xf1c   : > { %18406 = vmatprep.mubr.msk.f32.mxu1 %vm4168_vm0, %v25224_v26 }
 0xf1f   : > { %18407 = vmatmul.mubr.msk.f32.gmra.mrb[132].mxu1 %vm4168_vm0, %v25225_v62 }
 0xf20   : > { %18409 = vmatprep.mubr.msk.f32.mxu1 %vm4168_vm0, %v25226_v6 }
 0xf23   : > { %18410 = vmatmul.mubr.msk.f32.gmra.mrb[134].mxu1 %vm4168_vm0, %v25227_v52 }
 0xf24   : > { %18412 = vmatprep.mubr.msk.f32.mxu1 %vm4168_vm0, %v25228_v20 }
 0xf27   : > { %18413 = vmatmul.mubr.msk.f32.gmra.mrb[136].mxu1 %vm4168_vm0, %v25229_v9 }
 0xf28   : > { %18415 = vmatprep.mubr.msk.f32.mxu1 %vm4168_vm0, %v25230_v25 }
 0xf2b   : > { %18416 = vmatmul.mubr.msk.f32.gmra.mrb[138].mxu1 %vm4168_vm0, %v25231_v45 }
 0xf2c   : > { %18418 = vmatprep.mubr.msk.f32.mxu1 %vm4168_vm0, %v25232_v50 }
 0xf2f   : > { %18419 = vmatmul.mubr.msk.f32.gmra.mrb[140].mxu1 %vm4168_vm0, %v25233_v43 }
 0xf30   : > { %18421 = vmatprep.mubr.msk.f32.mxu1 %vm4168_vm0, %v25234_v30 }
 0xf33   : > { %18422 = vmatmul.mubr.msk.f32.gmra.mrb[142].mxu1 %vm4168_vm0, %v25235_v44 }
 0xf34   : > { %18424 = vmatprep.mubr.msk.f32.mxu1 %vm4168_vm0, %v25236_v22 }
 0xf37   : > { %18425 = vmatmul.mubr.msk.f32.gmra.mrb[144].mxu1 %vm4168_vm0, %v25237_v2 }
 0xf38   : > { %18427 = vmatprep.mubr.msk.f32.mxu1 %vm4168_vm0, %v25238_v42 }
 0xf3b   : > { %18428 = vmatmul.mubr.msk.f32.gmra.mrb[146].mxu1 %vm4168_vm0, %v25239_v16 }
 0xf3c   : > { %18430 = vmatprep.mubr.msk.f32.mxu1 %vm4168_vm0, %v25240_v36 }
 0xf3f   : > { %18431 = vmatmul.mubr.msk.f32.gmra.mrb[148].mxu1 %vm4168_vm0, %v25255_v35 }
 0xf40   : > { %18433 = vmatprep.mubr.msk.f32.mxu1 %vm4168_vm0, %v25242_v38 }
 0xf43   : > { %18434 = vmatmul.mubr.msk.f32.gmra.mrb[150].mxu1 %vm4168_vm0, %v25256_v60 }
 0xf44   : > { %18436 = vmatprep.mubr.msk.f32.mxu1 %vm4168_vm0, %v25257_v53 }
 0xf47   : > { %18437 = vmatmul.mubr.msk.f32.gmra.mrb[152].mxu1 %vm4168_vm0, %v25258_v10 }
 0xf48   : > { %18439 = vmatprep.mubr.msk.f32.mxu1 %vm4168_vm0, %v24193_v59 }
 0xf4b   : > { %18440 = vmatmul.mubr.msk.f32.gmra.mrb[154].mxu1 %vm4168_vm0, %v24198_v61 }
 0xf4c   : > { %18442 = vmatprep.mubr.msk.f32.mxu1 %vm4168_vm0, %v24424_v8 }
 0xf4f   : > { %18443 = vmatmul.mubr.msk.f32.gmra.mrb[156].mxu1 %vm4168_vm0, %v24429_v39 }
 0xf50   : > { %18445 = vmatprep.mubr.msk.f32.mxu1 %vm4168_vm0, %v13529_v15 }
 0xf53   : > { %18446 = vmatmul.mubr.msk.f32.gmra.mrb[158].mxu1 %vm4168_vm0, %v13531_v31 }
 0xfea   : > { %v18402_v4 = vpop.f32.mrb[128].mxu1 }
 0xfeb   : > { %v13804_v33 = vadd.f32 %v18402_v4, %v24626_v23  ;;  %v13605_v8 = vpop.f32.mrb[129].mxu1 }
 0xfec   : > { %v13803_v39 = vadd.f32 %v24626_v23, %v13605_v8 }
 0xfed   : > { %v13836_v59 = vmax.f32 %v13804_v33, 0.0 }
 0xfee   : > { %v13835_v61 = vmax.f32 %v13803_v39, 0.0  ;;  %v18405_v14 = vpop.f32.mrb[130].mxu1 }
 0xfef   : > { %13868 = vst.msk [vmem:[%s24634_s15 + $0x8] sm:$0xff] %vm419_vm1, %v13836_v59  ;;  %v13806_v34 = vadd.f32 %v18405_v14, %v24626_v23  ;;  %v13615_v63 = vpop.f32.mrb[131].mxu1 }
 0xff0   : > { %13867 = vst.msk [vmem:[%s24634_s15] sm:$0xff] %vm419_vm1, %v13835_v61  ;;  %v13805_v51 = vadd.f32 %v24626_v23, %v13615_v63 }
 0xff1   : > { %v13838_v32 = vmax.f32 %v13806_v34, 0.0 }
 0xff2   : > { %v13837_v26 = vmax.f32 %v13805_v51, 0.0  ;;  %v18408_v62 = vpop.f32.mrb[132].mxu1 }
 0xff3   : > { %13870 = vst.msk [vmem:[%s24634_s15 + $0x18] sm:$0xff] %vm419_vm1, %v13838_v32  ;;  %v13808_v6 = vadd.f32 %v18408_v62, %v24626_v23  ;;  %v13625_v52 = vpop.f32.mrb[133].mxu1 }
 0xff4   : > { %13869 = vst.msk [vmem:[%s24634_s15 + $0x10] sm:$0xff] %vm419_vm1, %v13837_v26  ;;  %v13807_v20 = vadd.f32 %v24626_v23, %v13625_v52 }
 0xff5   : > { %v13840_v9 = vmax.f32 %v13808_v6, 0.0 }
 0xff6   : > { %v13839_v25 = vmax.f32 %v13807_v20, 0.0  ;;  %v18411_v45 = vpop.f32.mrb[134].mxu1 }
 0xff7   : > { %13872 = vst.msk [vmem:[%s24634_s15 + $0x28] sm:$0xff] %vm419_vm1, %v13840_v9  ;;  %v13810_v50 = vadd.f32 %v18411_v45, %v24626_v23  ;;  %v13635_v43 = vpop.f32.mrb[135].mxu1 }
 0xff8   : > { %13871 = vst.msk [vmem:[%s24634_s15 + $0x20] sm:$0xff] %vm419_vm1, %v13839_v25  ;;  %v13809_v30 = vadd.f32 %v24626_v23, %v13635_v43 }
 0xff9   : > { %v13842_v44 = vmax.f32 %v13810_v50, 0.0 }
 0xffa   : > { %v13841_v22 = vmax.f32 %v13809_v30, 0.0  ;;  %v18414_v2 = vpop.f32.mrb[136].mxu1 }
 0xffb   : > { %13874 = vst.msk [vmem:[%s24634_s15 + $0x38] sm:$0xff] %vm419_vm1, %v13842_v44  ;;  %v13812_v42 = vadd.f32 %v18414_v2, %v24626_v23  ;;  %v13645_v16 = vpop.f32.mrb[137].mxu1 }
 0xffc   : > { %13873 = vst.msk [vmem:[%s24634_s15 + $0x30] sm:$0xff] %vm419_vm1, %v13841_v22  ;;  %v13811_v36 = vadd.f32 %v24626_v23, %v13645_v16 }
 0xffd   : > { %v13844_v38 = vmax.f32 %v13812_v42, 0.0 }
 0xffe   : > { %v13843_v13 = vmax.f32 %v13811_v36, 0.0  ;;  %v18417_v54 = vpop.f32.mrb[138].mxu1 }
 0xfff   : > { %13876 = vst.msk [vmem:[%s24634_s15 + $0x48] sm:$0xff] %vm419_vm1, %v13844_v38  ;;  %v13814_v58 = vadd.f32 %v18417_v54, %v24626_v23  ;;  %v13655_v24 = vpop.f32.mrb[139].mxu1 }
0x1000   : > { %13875 = vst.msk [vmem:[%s24634_s15 + $0x40] sm:$0xff] %vm419_vm1, %v13843_v13  ;;  %v13813_v48 = vadd.f32 %v24626_v23, %v13655_v24 }
0x1001   : > { %v13846_v46 = vmax.f32 %v13814_v58, 0.0 }
0x1002   : > { %v13845_v11 = vmax.f32 %v13813_v48, 0.0  ;;  %v18420_v0 = vpop.f32.mrb[140].mxu1 }
0x1003   : > { %13878 = vst.msk [vmem:[%s24634_s15 + $0x58] sm:$0xff] %vm419_vm1, %v13846_v46  ;;  %v13816_v18 = vadd.f32 %v18420_v0, %v24626_v23  ;;  %v13665_v41 = vpop.f32.mrb[141].mxu1 }
0x1004   : > { %13877 = vst.msk [vmem:[%s24634_s15 + $0x50] sm:$0xff] %vm419_vm1, %v13845_v11  ;;  %v13815_v37 = vadd.f32 %v24626_v23, %v13665_v41 }
0x1005   : > { %v13848_v47 = vmax.f32 %v13816_v18, 0.0 }
0x1006   : > { %v13847_v3 = vmax.f32 %v13815_v37, 0.0  ;;  %v18423_v49 = vpop.f32.mrb[142].mxu1 }
0x1007   : > { %13880 = vst.msk [vmem:[%s24634_s15 + $0x68] sm:$0xff] %vm419_vm1, %v13848_v47  ;;  %v13818_v21 = vadd.f32 %v18423_v49, %v24626_v23  ;;  %v13675_v1 = vpop.f32.mrb[143].mxu1 }
0x1008   : > { %13879 = vst.msk [vmem:[%s24634_s15 + $0x60] sm:$0xff] %vm419_vm1, %v13847_v3  ;;  %v13817_v19 = vadd.f32 %v24626_v23, %v13675_v1 }
0x1009   : > { %v13850_v56 = vmax.f32 %v13818_v21, 0.0 }
0x100a   : > { %v13849_v7 = vmax.f32 %v13817_v19, 0.0  ;;  %v18426_v29 = vpop.f32.mrb[144].mxu1 }
0x100b   : > { %13882 = vst.msk [vmem:[%s24634_s15 + $0x78] sm:$0xff] %vm419_vm1, %v13850_v56  ;;  %v13820_v55 = vadd.f32 %v18426_v29, %v24626_v23  ;;  %v13685_v17 = vpop.f32.mrb[145].mxu1 }
0x100c   : > { %13881 = vst.msk [vmem:[%s24634_s15 + $0x70] sm:$0xff] %vm419_vm1, %v13849_v7  ;;  %v13819_v57 = vadd.f32 %v24626_v23, %v13685_v17 }
0x100d   : > { %v13852_v40 = vmax.f32 %v13820_v55, 0.0 }
0x100e   : > { %v13851_v35 = vmax.f32 %v13819_v57, 0.0  ;;  %v18429_v60 = vpop.f32.mrb[146].mxu1 }
0x100f   : > { %13884 = vst.msk [vmem:[%s24634_s15 + $0x88] sm:$0xff] %vm419_vm1, %v13852_v40  ;;  %v13822_v53 = vadd.f32 %v18429_v60, %v24626_v23  ;;  %v13695_v10 = vpop.f32.mrb[147].mxu1 }
0x1010   : > { %13883 = vst.msk [vmem:[%s24634_s15 + $0x80] sm:$0xff] %vm419_vm1, %v13851_v35  ;;  %v13821_v28 = vadd.f32 %v24626_v23, %v13695_v10 }
0x1011   : > { %v13854_v5 = vmax.f32 %v13822_v53, 0.0 }
0x1012   : > { %v13853_v12 = vmax.f32 %v13821_v28, 0.0  ;;  %v18432_v27 = vpop.f32.mrb[148].mxu1 }
0x1013   : > { %13886 = vst.msk [vmem:[%s24634_s15 + $0x98] sm:$0xff] %vm419_vm1, %v13854_v5  ;;  %v13824_v15 = vadd.f32 %v18432_v27, %v24626_v23  ;;  %v13705_v31 = vpop.f32.mrb[149].mxu1 }
0x1014   : > { %13885 = vst.msk [vmem:[%s24634_s15 + $0x90] sm:$0xff] %vm419_vm1, %v13853_v12  ;;  %v13823_v4 = vadd.f32 %v24626_v23, %v13705_v31 }
0x1015   : > { %v13856_v33 = vmax.f32 %v13824_v15, 0.0 }
0x1016   : > { %v13855_v8 = vmax.f32 %v13823_v4, 0.0  ;;  %v18435_v39 = vpop.f32.mrb[150].mxu1 }
0x1017   : > { %13888 = vst.msk [vmem:[%s24634_s15 + $0xa8] sm:$0xff] %vm419_vm1, %v13856_v33  ;;  %v13826_v59 = vadd.f32 %v18435_v39, %v24626_v23  ;;  %v13715_v61 = vpop.f32.mrb[151].mxu1 }
0x1018   : > { %13887 = vst.msk [vmem:[%s24634_s15 + $0xa0] sm:$0xff] %vm419_vm1, %v13855_v8  ;;  %v13825_v14 = vadd.f32 %v24626_v23, %v13715_v61 }
0x1019   : > { %v13858_v34 = vmax.f32 %v13826_v59, 0.0 }
0x101a   : > { %v13857_v63 = vmax.f32 %v13825_v14, 0.0  ;;  %v18438_v51 = vpop.f32.mrb[152].mxu1 }
0x101b   : > { %13890 = vst.msk [vmem:[%s24634_s15 + $0xb8] sm:$0xff] %vm419_vm1, %v13858_v34  ;;  %v13828_v32 = vadd.f32 %v18438_v51, %v24626_v23  ;;  %v13725_v26 = vpop.f32.mrb[153].mxu1 }
0x101c   : > { %13889 = vst.msk [vmem:[%s24634_s15 + $0xb0] sm:$0xff] %vm419_vm1, %v13857_v63  ;;  %v13827_v62 = vadd.f32 %v24626_v23, %v13725_v26 }
0x101d   : > { %v13860_v6 = vmax.f32 %v13828_v32, 0.0 }
0x101e   : > { %v13859_v52 = vmax.f32 %v13827_v62, 0.0  ;;  %v18441_v20 = vpop.f32.mrb[154].mxu1 }
0x101f   : > { %13892 = vst.msk [vmem:[%s24634_s15 + $0xc8] sm:$0xff] %vm419_vm1, %v13860_v6  ;;  %v13830_v9 = vadd.f32 %v18441_v20, %v24626_v23  ;;  %v13735_v25 = vpop.f32.mrb[155].mxu1 }
0x1020   : > { %13891 = vst.msk [vmem:[%s24634_s15 + $0xc0] sm:$0xff] %vm419_vm1, %v13859_v52  ;;  %v13829_v45 = vadd.f32 %v24626_v23, %v13735_v25 }
0x1021   : > { %v13862_v50 = vmax.f32 %v13830_v9, 0.0 }
0x1022   : > { %v13861_v43 = vmax.f32 %v13829_v45, 0.0  ;;  %v18444_v30 = vpop.f32.mrb[156].mxu1 }
0x1023   : > { %13894 = vst.msk [vmem:[%s24634_s15 + $0xd8] sm:$0xff] %vm419_vm1, %v13862_v50  ;;  %v13832_v44 = vadd.f32 %v18444_v30, %v24626_v23  ;;  %v13745_v22 = vpop.f32.mrb[157].mxu1 }
0x1024   : > { %13893 = vst.msk [vmem:[%s24634_s15 + $0xd0] sm:$0xff] %vm419_vm1, %v13861_v43  ;;  %v13831_v2 = vadd.f32 %v24626_v23, %v13745_v22 }
0x1025   : > { %v13864_v42 = vmax.f32 %v13832_v44, 0.0 }
0x1026   : > { %v13863_v16 = vmax.f32 %v13831_v2, 0.0  ;;  %v18447_v36 = vpop.f32.mrb[158].mxu1 }
0x1027   : > { %13896 = vst.msk [vmem:[%s24634_s15 + $0xe8] sm:$0xff] %vm419_vm1, %v13864_v42  ;;  %v13834_v38 = vadd.f32 %v18447_v36, %v24626_v23  ;;  %v13755_v13 = vpop.f32.mrb[159].mxu1 }
0x1028   : > { %13895 = vst.msk [vmem:[%s24634_s15 + $0xe0] sm:$0xff] %vm419_vm1, %v13863_v16  ;;  %v13833_v54 = vadd.f32 %v24626_v23, %v13755_v13 }
0x1029   : > { %v13866_v58 = vmax.f32 %v13834_v38, 0.0 }
0x102a   : > { %v13865_v24 = vmax.f32 %v13833_v54, 0.0 }
0x102b   : > { %13898 = vst.msk [vmem:[%s24634_s15 + $0xf8] sm:$0xff] %vm419_vm1, %v13866_v58 }
0x102c   : > { %13897 = vst.msk [vmem:[%s24634_s15 + $0xf0] sm:$0xff] %vm419_vm1, %v13865_v24 }
0x102d PF: > { %s21_s17 = sadd.s32 1, %s19668_s17  }
0x102e   : > { %p18_p4 = scmp.ge.s32.totalorder %s21_s17, 4  }
0x1030   :  { %20 = sbr.rel (!%p18_p4) target bundleno = 1 (0x1), region = 139 }

</bundles_post_ra>
